<compile_context>
chip_gen: v6e
topology: v6e:2x2x1
jax: 0.10.0
libtpu: 0.0.40
codegen_flags: <defaults>
</compile_context>

<pallas_src>
import numpy as np
import jax
import jax.numpy as jnp
from jax.experimental import pallas as pl
from jax.experimental.pallas import tpu as pltpu

# ---------------------------------------------------------------------------
# Config consistent with the shape algebra of HuPRNet.forward
# ---------------------------------------------------------------------------
BATCH = 2
NUM_GROUP_FRAMES = 2       # f
NUM_FRAMES = 4             # cfg.DATASET.num_frames
DOPPLER = NUM_FRAMES       # dopplerSize == numFrames (so .view() gives 2 ch)
RANGE = 16
AZIMUTH = 16
ELEV = 4
NUM_FILTERS = 8
HEATMAP = 16
NUM_JOINTS = 8
HIDDEN = 32
PRELU_ALPHA = 0.25
LN_EPS = 1e-5

assert BATCH == 2 and NUM_GROUP_FRAMES == 2 and DOPPLER == NUM_FRAMES
assert RANGE == AZIMUTH == HEATMAP == 16 and ELEV == 4

# Padded-flat spatial layouts: 16x16 -> 18x18 (=324) padded to 384 lanes,
# 8x8 -> 10x10 (=100) padded to 128 lanes.  Per-branch activations live as
# (channel rows, BATCH * Lpad) values with zero border rings and zero tails.
W18, LP16 = 18, 384
W10, LP8 = 10, 128
LANES16 = BATCH * LP16                       # 768
LANES8 = BATCH * LP8                         # 256
DEC_LANES = BATCH * HEATMAP * HEATMAP        # 512
DEC_CH_PER_BRANCH = 5 * NUM_FILTERS          # 8 + 16 + 16 = 40
CONV_CH = NUM_GROUP_FRAMES * DOPPLER * 2     # 16 channel rows per batch sample

_OFF18 = tuple((dy - 1) * W18 + (dx - 1) for dy in range(3) for dx in range(3))
_OFF10 = tuple((dy - 1) * W10 + (dx - 1) for dy in range(3) for dx in range(3))


def _prelu(x):
    return jnp.where(x > 0, x, PRELU_ALPHA * x)


# ---------------------------------------------------------------------------
# Kernel 1: LayerNorm([range, azimuth]) + mean over elevation + placement into
# the padded-flat conv layout, both radar branches in one launch.
# ---------------------------------------------------------------------------
def _ln_embed_kernel(h_ref, v_ref, e_ref, o_ref):
    # h_ref / v_ref: (B*G*D*C, ELEV, R*A) with rows ordered (b, g, d, c).
    x = jnp.concatenate([h_ref[...], v_ref[...]], axis=0)        # (64, 4, 256)
    mu = jnp.mean(x, axis=-1, keepdims=True)
    xc = x - mu
    var = jnp.mean(xc * xc, axis=-1, keepdims=True)
    y = jnp.mean(xc * jax.lax.rsqrt(var + LN_EPS), axis=1)       # (64, 256)
    # Place each 16x16 map into the 18x18-flat-384 layout (zero borders/tail).
    z = jnp.dot(y, e_ref[...], preferred_element_type=jnp.float32)   # (64, 384)
    for br in range(2):
        for bb in range(BATCH):
            row0 = br * BATCH * CONV_CH + bb * CONV_CH
            o_ref[br, :, bb * LP16:(bb + 1) * LP16] = z[row0:row0 + CONV_CH]


def layernorm_embed(xh, xv, embed):
    return pl.pallas_call(
        _ln_embed_kernel,
        out_shape=jax.ShapeDtypeStruct((2, CONV_CH, LANES16), jnp.float32),
    )(xh, xv, embed)


# ---------------------------------------------------------------------------
# Kernel 2: fused conv stack (MNet + Encoder3D) + decoder prologue.
# grid = (branch,), "parallel" -> one TensorCore per radar branch on v7x.
# ---------------------------------------------------------------------------
def _conv_mm(x, w_ref, b_ref, offsets):
    """One conv layer as a single matmul: 9 lane-rolled copies of the
    padded-flat activation -> (9*C, L) im2col -> bf16 MXU matmul -> f32 bias."""
    l = x.shape[-1]
    pieces = [x if off == 0 else pltpu.roll(x, (-off) % l, axis=1)
              for off in offsets]
    im2col = jnp.concatenate(pieces, axis=0).astype(jnp.bfloat16)
    y = jnp.dot(w_ref[...], im2col, preferred_element_type=jnp.float32)
    return y + b_ref[...]


def _encoder_kernel(x_ref, w0_ref, b0_ref, w1_ref, b1_ref, w2_ref, b2_ref,
                    w3_ref, b3_ref, m18_ref, s2_ref, e16_ref, u2_ref, u4_ref,
                    out_ref):
    nf = NUM_FILTERS
    m18 = m18_ref[...]                                            # (1, 768)
    x0 = x_ref[...]                                               # (16, 768)

    # TODO(synk): MNet internals not in the provided source; modeled as
    # Conv3d(2 -> nf, (numFrames,3,3), pad (0,1,1)) + ReLU (frame axis folded
    # into the weight matrix, group-frame axis block-diagonal).
    y0 = jnp.maximum(_conv_mm(x0, w0_ref, b0_ref, _OFF18), 0.0) * m18   # (16,768)

    # TODO(synk): Encoder3D internals not provided; modeled as three
    # Conv3d(3x3x3)+PReLU stages at strides 1, (1,2,2), (1,2,2).
    y1 = _prelu(_conv_mm(y0, w1_ref, b1_ref, _OFF18)) * m18       # (16, 768)  l1
    y2 = _prelu(_conv_mm(y1, w2_ref, b2_ref, _OFF18))             # (32, 768)  l2 (stride-1 form)
    x3 = jnp.dot(y2.astype(jnp.bfloat16), s2_ref[...],
                 preferred_element_type=jnp.float32)              # (32, 256)  strided crop
    y3 = _prelu(_conv_mm(x3, w3_ref, b3_ref, _OFF10))             # (32, 256)  l3 (stride-1 form)

    # Decoder prologue: mean over the temporal (group-frame) axis, extract the
    # valid pixels / nearest-neighbour upsample to 16x16 dense lanes, concat.
    l1 = 0.5 * (y1[0:nf] + y1[nf:2 * nf])                         # (8, 768)
    l2 = 0.5 * (y2[0:2 * nf] + y2[2 * nf:4 * nf])                 # (16, 768)
    l3 = 0.5 * (y3[0:2 * nf] + y3[2 * nf:4 * nf])                 # (16, 256)
    d1 = jnp.dot(l1.astype(jnp.bfloat16), e16_ref[...],
                 preferred_element_type=jnp.float32)              # (8, 512)
    d2 = jnp.dot(l2.astype(jnp.bfloat16), u2_ref[...],
                 preferred_element_type=jnp.float32)              # (16, 512)
    d3 = jnp.dot(l3.astype(jnp.bfloat16), u4_ref[...],
                 preferred_element_type=jnp.float32)              # (16, 512)
    out_ref[0:nf, :] = d1
    out_ref[nf:3 * nf, :] = d2
    out_ref[3 * nf:5 * nf, :] = d3


def _branch_spec(a):   # per-branch stacked array (leading dim 2)
    return pl.BlockSpec((None, a.shape[1], a.shape[2]), lambda s: (s, 0, 0))


def _shared_spec(a):   # branch-shared 2-D constant
    return pl.BlockSpec((a.shape[0], a.shape[1]), lambda s: (0, 0))


def encoder_stack(xln, p):
    args = (xln, p["w0"], p["b0"], p["w1"], p["b1"], p["w2"], p["b2"],
            p["w3"], p["b3"], p["mask18"], p["down2"], p["ext16"],
            p["up2"], p["up4"])
    in_specs = ([_branch_spec(a) for a in args[:9]] +
                [_shared_spec(a) for a in args[9:]])
    return pl.pallas_call(
        _encoder_kernel,
        out_shape=jax.ShapeDtypeStruct((2, DEC_CH_PER_BRANCH, DEC_LANES),
                                       jnp.float32),
        grid=(2,),
        in_specs=in_specs,
        out_specs=pl.BlockSpec((None, DEC_CH_PER_BRANCH, DEC_LANES),
                               lambda s: (s, 0, 0)),
        compiler_params=pltpu.CompilerParams(
            dimension_semantics=("parallel",)),
    )(*args)


# ---------------------------------------------------------------------------
# Kernel 3: fused decoder head — fc1 (PReLU) + fc2 + GCN + both sigmoids.
# ---------------------------------------------------------------------------
def _decoder_kernel(x_ref, w1_ref, b1_ref, w2_ref, b2_ref, adj_ref,
                    heat_ref, gcn_ref):
    x = x_ref[...].astype(jnp.bfloat16)                           # (80, 512)
    h = jnp.dot(w1_ref[...], x, preferred_element_type=jnp.float32) + b1_ref[...]
    h = _prelu(h)
    logits = jnp.dot(w2_ref[...], h.astype(jnp.bfloat16),
                     preferred_element_type=jnp.float32) + b2_ref[...]
    heat_ref[...] = jax.nn.sigmoid(logits)
    g = jnp.dot(adj_ref[...], logits, preferred_element_type=jnp.float32)
    gcn_ref[...] = jax.nn.sigmoid(g)


def decoder_fused(cat, p):
    n = cat.shape[1]
    return pl.pallas_call(
        _decoder_kernel,
        out_shape=(jax.ShapeDtypeStruct((NUM_JOINTS, n), jnp.float32),
                   jax.ShapeDtypeStruct((NUM_JOINTS, n), jnp.float32)),
    )(cat, p["dec_w1"], p["dec_b1"], p["dec_w2"], p["dec_b2"], p["gcn_adj"])


# ---------------------------------------------------------------------------
# Host-side constant / weight preparation (runs once at init).
# ---------------------------------------------------------------------------
def _make_consts():
    def flat18(y, x): return (y + 1) * W18 + (x + 1)
    def flat10(y, x): return (y + 1) * W10 + (x + 1)

    embed = np.zeros((RANGE * AZIMUTH, LP16), np.float32)
    for y in range(RANGE):
        for x in range(AZIMUTH):
            embed[y * AZIMUTH + x, flat18(y, x)] = 1.0

    mask = np.zeros((1, LANES16), np.float32)
    for bb in range(BATCH):
        for y in range(RANGE):
            for x in range(AZIMUTH):
                mask[0, bb * LP16 + flat18(y, x)] = 1.0

    down2 = np.zeros((LP16, LP8), np.float32)      # 18x18-flat -> 10x10-flat
    for i in range(8):
        for j in range(8):
            down2[flat18(2 * i, 2 * j), flat10(i, j)] = 1.0

    ext16 = np.zeros((LP16, HEATMAP * HEATMAP), np.float32)
    up2 = np.zeros((LP16, HEATMAP * HEATMAP), np.float32)
    up4 = np.zeros((LP8, HEATMAP * HEATMAP), np.float32)
    for y in range(HEATMAP):
        for x in range(HEATMAP):
            t = y * HEATMAP + x
            ext16[flat18(y, x), t] = 1.0
            up2[flat18(2 * (y // 2), 2 * (x // 2)), t] = 1.0
            up4[flat10(2 * (y // 4), 2 * (x // 4)), t] = 1.0

    def bdiag(m):
        a, b = m.shape
        out = np.zeros((BATCH * a, BATCH * b), m.dtype)
        for i in range(BATCH):
            out[i * a:(i + 1) * a, i * b:(i + 1) * b] = m
        return out

    return {
        "embed": jnp.asarray(embed),                             # (256, 384)
        "mask18": jnp.asarray(mask),                             # (1, 768)
        "down2": jnp.asarray(bdiag(down2), dtype=jnp.bfloat16),  # (768, 256)
        "ext16": jnp.asarray(bdiag(ext16), dtype=jnp.bfloat16),  # (768, 512)
        "up2": jnp.asarray(bdiag(up2), dtype=jnp.bfloat16),      # (768, 512)
        "up4": jnp.asarray(bdiag(up4), dtype=jnp.bfloat16),      # (256, 512)
    }


def _init_conv_stack(key, s, o, c, kd, kh, kw, scale=0.1):
    kwk, kbk = jax.random.split(key)
    w = scale * jax.random.normal(kwk, (s, o, c, kd, kh, kw), jnp.float32)
    b = scale * jax.random.normal(kbk, (s, o), jnp.float32)
    return w, b


def _fold_mnet_weight(w):
    # w: (S, O, CH=2, FR=numFrames, 3, 3).  Frame axis fully contracted
    # (kd == numFrames, no depth pad); group-frame axis made block-diagonal.
    s, o, ch, fr, kh, kw = w.shape
    ce = ch * fr
    wm = jnp.transpose(w, (0, 1, 4, 5, 2, 3)).reshape(s, o, kh * kw, ce)
    g = NUM_GROUP_FRAMES
    w0 = jnp.zeros((s, g * o, kh * kw, g * ce), w.dtype)
    for gi in range(g):
        w0 = w0.at[:, gi * o:(gi + 1) * o, :, gi * ce:(gi + 1) * ce].set(wm)
    return w0.reshape(s, g * o, kh * kw * g * ce)


def _fold_enc_weight(w):
    # w: (S, O, C, 3, 3, 3) with D=2, pad_d=1 -> rows (zo, o), cols (dy,dx,zin,c).
    s, o, c, kd, kh, kw = w.shape
    rows = []
    for zo in range(NUM_GROUP_FRAMES):
        blks = []
        for zin in range(NUM_GROUP_FRAMES):
            dz = zin - zo + 1
            blks.append(jnp.transpose(w[:, :, :, dz, :, :], (0, 1, 3, 4, 2)))
        blk = jnp.stack(blks, axis=4)                  # (S, O, KH, KW, D, C)
        rows.append(blk.reshape(s, o, kh * kw * NUM_GROUP_FRAMES * c))
    return jnp.concatenate(rows, axis=1)


def _tile_bias(b):
    return jnp.concatenate([b] * NUM_GROUP_FRAMES, axis=1)[..., None]


def init_params(key):
    ks = jax.random.split(key, 6)
    p = dict(_make_consts())
    # TODO(synk): MNet / Encoder3D internals are synthetic (not in the source).
    w, b = _init_conv_stack(ks[0], 2, NUM_FILTERS, 2, NUM_FRAMES, 3, 3)
    p["w0"], p["b0"] = _fold_mnet_weight(w).astype(jnp.bfloat16), _tile_bias(b)
    w, b = _init_conv_stack(ks[1], 2, NUM_FILTERS, NUM_FILTERS, 3, 3, 3)
    p["w1"], p["b1"] = _fold_enc_weight(w).astype(jnp.bfloat16), _tile_bias(b)
    w, b = _init_conv_stack(ks[2], 2, 2 * NUM_FILTERS, NUM_FILTERS, 3, 3, 3)
    p["w2"], p["b2"] = _fold_enc_weight(w).astype(jnp.bfloat16), _tile_bias(b)
    w, b = _init_conv_stack(ks[3], 2, 2 * NUM_FILTERS, 2 * NUM_FILTERS, 3, 3, 3)
    p["w3"], p["b3"] = _fold_enc_weight(w).astype(jnp.bfloat16), _tile_bias(b)
    # TODO(synk): MultiScaleCrossSelfAttentionPRGCN not provided; modeled as
    # multi-scale fusion (1x1 convs) + a graph-conv refinement head.
    cat_ch = 2 * DEC_CH_PER_BRANCH
    k1w, k1b = jax.random.split(ks[4])
    p["dec_w1"] = (0.1 * jax.random.normal(k1w, (HIDDEN, cat_ch),
                                           jnp.float32)).astype(jnp.bfloat16)
    p["dec_b1"] = 0.1 * jax.random.normal(k1b, (HIDDEN, 1), jnp.float32)
    k2w, k2b = jax.random.split(ks[5])
    p["dec_w2"] = (0.1 * jax.random.normal(k2w, (NUM_JOINTS, HIDDEN),
                                           jnp.float32)).astype(jnp.bfloat16)
    p["dec_b2"] = 0.1 * jax.random.normal(k2b, (NUM_JOINTS, 1), jnp.float32)
    adj = jnp.eye(NUM_JOINTS) + jnp.eye(NUM_JOINTS, k=1) + jnp.eye(NUM_JOINTS, k=-1)
    dinv = 1.0 / jnp.sqrt(jnp.sum(adj, axis=1))
    p["gcn_adj"] = (adj * dinv[:, None] * dinv[None, :]).astype(jnp.float32)
    return p


# ---------------------------------------------------------------------------
# HuPRNet forward
# ---------------------------------------------------------------------------
def hupr_forward(params, vrdae_hori, vrdae_vert):
    # TODO(synk): RadarPreprocessor branch (mmwave_cfg is not None) omitted —
    # this mirrors the reference forward with mmwave_cfg=None.
    b, f, c, d, w, h, a = vrdae_hori.shape

    def prep(x):
        # 'b f c d w h a' -> rows (b, f, d, c) with the LayerNorm axes (w*h)
        # dense on lanes; the (d, c) row order reproduces the .view() channel
        # fold the PyTorch code performs before MNet.
        xt = jnp.transpose(x, (0, 1, 3, 2, 6, 4, 5))
        return xt.reshape(b * f * d * c, a, w * h).astype(jnp.float32)

    xln = layernorm_embed(prep(vrdae_hori), prep(vrdae_vert), params["embed"])
    slab = encoder_stack(xln, params)                        # (2, 40, 512)
    cat = slab.reshape(2 * DEC_CH_PER_BRANCH, DEC_LANES)     # (80, 512)
    heat, gcn = decoder_fused(cat, params)                   # (8, 512) x2
    heat = heat.reshape(NUM_JOINTS, BATCH, HEATMAP, HEATMAP).transpose(1, 0, 2, 3)
    gcn = gcn.reshape(NUM_JOINTS, BATCH, HEATMAP, HEATMAP).transpose(1, 0, 2, 3)
    heatmap = heat[:, :, None]                               # sigmoid().unsqueeze(2)
    return heatmap, gcn


if __name__ == "__main__":
    key = jax.random.PRNGKey(0)
    k1, k2 = jax.random.split(key)
    shape = (BATCH, NUM_GROUP_FRAMES, 2, DOPPLER, RANGE, AZIMUTH, ELEV)
    vrdae_hori = jax.random.normal(k1, shape, jnp.float32)
    vrdae_vert = jax.random.normal(k2, shape, jnp.float32)
    params = init_params(jax.random.PRNGKey(42))

    heatmap, gcn_heatmap = jax.jit(hupr_forward)(params, vrdae_hori, vrdae_vert)
    jax.block_until_ready((heatmap, gcn_heatmap))

    assert heatmap.shape == (BATCH, NUM_JOINTS, 1, HEATMAP, HEATMAP)
    assert gcn_heatmap.shape == (BATCH, NUM_JOINTS, HEATMAP, HEATMAP)
    assert bool(jnp.all(jnp.isfinite(heatmap)))
    assert bool(jnp.all(jnp.isfinite(gcn_heatmap)))
    print("KERNEL_OK")
</pallas_src>

<mosaic_0001>
module attributes {stable_mosaic.version = 11 : i64} {
  func.func @_ln_embed_kernel(%arg0: memref<32x4x256xf32, #tpu.memory_space<vmem>>, %arg1: memref<32x4x256xf32, #tpu.memory_space<vmem>>, %arg2: memref<256x384xf32, #tpu.memory_space<vmem>>, %arg3: memref<2x16x768xf32, #tpu.memory_space<vmem>>) attributes {dimension_semantics = [], scalar_prefetch = 0 : i64, scratch_operands = 0 : i64, tpu.core_type = #tpu.core_type<tc>} {
    %c0 = arith.constant 0 : index
    %c0_0 = arith.constant 0 : index
    %c0_1 = arith.constant 0 : index
    %0 = vector.load %arg0[%c0, %c0_0, %c0_1] : memref<32x4x256xf32, #tpu.memory_space<vmem>>, vector<32x4x256xf32>
    %c0_2 = arith.constant 0 : index
    %c0_3 = arith.constant 0 : index
    %c0_4 = arith.constant 0 : index
    %1 = vector.load %arg1[%c0_2, %c0_3, %c0_4] : memref<32x4x256xf32, #tpu.memory_space<vmem>>, vector<32x4x256xf32>
    %2 = tpu.concatenate %0, %1 in 0 : vector<32x4x256xf32>, vector<32x4x256xf32> -> vector<64x4x256xf32>
    %cst = arith.constant dense<0.000000e+00> : vector<64x4xf32>
    %3 = vector.multi_reduction <add>, %2, %cst [2] : vector<64x4x256xf32> to vector<64x4xf32>
    %4 = vector.shape_cast %3 : vector<64x4xf32> to vector<64x4x1xf32>
    %cst_5 = arith.constant 2.560000e+02 : f32
    %5 = vector.broadcast %cst_5 : f32 to vector<64x4x1xf32>
    %6 = arith.divf %4, %5 : vector<64x4x1xf32>
    %7 = vector.broadcast %6 : vector<64x4x1xf32> to vector<64x4x256xf32>
    %8 = arith.subf %2, %7 : vector<64x4x256xf32>
    %9 = arith.mulf %8, %8 : vector<64x4x256xf32>
    %cst_6 = arith.constant dense<0.000000e+00> : vector<64x4xf32>
    %10 = vector.multi_reduction <add>, %9, %cst_6 [2] : vector<64x4x256xf32> to vector<64x4xf32>
    %11 = vector.shape_cast %10 : vector<64x4xf32> to vector<64x4x1xf32>
    %cst_7 = arith.constant 2.560000e+02 : f32
    %12 = vector.broadcast %cst_7 : f32 to vector<64x4x1xf32>
    %13 = arith.divf %11, %12 : vector<64x4x1xf32>
    %cst_8 = arith.constant 9.99999974E-6 : f32
    %14 = vector.broadcast %cst_8 : f32 to vector<64x4x1xf32>
    %15 = arith.addf %13, %14 : vector<64x4x1xf32>
    %16 = math.rsqrt %15 : vector<64x4x1xf32>
    %17 = vector.broadcast %16 : vector<64x4x1xf32> to vector<64x4x256xf32>
    %18 = arith.mulf %8, %17 : vector<64x4x256xf32>
    %cst_9 = arith.constant dense<0.000000e+00> : vector<64x256xf32>
    %19 = vector.multi_reduction <add>, %18, %cst_9 [1] : vector<64x4x256xf32> to vector<64x256xf32>
    %cst_10 = arith.constant 4.000000e+00 : f32
    %20 = vector.broadcast %cst_10 : f32 to vector<64x256xf32>
    %21 = arith.divf %19, %20 : vector<64x256xf32>
    %c0_11 = arith.constant 0 : index
    %c0_12 = arith.constant 0 : index
    %22 = vector.load %arg2[%c0_11, %c0_12] : memref<256x384xf32, #tpu.memory_space<vmem>>, vector<256x384xf32>
    %cst_13 = arith.constant dense<0.000000e+00> : vector<64x384xf32>
    %23 = tpu.matmul %21, %22, %cst_13 {dimension_numbers = #tpu.dot_dimension_numbers<[1], [0], [0], [1], [0, 0, 1, 1], [], []>} : vector<64x256xf32>, vector<256x384xf32>, vector<64x384xf32> -> vector<64x384xf32>
    %24 = vector.extract_strided_slice %23 {offsets = [0, 0], sizes = [16, 384], strides = [1, 1]} : vector<64x384xf32> to vector<16x384xf32>
    %c0_14 = arith.constant 0 : index
    %c0_15 = arith.constant 0 : index
    %c0_16 = arith.constant 0 : index
    %25 = vector.load %arg3[%c0_14, %c0_15, %c0_16] : memref<2x16x768xf32, #tpu.memory_space<vmem>>, vector<1x16x384xf32>
    %26 = vector.shape_cast %25 : vector<1x16x384xf32> to vector<16x384xf32>
    %27 = vector.shape_cast %24 : vector<16x384xf32> to vector<1x16x384xf32>
    tpu.vector_store %arg3[%c0_14, %c0_15, %c0_16], %27 {strides = array<i32>} : memref<2x16x768xf32, #tpu.memory_space<vmem>>, vector<1x16x384xf32>,
    %28 = vector.extract_strided_slice %23 {offsets = [16, 0], sizes = [16, 384], strides = [1, 1]} : vector<64x384xf32> to vector<16x384xf32>
    %c0_17 = arith.constant 0 : index
    %c0_18 = arith.constant 0 : index
    %c384 = arith.constant 384 : index
    %29 = vector.load %arg3[%c0_17, %c0_18, %c384] : memref<2x16x768xf32, #tpu.memory_space<vmem>>, vector<1x16x384xf32>
    %30 = vector.shape_cast %29 : vector<1x16x384xf32> to vector<16x384xf32>
    %31 = vector.shape_cast %28 : vector<16x384xf32> to vector<1x16x384xf32>
    tpu.vector_store %arg3[%c0_17, %c0_18, %c384], %31 {strides = array<i32>} : memref<2x16x768xf32, #tpu.memory_space<vmem>>, vector<1x16x384xf32>,
    %32 = vector.extract_strided_slice %23 {offsets = [32, 0], sizes = [16, 384], strides = [1, 1]} : vector<64x384xf32> to vector<16x384xf32>
    %c1 = arith.constant 1 : index
    %c0_19 = arith.constant 0 : index
    %c0_20 = arith.constant 0 : index
    %33 = vector.load %arg3[%c1, %c0_19, %c0_20] : memref<2x16x768xf32, #tpu.memory_space<vmem>>, vector<1x16x384xf32>
    %34 = vector.shape_cast %33 : vector<1x16x384xf32> to vector<16x384xf32>
    %35 = vector.shape_cast %32 : vector<16x384xf32> to vector<1x16x384xf32>
    tpu.vector_store %arg3[%c1, %c0_19, %c0_20], %35 {strides = array<i32>} : memref<2x16x768xf32, #tpu.memory_space<vmem>>, vector<1x16x384xf32>,
    %36 = vector.extract_strided_slice %23 {offsets = [48, 0], sizes = [16, 384], strides = [1, 1]} : vector<64x384xf32> to vector<16x384xf32>
    %c1_21 = arith.constant 1 : index
    %c0_22 = arith.constant 0 : index
    %c384_23 = arith.constant 384 : index
    %37 = vector.load %arg3[%c1_21, %c0_22, %c384_23] : memref<2x16x768xf32, #tpu.memory_space<vmem>>, vector<1x16x384xf32>
    %38 = vector.shape_cast %37 : vector<1x16x384xf32> to vector<16x384xf32>
    %39 = vector.shape_cast %36 : vector<16x384xf32> to vector<1x16x384xf32>
    tpu.vector_store %arg3[%c1_21, %c0_22, %c384_23], %39 {strides = array<i32>} : memref<2x16x768xf32, #tpu.memory_space<vmem>>, vector<1x16x384xf32>,
    return
  }
}

module attributes {stable_mosaic.version = 11 : i64} {
  func.func @_encoder_kernel(%arg0: i32, %arg1: memref<1x16x768xf32, #tpu.memory_space<vmem>>, %arg2: memref<1x16x144xbf16, #tpu.memory_space<vmem>>, %arg3: memref<1x16x1xf32, #tpu.memory_space<vmem>>, %arg4: memref<1x16x144xbf16, #tpu.memory_space<vmem>>, %arg5: memref<1x16x1xf32, #tpu.memory_space<vmem>>, %arg6: memref<1x32x144xbf16, #tpu.memory_space<vmem>>, %arg7: memref<1x32x1xf32, #tpu.memory_space<vmem>>, %arg8: memref<1x32x288xbf16, #tpu.memory_space<vmem>>, %arg9: memref<1x32x1xf32, #tpu.memory_space<vmem>>, %arg10: memref<1x768xf32, #tpu.memory_space<vmem>>, %arg11: memref<768x256xbf16, #tpu.memory_space<vmem>>, %arg12: memref<768x512xbf16, #tpu.memory_space<vmem>>, %arg13: memref<768x512xbf16, #tpu.memory_space<vmem>>, %arg14: memref<256x512xbf16, #tpu.memory_space<vmem>>, %arg15: memref<1x40x512xf32, #tpu.memory_space<vmem>>) attributes {dimension_semantics = [#tpu.dimension_semantics<parallel>], iteration_bounds = array<i64: 2>, scalar_prefetch = 0 : i64, scratch_operands = 0 : i64, tpu.core_type = #tpu.core_type<tc>, window_params = [{transform_indices = @transform_0, window_bounds = array<i64: 1, 16, 768>}, {transform_indices = @transform_1, window_bounds = array<i64: 1, 16, 144>}, {transform_indices = @transform_2, window_bounds = array<i64: 1, 16, 1>}, {transform_indices = @transform_3, window_bounds = array<i64: 1, 16, 144>}, {transform_indices = @transform_4, window_bounds = array<i64: 1, 16, 1>}, {transform_indices = @transform_5, window_bounds = array<i64: 1, 32, 144>}, {transform_indices = @transform_6, window_bounds = array<i64: 1, 32, 1>}, {transform_indices = @transform_7, window_bounds = array<i64: 1, 32, 288>}, {transform_indices = @transform_8, window_bounds = array<i64: 1, 32, 1>}, {pipeline_mode = #tpu.pipeline_mode<synchronous>, transform_indices = @transform_9, window_bounds = array<i64: 1, 768>}, {pipeline_mode = #tpu.pipeline_mode<synchronous>, transform_indices = @transform_10, window_bounds = array<i64: 768, 256>}, {pipeline_mode = #tpu.pipeline_mode<synchronous>, transform_indices = @transform_11, window_bounds = array<i64: 768, 512>}, {pipeline_mode = #tpu.pipeline_mode<synchronous>, transform_indices = @transform_12, window_bounds = array<i64: 768, 512>}, {pipeline_mode = #tpu.pipeline_mode<synchronous>, transform_indices = @transform_13, window_bounds = array<i64: 256, 512>}, {transform_indices = @transform_14, window_bounds = array<i64: 1, 40, 512>}]} {
    %c0 = arith.constant 0 : index
    %c0_0 = arith.constant 0 : index
    %0 = vector.load %arg10[%c0, %c0_0] : memref<1x768xf32, #tpu.memory_space<vmem>>, vector<1x768xf32>
    %c0_1 = arith.constant 0 : index
    %c0_2 = arith.constant 0 : index
    %c0_3 = arith.constant 0 : index
    %1 = vector.load %arg1[%c0_1, %c0_2, %c0_3] : memref<1x16x768xf32, #tpu.memory_space<vmem>>, vector<1x16x768xf32>
    %2 = vector.shape_cast %1 : vector<1x16x768xf32> to vector<16x768xf32>
    %c19_i32 = arith.constant 19 : i32
    %3 = tpu.dynamic_rotate %2 by %c19_i32 dim 1 : vector<16x768xf32>, i32 -> vector<16x768xf32>
    %c18_i32 = arith.constant 18 : i32
    %4 = tpu.dynamic_rotate %2 by %c18_i32 dim 1 : vector<16x768xf32>, i32 -> vector<16x768xf32>
    %c17_i32 = arith.constant 17 : i32
    %5 = tpu.dynamic_rotate %2 by %c17_i32 dim 1 : vector<16x768xf32>, i32 -> vector<16x768xf32>
    %c1_i32 = arith.constant 1 : i32
    %6 = tpu.dynamic_rotate %2 by %c1_i32 dim 1 : vector<16x768xf32>, i32 -> vector<16x768xf32>
    %c767_i32 = arith.constant 767 : i32
    %7 = tpu.dynamic_rotate %2 by %c767_i32 dim 1 : vector<16x768xf32>, i32 -> vector<16x768xf32>
    %c751_i32 = arith.constant 751 : i32
    %8 = tpu.dynamic_rotate %2 by %c751_i32 dim 1 : vector<16x768xf32>, i32 -> vector<16x768xf32>
    %c750_i32 = arith.constant 750 : i32
    %9 = tpu.dynamic_rotate %2 by %c750_i32 dim 1 : vector<16x768xf32>, i32 -> vector<16x768xf32>
    %c749_i32 = arith.constant 749 : i32
    %10 = tpu.dynamic_rotate %2 by %c749_i32 dim 1 : vector<16x768xf32>, i32 -> vector<16x768xf32>
    %11 = tpu.concatenate %3, %4, %5, %6, %2, %7, %8, %9, %10 in 0 : vector<16x768xf32>, vector<16x768xf32>, vector<16x768xf32>, vector<16x768xf32>, vector<16x768xf32>, vector<16x768xf32>, vector<16x768xf32>, vector<16x768xf32>, vector<16x768xf32> -> vector<144x768xf32>
    %12 = arith.truncf %11 : vector<144x768xf32> to vector<144x768xbf16>
    %c0_4 = arith.constant 0 : index
    %c0_5 = arith.constant 0 : index
    %c0_6 = arith.constant 0 : index
    %13 = vector.load %arg2[%c0_4, %c0_5, %c0_6] : memref<1x16x144xbf16, #tpu.memory_space<vmem>>, vector<1x16x144xbf16>
    %14 = vector.shape_cast %13 : vector<1x16x144xbf16> to vector<16x144xbf16>
    %cst = arith.constant dense<0.000000e+00> : vector<16x768xf32>
    %15 = tpu.matmul %14, %12, %cst {dimension_numbers = #tpu.dot_dimension_numbers<[1], [0], [0], [1], [0, 0, 1, 1], [], []>} : vector<16x144xbf16>, vector<144x768xbf16>, vector<16x768xf32> -> vector<16x768xf32>
    %c0_7 = arith.constant 0 : index
    %c0_8 = arith.constant 0 : index
    %c0_9 = arith.constant 0 : index
    %16 = vector.load %arg3[%c0_7, %c0_8, %c0_9] : memref<1x16x1xf32, #tpu.memory_space<vmem>>, vector<1x16x1xf32>
    %17 = vector.shape_cast %16 : vector<1x16x1xf32> to vector<16x1xf32>
    %18 = vector.broadcast %17 : vector<16x1xf32> to vector<16x768xf32>
    %19 = arith.addf %15, %18 : vector<16x768xf32>
    %cst_10 = arith.constant 0.000000e+00 : f32
    %20 = vector.broadcast %cst_10 : f32 to vector<16x768xf32>
    %21 = arith.maximumf %19, %20 : vector<16x768xf32>
    %22 = vector.broadcast %0 : vector<1x768xf32> to vector<16x768xf32>
    %23 = arith.mulf %21, %22 : vector<16x768xf32>
    %c19_i32_11 = arith.constant 19 : i32
    %24 = tpu.dynamic_rotate %23 by %c19_i32_11 dim 1 : vector<16x768xf32>, i32 -> vector<16x768xf32>
    %c18_i32_12 = arith.constant 18 : i32
    %25 = tpu.dynamic_rotate %23 by %c18_i32_12 dim 1 : vector<16x768xf32>, i32 -> vector<16x768xf32>
    %c17_i32_13 = arith.constant 17 : i32
    %26 = tpu.dynamic_rotate %23 by %c17_i32_13 dim 1 : vector<16x768xf32>, i32 -> vector<16x768xf32>
    %c1_i32_14 = arith.constant 1 : i32
    %27 = tpu.dynamic_rotate %23 by %c1_i32_14 dim 1 : vector<16x768xf32>, i32 -> vector<16x768xf32>
    %c767_i32_15 = arith.constant 767 : i32
    %28 = tpu.dynamic_rotate %23 by %c767_i32_15 dim 1 : vector<16x768xf32>, i32 -> vector<16x768xf32>
    %c751_i32_16 = arith.constant 751 : i32
    %29 = tpu.dynamic_rotate %23 by %c751_i32_16 dim 1 : vector<16x768xf32>, i32 -> vector<16x768xf32>
    %c750_i32_17 = arith.constant 750 : i32
    %30 = tpu.dynamic_rotate %23 by %c750_i32_17 dim 1 : vector<16x768xf32>, i32 -> vector<16x768xf32>
    %c749_i32_18 = arith.constant 749 : i32
    %31 = tpu.dynamic_rotate %23 by %c749_i32_18 dim 1 : vector<16x768xf32>, i32 -> vector<16x768xf32>
    %32 = tpu.concatenate %24, %25, %26, %27, %23, %28, %29, %30, %31 in 0 : vector<16x768xf32>, vector<16x768xf32>, vector<16x768xf32>, vector<16x768xf32>, vector<16x768xf32>, vector<16x768xf32>, vector<16x768xf32>, vector<16x768xf32>, vector<16x768xf32> -> vector<144x768xf32>
    %33 = arith.truncf %32 : vector<144x768xf32> to vector<144x768xbf16>
    %c0_19 = arith.constant 0 : index
    %c0_20 = arith.constant 0 : index
    %c0_21 = arith.constant 0 : index
    %34 = vector.load %arg4[%c0_19, %c0_20, %c0_21] : memref<1x16x144xbf16, #tpu.memory_space<vmem>>, vector<1x16x144xbf16>
    %35 = vector.shape_cast %34 : vector<1x16x144xbf16> to vector<16x144xbf16>
    %cst_22 = arith.constant dense<0.000000e+00> : vector<16x768xf32>
    %36 = tpu.matmul %35, %33, %cst_22 {dimension_numbers = #tpu.dot_dimension_numbers<[1], [0], [0], [1], [0, 0, 1, 1], [], []>} : vector<16x144xbf16>, vector<144x768xbf16>, vector<16x768xf32> -> vector<16x768xf32>
    %c0_23 = arith.constant 0 : index
    %c0_24 = arith.constant 0 : index
    %c0_25 = arith.constant 0 : index
    %37 = vector.load %arg5[%c0_23, %c0_24, %c0_25] : memref<1x16x1xf32, #tpu.memory_space<vmem>>, vector<1x16x1xf32>
    %38 = vector.shape_cast %37 : vector<1x16x1xf32> to vector<16x1xf32>
    %39 = vector.broadcast %38 : vector<16x1xf32> to vector<16x768xf32>
    %40 = arith.addf %36, %39 : vector<16x768xf32>
    %cst_26 = arith.constant 0.000000e+00 : f32
    %41 = vector.broadcast %cst_26 : f32 to vector<16x768xf32>
    %42 = arith.cmpf ogt, %40, %41 : vector<16x768xf32>
    %cst_27 = arith.constant 2.500000e-01 : f32
    %43 = vector.broadcast %cst_27 : f32 to vector<16x768xf32>
    %44 = arith.mulf %43, %40 : vector<16x768xf32>
    %45 = arith.select %42, %40, %44 : vector<16x768xi1>, vector<16x768xf32>
    %46 = vector.broadcast %0 : vector<1x768xf32> to vector<16x768xf32>
    %47 = arith.mulf %45, %46 : vector<16x768xf32>
    %c19_i32_28 = arith.constant 19 : i32
    %48 = tpu.dynamic_rotate %47 by %c19_i32_28 dim 1 : vector<16x768xf32>, i32 -> vector<16x768xf32>
    %c18_i32_29 = arith.constant 18 : i32
    %49 = tpu.dynamic_rotate %47 by %c18_i32_29 dim 1 : vector<16x768xf32>, i32 -> vector<16x768xf32>
    %c17_i32_30 = arith.constant 17 : i32
    %50 = tpu.dynamic_rotate %47 by %c17_i32_30 dim 1 : vector<16x768xf32>, i32 -> vector<16x768xf32>
    %c1_i32_31 = arith.constant 1 : i32
    %51 = tpu.dynamic_rotate %47 by %c1_i32_31 dim 1 : vector<16x768xf32>, i32 -> vector<16x768xf32>
    %c767_i32_32 = arith.constant 767 : i32
    %52 = tpu.dynamic_rotate %47 by %c767_i32_32 dim 1 : vector<16x768xf32>, i32 -> vector<16x768xf32>
    %c751_i32_33 = arith.constant 751 : i32
    %53 = tpu.dynamic_rotate %47 by %c751_i32_33 dim 1 : vector<16x768xf32>, i32 -> vector<16x768xf32>
    %c750_i32_34 = arith.constant 750 : i32
    %54 = tpu.dynamic_rotate %47 by %c750_i32_34 dim 1 : vector<16x768xf32>, i32 -> vector<16x768xf32>
    %c749_i32_35 = arith.constant 749 : i32
    %55 = tpu.dynamic_rotate %47 by %c749_i32_35 dim 1 : vector<16x768xf32>, i32 -> vector<16x768xf32>
    %56 = tpu.concatenate %48, %49, %50, %51, %47, %52, %53, %54, %55 in 0 : vector<16x768xf32>, vector<16x768xf32>, vector<16x768xf32>, vector<16x768xf32>, vector<16x768xf32>, vector<16x768xf32>, vector<16x768xf32>, vector<16x768xf32>, vector<16x768xf32> -> vector<144x768xf32>
    %57 = arith.truncf %56 : vector<144x768xf32> to vector<144x768xbf16>
    %c0_36 = arith.constant 0 : index
    %c0_37 = arith.constant 0 : index
    %c0_38 = arith.constant 0 : index
    %58 = vector.load %arg6[%c0_36, %c0_37, %c0_38] : memref<1x32x144xbf16, #tpu.memory_space<vmem>>, vector<1x32x144xbf16>
    %59 = vector.shape_cast %58 : vector<1x32x144xbf16> to vector<32x144xbf16>
    %cst_39 = arith.constant dense<0.000000e+00> : vector<32x768xf32>
    %60 = tpu.matmul %59, %57, %cst_39 {dimension_numbers = #tpu.dot_dimension_numbers<[1], [0], [0], [1], [0, 0, 1, 1], [], []>} : vector<32x144xbf16>, vector<144x768xbf16>, vector<32x768xf32> -> vector<32x768xf32>
    %c0_40 = arith.constant 0 : index
    %c0_41 = arith.constant 0 : index
    %c0_42 = arith.constant 0 : index
    %61 = vector.load %arg7[%c0_40, %c0_41, %c0_42] : memref<1x32x1xf32, #tpu.memory_space<vmem>>, vector<1x32x1xf32>
    %62 = vector.shape_cast %61 : vector<1x32x1xf32> to vector<32x1xf32>
    %63 = vector.broadcast %62 : vector<32x1xf32> to vector<32x768xf32>
    %64 = arith.addf %60, %63 : vector<32x768xf32>
    %cst_43 = arith.constant 0.000000e+00 : f32
    %65 = vector.broadcast %cst_43 : f32 to vector<32x768xf32>
    %66 = arith.cmpf ogt, %64, %65 : vector<32x768xf32>
    %cst_44 = arith.constant 2.500000e-01 : f32
    %67 = vector.broadcast %cst_44 : f32 to vector<32x768xf32>
    %68 = arith.mulf %67, %64 : vector<32x768xf32>
    %69 = arith.select %66, %64, %68 : vector<32x768xi1>, vector<32x768xf32>
    %70 = arith.truncf %69 : vector<32x768xf32> to vector<32x768xbf16>
    %c0_45 = arith.constant 0 : index
    %c0_46 = arith.constant 0 : index
    %71 = vector.load %arg11[%c0_45, %c0_46] : memref<768x256xbf16, #tpu.memory_space<vmem>>, vector<768x256xbf16>
    %cst_47 = arith.constant dense<0.000000e+00> : vector<32x256xf32>
    %72 = tpu.matmul %70, %71, %cst_47 {dimension_numbers = #tpu.dot_dimension_numbers<[1], [0], [0], [1], [0, 0, 1, 1], [], []>} : vector<32x768xbf16>, vector<768x256xbf16>, vector<32x256xf32> -> vector<32x256xf32>
    %c11_i32 = arith.constant 11 : i32
    %73 = tpu.dynamic_rotate %72 by %c11_i32 dim 1 : vector<32x256xf32>, i32 -> vector<32x256xf32>
    %c10_i32 = arith.constant 10 : i32
    %74 = tpu.dynamic_rotate %72 by %c10_i32 dim 1 : vector<32x256xf32>, i32 -> vector<32x256xf32>
    %c9_i32 = arith.constant 9 : i32
    %75 = tpu.dynamic_rotate %72 by %c9_i32 dim 1 : vector<32x256xf32>, i32 -> vector<32x256xf32>
    %c1_i32_48 = arith.constant 1 : i32
    %76 = tpu.dynamic_rotate %72 by %c1_i32_48 dim 1 : vector<32x256xf32>, i32 -> vector<32x256xf32>
    %c255_i32 = arith.constant 255 : i32
    %77 = tpu.dynamic_rotate %72 by %c255_i32 dim 1 : vector<32x256xf32>, i32 -> vector<32x256xf32>
    %c247_i32 = arith.constant 247 : i32
    %78 = tpu.dynamic_rotate %72 by %c247_i32 dim 1 : vector<32x256xf32>, i32 -> vector<32x256xf32>
    %c246_i32 = arith.constant 246 : i32
    %79 = tpu.dynamic_rotate %72 by %c246_i32 dim 1 : vector<32x256xf32>, i32 -> vector<32x256xf32>
    %c245_i32 = arith.constant 245 : i32
    %80 = tpu.dynamic_rotate %72 by %c245_i32 dim 1 : vector<32x256xf32>, i32 -> vector<32x256xf32>
    %81 = tpu.concatenate %73, %74, %75, %76, %72, %77, %78, %79, %80 in 0 : vector<32x256xf32>, vector<32x256xf32>, vector<32x256xf32>, vector<32x256xf32>, vector<32x256xf32>, vector<32x256xf32>, vector<32x256xf32>, vector<32x256xf32>, vector<32x256xf32> -> vector<288x256xf32>
    %82 = arith.truncf %81 : vector<288x256xf32> to vector<288x256xbf16>
    %c0_49 = arith.constant 0 : index
    %c0_50 = arith.constant 0 : index
    %c0_51 = arith.constant 0 : index
    %83 = vector.load %arg8[%c0_49, %c0_50, %c0_51] : memref<1x32x288xbf16, #tpu.memory_space<vmem>>, vector<1x32x288xbf16>
    %84 = vector.shape_cast %83 : vector<1x32x288xbf16> to vector<32x288xbf16>
    %cst_52 = arith.constant dense<0.000000e+00> : vector<32x256xf32>
    %85 = tpu.matmul %84, %82, %cst_52 {dimension_numbers = #tpu.dot_dimension_numbers<[1], [0], [0], [1], [0, 0, 1, 1], [], []>} : vector<32x288xbf16>, vector<288x256xbf16>, vector<32x256xf32> -> vector<32x256xf32>
    %c0_53 = arith.constant 0 : index
    %c0_54 = arith.constant 0 : index
    %c0_55 = arith.constant 0 : index
    %86 = vector.load %arg9[%c0_53, %c0_54, %c0_55] : memref<1x32x1xf32, #tpu.memory_space<vmem>>, vector<1x32x1xf32>
    %87 = vector.shape_cast %86 : vector<1x32x1xf32> to vector<32x1xf32>
    %88 = vector.broadcast %87 : vector<32x1xf32> to vector<32x256xf32>
    %89 = arith.addf %85, %88 : vector<32x256xf32>
    %cst_56 = arith.constant 0.000000e+00 : f32
    %90 = vector.broadcast %cst_56 : f32 to vector<32x256xf32>
    %91 = arith.cmpf ogt, %89, %90 : vector<32x256xf32>
    %cst_57 = arith.constant 2.500000e-01 : f32
    %92 = vector.broadcast %cst_57 : f32 to vector<32x256xf32>
    %93 = arith.mulf %92, %89 : vector<32x256xf32>
    %94 = arith.select %91, %89, %93 : vector<32x256xi1>, vector<32x256xf32>
    %95 = vector.extract_strided_slice %47 {offsets = [0, 0], sizes = [8, 768], strides = [1, 1]} : vector<16x768xf32> to vector<8x768xf32>
    %96 = vector.extract_strided_slice %47 {offsets = [8, 0], sizes = [8, 768], strides = [1, 1]} : vector<16x768xf32> to vector<8x768xf32>
    %97 = arith.addf %95, %96 : vector<8x768xf32>
    %cst_58 = arith.constant 5.000000e-01 : f32
    %98 = vector.broadcast %cst_58 : f32 to vector<8x768xf32>
    %99 = arith.mulf %98, %97 : vector<8x768xf32>
    %100 = vector.extract_strided_slice %69 {offsets = [0, 0], sizes = [16, 768], strides = [1, 1]} : vector<32x768xf32> to vector<16x768xf32>
    %101 = vector.extract_strided_slice %69 {offsets = [16, 0], sizes = [16, 768], strides = [1, 1]} : vector<32x768xf32> to vector<16x768xf32>
    %102 = arith.addf %100, %101 : vector<16x768xf32>
    %cst_59 = arith.constant 5.000000e-01 : f32
    %103 = vector.broadcast %cst_59 : f32 to vector<16x768xf32>
    %104 = arith.mulf %103, %102 : vector<16x768xf32>
    %105 = vector.extract_strided_slice %94 {offsets = [0, 0], sizes = [16, 256], strides = [1, 1]} : vector<32x256xf32> to vector<16x256xf32>
    %106 = vector.extract_strided_slice %94 {offsets = [16, 0], sizes = [16, 256], strides = [1, 1]} : vector<32x256xf32> to vector<16x256xf32>
    %107 = arith.addf %105, %106 : vector<16x256xf32>
    %cst_60 = arith.constant 5.000000e-01 : f32
    %108 = vector.broadcast %cst_60 : f32 to vector<16x256xf32>
    %109 = arith.mulf %108, %107 : vector<16x256xf32>
    %110 = arith.truncf %99 : vector<8x768xf32> to vector<8x768xbf16>
    %c0_61 = arith.constant 0 : index
    %c0_62 = arith.constant 0 : index
    %111 = vector.load %arg12[%c0_61, %c0_62] : memref<768x512xbf16, #tpu.memory_space<vmem>>, vector<768x512xbf16>
    %cst_63 = arith.constant dense<0.000000e+00> : vector<8x512xf32>
    %112 = tpu.matmul %110, %111, %cst_63 {dimension_numbers = #tpu.dot_dimension_numbers<[1], [0], [0], [1], [0, 0, 1, 1], [], []>} : vector<8x768xbf16>, vector<768x512xbf16>, vector<8x512xf32> -> vector<8x512xf32>
    %113 = arith.truncf %104 : vector<16x768xf32> to vector<16x768xbf16>
    %c0_64 = arith.constant 0 : index
    %c0_65 = arith.constant 0 : index
    %114 = vector.load %arg13[%c0_64, %c0_65] : memref<768x512xbf16, #tpu.memory_space<vmem>>, vector<768x512xbf16>
    %cst_66 = arith.constant dense<0.000000e+00> : vector<16x512xf32>
    %115 = tpu.matmul %113, %114, %cst_66 {dimension_numbers = #tpu.dot_dimension_numbers<[1], [0], [0], [1], [0, 0, 1, 1], [], []>} : vector<16x768xbf16>, vector<768x512xbf16>, vector<16x512xf32> -> vector<16x512xf32>
    %116 = arith.truncf %109 : vector<16x256xf32> to vector<16x256xbf16>
    %c0_67 = arith.constant 0 : index
    %c0_68 = arith.constant 0 : index
    %117 = vector.load %arg14[%c0_67, %c0_68] : memref<256x512xbf16, #tpu.memory_space<vmem>>, vector<256x512xbf16>
    %cst_69 = arith.constant dense<0.000000e+00> : vector<16x512xf32>
    %118 = tpu.matmul %116, %117, %cst_69 {dimension_numbers = #tpu.dot_dimension_numbers<[1], [0], [0], [1], [0, 0, 1, 1], [], []>} : vector<16x256xbf16>, vector<256x512xbf16>, vector<16x512xf32> -> vector<16x512xf32>
    %c0_70 = arith.constant 0 : index
    %c0_71 = arith.constant 0 : index
    %c0_72 = arith.constant 0 : index
    %119 = vector.load %arg15[%c0_70, %c0_71, %c0_72] : memref<1x40x512xf32, #tpu.memory_space<vmem>>, vector<1x8x512xf32>
    %120 = vector.shape_cast %119 : vector<1x8x512xf32> to vector<8x512xf32>
    %121 = vector.shape_cast %112 : vector<8x512xf32> to vector<1x8x512xf32>
    tpu.vector_store %arg15[%c0_70, %c0_71, %c0_72], %121 {strides = array<i32>} : memref<1x40x512xf32, #tpu.memory_space<vmem>>, vector<1x8x512xf32>,
    %c0_73 = arith.constant 0 : index
    %c8 = arith.constant 8 : index
    %c0_74 = arith.constant 0 : index
    %122 = vector.load %arg15[%c0_73, %c8, %c0_74] : memref<1x40x512xf32, #tpu.memory_space<vmem>>, vector<1x16x512xf32>
    %123 = vector.shape_cast %122 : vector<1x16x512xf32> to vector<16x512xf32>
    %124 = vector.shape_cast %115 : vector<16x512xf32> to vector<1x16x512xf32>
    tpu.vector_store %arg15[%c0_73, %c8, %c0_74], %124 {strides = array<i32>} : memref<1x40x512xf32, #tpu.memory_space<vmem>>, vector<1x16x512xf32>,
    %c0_75 = arith.constant 0 : index
    %c24 = arith.constant 24 : index
    %c0_76 = arith.constant 0 : index
    %125 = vector.load %arg15[%c0_75, %c24, %c0_76] : memref<1x40x512xf32, #tpu.memory_space<vmem>>, vector<1x16x512xf32>
    %126 = vector.shape_cast %125 : vector<1x16x512xf32> to vector<16x512xf32>
    %127 = vector.shape_cast %118 : vector<16x512xf32> to vector<1x16x512xf32>
    tpu.vector_store %arg15[%c0_75, %c24, %c0_76], %127 {strides = array<i32>} : memref<1x40x512xf32, #tpu.memory_space<vmem>>, vector<1x16x512xf32>,
    return
  }
  func.func @transform_0(%arg0: i32) -> (i32, i32, i32) {
    %c0_i32 = arith.constant 0 : i32
    %c0_i32_0 = arith.constant 0 : i32
    %c0_i32_1 = arith.constant 0 : i32
    return %arg0, %c0_i32, %c0_i32_0 : i32, i32, i32
  }
  func.func @transform_1(%arg0: i32) -> (i32, i32, i32) {
    %c0_i32 = arith.constant 0 : i32
    %c0_i32_0 = arith.constant 0 : i32
    %c0_i32_1 = arith.constant 0 : i32
    return %arg0, %c0_i32, %c0_i32_0 : i32, i32, i32
  }
  func.func @transform_2(%arg0: i32) -> (i32, i32, i32) {
    %c0_i32 = arith.constant 0 : i32
    %c0_i32_0 = arith.constant 0 : i32
    %c0_i32_1 = arith.constant 0 : i32
    return %arg0, %c0_i32, %c0_i32_0 : i32, i32, i32
  }
  func.func @transform_3(%arg0: i32) -> (i32, i32, i32) {
    %c0_i32 = arith.constant 0 : i32
    %c0_i32_0 = arith.constant 0 : i32
    %c0_i32_1 = arith.constant 0 : i32
    return %arg0, %c0_i32, %c0_i32_0 : i32, i32, i32
  }
  func.func @transform_4(%arg0: i32) -> (i32, i32, i32) {
    %c0_i32 = arith.constant 0 : i32
    %c0_i32_0 = arith.constant 0 : i32
    %c0_i32_1 = arith.constant 0 : i32
    return %arg0, %c0_i32, %c0_i32_0 : i32, i32, i32
  }
  func.func @transform_5(%arg0: i32) -> (i32, i32, i32) {
    %c0_i32 = arith.constant 0 : i32
    %c0_i32_0 = arith.constant 0 : i32
    %c0_i32_1 = arith.constant 0 : i32
    return %arg0, %c0_i32, %c0_i32_0 : i32, i32, i32
  }
  func.func @transform_6(%arg0: i32) -> (i32, i32, i32) {
    %c0_i32 = arith.constant 0 : i32
    %c0_i32_0 = arith.constant 0 : i32
    %c0_i32_1 = arith.constant 0 : i32
    return %arg0, %c0_i32, %c0_i32_0 : i32, i32, i32
  }
  func.func @transform_7(%arg0: i32) -> (i32, i32, i32) {
    %c0_i32 = arith.constant 0 : i32
    %c0_i32_0 = arith.constant 0 : i32
    %c0_i32_1 = arith.constant 0 : i32
    return %arg0, %c0_i32, %c0_i32_0 : i32, i32, i32
  }
  func.func @transform_8(%arg0: i32) -> (i32, i32, i32) {
    %c0_i32 = arith.constant 0 : i32
    %c0_i32_0 = arith.constant 0 : i32
    %c0_i32_1 = arith.constant 0 : i32
    return %arg0, %c0_i32, %c0_i32_0 : i32, i32, i32
  }
  func.func @transform_9(%arg0: i32) -> (i32, i32) {
    %c0_i32 = arith.constant 0 : i32
    %c0_i32_0 = arith.constant 0 : i32
    %c0_i32_1 = arith.constant 0 : i32
    return %c0_i32, %c0_i32_0 : i32, i32
  }
  func.func @transform_10(%arg0: i32) -> (i32, i32) {
    %c0_i32 = arith.constant 0 : i32
    %c0_i32_0 = arith.constant 0 : i32
    %c0_i32_1 = arith.constant 0 : i32
    return %c0_i32, %c0_i32_0 : i32, i32
  }
  func.func @transform_11(%arg0: i32) -> (i32, i32) {
    %c0_i32 = arith.constant 0 : i32
    %c0_i32_0 = arith.constant 0 : i32
    %c0_i32_1 = arith.constant 0 : i32
    return %c0_i32, %c0_i32_0 : i32, i32
  }
  func.func @transform_12(%arg0: i32) -> (i32, i32) {
    %c0_i32 = arith.constant 0 : i32
    %c0_i32_0 = arith.constant 0 : i32
    %c0_i32_1 = arith.constant 0 : i32
    return %c0_i32, %c0_i32_0 : i32, i32
  }
  func.func @transform_13(%arg0: i32) -> (i32, i32) {
    %c0_i32 = arith.constant 0 : i32
    %c0_i32_0 = arith.constant 0 : i32
    %c0_i32_1 = arith.constant 0 : i32
    return %c0_i32, %c0_i32_0 : i32, i32
  }
  func.func @transform_14(%arg0: i32) -> (i32, i32, i32) {
    %c0_i32 = arith.constant 0 : i32
    %c0_i32_0 = arith.constant 0 : i32
    %c0_i32_1 = arith.constant 0 : i32
    return %arg0, %c0_i32, %c0_i32_0 : i32, i32, i32
  }
}

module attributes {stable_mosaic.version = 11 : i64} {
  func.func @_decoder_kernel(%arg0: memref<80x512xf32, #tpu.memory_space<vmem>>, %arg1: memref<32x80xbf16, #tpu.memory_space<vmem>>, %arg2: memref<32x1xf32, #tpu.memory_space<vmem>>, %arg3: memref<8x32xbf16, #tpu.memory_space<vmem>>, %arg4: memref<8x1xf32, #tpu.memory_space<vmem>>, %arg5: memref<8x8xf32, #tpu.memory_space<vmem>>, %arg6: memref<8x512xf32, #tpu.memory_space<vmem>>, %arg7: memref<8x512xf32, #tpu.memory_space<vmem>>) attributes {dimension_semantics = [], scalar_prefetch = 0 : i64, scratch_operands = 0 : i64, tpu.core_type = #tpu.core_type<tc>} {
    %c0 = arith.constant 0 : index
    %c0_0 = arith.constant 0 : index
    %0 = vector.load %arg0[%c0, %c0_0] : memref<80x512xf32, #tpu.memory_space<vmem>>, vector<80x512xf32>
    %1 = arith.truncf %0 : vector<80x512xf32> to vector<80x512xbf16>
    %c0_1 = arith.constant 0 : index
    %c0_2 = arith.constant 0 : index
    %2 = vector.load %arg1[%c0_1, %c0_2] : memref<32x80xbf16, #tpu.memory_space<vmem>>, vector<32x80xbf16>
    %cst = arith.constant dense<0.000000e+00> : vector<32x512xf32>
    %3 = tpu.matmul %2, %1, %cst {dimension_numbers = #tpu.dot_dimension_numbers<[1], [0], [0], [1], [0, 0, 1, 1], [], []>} : vector<32x80xbf16>, vector<80x512xbf16>, vector<32x512xf32> -> vector<32x512xf32>
    %c0_3 = arith.constant 0 : index
    %c0_4 = arith.constant 0 : index
    %4 = vector.load %arg2[%c0_3, %c0_4] : memref<32x1xf32, #tpu.memory_space<vmem>>, vector<32x1xf32>
    %5 = vector.broadcast %4 : vector<32x1xf32> to vector<32x512xf32>
    %6 = arith.addf %3, %5 : vector<32x512xf32>
    %cst_5 = arith.constant 0.000000e+00 : f32
    %7 = vector.broadcast %cst_5 : f32 to vector<32x512xf32>
    %8 = arith.cmpf ogt, %6, %7 : vector<32x512xf32>
    %cst_6 = arith.constant 2.500000e-01 : f32
    %9 = vector.broadcast %cst_6 : f32 to vector<32x512xf32>
    %10 = arith.mulf %9, %6 : vector<32x512xf32>
    %11 = arith.select %8, %6, %10 : vector<32x512xi1>, vector<32x512xf32>
    %c0_7 = arith.constant 0 : index
    %c0_8 = arith.constant 0 : index
    %12 = vector.load %arg3[%c0_7, %c0_8] : memref<8x32xbf16, #tpu.memory_space<vmem>>, vector<8x32xbf16>
    %13 = arith.truncf %11 : vector<32x512xf32> to vector<32x512xbf16>
    %cst_9 = arith.constant dense<0.000000e+00> : vector<8x512xf32>
    %14 = tpu.matmul %12, %13, %cst_9 {dimension_numbers = #tpu.dot_dimension_numbers<[1], [0], [0], [1], [0, 0, 1, 1], [], []>} : vector<8x32xbf16>, vector<32x512xbf16>, vector<8x512xf32> -> vector<8x512xf32>
    %c0_10 = arith.constant 0 : index
    %c0_11 = arith.constant 0 : index
    %15 = vector.load %arg4[%c0_10, %c0_11] : memref<8x1xf32, #tpu.memory_space<vmem>>, vector<8x1xf32>
    %16 = vector.broadcast %15 : vector<8x1xf32> to vector<8x512xf32>
    %17 = arith.addf %14, %16 : vector<8x512xf32>
    %18 = arith.negf %17 : vector<8x512xf32>
    %19 = math.exp %18 : vector<8x512xf32>
    %cst_12 = arith.constant 1.000000e+00 : f32
    %20 = vector.broadcast %cst_12 : f32 to vector<8x512xf32>
    %21 = arith.addf %20, %19 : vector<8x512xf32>
    %22 = arith.divf %20, %21 : vector<8x512xf32>
    %c0_13 = arith.constant 0 : index
    %c0_14 = arith.constant 0 : index
    %23 = vector.load %arg6[%c0_13, %c0_14] : memref<8x512xf32, #tpu.memory_space<vmem>>, vector<8x512xf32>
    tpu.vector_store %arg6[%c0_13, %c0_14], %22 {strides = array<i32>} : memref<8x512xf32, #tpu.memory_space<vmem>>, vector<8x512xf32>,
    %c0_15 = arith.constant 0 : index
    %c0_16 = arith.constant 0 : index
    %24 = vector.load %arg5[%c0_15, %c0_16] : memref<8x8xf32, #tpu.memory_space<vmem>>, vector<8x8xf32>
    %cst_17 = arith.constant dense<0.000000e+00> : vector<8x512xf32>
    %25 = tpu.matmul %24, %17, %cst_17 {dimension_numbers = #tpu.dot_dimension_numbers<[1], [0], [0], [1], [0, 0, 1, 1], [], []>} : vector<8x8xf32>, vector<8x512xf32>, vector<8x512xf32> -> vector<8x512xf32>
    %26 = arith.negf %25 : vector<8x512xf32>
    %27 = math.exp %26 : vector<8x512xf32>
    %cst_18 = arith.constant 1.000000e+00 : f32
    %28 = vector.broadcast %cst_18 : f32 to vector<8x512xf32>
    %29 = arith.addf %28, %27 : vector<8x512xf32>
    %30 = arith.divf %28, %29 : vector<8x512xf32>
    %c0_19 = arith.constant 0 : index
    %c0_20 = arith.constant 0 : index
    %31 = vector.load %arg7[%c0_19, %c0_20] : memref<8x512xf32, #tpu.memory_space<vmem>>, vector<8x512xf32>
    tpu.vector_store %arg7[%c0_19, %c0_20], %30 {strides = array<i32>} : memref<8x512xf32, #tpu.memory_space<vmem>>, vector<8x512xf32>,
    return
  }
}

</mosaic_0001>

<bundles_post_ra>
// kernel: hupr_forward.5
= control target key start
LH: loop header
LB: loop body
LE: loop exit
PB: predicated region body
PF: predicated region fallthrough
CT: control target
= control target key end

     0   :  { %v653_v3 = vmov 0   ;;  %vm124_vm0 = vcmask 654336   ;;  %s925_s0 = inlined_call_operand.vmem [shape: f32[80,512], index: 0, kind: input, shape index: {}]   ;;  %s926_s1 = inlined_call_operand.vmem [shape: bf16[32,80], index: 1, kind: input, shape index: {}]   ;;  %s927_s2 = inlined_call_operand.vmem [shape: f32[32,1], index: 2, kind: input, shape index: {}]   ;;  %s928_s4 = inlined_call_operand.vmem [shape: f32[8,1], index: 4, kind: input, shape index: {}]   ;;  %s929_s3 = inlined_call_operand.vmem [shape: bf16[8,32], index: 3, kind: input, shape index: {}]   ;;  %s930_s5 = inlined_call_operand.vmem [shape: f32[8,8], index: 5, kind: input, shape index: {}]   ;;  %s931_s6 = inlined_call_operand.vmem [shape: f32[8,512], index: 6, kind: output, shape index: {0}]   ;;  %s932_s7 = inlined_call_operand.vmem [shape: f32[8,512], index: 7, kind: output, shape index: {1}]  }
   0x1   :  { %v59_v0 = vld [vmem:[%s925_s0 + $0x108] sm:$0xff]  ;;  %v61_v2 = vld [vmem:[%s925_s0 + $0x118] sm:$0xff]  ;;  %163 = vmatprep.mubr.bf16.mxu0 %v653_v3  ;;  %216 = vmatprep.mubr.bf16.mxu1 %v653_v3  ;;  %v58_v6 = vld [vmem:[%s925_s0 + $0x100] sm:$0xff] }
   0x2   :  { %v63_v1 = vld [vmem:[%s925_s0 + $0x128] sm:$0xff]  ;;  %v65_v5 = vld [vmem:[%s925_s0 + $0x138] sm:$0xff]  ;;  %v62_v7 = vld [vmem:[%s925_s0 + $0x120] sm:$0xff]  ;;  %618 = vset.pattern.permute.xlu1 %v653_v3  ;;  %617 = vset.pattern.permute.xlu0 %v653_v3 }
   0x3   :  { %v83_v4 = vpack.c.bf16 %v63_v1, %v59_v0  ;;  %v85_v8 = vpack.c.bf16 %v65_v5, %v61_v2  ;;  %v82_v9 = vpack.c.bf16 %v62_v7, %v58_v6  ;;  %v60_v10 = vld [vmem:[%s925_s0 + $0x110] sm:$0xff]  ;;  %v51_v12 = vld [vmem:[%s925_s0 + $0xc8] sm:$0xff]  ;;  %v53_v15 = vld [vmem:[%s925_s0 + $0xd8] sm:$0xff] }
   0x4   :  { %v64_v11 = vld [vmem:[%s925_s0 + $0x130] sm:$0xff]  ;;  %v55_v14 = vld [vmem:[%s925_s0 + $0xe8] sm:$0xff]  ;;  %v57_v16 = vld [vmem:[%s925_s0 + $0xf8] sm:$0xff] }
   0x5   :  { %137 = vmatprep.subr.bf16.mxu0 %v83_v4  ;;  %v84_v13 = vpack.c.bf16 %v64_v11, %v60_v10  ;;  %190 = vmatprep.subr.bf16.mxu1 %v85_v8  ;;  %v79_v17 = vpack.c.bf16 %v55_v14, %v51_v12  ;;  %v81_v18 = vpack.c.bf16 %v57_v16, %v53_v15  ;;  %v50_v19 = vld [vmem:[%s925_s0 + $0xc0] sm:$0xff]  ;;  %v52_v21 = vld [vmem:[%s925_s0 + $0xd0] sm:$0xff]  ;;  %v43_v24 = vld [vmem:[%s925_s0 + $0x88] sm:$0xff] }
   0x6   :  { %138 = vmatpush1.bf16.msra.mxu0 %v82_v9  ;;  %v54_v20 = vld [vmem:[%s925_s0 + $0xe0] sm:$0xff]  ;;  %v56_v23 = vld [vmem:[%s925_s0 + $0xf0] sm:$0xff]  ;;  %v47_v25 = vld [vmem:[%s925_s0 + $0xa8] sm:$0xff] }
   0x7   :  { %191 = vmatpush1.bf16.msra.mxu1 %v84_v13  ;;  %v78_v22 = vpack.c.bf16 %v54_v20, %v50_v19  ;;  %139 = vmatprep.subr.bf16.mxu0 %v79_v17  ;;  %v80_v26 = vpack.c.bf16 %v56_v23, %v52_v21  ;;  %v75_v27 = vpack.c.bf16 %v47_v25, %v43_v24  ;;  %v45_v28 = vld [vmem:[%s925_s0 + $0x98] sm:$0xff]  ;;  %v42_v30 = vld [vmem:[%s925_s0 + $0x80] sm:$0xff]  ;;  %v44_v33 = vld [vmem:[%s925_s0 + $0x90] sm:$0xff] }
   0x8   :  { %192 = vmatprep.subr.bf16.mxu1 %v81_v18  ;;  %v49_v29 = vld [vmem:[%s925_s0 + $0xb8] sm:$0xff]  ;;  %v46_v32 = vld [vmem:[%s925_s0 + $0xa0] sm:$0xff]  ;;  %v48_v34 = vld [vmem:[%s925_s0 + $0xb0] sm:$0xff] }
   0x9   :  { %v77_v31 = vpack.c.bf16 %v49_v29, %v45_v28  ;;  %v74_v35 = vpack.c.bf16 %v46_v32, %v42_v30  ;;  %v35_v36 = vld [vmem:[%s925_s0 + $0x48] sm:$0xff]  ;;  %v37_v38 = vld [vmem:[%s925_s0 + $0x58] sm:$0xff]  ;;  %v76_v39 = vpack.c.bf16 %v48_v34, %v44_v33  ;;  %v34_v42 = vld [vmem:[%s925_s0 + $0x40] sm:$0xff] }
   0xa   :  { %140 = vmatpush1.bf16.msra.mxu0 %v78_v22  ;;  %v39_v37 = vld [vmem:[%s925_s0 + $0x68] sm:$0xff]  ;;  %v41_v41 = vld [vmem:[%s925_s0 + $0x78] sm:$0xff]  ;;  %v38_v43 = vld [vmem:[%s925_s0 + $0x60] sm:$0xff] }
   0xb   :  { %193 = vmatpush1.bf16.msra.mxu1 %v80_v26  ;;  %141 = vmatprep.subr.bf16.mxu0 %v75_v27  ;;  %v71_v40 = vpack.c.bf16 %v39_v37, %v35_v36  ;;  %v73_v44 = vpack.c.bf16 %v41_v41, %v37_v38  ;;  %v36_v45 = vld [vmem:[%s925_s0 + $0x50] sm:$0xff]  ;;  %v27_v47 = vld [vmem:[%s925_s0 + $0x8] sm:$0xff]  ;;  %v29_v49 = vld [vmem:[%s925_s0 + $0x18] sm:$0xff]  ;;  %v70_v51 = vpack.c.bf16 %v38_v43, %v34_v42 }
   0xc   :  { %194 = vmatprep.subr.bf16.mxu1 %v77_v31  ;;  %v40_v46 = vld [vmem:[%s925_s0 + $0x70] sm:$0xff]  ;;  %v31_v48 = vld [vmem:[%s925_s0 + $0x28] sm:$0xff]  ;;  %v33_v50 = vld [vmem:[%s925_s0 + $0x38] sm:$0xff] }
   0xd   :  { %v26_v52 = vld [vmem:[%s925_s0] sm:$0xff]  ;;  %v72_v54 = vpack.c.bf16 %v40_v46, %v36_v45  ;;  %v67_v55 = vpack.c.bf16 %v31_v48, %v27_v47  ;;  %v28_v56 = vld [vmem:[%s925_s0 + $0x10] sm:$0xff]  ;;  %v69_v57 = vpack.c.bf16 %v33_v50, %v29_v49  ;;  %v91_v63 = vld [vmem:[%s927_s2 + $0x8] sm:$0xff] }
   0xe   :  { %142 = vmatpush1.bf16.msra.mxu0 %v74_v35  ;;  %v30_v53 = vld [vmem:[%s925_s0 + $0x20] sm:$0xff]  ;;  %v32_v58 = vld [vmem:[%s925_s0 + $0x30] sm:$0xff]  ;;  %v93_v1 = vld [vmem:[%s927_s2 + $0x18] sm:$0xff] }
   0xf   :  { %195 = vmatpush1.bf16.msra.mxu1 %v76_v39  ;;  %143 = vmatprep.subr.bf16.mxu0 %v71_v40  ;;  %v90_v59 = vld [vmem:[%s927_s2] sm:$0xff]  ;;  %v92_v60 = vld [vmem:[%s927_s2 + $0x10] sm:$0xff]  ;;  %v66_v61 = vpack.c.bf16 %v30_v53, %v26_v52  ;;  %v68_v62 = vpack.c.bf16 %v32_v58, %v28_v56  ;;  %v620_v4 = vld [vmem:[%s926_s1 + $0x8] sm:$0xff]  }
  0x10   :  { %196 = vmatprep.subr.bf16.mxu1 %v73_v44  ;;  %96 = vperm.xlu1 %618, %v90_v59   ;;  %v619_v0 = vld [vmem:[%s926_s1] sm:$0xff]  }
  0x11   :  { %106 = vperm.xlu0 %617, %v92_v60   ;;  %v294_v2 = vld [vmem:[%s928_s4] sm:$0xff] }
  0x12   :  { %144 = vmatpush1.bf16.msra.mxu0 %v70_v51 }
  0x13   :  { %197 = vmatpush1.bf16.msra.mxu1 %v72_v54  ;;  %145 = vmatprep.subr.bf16.mxu0 %v67_v55 }
  0x14   :  { %198 = vmatprep.subr.bf16.mxu1 %v69_v57  ;;  %101 = vperm.xlu1 %618, %v91_v63  }
  0x15   :  { %111 = vperm.xlu0 %617, %v93_v1  }
  0x16   :  { %146 = vmatpush1.bf16.msra.mxu0 %v66_v61 }
  0x17   :  { %199 = vmatpush1.bf16.msra.mxu1 %v68_v62 }
  0x19   :  { %599 = vmatmul.mubr.msk.bf16.vlgmr.msra.gmra.mxu0 %vm124_vm0, %v619_v0  ;;  %297 = vperm.xlu0 %617, %v294_v2  }
  0x1a   :  { %601 = vmatmul.mubr.msk.bf16.vlgmr.msra.gmra.mxu1 %vm124_vm0, %v619_v0  ;;  %173 = vmatprep.mubr.bf16.mxu0 %v653_v3 }
  0x1b   :  { %226 = vmatprep.mubr.bf16.mxu1 %v653_v3 }
  0x21   :  { %600 = vmatmul.mubr.msk.bf16.gmra.mxu0 %vm124_vm0, %v620_v4 }
  0x22   :  { %602 = vmatmul.mubr.msk.bf16.gmra.mxu1 %vm124_vm0, %v620_v4  ;;  %336 = vmatprep.mubr.bf16.mxu0 %v653_v3 }
  0x23   :  { %377 = vmatprep.mubr.bf16.mxu1 %v653_v3 }
  0x8b   :  { %v97_v5 = vpop.permute.xlu1 %96 }
  0x8c   :  { %v107_v14 = vpop.permute.xlu0 %106 }
  0x8f   :  { %v102_v11 = vpop.permute.xlu1 %101 }
  0x90   :  { %v112_v34 = vpop.permute.xlu0 %111 }
  0xd9   :  { %v165_v6 = vpop.f32.mrf.mxu0 }
  0xda   :  { %v218_v7 = vpop.f32.mrf.mxu1  ;;  %v844_v13 = vadd.f32 %v165_v6, %v97_v5 }
  0xdb   :  { %v167_v8 = vpop.f32.mrf.mxu0  ;;  %v846_v16 = vadd.f32 %v218_v7, %v97_v5 }
  0xdc   :  { %v220_v9 = vpop.f32.mrf.mxu1  ;;  %v848_v17 = vadd.f32 %v167_v8, %v97_v5  ;;  %v857_v24 = vmul.f32 0.25, %v844_v13  ;;  %vm237_vm6 = vcmp.gt.f32.partialorder %v844_v13, 0.0 }
  0xdd   :  { %v169_v10 = vpop.f32.mrf.mxu0  ;;  %v850_v19 = vadd.f32 %v220_v9, %v97_v5  ;;  %v860_v28 = vmul.f32 0.25, %v846_v16  ;;  %vm239_vm9 = vcmp.gt.f32.partialorder %v846_v16, 0.0 }
  0xde   :  { %v222_v12 = vpop.f32.mrf.mxu1  ;;  %v852_v3 = vadd.f32 %v169_v10, %v102_v11  ;;  %vm238_vm1 = vcmp.gt.f32.partialorder %v848_v17, 0.0  ;;  %v254_v29 = vmul.f32 0.25, %v848_v17 }
  0xdf   :  { %v171_v15 = vpop.f32.mrf.mxu0  ;;  %v854_v21 = vadd.f32 %v222_v12, %v102_v11  ;;  %vm240_vm2 = vcmp.gt.f32.partialorder %v850_v19, 0.0  ;;  %v256_v32 = vmul.f32 0.25, %v850_v19 }
  0xe0   :  { %v224_v18 = vpop.f32.mrf.mxu1  ;;  %v172_v22 = vadd.f32 %v171_v15, %v102_v11  ;;  %vm241_vm3 = vcmp.gt.f32.partialorder %v852_v3, 0.0  ;;  %v257_v33 = vmul.f32 0.25, %v852_v3  ;;  %v270_v6 = vsel %vm238_vm1, %v848_v17, %v254_v29 }
  0xe1   :  { %v175_v20 = vpop.f32.mrf.mxu0  ;;  %v225_v25 = vadd.f32 %v224_v18, %v102_v11  ;;  %vm243_vm4 = vcmp.gt.f32.partialorder %v854_v21, 0.0  ;;  %v259_v37 = vmul.f32 0.25, %v854_v21  ;;  %v272_v10 = vsel %vm240_vm2, %v850_v19, %v256_v32  ;;  %v285_v19 = vld [vmem:[%s929_s3] sm:$0xf] }
  0xe2   :  { %v228_v23 = vpop.f32.mrf.mxu1  ;;  %v176_v26 = vadd.f32 %v175_v20, %v107_v14  ;;  %vm242_vm5 = vcmp.gt.f32.partialorder %v172_v22, 0.0  ;;  %v258_v41 = vmul.f32 0.25, %v172_v22  ;;  %v273_v7 = vsel %vm241_vm3, %v852_v3, %v257_v33  ;;  %v298_v3 = vpop.permute.xlu0 %297 }
  0xe3   :  { %v177_v27 = vpop.f32.mrf.mxu0  ;;  %v229_v30 = vadd.f32 %v228_v23, %v107_v14  ;;  %vm244_vm7 = vcmp.gt.f32.partialorder %v225_v25, 0.0  ;;  %v260_v42 = vmul.f32 0.25, %v225_v25  ;;  %v275_v11 = vsel %vm243_vm4, %v854_v21, %v259_v37 }
  0xe4   :  { %v230_v31 = vpop.f32.mrf.mxu1  ;;  %v178_v35 = vadd.f32 %v177_v27, %v107_v14  ;;  %vm245_vm8 = vcmp.gt.f32.partialorder %v176_v26, 0.0  ;;  %v261_v44 = vmul.f32 0.25, %v176_v26  ;;  %v274_v57 = vsel %vm242_vm5, %v172_v22, %v258_v41 }
  0xe5   :  { %v179_v36 = vpop.f32.mrf.mxu0  ;;  %v231_v38 = vadd.f32 %v230_v31, %v107_v14  ;;  %v263_v45 = vmul.f32 0.25, %v229_v30  ;;  %vm247_vm0 = vcmp.gt.f32.partialorder %v229_v30, 0.0  ;;  %v276_v61 = vsel %vm244_vm7, %v225_v25, %v260_v42 }
  0xe6   :  { %v180_v39 = vadd.f32 %v179_v36, %v112_v34  ;;  %v232_v40 = vpop.f32.mrf.mxu1  ;;  %v262_v49 = vmul.f32 0.25, %v178_v35  ;;  %vm246_vm11 = vcmp.gt.f32.partialorder %v178_v35, 0.0  ;;  %v277_v62 = vsel %vm245_vm8, %v176_v26, %v261_v44 }
  0xe7   :  { %v181_v43 = vpop.f32.mrf.mxu0  ;;  %v233_v47 = vadd.f32 %v232_v40, %v112_v34  ;;  %v264_v52 = vmul.f32 0.25, %v231_v38  ;;  %vm248_vm13 = vcmp.gt.f32.partialorder %v231_v38, 0.0  ;;  %v279_v2 = vsel %vm247_vm0, %v229_v30, %v263_v45  ;;  %v414_v30 = vld [vmem:[%s930_s5] sm:$0xff] }
  0xe8   :  { %v265_v46 = vmul.f32 0.25, %v180_v39  ;;  %v234_v48 = vpop.f32.mrf.mxu1  ;;  %vm249_vm10 = vcmp.gt.f32.partialorder %v180_v39, 0.0  ;;  %v182_v50 = vadd.f32 %v181_v43, %v112_v34  ;;  %v278_v59 = vsel %vm246_vm11, %v178_v35, %v262_v49 }
  0xe9   :  { %v235_v51 = vadd.f32 %v234_v48, %v112_v34  ;;  %vm251_vm12 = vcmp.gt.f32.partialorder %v233_v47, 0.0  ;;  %v267_v53 = vmul.f32 0.25, %v233_v47  ;;  %v280_v0 = vsel %vm248_vm13, %v231_v38, %v264_v52 }
  0xea   :  { %vm250_vm14 = vcmp.gt.f32.partialorder %v182_v50, 0.0  ;;  %v266_v54 = vmul.f32 0.25, %v182_v50  ;;  %v281_v55 = vsel %vm249_vm10, %v180_v39, %v265_v46  ;;  %v287_v9 = vpack.c.bf16 %v274_v57, %v270_v6 }
  0xeb   :  { %vm252_vm15 = vcmp.gt.f32.partialorder %v235_v51, 0.0  ;;  %v268_v56 = vmul.f32 0.25, %v235_v51  ;;  %v283_v58 = vsel %vm251_vm12, %v233_v47, %v267_v53  ;;  %v290_v4 = vpack.c.bf16 %v281_v55, %v277_v62 }
  0xec   :  { %v282_v60 = vsel %vm250_vm14, %v182_v50, %v266_v54  ;;  %v292_v8 = vpack.c.bf16 %v283_v58, %v279_v2  ;;  %v289_v12 = vpack.c.bf16 %v276_v61, %v272_v10  ;;  %v269_v14 = vsel %vm237_vm6, %v844_v13, %v857_v24 }
  0xed   :  { %v291_v63 = vpack.c.bf16 %v282_v60, %v278_v59  ;;  %v284_v1 = vsel %vm252_vm15, %v235_v51, %v268_v56  ;;  %v271_v15 = vsel %vm239_vm9, %v846_v16, %v860_v28  ;;  %v286_v17 = vpack.c.bf16 %v273_v7, %v269_v14 }
  0xee   :  { %v293_v5 = vpack.c.bf16 %v284_v1, %v280_v0  ;;  %v288_v18 = vpack.c.bf16 %v275_v11, %v271_v15  ;;  %vm300_vm1 = vcmask 261120   ;;  %v654_v13 = vmov 0.0  }
  0xef   :  { %316 = vmatprep.subr.bf16.mxu0 %v291_v63  ;;  %vm415_vm2 = vcmask 64512  }
  0xf0   :  { %357 = vmatprep.subr.bf16.mxu1 %v293_v5  ;;  %317 = vmatpush1.bf16.msra.mxu0 %v290_v4 }
  0xf1   :  { %358 = vmatpush1.bf16.msra.mxu1 %v292_v8  ;;  %318 = vmatprep.subr.bf16.mxu0 %v287_v9 }
  0xf2   :  { %359 = vmatprep.subr.bf16.mxu1 %v289_v12 }
  0xf4   :  { %319 = vmatpush1.bf16.msra.mxu0 %v286_v17 }
  0xf5   :  { %360 = vmatpush1.bf16.msra.mxu1 %v288_v18 }
  0xf7   :  { %603 = vmatmul.mubr.msk.bf16.vlgmr.msra.gmra.mxu0 %vm300_vm1, %v285_v19 }
  0xf8   :  { %604 = vmatmul.mubr.msk.bf16.vlgmr.msra.gmra.mxu1 %vm300_vm1, %v285_v19  ;;  %483 = vmatprep.mubr.f32.mxu0 %v654_v13 }
  0xf9   :  { %554 = vmatprep.mubr.f32.mxu1 %v654_v13 }
 0x1b7   :  { %v338_v20 = vpop.f32.mrf.mxu0 }
 0x1b8   :  { %v339_v21 = vadd.f32 %v338_v20, %v298_v3  ;;  %v379_v22 = vpop.f32.mrf.mxu1 }
 0x1b9   :  { %v380_v16 = vadd.f32 %v379_v22, %v298_v3  ;;  %v340_v23 = vpop.f32.mrf.mxu0 }
 0x1ba   :  { %v605_v24 = vmul.f32 -1.442695, %v339_v21  ;;  %v341_v25 = vadd.f32 %v340_v23, %v298_v3  ;;  %v381_v26 = vpop.f32.mrf.mxu1 }
 0x1bb   :  { %v607_v27 = vmul.f32 -1.442695, %v380_v16  ;;  %v382_v28 = vadd.f32 %v381_v26, %v298_v3  ;;  %v342_v29 = vpop.f32.mrf.mxu0 }
 0x1bc   :  { %621 = vpow2.f32 %v605_v24  ;;  %v606_v31 = vmul.f32 -1.442695, %v341_v25  ;;  %v383_v32 = vpop.f32.mrf.mxu1  ;;  %449 = vmatprep.subr.mxu0 %v341_v25 }
 0x1bd   :  { %623 = vpow2.f32 %v607_v27  ;;  %v608_v33 = vmul.f32 -1.442695, %v382_v28  ;;  %520 = vmatprep.subr.mxu1 %v382_v28  ;;  %v343_v34 = vpop.f32.mrf.mxu0  ;;  %450 = vmatpush1.msra.mxu0 %v339_v21 }
 0x1be   :  { %625 = vpow2.f32 %v606_v31  ;;  %v384_v35 = vpop.f32.mrf.mxu1  ;;  %521 = vmatpush1.msra.mxu1 %v380_v16  ;;  %609 = vmatmul.mubr.msk.f32.vlgmr.msra.gmra.mxu0 %vm415_vm2, %v414_v30 }
 0x1bf   :  { %627 = vpow2.f32 %v608_v33  ;;  %610 = vmatmul.mubr.msk.f32.vlgmr.msra.gmra.mxu1 %vm415_vm2, %v414_v30 }
 0x1c9   :  { %v622_v36 = vpop.eup %621 }
 0x1ca   :  { %v624_v37 = vpop.eup %623  ;;  %v398_v38 = vadd.f32 1.0, %v622_v36 }
 0x1cb   :  { %v626_v39 = vpop.eup %625  ;;  %v400_v40 = vadd.f32 1.0, %v624_v37 }
 0x1cc   :  { %v628_v41 = vpop.eup %627  ;;  %629 = vrcp.f32 %v398_v38  ;;  %v399_v42 = vadd.f32 1.0, %v626_v39 }
 0x1cd   :  { %631 = vrcp.f32 %v400_v40  ;;  %v401_v43 = vadd.f32 1.0, %v628_v41 }
 0x1ce   :  { %633 = vrcp.f32 %v399_v42 }
 0x1cf   :  { %635 = vrcp.f32 %v401_v43 }
 0x1d9   :  { %v630_v44 = vpop.eup %629 }
 0x1da   :  { %v632_v45 = vpop.eup %631  ;;  %410 = vst [vmem:[%s931_s6] sm:$0xff] %v630_v44 }
 0x1db   :  { %v634_v46 = vpop.eup %633  ;;  %412 = vst [vmem:[%s931_s6 + $0x10] sm:$0xff] %v632_v45 }
 0x1dc   :  { %v636_v47 = vpop.eup %635  ;;  %411 = vst [vmem:[%s931_s6 + $0x8] sm:$0xff] %v634_v46 }
 0x1dd   :  { %413 = vst [vmem:[%s931_s6 + $0x18] sm:$0xff] %v636_v47 }
 0x27e   :  { %v485_v48 = vpop.f32.mrf.mxu0 }
 0x27f   :  { %v611_v49 = vmul.f32 -1.442695, %v485_v48  ;;  %v556_v50 = vpop.f32.mrf.mxu1 }
 0x280   :  { %v613_v51 = vmul.f32 -1.442695, %v556_v50  ;;  %v487_v52 = vpop.f32.mrf.mxu0 }
 0x281   :  { %637 = vpow2.f32 %v611_v49  ;;  %v612_v53 = vmul.f32 -1.442695, %v487_v52  ;;  %v558_v54 = vpop.f32.mrf.mxu1 }
 0x282   :  { %639 = vpow2.f32 %v613_v51  ;;  %v614_v55 = vmul.f32 -1.442695, %v558_v54 }
 0x283   :  { %641 = vpow2.f32 %v612_v53 }
 0x284   :  { %643 = vpow2.f32 %v614_v55 }
 0x28e   :  { %v638_v56 = vpop.eup %637 }
 0x28f   :  { %v640_v57 = vpop.eup %639  ;;  %v573_v58 = vadd.f32 1.0, %v638_v56 }
 0x290   :  { %v642_v59 = vpop.eup %641  ;;  %v575_v60 = vadd.f32 1.0, %v640_v57 }
 0x291   :  { %v644_v61 = vpop.eup %643  ;;  %645 = vrcp.f32 %v573_v58  ;;  %v574_v62 = vadd.f32 1.0, %v642_v59 }
 0x292   :  { %647 = vrcp.f32 %v575_v60  ;;  %v576_v63 = vadd.f32 1.0, %v644_v61 }
 0x293   :  { %649 = vrcp.f32 %v574_v62 }
 0x294   :  { %651 = vrcp.f32 %v576_v63 }
 0x29e   :  { %v646_v0 = vpop.eup %645 }
 0x29f   :  { %v648_v1 = vpop.eup %647  ;;  %585 = vst [vmem:[%s932_s7] sm:$0xff] %v646_v0 }
 0x2a0   :  { %v650_v2 = vpop.eup %649  ;;  %587 = vst [vmem:[%s932_s7 + $0x10] sm:$0xff] %v648_v1 }
 0x2a1   :  { %v652_v4 = vpop.eup %651  ;;  %586 = vst [vmem:[%s932_s7 + $0x8] sm:$0xff] %v650_v2 }
 0x2a2   :  { %588 = vst [vmem:[%s932_s7 + $0x18] sm:$0xff] %v652_v4 }

// kernel: hupr_forward.3
= control target key start
LH: loop header
LB: loop body
LE: loop exit
PB: predicated region body
PF: predicated region fallthrough
CT: control target
= control target key end

     0   :  { %vm270_vm0 = vcmask 1043456   ;;  %vm4145_vm1 = vcmask 1041409   ;;  %vm4147_vm2 = vcmask 1042434   ;;  %vm4149_vm3 = vcmask 1043459   ;;  %s7231_s0 = inlined_call_operand.vmem [shape: f32[32,4,256], index: 0, kind: input, shape index: {}]   ;;  %s7232_s1 = inlined_call_operand.vmem [shape: f32[32,4,256], index: 1, kind: input, shape index: {}]   ;;  %s7233_s2 = inlined_call_operand.vmem [shape: f32[256,384], index: 2, kind: input, shape index: {}]   ;;  %s7234_s3 = inlined_call_operand.vmem [shape: f32[2,16,768], index: 3, kind: output, shape index: {}]  }
   0x1   :  { %v4856_v0 = vld [vmem:[%s7231_s0] sm:$0xff]  ;;  %v4861_v1 = vld [vmem:[%s7231_s0 + $0x10] sm:$0xff]  ;;  %v4866_v2 = vld [vmem:[%s7231_s0 + $0x8] sm:$0xff]  ;;  %vm4151_vm4 = vcmask 1044484   ;;  %vm4153_vm5 = vcmask 1045509   ;;  %vm4155_vm6 = vcmask 1046534  }
   0x2   :  { %v142_v3 = vcombine.high %v4856_v0, %v4856_v0  ;;  %v271_v4 = vsel %vm270_vm0, %v4856_v0, 0.0  ;;  %v144_v5 = vcombine.high %v4861_v1, %v4861_v1  ;;  %v281_v6 = vsel %vm270_vm0, %v4861_v1, 0.0  ;;  %v4879_v7 = vld [vmem:[%s7231_s0 + $0x18] sm:$0xff]  ;;  %v4884_v8 = vld [vmem:[%s7231_s0 + $0x20] sm:$0xff]  ;;  %v4895_v12 = vld [vmem:[%s7231_s0 + $0x28] sm:$0xff] }
   0x3   :  { %v143_v9 = vcombine.high %v4866_v2, %v4866_v2  ;;  %v276_v10 = vsel %vm270_vm0, %v4866_v2, 0.0  ;;  %v145_v11 = vcombine.high %v4879_v7, %v4879_v7  ;;  %v286_v15 = vsel %vm270_vm0, %v4879_v7, 0.0  ;;  %v4908_v21 = vld [vmem:[%s7231_s0 + $0x40] sm:$0xff]  ;;  %v4913_v22 = vld [vmem:[%s7231_s0 + $0x48] sm:$0xff]  ;;  %v4930_v32 = vld [vmem:[%s7231_s0 + $0x30] sm:$0xff] }
   0x4   :  { %v272_v13 = vsel %vm270_vm0, %v142_v3, 0.0  ;;  %v282_v14 = vsel %vm270_vm0, %v144_v5, 0.0  ;;  %v146_v16 = vcombine.high %v4884_v8, %v4884_v8  ;;  %v147_v23 = vcombine.high %v4895_v12, %v4895_v12  ;;  %v4935_v33 = vld [vmem:[%s7231_s0 + $0x50] sm:$0xff]  ;;  %v4950_v42 = vld [vmem:[%s7231_s0 + $0x38] sm:$0xff]  ;;  %v4970_v52 = vld [vmem:[%s7231_s0 + $0x60] sm:$0xff] }
   0x5   :  { %v273_v17 = vadd.f32 %v272_v13, %v271_v4  ;;  %v283_v18 = vadd.f32 %v282_v14, %v281_v6  ;;  %v277_v19 = vsel %vm270_vm0, %v143_v9, 0.0  ;;  %v287_v20 = vsel %vm270_vm0, %v145_v11, 0.0  ;;  %v4955_v43 = vld [vmem:[%s7231_s0 + $0x58] sm:$0xff]  ;;  %v4975_v53 = vld [vmem:[%s7231_s0 + $0x68] sm:$0xff]  ;;  %v4990_v62 = vld [vmem:[%s7231_s0 + $0x80] sm:$0xff] }
   0x6   :  { %v278_v24 = vadd.f32 %v277_v19, %v276_v10  ;;  %v288_v25 = vadd.f32 %v287_v20, %v286_v15  ;;  %v291_v26 = vsel %vm270_vm0, %v4884_v8, 0.0  ;;  %v292_v27 = vsel %vm270_vm0, %v146_v16, 0.0  ;;  %v4995_v63 = vld [vmem:[%s7231_s0 + $0x88] sm:$0xff]  ;;  %v5010_v14 = vld [vmem:[%s7231_s0 + $0x70] sm:$0xff] }
   0x7   :  { %274 = vadd.xlane.f32.xlu0 %v273_v17  ;;  %284 = vadd.xlane.f32.xlu1 %v283_v18  ;;  %v296_v28 = vsel %vm270_vm0, %v4895_v12, 0.0  ;;  %v297_v29 = vsel %vm270_vm0, %v147_v23, 0.0  ;;  %v150_v30 = vcombine.high %v4908_v21, %v4908_v21  ;;  %v151_v31 = vcombine.high %v4913_v22, %v4913_v22  ;;  %v5015_v15 = vld [vmem:[%s7231_s0 + $0x90] sm:$0xff] }
   0x8   :  { %v293_v34 = vadd.f32 %v292_v27, %v291_v26  ;;  %v298_v35 = vadd.f32 %v297_v29, %v296_v28  ;;  %v311_v36 = vsel %vm270_vm0, %v4908_v21, 0.0  ;;  %v148_v37 = vcombine.high %v4930_v32, %v4930_v32  ;;  %v5030_v26 = vld [vmem:[%s7231_s0 + $0x78] sm:$0xff] }
   0x9   :  { %v312_v38 = vsel %vm270_vm0, %v150_v30, 0.0  ;;  %v316_v39 = vsel %vm270_vm0, %v4913_v22, 0.0  ;;  %v317_v40 = vsel %vm270_vm0, %v151_v31, 0.0  ;;  %v152_v41 = vcombine.high %v4935_v33, %v4935_v33  ;;  %v5035_v27 = vld [vmem:[%s7231_s0 + $0x98] sm:$0xff] }
   0xa   :  { %v313_v44 = vadd.f32 %v312_v38, %v311_v36  ;;  %v318_v45 = vadd.f32 %v317_v40, %v316_v39  ;;  %v301_v46 = vsel %vm270_vm0, %v4930_v32, 0.0  ;;  %v302_v47 = vsel %vm270_vm0, %v148_v37, 0.0  ;;  %v34_v38 = vld [vmem:[%s7231_s0 + $0xa0] sm:$0xff]  ;;  %v35_v39 = vld [vmem:[%s7231_s0 + $0xa8] sm:$0xff] }
   0xb   :  { %279 = vadd.xlane.f32.xlu0 %v278_v24  ;;  %289 = vadd.xlane.f32.xlu1 %v288_v25  ;;  %v321_v48 = vsel %vm270_vm0, %v4935_v33, 0.0  ;;  %v322_v49 = vsel %vm270_vm0, %v152_v41, 0.0  ;;  %v149_v50 = vcombine.high %v4950_v42, %v4950_v42  ;;  %v153_v51 = vcombine.high %v4955_v43, %v4955_v43 }
   0xc   :  { %v303_v54 = vadd.f32 %v302_v47, %v301_v46  ;;  %v323_v55 = vadd.f32 %v322_v49, %v321_v48  ;;  %v306_v56 = vsel %vm270_vm0, %v4950_v42, 0.0  ;;  %v326_v57 = vsel %vm270_vm0, %v4955_v43, 0.0 }
   0xd   :  { %v307_v58 = vsel %vm270_vm0, %v149_v50, 0.0  ;;  %v327_v59 = vsel %vm270_vm0, %v153_v51, 0.0  ;;  %v154_v60 = vcombine.high %v4970_v52, %v4970_v52  ;;  %v155_v61 = vcombine.high %v4975_v53, %v4975_v53  ;;  %v38_v50 = vld [vmem:[%s7231_s0 + $0xc0] sm:$0xff]  ;;  %v39_v51 = vld [vmem:[%s7231_s0 + $0xc8] sm:$0xff] }
   0xe   :  { %v308_v3 = vadd.f32 %v307_v58, %v306_v56  ;;  %v328_v4 = vadd.f32 %v327_v59, %v326_v57  ;;  %v331_v5 = vsel %vm270_vm0, %v4970_v52, 0.0  ;;  %v158_v6 = vcombine.high %v4990_v62, %v4990_v62 }
   0xf   :  { %294 = vadd.xlane.f32.xlu0 %v293_v34  ;;  %299 = vadd.xlane.f32.xlu1 %v298_v35  ;;  %v332_v9 = vsel %vm270_vm0, %v154_v60, 0.0  ;;  %v336_v10 = vsel %vm270_vm0, %v4975_v53, 0.0  ;;  %v337_v11 = vsel %vm270_vm0, %v155_v61, 0.0  ;;  %v159_v13 = vcombine.high %v4995_v63, %v4995_v63 }
  0x10   :  { %v333_v16 = vadd.f32 %v332_v9, %v331_v5  ;;  %v338_v17 = vadd.f32 %v337_v11, %v336_v10  ;;  %v351_v18 = vsel %vm270_vm0, %v4990_v62, 0.0  ;;  %v352_v19 = vsel %vm270_vm0, %v158_v6, 0.0 }
  0x11   :  { %v356_v20 = vsel %vm270_vm0, %v4995_v63, 0.0  ;;  %v357_v23 = vsel %vm270_vm0, %v159_v13, 0.0  ;;  %v156_v24 = vcombine.high %v5010_v14, %v5010_v14  ;;  %v160_v25 = vcombine.high %v5015_v15, %v5015_v15 }
  0x12   :  { %v353_v28 = vadd.f32 %v352_v19, %v351_v18  ;;  %v358_v29 = vadd.f32 %v357_v23, %v356_v20  ;;  %v341_v30 = vsel %vm270_vm0, %v5010_v14, 0.0  ;;  %v157_v31 = vcombine.high %v5030_v26, %v5030_v26  ;;  %v37_v18 = vld [vmem:[%s7231_s0 + $0xb8] sm:$0xff] }
  0x13   :  { %314 = vadd.xlane.f32.xlu0 %v313_v44  ;;  %319 = vadd.xlane.f32.xlu1 %v318_v45  ;;  %v342_v34 = vsel %vm270_vm0, %v156_v24, 0.0  ;;  %v361_v35 = vsel %vm270_vm0, %v5015_v15, 0.0  ;;  %v362_v36 = vsel %vm270_vm0, %v160_v25, 0.0  ;;  %v161_v37 = vcombine.high %v5035_v27, %v5035_v27  ;;  %v41_v19 = vld [vmem:[%s7231_s0 + $0xd8] sm:$0xff] }
  0x14   :  { %v343_v40 = vadd.f32 %v342_v34, %v341_v30  ;;  %v363_v41 = vadd.f32 %v362_v36, %v361_v35  ;;  %v346_v44 = vsel %vm270_vm0, %v5030_v26, 0.0  ;;  %v347_v45 = vsel %vm270_vm0, %v157_v31, 0.0  ;;  %v42_v34 = vld [vmem:[%s7231_s0 + $0xe0] sm:$0xff]  ;;  %v43_v35 = vld [vmem:[%s7231_s0 + $0xe8] sm:$0xff] }
  0x15   :  { %v366_v46 = vsel %vm270_vm0, %v5035_v27, 0.0  ;;  %v367_v47 = vsel %vm270_vm0, %v161_v37, 0.0  ;;  %v162_v48 = vcombine.high %v34_v38, %v34_v38  ;;  %v163_v49 = vcombine.high %v35_v39, %v35_v39 }
  0x16   :  { %v371_v56 = vsel %vm270_vm0, %v34_v38, 0.0  ;;  %v376_v57 = vsel %vm270_vm0, %v35_v39, 0.0  ;;  %v166_v60 = vcombine.high %v38_v50, %v38_v50  ;;  %v167_v61 = vcombine.high %v39_v51, %v39_v51 }
  0x17   :  { %304 = vadd.xlane.f32.xlu0 %v303_v54  ;;  %324 = vadd.xlane.f32.xlu1 %v323_v55  ;;  %v348_v54 = vadd.f32 %v347_v45, %v346_v44  ;;  %v368_v55 = vadd.f32 %v367_v47, %v366_v46  ;;  %v372_v58 = vsel %vm270_vm0, %v162_v48, 0.0  ;;  %v377_v59 = vsel %vm270_vm0, %v163_v49, 0.0  ;;  %v46_v46 = vld [vmem:[%s7232_s1] sm:$0xff]  ;;  %v47_v47 = vld [vmem:[%s7232_s1 + $0x8] sm:$0xff] }
  0x18   :  { %v373_v5 = vadd.f32 %v372_v58, %v371_v56  ;;  %v378_v6 = vadd.f32 %v377_v59, %v376_v57  ;;  %v391_v9 = vsel %vm270_vm0, %v38_v50, 0.0  ;;  %v392_v11 = vsel %vm270_vm0, %v166_v60, 0.0  ;;  %v44_v58 = vld [vmem:[%s7231_s0 + $0xf0] sm:$0xff] }
  0x19   :  { %v396_v13 = vsel %vm270_vm0, %v39_v51, 0.0  ;;  %v393_v20 = vadd.f32 %v392_v11, %v391_v9  ;;  %v165_v30 = vcombine.high %v37_v18, %v37_v18  ;;  %v169_v31 = vcombine.high %v41_v19, %v41_v19  ;;  %v48_v59 = vld [vmem:[%s7232_s1 + $0x10] sm:$0xff]  ;;  %v45_v11 = vld [vmem:[%s7231_s0 + $0xf8] sm:$0xff] }
  0x1a   :  { %v386_v38 = vsel %vm270_vm0, %v37_v18, 0.0  ;;  %v170_v39 = vcombine.high %v42_v34, %v42_v34  ;;  %v171_v45 = vcombine.high %v43_v35, %v43_v35  ;;  %v411_v50 = vsel %vm270_vm0, %v42_v34, 0.0 }
  0x1b   :  { %309 = vadd.xlane.f32.xlu0 %v308_v3  ;;  %329 = vadd.xlane.f32.xlu1 %v328_v4  ;;  %v36_v3 = vld [vmem:[%s7231_s0 + $0xb0] sm:$0xff]  ;;  %v407_v44 = vsel %vm270_vm0, %v169_v31, 0.0  ;;  %v174_v56 = vcombine.high %v46_v46, %v46_v46  ;;  %v175_v57 = vcombine.high %v47_v47, %v47_v47  ;;  %v172_v9 = vcombine.high %v44_v58, %v44_v58 }
  0x1c   :  { %v40_v4 = vld [vmem:[%s7231_s0 + $0xd0] sm:$0xff]  ;;  %v164_v10 = vcombine.high %v36_v3, %v36_v3  ;;  %v381_v24 = vsel %vm270_vm0, %v36_v3, 0.0  ;;  %v412_v51 = vsel %vm270_vm0, %v170_v39, 0.0  ;;  %v431_v3 = vsel %vm270_vm0, %v46_v46, 0.0 }
  0x1d   :  { %v413_v60 = vadd.f32 %v412_v51, %v411_v50  ;;  %v421_v18 = vsel %vm270_vm0, %v44_v58, 0.0  ;;  %v426_v34 = vsel %vm270_vm0, %v45_v11, 0.0  ;;  %vm4157_vm7 = vcmask 1047559  }
  0x1e   :  { %v382_v25 = vsel %vm270_vm0, %v164_v10, 0.0  ;;  %v176_v10 = vcombine.high %v48_v59, %v48_v59 }
  0x1f   :  { %334 = vadd.xlane.f32.xlu0 %v333_v16  ;;  %339 = vadd.xlane.f32.xlu1 %v338_v17  ;;  %v397_v16 = vsel %vm270_vm0, %v167_v61, 0.0  ;;  %v168_v17 = vcombine.high %v40_v4, %v40_v4  ;;  %v383_v36 = vadd.f32 %v382_v25, %v381_v24 }
  0x20   :  { %v398_v23 = vadd.f32 %v397_v16, %v396_v13  ;;  %v49_v13 = vld [vmem:[%s7232_s1 + $0x18] sm:$0xff]  ;;  %v442_v24 = vsel %vm270_vm0, %v176_v10, 0.0 }
  0x21   :  { %v177_v25 = vcombine.high %v49_v13, %v49_v13 }
  0x23   :  { %354 = vadd.xlane.f32.xlu0 %v353_v28  ;;  %359 = vadd.xlane.f32.xlu1 %v358_v29  ;;  %v401_v28 = vsel %vm270_vm0, %v40_v4, 0.0  ;;  %v402_v29 = vsel %vm270_vm0, %v168_v17, 0.0  ;;  %v436_v4 = vsel %vm270_vm0, %v47_v47, 0.0 }
  0x24   :  { %v403_v37 = vadd.f32 %v402_v29, %v401_v28  ;;  %v50_v28 = vld [vmem:[%s7232_s1 + $0x20] sm:$0xff]  ;;  %v51_v29 = vld [vmem:[%s7232_s1 + $0x28] sm:$0xff] }
  0x25   :  { %v179_v39 = vcombine.high %v51_v29, %v51_v29  ;;  %v451_v46 = vsel %vm270_vm0, %v50_v28, 0.0 }
  0x27   :  { %344 = vadd.xlane.f32.xlu0 %v343_v40  ;;  %364 = vadd.xlane.f32.xlu1 %v363_v41  ;;  %v387_v40 = vsel %vm270_vm0, %v165_v30, 0.0  ;;  %v406_v41 = vsel %vm270_vm0, %v41_v19, 0.0  ;;  %v173_v19 = vcombine.high %v45_v11, %v45_v11  ;;  %v457_v50 = vsel %vm270_vm0, %v179_v39, 0.0 }
  0x28   :  { %v388_v48 = vadd.f32 %v387_v40, %v386_v38  ;;  %v408_v49 = vadd.f32 %v407_v44, %v406_v41  ;;  %v178_v38 = vcombine.high %v50_v28, %v50_v28  ;;  %v54_v40 = vld [vmem:[%s7232_s1 + $0x40] sm:$0xff]  ;;  %v55_v41 = vld [vmem:[%s7232_s1 + $0x48] sm:$0xff] }
  0x29   :  { %v182_v47 = vcombine.high %v54_v40, %v54_v40  ;;  %v183_v51 = vcombine.high %v55_v41, %v55_v41  ;;  %v471_v58 = vsel %vm270_vm0, %v54_v40, 0.0 }
  0x2b   :  { %349 = vadd.xlane.f32.xlu0 %v348_v54  ;;  %369 = vadd.xlane.f32.xlu1 %v368_v55  ;;  %v416_v54 = vsel %vm270_vm0, %v43_v35, 0.0  ;;  %v417_v55 = vsel %vm270_vm0, %v171_v45, 0.0  ;;  %v427_v35 = vsel %vm270_vm0, %v173_v19, 0.0 }
  0x2c   :  { %v418_v61 = vadd.f32 %v417_v55, %v416_v54  ;;  %v428_v44 = vadd.f32 %v427_v35, %v426_v34  ;;  %v52_v54 = vld [vmem:[%s7232_s1 + $0x30] sm:$0xff] }
  0x2d   :  { %v56_v55 = vld [vmem:[%s7232_s1 + $0x50] sm:$0xff]  ;;  %v461_v11 = vsel %vm270_vm0, %v52_v54, 0.0 }
  0x2f   :  { %374 = vadd.xlane.f32.xlu0 %v373_v5  ;;  %379 = vadd.xlane.f32.xlu1 %v378_v6  ;;  %v432_v5 = vsel %vm270_vm0, %v174_v56, 0.0  ;;  %v437_v6 = vsel %vm270_vm0, %v175_v57, 0.0 }
  0x30   :  { %v433_v16 = vadd.f32 %v432_v5, %v431_v3  ;;  %v438_v17 = vadd.f32 %v437_v6, %v436_v4  ;;  %v180_v3 = vcombine.high %v52_v54, %v52_v54  ;;  %v184_v4 = vcombine.high %v56_v55, %v56_v55  ;;  %v53_v5 = vld [vmem:[%s7232_s1 + $0x38] sm:$0xff] }
  0x31   :  { %v57_v6 = vld [vmem:[%s7232_s1 + $0x58] sm:$0xff]  ;;  %v466_v28 = vsel %vm270_vm0, %v53_v5, 0.0 }
  0x32   :  { %v185_v19 = vcombine.high %v57_v6, %v57_v6 }
  0x33   :  { %394 = vadd.xlane.f32.xlu0 %v393_v20  ;;  %399 = vadd.xlane.f32.xlu1 %v398_v23  ;;  %v422_v20 = vsel %vm270_vm0, %v172_v9, 0.0  ;;  %v441_v23 = vsel %vm270_vm0, %v48_v59, 0.0  ;;  %v472_v59 = vsel %vm270_vm0, %v182_v47, 0.0 }
  0x34   :  { %v423_v30 = vadd.f32 %v422_v20, %v421_v18  ;;  %v443_v31 = vadd.f32 %v442_v24, %v441_v23  ;;  %v473_v9 = vadd.f32 %v472_v59, %v471_v58  ;;  %v181_v18 = vcombine.high %v53_v5, %v53_v5  ;;  %v58_v20 = vld [vmem:[%s7232_s1 + $0x60] sm:$0xff]  ;;  %v59_v23 = vld [vmem:[%s7232_s1 + $0x68] sm:$0xff] }
  0x35   :  { %v487_v34 = vsel %vm270_vm0, %v185_v19, 0.0  ;;  %v187_v35 = vcombine.high %v59_v23, %v59_v23  ;;  %v491_v40 = vsel %vm270_vm0, %v58_v20, 0.0 }
  0x37   :  { %384 = vadd.xlane.f32.xlu0 %v383_v36  ;;  %404 = vadd.xlane.f32.xlu1 %v403_v37  ;;  %v446_v36 = vsel %vm270_vm0, %v49_v13, 0.0  ;;  %v447_v37 = vsel %vm270_vm0, %v177_v25, 0.0  ;;  %v481_v13 = vsel %vm270_vm0, %v56_v55, 0.0 }
  0x38   :  { %v448_v45 = vadd.f32 %v447_v37, %v446_v36  ;;  %v62_v36 = vld [vmem:[%s7232_s1 + $0x80] sm:$0xff]  ;;  %v63_v37 = vld [vmem:[%s7232_s1 + $0x88] sm:$0xff] }
  0x39   :  { %v191_v47 = vcombine.high %v63_v37, %v63_v37  ;;  %v511_v54 = vsel %vm270_vm0, %v62_v36, 0.0 }
  0x3b   :  { %389 = vadd.xlane.f32.xlu0 %v388_v48  ;;  %409 = vadd.xlane.f32.xlu1 %v408_v49  ;;  %v452_v48 = vsel %vm270_vm0, %v178_v38, 0.0  ;;  %v456_v49 = vsel %vm270_vm0, %v51_v29, 0.0  ;;  %v186_v29 = vcombine.high %v58_v20, %v58_v20  ;;  %v517_v58 = vsel %vm270_vm0, %v191_v47, 0.0 }
  0x3c   :  { %v453_v56 = vadd.f32 %v452_v48, %v451_v46  ;;  %v458_v57 = vadd.f32 %v457_v50, %v456_v49  ;;  %v190_v46 = vcombine.high %v62_v36, %v62_v36  ;;  %v60_v48 = vld [vmem:[%s7232_s1 + $0x70] sm:$0xff] }
  0x3d   :  { %v64_v49 = vld [vmem:[%s7232_s1 + $0x90] sm:$0xff]  ;;  %v188_v55 = vcombine.high %v60_v48, %v60_v48  ;;  %v501_v5 = vsel %vm270_vm0, %v60_v48, 0.0 }
  0x3e   :  { %v192_v59 = vcombine.high %v64_v49, %v64_v49 }
  0x3f   :  { %414 = vadd.xlane.f32.xlu0 %v413_v60  ;;  %419 = vadd.xlane.f32.xlu1 %v418_v61  ;;  %v476_v60 = vsel %vm270_vm0, %v55_v41, 0.0  ;;  %v477_v61 = vsel %vm270_vm0, %v183_v51, 0.0  ;;  %v492_v41 = vsel %vm270_vm0, %v186_v29, 0.0 }
  0x40   :  { %v478_v10 = vadd.f32 %v477_v61, %v476_v60  ;;  %v493_v50 = vadd.f32 %v492_v41, %v491_v40  ;;  %v61_v60 = vld [vmem:[%s7232_s1 + $0x78] sm:$0xff] }
  0x41   :  { %v65_v61 = vld [vmem:[%s7232_s1 + $0x98] sm:$0xff]  ;;  %v506_v20 = vsel %vm270_vm0, %v61_v60, 0.0 }
  0x43   :  { %434 = vadd.xlane.f32.xlu0 %v433_v16  ;;  %439 = vadd.xlane.f32.xlu1 %v438_v17  ;;  %v462_v16 = vsel %vm270_vm0, %v180_v3, 0.0  ;;  %v482_v17 = vsel %vm270_vm0, %v184_v4, 0.0 }
  0x44   :  { %v463_v24 = vadd.f32 %v462_v16, %v461_v11  ;;  %v483_v25 = vadd.f32 %v482_v17, %v481_v13  ;;  %v189_v11 = vcombine.high %v61_v60, %v61_v60  ;;  %v193_v13 = vcombine.high %v65_v61, %v65_v61  ;;  %v66_v16 = vld [vmem:[%s7232_s1 + $0xa0] sm:$0xff]  ;;  %v67_v17 = vld [vmem:[%s7232_s1 + $0xa8] sm:$0xff] }
  0x45   :  { %v195_v29 = vcombine.high %v67_v17, %v67_v17  ;;  %v531_v36 = vsel %vm270_vm0, %v66_v16, 0.0 }
  0x47   :  { %424 = vadd.xlane.f32.xlu0 %v423_v30  ;;  %444 = vadd.xlane.f32.xlu1 %v443_v31  ;;  %v467_v30 = vsel %vm270_vm0, %v181_v18, 0.0  ;;  %v486_v31 = vsel %vm270_vm0, %v57_v6, 0.0  ;;  %v502_v6 = vsel %vm270_vm0, %v188_v55, 0.0  ;;  %v537_v40 = vsel %vm270_vm0, %v195_v29, 0.0 }
  0x48   :  { %v468_v38 = vadd.f32 %v467_v30, %v466_v28  ;;  %v488_v39 = vadd.f32 %v487_v34, %v486_v31  ;;  %v503_v18 = vadd.f32 %v502_v6, %v501_v5  ;;  %v194_v28 = vcombine.high %v66_v16, %v66_v16  ;;  %v70_v30 = vld [vmem:[%s7232_s1 + $0xc0] sm:$0xff]  ;;  %v71_v31 = vld [vmem:[%s7232_s1 + $0xc8] sm:$0xff] }
  0x49   :  { %v199_v41 = vcombine.high %v71_v31, %v71_v31  ;;  %v551_v48 = vsel %vm270_vm0, %v70_v30, 0.0 }
  0x4b   :  { %429 = vadd.xlane.f32.xlu0 %v428_v44  ;;  %449 = vadd.xlane.f32.xlu1 %v448_v45  ;;  %v496_v44 = vsel %vm270_vm0, %v59_v23, 0.0  ;;  %v497_v45 = vsel %vm270_vm0, %v187_v35, 0.0  ;;  %v526_v23 = vsel %vm270_vm0, %v65_v61, 0.0 }
  0x4c   :  { %v498_v51 = vadd.f32 %v497_v45, %v496_v44  ;;  %v68_v44 = vld [vmem:[%s7232_s1 + $0xb0] sm:$0xff] }
  0x4d   :  { %v72_v45 = vld [vmem:[%s7232_s1 + $0xd0] sm:$0xff]  ;;  %v541_v60 = vsel %vm270_vm0, %v68_v44, 0.0 }
  0x4e   :  { %v200_v55 = vcombine.high %v72_v45, %v72_v45 }
  0x4f   :  { %454 = vadd.xlane.f32.xlu0 %v453_v56  ;;  %459 = vadd.xlane.f32.xlu1 %v458_v57  ;;  %v512_v56 = vsel %vm270_vm0, %v190_v46, 0.0  ;;  %v516_v57 = vsel %vm270_vm0, %v63_v37, 0.0  ;;  %v198_v37 = vcombine.high %v70_v30, %v70_v30 }
  0x50   :  { %v513_v3 = vadd.f32 %v512_v56, %v511_v54  ;;  %v518_v4 = vadd.f32 %v517_v58, %v516_v57  ;;  %v196_v54 = vcombine.high %v68_v44, %v68_v44  ;;  %v69_v56 = vld [vmem:[%s7232_s1 + $0xb8] sm:$0xff]  ;;  %v562_v5 = vsel %vm270_vm0, %v200_v55, 0.0 }
  0x51   :  { %v73_v57 = vld [vmem:[%s7232_s1 + $0xd8] sm:$0xff]  ;;  %v197_v61 = vcombine.high %v69_v56, %v69_v56  ;;  %v546_v16 = vsel %vm270_vm0, %v69_v56, 0.0 }
  0x52   :  { %v201_v6 = vcombine.high %v73_v57, %v73_v57 }
  0x53   :  { %474 = vadd.xlane.f32.xlu0 %v473_v9  ;;  %479 = vadd.xlane.f32.xlu1 %v478_v10  ;;  %v521_v9 = vsel %vm270_vm0, %v64_v49, 0.0  ;;  %v522_v10 = vsel %vm270_vm0, %v192_v59, 0.0  ;;  %v552_v49 = vsel %vm270_vm0, %v198_v37, 0.0 }
  0x54   :  { %v523_v19 = vadd.f32 %v522_v10, %v521_v9  ;;  %v553_v58 = vadd.f32 %v552_v49, %v551_v48  ;;  %v74_v9 = vld [vmem:[%s7232_s1 + $0xe0] sm:$0xff]  ;;  %v75_v10 = vld [vmem:[%s7232_s1 + $0xe8] sm:$0xff]  ;;  %v4832_v48 = vmov 839922192  }
  0x55   :  { %v571_v30 = vsel %vm270_vm0, %v74_v9, 0.0  ;;  %v721_v49 = vunpack.c.l.s4 %v4832_v48 }
  0x57   :  { %464 = vadd.xlane.f32.xlu0 %v463_v24  ;;  %484 = vadd.xlane.f32.xlu1 %v483_v25  ;;  %v507_v24 = vsel %vm270_vm0, %v189_v11, 0.0  ;;  %v527_v25 = vsel %vm270_vm0, %v193_v13, 0.0 }
  0x58   :  { %v508_v34 = vadd.f32 %v507_v24, %v506_v20  ;;  %v528_v35 = vadd.f32 %v527_v25, %v526_v23  ;;  %v202_v20 = vcombine.high %v74_v9, %v74_v9  ;;  %v203_v23 = vcombine.high %v75_v10, %v75_v10  ;;  %v76_v24 = vld [vmem:[%s7232_s1 + $0xf0] sm:$0xff]  ;;  %v77_v25 = vld [vmem:[%s7232_s1 + $0xf8] sm:$0xff] }
  0x59   :  { %v205_v37 = vcombine.high %v77_v25, %v77_v25  ;;  %v586_v44 = vsel %vm270_vm0, %v77_v25, 0.0 }
  0x5b   :  { %469 = vadd.xlane.f32.xlu0 %v468_v38  ;;  %489 = vadd.xlane.f32.xlu1 %v488_v39  ;;  %v532_v38 = vsel %vm270_vm0, %v194_v28, 0.0  ;;  %v536_v39 = vsel %vm270_vm0, %v67_v17, 0.0  ;;  %v547_v17 = vsel %vm270_vm0, %v197_v61, 0.0 }
  0x5c   :  { %v533_v46 = vadd.f32 %v532_v38, %v531_v36  ;;  %v538_v47 = vadd.f32 %v537_v40, %v536_v39  ;;  %v548_v28 = vadd.f32 %v547_v17, %v546_v16  ;;  %v204_v36 = vcombine.high %v76_v24, %v76_v24 }
  0x5d   :  { %v581_v40 = vsel %vm270_vm0, %v76_v24, 0.0 }
  0x5f   :  { %494 = vadd.xlane.f32.xlu0 %v493_v50  ;;  %499 = vadd.xlane.f32.xlu1 %v498_v51  ;;  %v556_v50 = vsel %vm270_vm0, %v71_v31, 0.0  ;;  %v557_v51 = vsel %vm270_vm0, %v199_v41, 0.0  ;;  %v576_v31 = vsel %vm270_vm0, %v75_v10, 0.0  ;;  %v582_v41 = vsel %vm270_vm0, %v204_v36, 0.0 }
  0x60   :  { %v558_v59 = vadd.f32 %v557_v51, %v556_v50  ;;  %v723_v50 = vlaneseq  ;;  %v722_v51 = vunpack.c.0.s8 %v721_v49 }
  0x63   :  { %514 = vadd.xlane.f32.xlu0 %v513_v3  ;;  %519 = vadd.xlane.f32.xlu1 %v518_v4  ;;  %v542_v3 = vsel %vm270_vm0, %v196_v54, 0.0  ;;  %v561_v4 = vsel %vm270_vm0, %v72_v45, 0.0  ;;  %v587_v45 = vsel %vm270_vm0, %v205_v37, 0.0  ;;  %v724_v54 = vshrl.u32 %v723_v50, 7 }
  0x64   :  { %v543_v11 = vadd.f32 %v542_v3, %v541_v60  ;;  %v563_v13 = vadd.f32 %v562_v5, %v561_v4 }
  0x65   :  { %v5273_v55 = vsub.s32 %v722_v51, %v724_v54 }
  0x67   :  { %504 = vadd.xlane.f32.xlu0 %v503_v18  ;;  %524 = vadd.xlane.f32.xlu1 %v523_v19  ;;  %v566_v18 = vsel %vm270_vm0, %v73_v57, 0.0  ;;  %v567_v19 = vsel %vm270_vm0, %v201_v6, 0.0 }
  0x68   :  { %v568_v29 = vadd.f32 %v567_v19, %v566_v18 }
  0x6b   :  { %509 = vadd.xlane.f32.xlu0 %v508_v34  ;;  %529 = vadd.xlane.f32.xlu1 %v528_v35  ;;  %v572_v34 = vsel %vm270_vm0, %v202_v20, 0.0  ;;  %v577_v35 = vsel %vm270_vm0, %v203_v23, 0.0 }
  0x6c   :  { %v573_v38 = vadd.f32 %v572_v34, %v571_v30  ;;  %v578_v39 = vadd.f32 %v577_v35, %v576_v31 }
  0x6f   :  { %534 = vadd.xlane.f32.xlu0 %v533_v46  ;;  %539 = vadd.xlane.f32.xlu1 %v538_v47  ;;  %v583_v46 = vadd.f32 %v582_v41, %v581_v40  ;;  %v588_v47 = vadd.f32 %v587_v45, %v586_v44 }
  0x73   :  { %554 = vadd.xlane.f32.xlu0 %v553_v58  ;;  %559 = vadd.xlane.f32.xlu1 %v558_v59 }
  0x77   :  { %544 = vadd.xlane.f32.xlu0 %v543_v11  ;;  %564 = vadd.xlane.f32.xlu1 %v563_v13 }
  0x7b   :  { %549 = vadd.xlane.f32.xlu0 %v548_v28  ;;  %569 = vadd.xlane.f32.xlu1 %v568_v29 }
  0x7f   :  { %574 = vadd.xlane.f32.xlu0 %v573_v38  ;;  %579 = vadd.xlane.f32.xlu1 %v578_v39 }
  0x83   :  { %584 = vadd.xlane.f32.xlu0 %v583_v46  ;;  %589 = vadd.xlane.f32.xlu1 %v588_v47 }
  0x90   :  { %v275_v56 = vpop.xlane.xlu0 %274  ;;  %v285_v57 = vpop.xlane.xlu1 %284 }
  0x91   :  { %v592_v58 = vmul.f32 0.00390625, %v275_v56  ;;  %v594_v59 = vmul.f32 0.00390625, %v285_v57 }
  0x93   :  { %v726_v60 = vrot.slane %v592_v58, %v5273_v55  ;;  %v740_v61 = vrot.slane %v594_v59, %v5273_v55 }
  0x94   :  { %v280_v3 = vpop.xlane.xlu0 %279  ;;  %v290_v4 = vpop.xlane.xlu1 %289 }
  0x95   :  { %v5278_v5 = vsub.f32 %v4856_v0, %v726_v60  ;;  %v5281_v6 = vsub.f32 %v4861_v1, %v740_v61  ;;  %v593_v9 = vmul.f32 0.00390625, %v280_v3  ;;  %v595_v10 = vmul.f32 0.00390625, %v290_v4  ;;  %v3967_v3 = vld [vmem:[%s7233_s2 + $0x170] sm:$0xff]  ;;  %v3966_v4 = vld [vmem:[%s7233_s2 + $0x168] sm:$0xff] }
  0x96   :  { %4280 = vmatprep.subr.mxu0 %v3967_v3 }
  0x97   :  { %v733_v11 = vrot.slane %v593_v9, %v5273_v55  ;;  %v747_v13 = vrot.slane %v595_v10, %v5273_v55  ;;  %v1296_v16 = vmul.f32 %v5278_v5, %v5278_v5  ;;  %v1298_v17 = vmul.f32 %v5281_v6, %v5281_v6  ;;  %4281 = vmatpush1.msra.mxu0 %v3966_v4 }
  0x98   :  { %v295_v18 = vpop.xlane.xlu0 %294  ;;  %v300_v19 = vpop.xlane.xlu1 %299 }
  0x99   :  { %v5290_v0 = vsub.f32 %v4866_v2, %v733_v11  ;;  %v5293_v1 = vsub.f32 %v4879_v7, %v747_v13  ;;  %v596_v20 = vmul.f32 0.00390625, %v295_v18  ;;  %v597_v23 = vmul.f32 0.00390625, %v300_v19 }
  0x9a   :  { %v1424_v24 = vcombine.high %v1296_v16, %v1296_v16  ;;  %v1426_v25 = vcombine.high %v1298_v17, %v1298_v17  ;;  %v1562_v28 = vsel %vm270_vm0, %v1298_v17, 0.0  ;;  %v1552_v7 = vsel %vm270_vm0, %v1296_v16, 0.0 }
  0x9b   :  { %v754_v29 = vrot.slane %v596_v20, %v5273_v55  ;;  %v761_v30 = vrot.slane %v597_v23, %v5273_v55  ;;  %v1297_v31 = vmul.f32 %v5290_v0, %v5290_v0  ;;  %v1299_v2 = vmul.f32 %v5293_v1, %v5293_v1 }
  0x9c   :  { %v315_v34 = vpop.xlane.xlu0 %314  ;;  %v320_v35 = vpop.xlane.xlu1 %319  ;;  %v1553_v36 = vsel %vm270_vm0, %v1424_v24, 0.0  ;;  %v1563_v37 = vsel %vm270_vm0, %v1426_v25, 0.0 }
  0x9d   :  { %v5306_v38 = vsub.f32 %v4884_v8, %v754_v29  ;;  %v5309_v39 = vsub.f32 %v4895_v12, %v761_v30  ;;  %v600_v40 = vmul.f32 0.00390625, %v315_v34  ;;  %v601_v41 = vmul.f32 0.00390625, %v320_v35 }
  0x9e   :  { %v1554_v44 = vadd.f32 %v1553_v36, %v1552_v7  ;;  %v1564_v45 = vadd.f32 %v1563_v37, %v1562_v28  ;;  %v1425_v46 = vcombine.high %v1297_v31, %v1297_v31  ;;  %v1557_v49 = vsel %vm270_vm0, %v1297_v31, 0.0 }
  0x9f   :  { %v782_v47 = vrot.slane %v600_v40, %v5273_v55  ;;  %v789_v48 = vrot.slane %v601_v41, %v5273_v55  ;;  %v1427_v50 = vcombine.high %v1299_v2, %v1299_v2  ;;  %v1567_v12 = vsel %vm270_vm0, %v1299_v2, 0.0 }
  0xa0   :  { %1555 = vadd.xlane.f32.xlu0 %v1554_v44  ;;  %v305_v51 = vpop.xlane.xlu0 %304  ;;  %v325_v54 = vpop.xlane.xlu1 %324  ;;  %v1558_v8 = vsel %vm270_vm0, %v1425_v46, 0.0  ;;  %v1300_v56 = vmul.f32 %v5306_v38, %v5306_v38  ;;  %v1301_v57 = vmul.f32 %v5309_v39, %v5309_v39 }
  0xa1   :  { %v5321_v58 = vsub.f32 %v4908_v21, %v782_v47  ;;  %v5324_v59 = vsub.f32 %v4913_v22, %v789_v48  ;;  %v598_v60 = vmul.f32 0.00390625, %v305_v51  ;;  %v602_v61 = vmul.f32 0.00390625, %v325_v54  ;;  %v3964_v22 = vld [vmem:[%s7233_s2 + $0x158] sm:$0xff] }
  0xa2   :  { %v1559_v9 = vadd.f32 %v1558_v8, %v1557_v49  ;;  %v1568_v10 = vsel %vm270_vm0, %v1427_v50, 0.0  ;;  %v1428_v11 = vcombine.high %v1300_v56, %v1300_v56  ;;  %v1572_v21 = vsel %vm270_vm0, %v1300_v56, 0.0  ;;  %4282 = vmatprep.subr.mxu0 %v3964_v22  ;;  %v3963_v8 = vld [vmem:[%s7233_s2 + $0x150] sm:$0xff] }
  0xa3   :  { %v768_v13 = vrot.slane %v598_v60, %v5273_v55  ;;  %v796_v16 = vrot.slane %v602_v61, %v5273_v55  ;;  %v1569_v17 = vadd.f32 %v1568_v10, %v1567_v12  ;;  %v1429_v18 = vcombine.high %v1301_v57, %v1301_v57  ;;  %4283 = vmatpush1.msra.mxu0 %v3963_v8 }
  0xa4   :  { %1565 = vadd.xlane.f32.xlu0 %v1564_v45  ;;  %1560 = vadd.xlane.f32.xlu1 %v1559_v9  ;;  %v310_v19 = vpop.xlane.xlu0 %309  ;;  %v330_v20 = vpop.xlane.xlu1 %329  ;;  %v1573_v23 = vsel %vm270_vm0, %v1428_v11, 0.0  ;;  %v1577_v24 = vsel %vm270_vm0, %v1301_v57, 0.0  ;;  %v1304_v25 = vmul.f32 %v5321_v58, %v5321_v58  ;;  %v1305_v28 = vmul.f32 %v5324_v59, %v5324_v59  ;;  %v3960_v9 = vld [vmem:[%s7233_s2 + $0x138] sm:$0xff] }
  0xa5   :  { %v5346_v29 = vsub.f32 %v4930_v32, %v768_v13  ;;  %v5349_v30 = vsub.f32 %v4935_v33, %v796_v16  ;;  %v599_v31 = vmul.f32 0.00390625, %v310_v19  ;;  %v603_v2 = vmul.f32 0.00390625, %v330_v20 }
  0xa6   :  { %v1574_v34 = vadd.f32 %v1573_v23, %v1572_v21  ;;  %v1578_v35 = vsel %vm270_vm0, %v1429_v18, 0.0  ;;  %v1432_v7 = vcombine.high %v1304_v25, %v1304_v25  ;;  %v1592_v36 = vsel %vm270_vm0, %v1304_v25, 0.0 }
  0xa7   :  { %v775_v37 = vrot.slane %v599_v31, %v5273_v55  ;;  %v803_v40 = vrot.slane %v603_v2, %v5273_v55  ;;  %v1579_v41 = vadd.f32 %v1578_v35, %v1577_v24  ;;  %v1433_v44 = vcombine.high %v1305_v28, %v1305_v28 }
  0xa8   :  { %1570 = vadd.xlane.f32.xlu1 %v1569_v17  ;;  %1575 = vadd.xlane.f32.xlu0 %v1574_v34  ;;  %v335_v32 = vpop.xlane.xlu0 %334  ;;  %v340_v33 = vpop.xlane.xlu1 %339  ;;  %v1593_v45 = vsel %vm270_vm0, %v1432_v7, 0.0  ;;  %v1597_v46 = vsel %vm270_vm0, %v1305_v28, 0.0  ;;  %v1302_v47 = vmul.f32 %v5346_v29, %v5346_v29  ;;  %v1306_v48 = vmul.f32 %v5349_v30, %v5349_v30  ;;  %v3958_v17 = vld [vmem:[%s7233_s2 + $0x128] sm:$0xff] }
  0xa9   :  { %v5362_v49 = vsub.f32 %v4950_v42, %v775_v37  ;;  %v5365_v50 = vsub.f32 %v4955_v43, %v803_v40  ;;  %v604_v51 = vmul.f32 0.00390625, %v335_v32  ;;  %v605_v54 = vmul.f32 0.00390625, %v340_v33  ;;  %v3961_v42 = vld [vmem:[%s7233_s2 + $0x140] sm:$0xff]  ;;  %v3955_v32 = vld [vmem:[%s7233_s2 + $0x110] sm:$0xff] }
  0xaa   :  { %v1594_v12 = vadd.f32 %v1593_v45, %v1592_v36  ;;  %v1598_v56 = vsel %vm270_vm0, %v1433_v44, 0.0  ;;  %v1430_v57 = vcombine.high %v1302_v47, %v1302_v47  ;;  %v1582_v60 = vsel %vm270_vm0, %v1302_v47, 0.0  ;;  %4284 = vmatprep.subr.mxu0 %v3961_v42  ;;  %v3951_v42 = vld [vmem:[%s7233_s2 + $0xf0] sm:$0xff] }
  0xab   :  { %v810_v43 = vrot.slane %v604_v51, %v5273_v55  ;;  %v817_v61 = vrot.slane %v605_v54, %v5273_v55  ;;  %v1599_v3 = vadd.f32 %v1598_v56, %v1597_v46  ;;  %v1434_v4 = vcombine.high %v1306_v48, %v1306_v48  ;;  %4285 = vmatpush1.msra.mxu0 %v3960_v9 }
  0xac   :  { %1580 = vadd.xlane.f32.xlu1 %v1579_v41  ;;  %1595 = vadd.xlane.f32.xlu0 %v1594_v12  ;;  %v355_v10 = vpop.xlane.xlu0 %354  ;;  %v360_v11 = vpop.xlane.xlu1 %359  ;;  %v1583_v21 = vsel %vm270_vm0, %v1430_v57, 0.0  ;;  %v1602_v22 = vsel %vm270_vm0, %v1306_v48, 0.0  ;;  %v1303_v13 = vmul.f32 %v5362_v49, %v5362_v49  ;;  %v1307_v16 = vmul.f32 %v5365_v50, %v5365_v50  ;;  %v3954_v48 = vld [vmem:[%s7233_s2 + $0x108] sm:$0xff] }
  0xad   :  { %v5390_v18 = vsub.f32 %v4970_v52, %v810_v43  ;;  %v5393_v19 = vsub.f32 %v4975_v53, %v817_v61  ;;  %v608_v20 = vmul.f32 0.00390625, %v355_v10  ;;  %v609_v23 = vmul.f32 0.00390625, %v360_v11  ;;  %4286 = vmatprep.subr.mxu0 %v3958_v17  ;;  %v3957_v53 = vld [vmem:[%s7233_s2 + $0x120] sm:$0xff] }
  0xae   :  { %v1584_v24 = vadd.f32 %v1583_v21, %v1582_v60  ;;  %v1603_v25 = vsel %vm270_vm0, %v1434_v4, 0.0  ;;  %v1431_v28 = vcombine.high %v1303_v13, %v1303_v13  ;;  %v1587_v31 = vsel %vm270_vm0, %v1303_v13, 0.0  ;;  %4287 = vmatpush1.msra.mxu0 %v3957_v53  ;;  %v3949_v11 = vld [vmem:[%s7233_s2 + $0xe0] sm:$0xff] }
  0xaf   :  { %v838_v2 = vrot.slane %v608_v20, %v5273_v55  ;;  %v845_v34 = vrot.slane %v609_v23, %v5273_v55  ;;  %v1604_v35 = vadd.f32 %v1603_v25, %v1602_v22  ;;  %v1435_v52 = vcombine.high %v1307_v16, %v1307_v16  ;;  %4288 = vmatprep.subr.mxu0 %v3955_v32  ;;  %v3948_v25 = vld [vmem:[%s7233_s2 + $0xd8] sm:$0xff] }
  0xb0   :  { %1600 = vadd.xlane.f32.xlu1 %v1599_v3  ;;  %1585 = vadd.xlane.f32.xlu0 %v1584_v24  ;;  %v345_v7 = vpop.xlane.xlu0 %344  ;;  %v365_v36 = vpop.xlane.xlu1 %364  ;;  %v1588_v37 = vsel %vm270_vm0, %v1431_v28, 0.0  ;;  %v1607_v40 = vsel %vm270_vm0, %v1307_v16, 0.0  ;;  %v1308_v41 = vmul.f32 %v5390_v18, %v5390_v18  ;;  %v1309_v44 = vmul.f32 %v5393_v19, %v5393_v19 }
  0xb1   :  { %v5412_v33 = vsub.f32 %v4990_v62, %v838_v2  ;;  %v5415_v45 = vsub.f32 %v4995_v63, %v845_v34  ;;  %v606_v46 = vmul.f32 0.00390625, %v345_v7  ;;  %v610_v47 = vmul.f32 0.00390625, %v365_v36  ;;  %v3952_v62 = vld [vmem:[%s7233_s2 + $0xf8] sm:$0xff]  ;;  %4289 = vmatpush1.msra.mxu0 %v3954_v48  ;;  %v3946_v2 = vld [vmem:[%s7233_s2 + $0xc8] sm:$0xff] }
  0xb2   :  { %v1589_v51 = vadd.f32 %v1588_v37, %v1587_v31  ;;  %v1608_v54 = vsel %vm270_vm0, %v1435_v52, 0.0  ;;  %v1436_v8 = vcombine.high %v1308_v41, %v1308_v41  ;;  %v1612_v12 = vsel %vm270_vm0, %v1308_v41, 0.0  ;;  %4290 = vmatprep.subr.mxu0 %v3952_v62  ;;  %v3945_v37 = vld [vmem:[%s7233_s2 + $0xc0] sm:$0xff]  ;;  %v3942_v62 = vld [vmem:[%s7233_s2 + $0xa8] sm:$0xff] }
  0xb3   :  { %v824_v63 = vrot.slane %v606_v46, %v5273_v55  ;;  %v852_v56 = vrot.slane %v610_v47, %v5273_v55  ;;  %v1609_v57 = vadd.f32 %v1608_v54, %v1607_v40  ;;  %v1437_v60 = vcombine.high %v1309_v44, %v1309_v44  ;;  %4291 = vmatpush1.msra.mxu0 %v3951_v42  ;;  %v3943_v54 = vld [vmem:[%s7233_s2 + $0xb0] sm:$0xff] }
  0xb4   :  { %1605 = vadd.xlane.f32.xlu1 %v1604_v35  ;;  %1590 = vadd.xlane.f32.xlu0 %v1589_v51  ;;  %v350_v43 = vpop.xlane.xlu0 %349  ;;  %v370_v61 = vpop.xlane.xlu1 %369  ;;  %v1613_v3 = vsel %vm270_vm0, %v1436_v8, 0.0  ;;  %v1617_v4 = vsel %vm270_vm0, %v1309_v44, 0.0  ;;  %v1312_v9 = vmul.f32 %v5412_v33, %v5412_v33  ;;  %v1313_v10 = vmul.f32 %v5415_v45, %v5415_v45 }
  0xb5   :  { %v5440_v21 = vsub.f32 %v5010_v14, %v824_v63  ;;  %v5443_v22 = vsub.f32 %v5015_v15, %v852_v56  ;;  %v607_v13 = vmul.f32 0.00390625, %v350_v43  ;;  %v611_v16 = vmul.f32 0.00390625, %v370_v61  ;;  %4292 = vmatprep.subr.mxu0 %v3949_v11  ;;  %v3940_v61 = vld [vmem:[%s7233_s2 + $0x98] sm:$0xff] }
  0xb6   :  { %v1614_v17 = vadd.f32 %v1613_v3, %v1612_v12  ;;  %v1618_v20 = vsel %vm270_vm0, %v1437_v60, 0.0  ;;  %v1440_v23 = vcombine.high %v1312_v9, %v1312_v9  ;;  %v1632_v24 = vsel %vm270_vm0, %v1312_v9, 0.0  ;;  %4293 = vmatpush1.msra.mxu0 %v3948_v25  ;;  %v4788_v3 = vld [vmem:[%s7231_s0 + $0xa0] sm:$0xff]  ;;  %v4789_v9 = vld [vmem:[%s7231_s0 + $0xa8] sm:$0xff] }
  0xb7   :  { %v831_v14 = vrot.slane %v607_v13, %v5273_v55  ;;  %v859_v28 = vrot.slane %v611_v16, %v5273_v55  ;;  %v1619_v15 = vadd.f32 %v1618_v20, %v1617_v4  ;;  %v1441_v31 = vcombine.high %v1313_v10, %v1313_v10  ;;  %4294 = vmatprep.subr.mxu0 %v3946_v2 }
  0xb8   :  { %1610 = vadd.xlane.f32.xlu1 %v1609_v57  ;;  %1615 = vadd.xlane.f32.xlu0 %v1614_v17  ;;  %v375_v34 = vpop.xlane.xlu0 %374  ;;  %v380_v35 = vpop.xlane.xlu1 %379  ;;  %v1633_v52 = vsel %vm270_vm0, %v1440_v23, 0.0  ;;  %v1637_v53 = vsel %vm270_vm0, %v1313_v10, 0.0  ;;  %v1310_v7 = vmul.f32 %v5440_v21, %v5440_v21  ;;  %v1314_v36 = vmul.f32 %v5443_v22, %v5443_v22 }
  0xb9   :  { %v5465_v40 = vsub.f32 %v5030_v26, %v831_v14  ;;  %v5468_v41 = vsub.f32 %v5035_v27, %v859_v28  ;;  %v612_v44 = vmul.f32 0.00390625, %v375_v34  ;;  %v613_v32 = vmul.f32 0.00390625, %v380_v35  ;;  %4295 = vmatpush1.msra.mxu0 %v3945_v37  ;;  %v4790_v37 = vld [vmem:[%s7231_s0 + $0xc0] sm:$0xff] }
  0xba   :  { %v1634_v46 = vadd.f32 %v1633_v52, %v1632_v24  ;;  %v1638_v47 = vsel %vm270_vm0, %v1441_v31, 0.0  ;;  %v1438_v48 = vcombine.high %v1310_v7, %v1310_v7  ;;  %v1622_v51 = vsel %vm270_vm0, %v1310_v7, 0.0  ;;  %4296 = vmatprep.subr.mxu0 %v3943_v54  ;;  %v3939_v24 = vld [vmem:[%s7233_s2 + $0x90] sm:$0xff]  ;;  %v3937_v31 = vld [vmem:[%s7233_s2 + $0x80] sm:$0xff] }
  0xbb   :  { %v866_v26 = vrot.slane %v612_v44, %v5273_v55  ;;  %v873_v8 = vrot.slane %v613_v32, %v5273_v55  ;;  %v1639_v27 = vadd.f32 %v1638_v47, %v1637_v53  ;;  %v1442_v12 = vcombine.high %v1314_v36, %v1314_v36  ;;  %4297 = vmatpush1.msra.mxu0 %v3942_v62  ;;  %v4791_v32 = vld [vmem:[%s7231_s0 + $0xc8] sm:$0xff] }
  0xbc   :  { %1620 = vadd.xlane.f32.xlu1 %v1619_v15  ;;  %1635 = vadd.xlane.f32.xlu0 %v1634_v46  ;;  %v395_v63 = vpop.xlane.xlu0 %394  ;;  %v400_v56 = vpop.xlane.xlu1 %399  ;;  %v1623_v57 = vsel %vm270_vm0, %v1438_v48, 0.0  ;;  %v1642_v60 = vsel %vm270_vm0, %v1314_v36, 0.0  ;;  %v1311_v42 = vmul.f32 %v5465_v40, %v5465_v40  ;;  %v1315_v43 = vmul.f32 %v5468_v41, %v5468_v41  ;;  %v3936_v36 = vld [vmem:[%s7233_s2 + $0x78] sm:$0xff] }
  0xbd   :  { %v5492_v4 = vsub.f32 %v4788_v3, %v866_v26  ;;  %v5497_v10 = vsub.f32 %v4789_v9, %v873_v8  ;;  %v616_v11 = vmul.f32 0.00390625, %v395_v63  ;;  %v617_v13 = vmul.f32 0.00390625, %v400_v56  ;;  %4298 = vmatprep.subr.mxu0 %v3940_v61 }
  0xbe   :  { %v1624_v16 = vadd.f32 %v1623_v57, %v1622_v51  ;;  %v1643_v17 = vsel %vm270_vm0, %v1442_v12, 0.0  ;;  %v1439_v20 = vcombine.high %v1311_v42, %v1311_v42  ;;  %v1627_v23 = vsel %vm270_vm0, %v1311_v42, 0.0  ;;  %4299 = vmatpush1.msra.mxu0 %v3939_v24  ;;  %v3933_v57 = vld [vmem:[%s7233_s2 + $0x60] sm:$0xff] }
  0xbf   :  { %v894_v25 = vrot.slane %v616_v11, %v5273_v55  ;;  %v901_v14 = vrot.slane %v617_v13, %v5273_v55  ;;  %v1644_v28 = vadd.f32 %v1643_v17, %v1642_v60  ;;  %v1443_v15 = vcombine.high %v1315_v43, %v1315_v43  ;;  %4300 = vmatprep.subr.mxu0 %v3937_v31  ;;  %v3931_v11 = vld [vmem:[%s7233_s2 + $0x50] sm:$0xff]  ;;  %v3930_v31 = vld [vmem:[%s7233_s2 + $0x48] sm:$0xff] }
  0xc0   :  { %1640 = vadd.xlane.f32.xlu1 %v1639_v27  ;;  %1625 = vadd.xlane.f32.xlu0 %v1624_v16  ;;  %v385_v2 = vpop.xlane.xlu0 %384  ;;  %v405_v34 = vpop.xlane.xlu1 %404  ;;  %v1628_v35 = vsel %vm270_vm0, %v1439_v20, 0.0  ;;  %v1647_v52 = vsel %vm270_vm0, %v1315_v43, 0.0  ;;  %v1316_v53 = vmul.f32 %v5492_v4, %v5492_v4  ;;  %v1317_v7 = vmul.f32 %v5497_v10, %v5497_v10  ;;  %v3934_v27 = vld [vmem:[%s7233_s2 + $0x68] sm:$0xff]  ;;  %v4792_v13 = vld [vmem:[%s7231_s0 + $0xb0] sm:$0xff] }
  0xc1   :  { %v5521_v44 = vsub.f32 %v4790_v37, %v894_v25  ;;  %v5526_v46 = vsub.f32 %v4791_v32, %v901_v14  ;;  %v614_v47 = vmul.f32 0.00390625, %v385_v2  ;;  %v618_v48 = vmul.f32 0.00390625, %v405_v34  ;;  %4301 = vmatpush1.msra.mxu0 %v3936_v36  ;;  %v4793_v17 = vld [vmem:[%s7231_s0 + $0xd0] sm:$0xff] }
  0xc2   :  { %v1629_v51 = vadd.f32 %v1628_v35, %v1627_v23  ;;  %v1648_v54 = vsel %vm270_vm0, %v1443_v15, 0.0  ;;  %v1444_v26 = vcombine.high %v1316_v53, %v1316_v53  ;;  %v1652_v8 = vsel %vm270_vm0, %v1316_v53, 0.0  ;;  %4302 = vmatprep.subr.mxu0 %v3934_v27  ;;  %v3928_v53 = vld [vmem:[%s7233_s2 + $0x38] sm:$0xff] }
  0xc3   :  { %v880_v12 = vrot.slane %v614_v47, %v5273_v55  ;;  %v908_v62 = vrot.slane %v618_v48, %v5273_v55  ;;  %v1649_v63 = vadd.f32 %v1648_v54, %v1647_v52  ;;  %v1445_v56 = vcombine.high %v1317_v7, %v1317_v7  ;;  %4303 = vmatpush1.msra.mxu0 %v3933_v57 }
  0xc4   :  { %1645 = vadd.xlane.f32.xlu1 %v1644_v28  ;;  %1630 = vadd.xlane.f32.xlu0 %v1629_v51  ;;  %v390_v60 = vpop.xlane.xlu0 %389  ;;  %v410_v42 = vpop.xlane.xlu1 %409  ;;  %v1653_v43 = vsel %vm270_vm0, %v1444_v26, 0.0  ;;  %v1657_v61 = vsel %vm270_vm0, %v1317_v7, 0.0  ;;  %v1320_v3 = vmul.f32 %v5521_v44, %v5521_v44  ;;  %v1321_v9 = vmul.f32 %v5526_v46, %v5526_v46  ;;  %v4794_v51 = vld [vmem:[%s7231_s0 + $0xb8] sm:$0xff] }
  0xc5   :  { %v5550_v16 = vsub.f32 %v4792_v13, %v880_v12  ;;  %v5555_v20 = vsub.f32 %v4793_v17, %v908_v62  ;;  %v615_v23 = vmul.f32 0.00390625, %v390_v60  ;;  %v619_v24 = vmul.f32 0.00390625, %v410_v42  ;;  %4304 = vmatprep.subr.mxu0 %v3931_v11  ;;  %v4795_v26 = vld [vmem:[%s7231_s0 + $0xd8] sm:$0xff]  ;;  %v3927_v62 = vld [vmem:[%s7233_s2 + $0x30] sm:$0xff]  ;;  %v3925_v42 = vld [vmem:[%s7233_s2 + $0x20] sm:$0xff] }
  0xc6   :  { %v1654_v25 = vadd.f32 %v1653_v43, %v1652_v8  ;;  %v1658_v14 = vsel %vm270_vm0, %v1445_v56, 0.0  ;;  %v1448_v28 = vcombine.high %v1320_v3, %v1320_v3  ;;  %v1672_v15 = vsel %vm270_vm0, %v1320_v3, 0.0  ;;  %4305 = vmatpush1.msra.mxu0 %v3930_v31  ;;  %v3924_v11 = vld [vmem:[%s7233_s2 + $0x18] sm:$0xff] }
  0xc7   :  { %v887_v2 = vrot.slane %v615_v23, %v5273_v55  ;;  %v915_v34 = vrot.slane %v619_v24, %v5273_v55  ;;  %v1659_v35 = vadd.f32 %v1658_v14, %v1657_v61  ;;  %v1449_v52 = vcombine.high %v1321_v9, %v1321_v9  ;;  %4306 = vmatprep.subr.mxu0 %v3928_v53 }
  0xc8   :  { %1650 = vadd.xlane.f32.xlu1 %v1649_v63  ;;  %1655 = vadd.xlane.f32.xlu0 %v1654_v25  ;;  %v415_v7 = vpop.xlane.xlu0 %414  ;;  %v420_v36 = vpop.xlane.xlu1 %419  ;;  %v1673_v37 = vsel %vm270_vm0, %v1448_v28, 0.0  ;;  %v1677_v32 = vsel %vm270_vm0, %v1321_v9, 0.0  ;;  %v1318_v47 = vmul.f32 %v5550_v16, %v5550_v16  ;;  %v1322_v48 = vmul.f32 %v5555_v20, %v5555_v20  ;;  %v3922_v28 = vld [vmem:[%s7233_s2 + $0x8] sm:$0xff] }
  0xc9   :  { %v5576_v54 = vsub.f32 %v4794_v51, %v887_v2  ;;  %v5581_v8 = vsub.f32 %v4795_v26, %v915_v34  ;;  %v620_v27 = vmul.f32 0.00390625, %v415_v7  ;;  %v621_v12 = vmul.f32 0.00390625, %v420_v36  ;;  %4307 = vmatpush1.msra.mxu0 %v3927_v62  ;;  %v4797_v2 = vld [vmem:[%s7231_s0 + $0xe8] sm:$0xff]  ;;  %v3968_v62 = vld [vmem:[%s7233_s2 + $0x178] sm:$0xff] }
  0xca   :  { %v1674_v63 = vadd.f32 %v1673_v37, %v1672_v15  ;;  %v1678_v56 = vsel %vm270_vm0, %v1449_v52, 0.0  ;;  %v1446_v57 = vcombine.high %v1318_v47, %v1318_v47  ;;  %v1662_v60 = vsel %vm270_vm0, %v1318_v47, 0.0  ;;  %v4796_v15 = vld [vmem:[%s7231_s0 + $0xe0] sm:$0xff]  ;;  %4308 = vmatprep.subr.mxu0 %v3925_v42  ;;  %v4016_v47 = vld [vmem:[%s7233_s2 + $0x2f8] sm:$0xff] }
  0xcb   :  { %7307 = vst [vmem:[#allocation2_spill] sm:$0xff] %v5576_v54  ;;  %v922_v43 = vrot.slane %v620_v27, %v5273_v55  ;;  %v929_v61 = vrot.slane %v621_v12, %v5273_v55  ;;  %v1679_v3 = vadd.f32 %v1678_v56, %v1677_v32  ;;  %v1450_v9 = vcombine.high %v1322_v48, %v1322_v48  ;;  %v3921_v32 = vld [vmem:[%s7233_s2] sm:$0xff]  ;;  %v4015_v12 = vld [vmem:[%s7233_s2 + $0x2f0] sm:$0xff] }
  0xcc   :  { %1660 = vadd.xlane.f32.xlu1 %v1659_v35  ;;  %1675 = vadd.xlane.f32.xlu0 %v1674_v63  ;;  %v435_v13 = vpop.xlane.xlu0 %434  ;;  %v440_v17 = vpop.xlane.xlu1 %439  ;;  %v1663_v23 = vsel %vm270_vm0, %v1446_v57, 0.0  ;;  %v1682_v24 = vsel %vm270_vm0, %v1322_v48, 0.0  ;;  %v1319_v25 = vmul.f32 %v5576_v54, %v5576_v54  ;;  %v1323_v14 = vmul.f32 %v5581_v8, %v5581_v8 }
  0xcd   :  { %v5608_v31 = vsub.f32 %v4796_v15, %v922_v43  ;;  %v5613_v34 = vsub.f32 %v4797_v2, %v929_v61  ;;  %v624_v35 = vmul.f32 0.00390625, %v435_v13  ;;  %v625_v52 = vmul.f32 0.00390625, %v440_v17  ;;  %4309 = vmatpush1.msra.mxu0 %v3924_v11  ;;  %v4014_v61 = vld [vmem:[%s7233_s2 + $0x2e8] sm:$0xff]  ;;  %4539 = vmatprep.subr.mxu1 %v4016_v47  ;;  %v4012_v15 = vld [vmem:[%s7233_s2 + $0x2d8] sm:$0xff]  ;;  %v4013_v2 = vld [vmem:[%s7233_s2 + $0x2e0] sm:$0xff] }
  0xce   :  { %v1664_v53 = vadd.f32 %v1663_v23, %v1662_v60  ;;  %v1683_v7 = vsel %vm270_vm0, %v1450_v9, 0.0  ;;  %v1447_v36 = vcombine.high %v1319_v25, %v1319_v25  ;;  %v1667_v37 = vsel %vm270_vm0, %v1319_v25, 0.0  ;;  %4310 = vmatprep.subr.mxu0 %v3922_v28  ;;  %v4799_v11 = vld [vmem:[%s7232_s1 + $0x8] sm:$0xff]  ;;  %4540 = vmatpush3.msra.mxu1 %v3968_v62  ;;  %v4009_v62 = vld [vmem:[%s7233_s2 + $0x2c0] sm:$0xff] }
  0xcf   :  { %v950_v48 = vrot.slane %v624_v35, %v5273_v55  ;;  %v957_v51 = vrot.slane %v625_v52, %v5273_v55  ;;  %v1684_v26 = vadd.f32 %v1683_v7, %v1682_v24  ;;  %v1451_v27 = vcombine.high %v1323_v14, %v1323_v14  ;;  %4311 = vmatpush1.msra.mxu0 %v3921_v32 }
  0xd0   :  { %1680 = vadd.xlane.f32.xlu1 %v1679_v3  ;;  %1665 = vadd.xlane.f32.xlu0 %v1664_v53  ;;  %v425_v63 = vpop.xlane.xlu0 %424  ;;  %v445_v56 = vpop.xlane.xlu1 %444  ;;  %v1668_v57 = vsel %vm270_vm0, %v1447_v36, 0.0  ;;  %v1687_v60 = vsel %vm270_vm0, %v1323_v14, 0.0  ;;  %v1324_v42 = vmul.f32 %v5608_v31, %v5608_v31  ;;  %v1325_v43 = vmul.f32 %v5613_v34, %v5613_v34  ;;  %v4798_v3 = vld [vmem:[%s7232_s1] sm:$0xff]  ;;  %v4011_v36 = vld [vmem:[%s7233_s2 + $0x2d0] sm:$0xff] }
  0xd1   :  { %v5643_v9 = vsub.f32 %v4798_v3, %v950_v48  ;;  %v5648_v13 = vsub.f32 %v4799_v11, %v957_v51  ;;  %v622_v17 = vmul.f32 0.00390625, %v425_v63  ;;  %v626_v23 = vmul.f32 0.00390625, %v445_v56  ;;  %4312 = vmatprep.subr.mxu0 %v4015_v12  ;;  %v4801_v56 = vld [vmem:[%s7232_s1 + $0x10] sm:$0xff]  ;;  %4541 = vmatprep.subr.mxu1 %v4013_v2  ;;  %v4006_v2 = vld [vmem:[%s7233_s2 + $0x2a8] sm:$0xff] }
  0xd2   :  { %v1669_v24 = vadd.f32 %v1668_v57, %v1667_v37  ;;  %v1688_v25 = vsel %vm270_vm0, %v1451_v27, 0.0  ;;  %v1452_v14 = vcombine.high %v1324_v42, %v1324_v42  ;;  %v1692_v28 = vsel %vm270_vm0, %v1324_v42, 0.0  ;;  %4313 = vmatpush2.msra.mxu0 %v4014_v61  ;;  %v3965_v37 = vld [vmem:[%s7233_s2 + $0x160] sm:$0xff] }
  0xd3   :  { %v936_v35 = vrot.slane %v622_v17, %v5273_v55  ;;  %v964_v52 = vrot.slane %v626_v23, %v5273_v55  ;;  %v1689_v53 = vadd.f32 %v1688_v25, %v1687_v60  ;;  %v1453_v7 = vcombine.high %v1325_v43, %v1325_v43  ;;  %4314 = vmatprep.subr.mxu0 %v4012_v15  ;;  %v4010_v17 = vld [vmem:[%s7233_s2 + $0x2c8] sm:$0xff]  ;;  %v4008_v23 = vld [vmem:[%s7233_s2 + $0x2b8] sm:$0xff] }
  0xd4   :  { %1685 = vadd.xlane.f32.xlu1 %v1684_v26  ;;  %1670 = vadd.xlane.f32.xlu0 %v1669_v24  ;;  %v430_v32 = vpop.xlane.xlu0 %429  ;;  %v450_v47 = vpop.xlane.xlu1 %449  ;;  %v1693_v48 = vsel %vm270_vm0, %v1452_v14, 0.0  ;;  %v1697_v51 = vsel %vm270_vm0, %v1325_v43, 0.0  ;;  %v1328_v27 = vmul.f32 %v5643_v9, %v5643_v9  ;;  %v1329_v12 = vmul.f32 %v5648_v13, %v5648_v13  ;;  %v4800_v26 = vld [vmem:[%s7231_s0 + $0xf0] sm:$0xff]  ;;  %v3962_v15 = vld [vmem:[%s7233_s2 + $0x148] sm:$0xff] }
  0xd5   :  { %v5678_v63 = vsub.f32 %v4800_v26, %v936_v35  ;;  %v5683_v57 = vsub.f32 %v4801_v56, %v964_v52  ;;  %v623_v60 = vmul.f32 0.00390625, %v430_v32  ;;  %v627_v42 = vmul.f32 0.00390625, %v450_v47  ;;  %4315 = vmatpush2.msra.mxu0 %v4011_v36  ;;  %4542 = vmatpush3.msra.mxu1 %v3965_v37  ;;  %v4007_v47 = vld [vmem:[%s7233_s2 + $0x2b0] sm:$0xff] }
  0xd6   :  { %v1694_v43 = vadd.f32 %v1693_v48, %v1692_v28  ;;  %v1698_v61 = vsel %vm270_vm0, %v1453_v7, 0.0  ;;  %v1456_v3 = vcombine.high %v1328_v27, %v1328_v27  ;;  %v1712_v11 = vsel %vm270_vm0, %v1328_v27, 0.0  ;;  %4316 = vmatprep.subr.mxu0 %v4009_v62  ;;  %4543 = vmatprep.subr.mxu1 %v4010_v17 }
  0xd7   :  { %v943_v24 = vrot.slane %v623_v60, %v5273_v55  ;;  %v971_v25 = vrot.slane %v627_v42, %v5273_v55  ;;  %v1699_v14 = vadd.f32 %v1698_v61, %v1697_v51  ;;  %v1457_v28 = vcombine.high %v1329_v12, %v1329_v12  ;;  %v4803_v51 = vld [vmem:[%s7232_s1 + $0x18] sm:$0xff]  ;;  %4317 = vmatpush2.msra.mxu0 %v4008_v23  ;;  %v3959_v61 = vld [vmem:[%s7233_s2 + $0x130] sm:$0xff] }
  0xd8   :  { %1690 = vadd.xlane.f32.xlu1 %v1689_v53  ;;  %1695 = vadd.xlane.f32.xlu0 %v1694_v43  ;;  %v455_v35 = vpop.xlane.xlu0 %454  ;;  %v460_v52 = vpop.xlane.xlu1 %459  ;;  %v1713_v7 = vsel %vm270_vm0, %v1456_v3, 0.0  ;;  %v1717_v36 = vsel %vm270_vm0, %v1329_v12, 0.0  ;;  %v1326_v37 = vmul.f32 %v5678_v63, %v5678_v63  ;;  %v1330_v32 = vmul.f32 %v5683_v57, %v5683_v57  ;;  %v4802_v53 = vld [vmem:[%s7231_s0 + $0xf8] sm:$0xff]  ;;  %v4005_v43 = vld [vmem:[%s7233_s2 + $0x2a0] sm:$0xff] }
  0xd9   :  { %v5713_v48 = vsub.f32 %v4802_v53, %v943_v24  ;;  %v5718_v27 = vsub.f32 %v4803_v51, %v971_v25  ;;  %v628_v12 = vmul.f32 0.00390625, %v455_v35  ;;  %v629_v62 = vmul.f32 0.00390625, %v460_v52  ;;  %4544 = vmatpush3.msra.mxu1 %v3962_v15  ;;  %4318 = vmatprep.subr.mxu0 %v4006_v2  ;;  %v4003_v24 = vld [vmem:[%s7233_s2 + $0x290] sm:$0xff]  ;;  %v4004_v25 = vld [vmem:[%s7233_s2 + $0x298] sm:$0xff] }
  0xda   :  { %v1714_v26 = vadd.f32 %v1713_v7, %v1712_v11  ;;  %v1718_v56 = vsel %vm270_vm0, %v1457_v28, 0.0  ;;  %v1454_v60 = vcombine.high %v1326_v37, %v1326_v37  ;;  %v1702_v42 = vsel %vm270_vm0, %v1326_v37, 0.0  ;;  %4545 = vmatprep.subr.mxu1 %v4007_v47  ;;  %v4002_v37 = vld [vmem:[%s7233_s2 + $0x288] sm:$0xff]  ;;  %v4804_v47 = vld [vmem:[%s7232_s1 + $0x20] sm:$0xff]  ;;  %4319 = vmatpush2.msra.mxu0 %v4005_v43 }
  0xdb   :  { %7308 = vst [vmem:[#allocation3_spill] sm:$0xff] %v5713_v48  ;;  %7309 = vst [vmem:[#allocation4_spill] sm:$0xff] %v5718_v27  ;;  %v1327_v3 = vmul.f32 %v5713_v48, %v5713_v48  ;;  %v1331_v11 = vmul.f32 %v5718_v27, %v5718_v27  ;;  %v978_v17 = vrot.slane %v628_v12, %v5273_v55  ;;  %v1722_v7 = vsel %vm270_vm0, %v1330_v32, 0.0 }
  0xdc   :  { %v985_v23 = vrot.slane %v629_v62, %v5273_v55  ;;  %1700 = vadd.xlane.f32.xlu1 %v1699_v14  ;;  %1715 = vadd.xlane.f32.xlu0 %v1714_v26  ;;  %v475_v28 = vpop.xlane.xlu0 %474  ;;  %v480_v15 = vpop.xlane.xlu1 %479  ;;  %v1719_v2 = vadd.f32 %v1718_v56, %v1717_v36  ;;  %v1703_v35 = vsel %vm270_vm0, %v1454_v60, 0.0  ;;  %v1458_v52 = vcombine.high %v1330_v32, %v1330_v32  ;;  %v4805_v14 = vld [vmem:[%s7232_s1 + $0x28] sm:$0xff]  ;;  %v3956_v60 = vld [vmem:[%s7233_s2 + $0x118] sm:$0xff] }
  0xdd   :  { %v5748_v53 = vsub.f32 %v4804_v47, %v978_v17  ;;  %v632_v51 = vmul.f32 0.00390625, %v475_v28  ;;  %v633_v12 = vmul.f32 0.00390625, %v480_v15  ;;  %4546 = vmatpush3.msra.mxu1 %v3959_v61  ;;  %v1704_v32 = vadd.f32 %v1703_v35, %v1702_v42  ;;  %4320 = vmatprep.subr.mxu0 %v4003_v24  ;;  %v4000_v17 = vld [vmem:[%s7233_s2 + $0x278] sm:$0xff]  ;;  %v3999_v24 = vld [vmem:[%s7233_s2 + $0x270] sm:$0xff] }
  0xde   :  { %v5753_v36 = vsub.f32 %v4805_v14, %v985_v23  ;;  %v1723_v62 = vsel %vm270_vm0, %v1458_v52, 0.0  ;;  %v1455_v26 = vcombine.high %v1327_v3, %v1327_v3  ;;  %v1707_v56 = vsel %vm270_vm0, %v1327_v3, 0.0  ;;  %4547 = vmatprep.subr.mxu1 %v4004_v25  ;;  %4321 = vmatpush2.msra.mxu0 %v4002_v37  ;;  %v4001_v23 = vld [vmem:[%s7233_s2 + $0x280] sm:$0xff] }
  0xdf   :  { %7310 = vst [vmem:[#allocation5_spill] sm:$0xff] %v5748_v53  ;;  %v1332_v43 = vmul.f32 %v5748_v53, %v5748_v53  ;;  %v1006_v61 = vrot.slane %v632_v51, %v5273_v55  ;;  %v1013_v3 = vrot.slane %v633_v12, %v5273_v55  ;;  %v1724_v15 = vadd.f32 %v1723_v62, %v1722_v7  ;;  %v3953_v37 = vld [vmem:[%s7233_s2 + $0x100] sm:$0xff] }
  0xe0   :  { %7311 = vst [vmem:[#allocation6_spill] sm:$0xff] %v5753_v36  ;;  %v1333_v42 = vmul.f32 %v5753_v36, %v5753_v36  ;;  %1720 = vadd.xlane.f32.xlu1 %v1719_v2  ;;  %1705 = vadd.xlane.f32.xlu0 %v1704_v32  ;;  %v465_v25 = vpop.xlane.xlu0 %464  ;;  %v485_v28 = vpop.xlane.xlu1 %484  ;;  %v1708_v35 = vsel %vm270_vm0, %v1455_v26, 0.0  ;;  %v1459_v52 = vcombine.high %v1331_v11, %v1331_v11  ;;  %v1727_v47 = vsel %vm270_vm0, %v1331_v11, 0.0  ;;  %v4806_v14 = vld [vmem:[%s7232_s1 + $0x40] sm:$0xff]  ;;  %v4807_v2 = vld [vmem:[%s7232_s1 + $0x48] sm:$0xff] }
  0xe1   :  { %v5783_v51 = vsub.f32 %v4806_v14, %v1006_v61  ;;  %v5788_v7 = vsub.f32 %v4807_v2, %v1013_v3  ;;  %v630_v12 = vmul.f32 0.00390625, %v465_v25  ;;  %v634_v32 = vmul.f32 0.00390625, %v485_v28  ;;  %4548 = vmatpush3.msra.mxu1 %v3956_v60  ;;  %4322 = vmatprep.subr.mxu0 %v4000_v17  ;;  %v3997_v61 = vld [vmem:[%s7233_s2 + $0x260] sm:$0xff]  ;;  %v3998_v3 = vld [vmem:[%s7233_s2 + $0x268] sm:$0xff] }
  0xe2   :  { %v1709_v11 = vadd.f32 %v1708_v35, %v1707_v56  ;;  %v1728_v62 = vsel %vm270_vm0, %v1459_v52, 0.0  ;;  %v1460_v26 = vcombine.high %v1332_v43, %v1332_v43  ;;  %v1732_v48 = vsel %vm270_vm0, %v1332_v43, 0.0  ;;  %4549 = vmatprep.subr.mxu1 %v4001_v23  ;;  %4323 = vmatpush2.msra.mxu0 %v3999_v24  ;;  %v3996_v23 = vld [vmem:[%s7233_s2 + $0x258] sm:$0xff]  ;;  %v3950_v24 = vld [vmem:[%s7233_s2 + $0xe8] sm:$0xff] }
  0xe3   :  { %7312 = vst [vmem:[#allocation7_spill] sm:$0xff] %v5783_v51  ;;  %7313 = vst [vmem:[#allocation8_spill] sm:$0xff] %v5788_v7  ;;  %v1336_v60 = vmul.f32 %v5783_v51, %v5783_v51  ;;  %v1337_v56 = vmul.f32 %v5788_v7, %v5788_v7  ;;  %v992_v17 = vrot.slane %v630_v12, %v5273_v55  ;;  %4550 = vmatpush3.msra.mxu1 %v3953_v37  ;;  %v3994_v37 = vld [vmem:[%s7233_s2 + $0x248] sm:$0xff]  ;;  %v4808_v12 = vld [vmem:[%s7232_s1 + $0x30] sm:$0xff] }
  0xe4   :  { %v1020_v43 = vrot.slane %v634_v32, %v5273_v55  ;;  %1725 = vadd.xlane.f32.xlu1 %v1724_v15  ;;  %1710 = vadd.xlane.f32.xlu0 %v1709_v11  ;;  %v470_v25 = vpop.xlane.xlu0 %469  ;;  %v490_v28 = vpop.xlane.xlu1 %489  ;;  %v1729_v35 = vadd.f32 %v1728_v62, %v1727_v47  ;;  %v1733_v52 = vsel %vm270_vm0, %v1460_v26, 0.0  ;;  %v1461_v14 = vcombine.high %v1333_v42, %v1333_v42  ;;  %v4809_v15 = vld [vmem:[%s7232_s1 + $0x50] sm:$0xff] }
  0xe5   :  { %v1737_v2 = vsel %vm270_vm0, %v1333_v42, 0.0  ;;  %v5818_v32 = vsub.f32 %v4808_v12, %v992_v17  ;;  %v631_v11 = vmul.f32 0.00390625, %v470_v25  ;;  %v635_v62 = vmul.f32 0.00390625, %v490_v28  ;;  %4324 = vmatprep.subr.mxu0 %v3997_v61  ;;  %4551 = vmatprep.subr.mxu1 %v3998_v3  ;;  %v3995_v17 = vld [vmem:[%s7233_s2 + $0x250] sm:$0xff] }
  0xe6   :  { %v5823_v47 = vsub.f32 %v4809_v15, %v1020_v43  ;;  %v1734_v42 = vadd.f32 %v1733_v52, %v1732_v48  ;;  %v1738_v26 = vsel %vm270_vm0, %v1461_v14, 0.0  ;;  %v1464_v7 = vcombine.high %v1336_v60, %v1336_v60  ;;  %4325 = vmatpush2.msra.mxu0 %v3996_v23  ;;  %4552 = vmatpush3.msra.mxu1 %v3950_v24  ;;  %v3993_v43 = vld [vmem:[%s7233_s2 + $0x240] sm:$0xff]  ;;  %v3947_v23 = vld [vmem:[%s7233_s2 + $0xd0] sm:$0xff] }
  0xe7   :  { %7314 = vst [vmem:[#allocation9_spill] sm:$0xff] %v5818_v32  ;;  %v1752_v54 = vsel %vm270_vm0, %v1336_v60, 0.0  ;;  %v1334_v61 = vmul.f32 %v5818_v32, %v5818_v32  ;;  %v999_v3 = vrot.slane %v631_v11, %v5273_v55  ;;  %v1027_v60 = vrot.slane %v635_v62, %v5273_v55  ;;  %4326 = vmatprep.subr.mxu0 %v3994_v37  ;;  %v3991_v24 = vld [vmem:[%s7233_s2 + $0x230] sm:$0xff]  ;;  %v3992_v37 = vld [vmem:[%s7233_s2 + $0x238] sm:$0xff] }
  0xe8   :  { %7315 = vst [vmem:[#allocation10_spill] sm:$0xff] %v5823_v47  ;;  %v1338_v48 = vmul.f32 %v5823_v47, %v5823_v47  ;;  %1730 = vadd.xlane.f32.xlu1 %v1729_v35  ;;  %1735 = vadd.xlane.f32.xlu0 %v1734_v42  ;;  %v495_v25 = vpop.xlane.xlu0 %494  ;;  %v500_v28 = vpop.xlane.xlu1 %499  ;;  %v1739_v52 = vadd.f32 %v1738_v26, %v1737_v2  ;;  %v1753_v14 = vsel %vm270_vm0, %v1464_v7, 0.0  ;;  %v1757_v15 = vsel %vm270_vm0, %v1337_v56, 0.0  ;;  %v4810_v11 = vld [vmem:[%s7232_s1 + $0x38] sm:$0xff] }
  0xe9   :  { %v1465_v12 = vcombine.high %v1337_v56, %v1337_v56  ;;  %v5853_v62 = vsub.f32 %v4810_v11, %v999_v3  ;;  %v4811_v35 = vld [vmem:[%s7232_s1 + $0x58] sm:$0xff]  ;;  %v636_v7 = vmul.f32 0.00390625, %v495_v25  ;;  %v637_v42 = vmul.f32 0.00390625, %v500_v28  ;;  %4553 = vmatprep.subr.mxu1 %v3995_v17  ;;  %4327 = vmatpush2.msra.mxu0 %v3993_v43  ;;  %v3990_v3 = vld [vmem:[%s7233_s2 + $0x228] sm:$0xff] }
  0xea   :  { %v5858_v2 = vsub.f32 %v4811_v35, %v1027_v60  ;;  %v1754_v56 = vadd.f32 %v1753_v14, %v1752_v54  ;;  %v1462_v47 = vcombine.high %v1334_v61, %v1334_v61  ;;  %v1742_v32 = vsel %vm270_vm0, %v1334_v61, 0.0  ;;  %4554 = vmatpush3.msra.mxu1 %v3947_v23  ;;  %4328 = vmatprep.subr.mxu0 %v3991_v24  ;;  %v3944_v60 = vld [vmem:[%s7233_s2 + $0xb8] sm:$0xff]  ;;  %v3989_v24 = vld [vmem:[%s7233_s2 + $0x220] sm:$0xff] }
  0xeb   :  { %7316 = vst [vmem:[#allocation11_spill] sm:$0xff] %v5853_v62  ;;  %v1758_v26 = vsel %vm270_vm0, %v1465_v12, 0.0  ;;  %v1335_v17 = vmul.f32 %v5853_v62, %v5853_v62  ;;  %v1034_v43 = vrot.slane %v636_v7, %v5273_v55  ;;  %v1041_v61 = vrot.slane %v637_v42, %v5273_v55  ;;  %4555 = vmatprep.subr.mxu1 %v3992_v37  ;;  %v3988_v23 = vld [vmem:[%s7233_s2 + $0x218] sm:$0xff]  ;;  %v3987_v37 = vld [vmem:[%s7233_s2 + $0x210] sm:$0xff]  ;;  %v4812_v7 = vld [vmem:[%s7232_s1 + $0x60] sm:$0xff] }
  0xec   :  { %7317 = vst [vmem:[#allocation12_spill] sm:$0xff] %v5858_v2  ;;  %v1339_v54 = vmul.f32 %v5858_v2, %v5858_v2  ;;  %1740 = vadd.xlane.f32.xlu1 %v1739_v52  ;;  %1755 = vadd.xlane.f32.xlu0 %v1754_v56  ;;  %v515_v25 = vpop.xlane.xlu0 %514  ;;  %v520_v28 = vpop.xlane.xlu1 %519  ;;  %v1759_v14 = vadd.f32 %v1758_v26, %v1757_v15  ;;  %v1743_v12 = vsel %vm270_vm0, %v1462_v47, 0.0  ;;  %v1762_v35 = vsel %vm270_vm0, %v1338_v48, 0.0  ;;  %v4813_v52 = vld [vmem:[%s7232_s1 + $0x68] sm:$0xff] }
  0xed   :  { %v1466_v11 = vcombine.high %v1338_v48, %v1338_v48  ;;  %v5888_v42 = vsub.f32 %v4812_v7, %v1034_v43  ;;  %v5893_v15 = vsub.f32 %v4813_v52, %v1041_v61  ;;  %v640_v47 = vmul.f32 0.00390625, %v515_v25  ;;  %4329 = vmatpush2.msra.mxu0 %v3990_v3  ;;  %4556 = vmatpush3.msra.mxu1 %v3944_v60  ;;  %v3941_v43 = vld [vmem:[%s7233_s2 + $0xa0] sm:$0xff] }
  0xee   :  { %v641_v56 = vmul.f32 0.00390625, %v520_v28  ;;  %v1744_v48 = vadd.f32 %v1743_v12, %v1742_v32  ;;  %v1463_v62 = vcombine.high %v1335_v17, %v1335_v17  ;;  %v1747_v2 = vsel %vm270_vm0, %v1335_v17, 0.0  ;;  %4330 = vmatprep.subr.mxu0 %v3988_v23  ;;  %4557 = vmatprep.subr.mxu1 %v3989_v24  ;;  %v3985_v61 = vld [vmem:[%s7233_s2 + $0x200] sm:$0xff]  ;;  %v3986_v23 = vld [vmem:[%s7233_s2 + $0x208] sm:$0xff]  ;;  %v3984_v24 = vld [vmem:[%s7233_s2 + $0x1f8] sm:$0xff] }
  0xef   :  { %7318 = vst [vmem:[#allocation13_spill] sm:$0xff] %v5888_v42  ;;  %7319 = vst [vmem:[#allocation14_spill] sm:$0xff] %v5893_v15  ;;  %v1763_v26 = vsel %vm270_vm0, %v1466_v11, 0.0  ;;  %v1340_v3 = vmul.f32 %v5888_v42, %v5888_v42  ;;  %v1341_v32 = vmul.f32 %v5893_v15, %v5893_v15  ;;  %v1062_v60 = vrot.slane %v640_v47, %v5273_v55  ;;  %v4814_v47 = vld [vmem:[%s7232_s1 + $0x80] sm:$0xff] }
  0xf0   :  { %v1069_v17 = vrot.slane %v641_v56, %v5273_v55  ;;  %4331 = vmatpush2.msra.mxu0 %v3987_v37  ;;  %1760 = vadd.xlane.f32.xlu1 %v1759_v14  ;;  %v505_v25 = vpop.xlane.xlu0 %504  ;;  %v525_v28 = vpop.xlane.xlu1 %524  ;;  %v1764_v12 = vadd.f32 %v1763_v26, %v1762_v35  ;;  %v1748_v11 = vsel %vm270_vm0, %v1463_v62, 0.0  ;;  %v1467_v7 = vcombine.high %v1339_v54, %v1339_v54  ;;  %v3938_v37 = vld [vmem:[%s7233_s2 + $0x88] sm:$0xff] }
  0xf1   :  { %1745 = vadd.xlane.f32.xlu0 %v1744_v48  ;;  %v1767_v52 = vsel %vm270_vm0, %v1339_v54, 0.0  ;;  %v5923_v56 = vsub.f32 %v4814_v47, %v1062_v60  ;;  %v4815_v14 = vld [vmem:[%s7232_s1 + $0x88] sm:$0xff]  ;;  %v638_v62 = vmul.f32 0.00390625, %v505_v25  ;;  %v642_v48 = vmul.f32 0.00390625, %v525_v28  ;;  %4558 = vmatpush3.msra.mxu1 %v3941_v43 }
  0xf2   :  { %v5928_v35 = vsub.f32 %v4815_v14, %v1069_v17  ;;  %4332 = vmatprep.subr.mxu0 %v3985_v61  ;;  %v1749_v54 = vadd.f32 %v1748_v11, %v1747_v2  ;;  %v1768_v26 = vsel %vm270_vm0, %v1467_v7, 0.0  ;;  %v1468_v15 = vcombine.high %v1340_v3, %v1340_v3  ;;  %4559 = vmatprep.subr.mxu1 %v3986_v23  ;;  %v3982_v60 = vld [vmem:[%s7233_s2 + $0x1e8] sm:$0xff]  ;;  %v3983_v17 = vld [vmem:[%s7233_s2 + $0x1f0] sm:$0xff]  ;;  %v3981_v23 = vld [vmem:[%s7233_s2 + $0x1e0] sm:$0xff] }
  0xf3   :  { %7320 = vst [vmem:[#allocation15_spill] sm:$0xff] %v5923_v56  ;;  %v1772_v42 = vsel %vm270_vm0, %v1340_v3, 0.0  ;;  %4333 = vmatpush2.msra.mxu0 %v3984_v24  ;;  %v1344_v43 = vmul.f32 %v5923_v56, %v5923_v56  ;;  %v1048_v61 = vrot.slane %v638_v62, %v5273_v55  ;;  %v1076_v3 = vrot.slane %v642_v48, %v5273_v55  ;;  %v3935_v24 = vld [vmem:[%s7233_s2 + $0x70] sm:$0xff] }
  0xf4   :  { %7321 = vst [vmem:[#allocation16_spill] sm:$0xff] %v5928_v35  ;;  %v1345_v2 = vmul.f32 %v5928_v35, %v5928_v35  ;;  %4560 = vmatpush3.msra.mxu1 %v3938_v37  ;;  %1765 = vadd.xlane.f32.xlu1 %v1764_v12  ;;  %v510_v25 = vpop.xlane.xlu0 %509  ;;  %v530_v28 = vpop.xlane.xlu1 %529  ;;  %v1769_v11 = vadd.f32 %v1768_v26, %v1767_v52  ;;  %v1773_v7 = vsel %vm270_vm0, %v1468_v15, 0.0  ;;  %v1777_v14 = vsel %vm270_vm0, %v1341_v32, 0.0  ;;  %v3979_v37 = vld [vmem:[%s7233_s2 + $0x1d0] sm:$0xff] }
  0xf5   :  { %1750 = vadd.xlane.f32.xlu0 %v1749_v54  ;;  %v1469_v47 = vcombine.high %v1341_v32, %v1341_v32  ;;  %v4816_v62 = vld [vmem:[%s7232_s1 + $0x70] sm:$0xff]  ;;  %v639_v15 = vmul.f32 0.00390625, %v510_v25  ;;  %v643_v54 = vmul.f32 0.00390625, %v530_v28  ;;  %4334 = vmatprep.subr.mxu0 %v3982_v60  ;;  %v1774_v32 = vadd.f32 %v1773_v7, %v1772_v42 }
  0xf6   :  { %v5958_v48 = vsub.f32 %v4816_v62, %v1048_v61  ;;  %v4817_v12 = vld [vmem:[%s7232_s1 + $0x90] sm:$0xff]  ;;  %4561 = vmatprep.subr.mxu1 %v3983_v17  ;;  %v1472_v35 = vcombine.high %v1344_v43, %v1344_v43  ;;  %v1792_v56 = vsel %vm270_vm0, %v1344_v43, 0.0  ;;  %4335 = vmatpush2.msra.mxu0 %v3981_v23  ;;  %v3980_v61 = vld [vmem:[%s7233_s2 + $0x1d8] sm:$0xff]  ;;  %v1473_v62 = vcombine.high %v1345_v2, %v1345_v2 }
  0xf7   :  { %v5963_v52 = vsub.f32 %v4817_v12, %v1076_v3  ;;  %v1778_v26 = vsel %vm270_vm0, %v1469_v47, 0.0  ;;  %4562 = vmatpush3.msra.mxu1 %v3935_v24  ;;  %v3978_v3 = vld [vmem:[%s7233_s2 + $0x1c8] sm:$0xff]  ;;  %v1055_v17 = vrot.slane %v639_v15, %v5273_v55  ;;  %v1083_v43 = vrot.slane %v643_v54, %v5273_v55  ;;  %4336 = vmatprep.subr.mxu0 %v3979_v37  ;;  %v3932_v23 = vld [vmem:[%s7233_s2 + $0x58] sm:$0xff]  ;;  %v3977_v37 = vld [vmem:[%s7233_s2 + $0x1c0] sm:$0xff] }
  0xf8   :  { %7322 = vst [vmem:[#allocation17_spill] sm:$0xff] %v5958_v48  ;;  %v1342_v60 = vmul.f32 %v5958_v48, %v5958_v48  ;;  %v3976_v24 = vld [vmem:[%s7233_s2 + $0x1b8] sm:$0xff]  ;;  %1770 = vadd.xlane.f32.xlu1 %v1769_v11  ;;  %v535_v25 = vpop.xlane.xlu0 %534  ;;  %v540_v28 = vpop.xlane.xlu1 %539  ;;  %v1779_v7 = vadd.f32 %v1778_v26, %v1777_v14  ;;  %v1793_v47 = vsel %vm270_vm0, %v1472_v35, 0.0  ;;  %v1797_v12 = vsel %vm270_vm0, %v1345_v2, 0.0  ;;  %4563 = vmatprep.subr.mxu1 %v3980_v61 }
  0xf9   :  { %7323 = vst [vmem:[#allocation18_spill] sm:$0xff] %v5963_v52  ;;  %v1346_v42 = vmul.f32 %v5963_v52, %v5963_v52  ;;  %1775 = vadd.xlane.f32.xlu0 %v1774_v32  ;;  %v4818_v15 = vld [vmem:[%s7232_s1 + $0x78] sm:$0xff]  ;;  %v644_v35 = vmul.f32 0.00390625, %v535_v25  ;;  %v645_v32 = vmul.f32 0.00390625, %v540_v28  ;;  %4337 = vmatpush2.msra.mxu0 %v3978_v3  ;;  %v1794_v2 = vadd.f32 %v1793_v47, %v1792_v56 }
  0xfa   :  { %v5993_v54 = vsub.f32 %v4818_v15, %v1055_v17  ;;  %v4819_v11 = vld [vmem:[%s7232_s1 + $0x98] sm:$0xff]  ;;  %v1798_v26 = vsel %vm270_vm0, %v1473_v62, 0.0  ;;  %v1470_v52 = vcombine.high %v1342_v60, %v1342_v60  ;;  %v1782_v48 = vsel %vm270_vm0, %v1342_v60, 0.0  ;;  %4564 = vmatpush3.msra.mxu1 %v3932_v23  ;;  %4338 = vmatprep.subr.mxu0 %v3976_v24  ;;  %v3975_v17 = vld [vmem:[%s7233_s2 + $0x1b0] sm:$0xff]  ;;  %v3973_v23 = vld [vmem:[%s7233_s2 + $0x1a0] sm:$0xff] }
  0xfb   :  { %v5998_v14 = vsub.f32 %v4819_v11, %v1083_v43  ;;  %v3929_v43 = vld [vmem:[%s7233_s2 + $0x40] sm:$0xff]  ;;  %v1090_v3 = vrot.slane %v644_v35, %v5273_v55  ;;  %v1097_v60 = vrot.slane %v645_v32, %v5273_v55  ;;  %4565 = vmatprep.subr.mxu1 %v3977_v37  ;;  %v3974_v24 = vld [vmem:[%s7233_s2 + $0x1a8] sm:$0xff]  ;;  %v1799_v47 = vadd.f32 %v1798_v26, %v1797_v12  ;;  %v3972_v37 = vld [vmem:[%s7233_s2 + $0x198] sm:$0xff] }
  0xfc   :  { %7324 = vst [vmem:[#allocation19_spill] sm:$0xff] %v5993_v54  ;;  %v1343_v61 = vmul.f32 %v5993_v54, %v5993_v54  ;;  %1780 = vadd.xlane.f32.xlu1 %v1779_v7  ;;  %v555_v25 = vpop.xlane.xlu0 %554  ;;  %v560_v28 = vpop.xlane.xlu1 %559  ;;  %v1783_v62 = vsel %vm270_vm0, %v1470_v52, 0.0  ;;  %v1474_v15 = vcombine.high %v1346_v42, %v1346_v42  ;;  %v1802_v11 = vsel %vm270_vm0, %v1346_v42, 0.0  ;;  %v4820_v35 = vld [vmem:[%s7232_s1 + $0xa0] sm:$0xff]  ;;  %v4821_v7 = vld [vmem:[%s7232_s1 + $0xa8] sm:$0xff]  ;;  %4339 = vmatpush2.msra.mxu0 %v3975_v17 }
  0xfd   :  { %7325 = vst [vmem:[#allocation20_spill] sm:$0xff] %v5998_v14  ;;  %v1347_v56 = vmul.f32 %v5998_v14, %v5998_v14  ;;  %1795 = vadd.xlane.f32.xlu0 %v1794_v2  ;;  %v6028_v32 = vsub.f32 %v4820_v35, %v1090_v3  ;;  %v6033_v12 = vsub.f32 %v4821_v7, %v1097_v60  ;;  %v648_v52 = vmul.f32 0.00390625, %v555_v25  ;;  %v3926_v3 = vld [vmem:[%s7233_s2 + $0x28] sm:$0xff] }
  0xfe   :  { %v649_v2 = vmul.f32 0.00390625, %v560_v28  ;;  %4566 = vmatpush3.msra.mxu1 %v3929_v43  ;;  %v1784_v42 = vadd.f32 %v1783_v62, %v1782_v48  ;;  %v1803_v26 = vsel %vm270_vm0, %v1474_v15, 0.0  ;;  %v1471_v54 = vcombine.high %v1343_v61, %v1343_v61  ;;  %4340 = vmatprep.subr.mxu0 %v3973_v23  ;;  %v3970_v60 = vld [vmem:[%s7233_s2 + $0x188] sm:$0xff]  ;;  %v3971_v23 = vld [vmem:[%s7233_s2 + $0x190] sm:$0xff] }
  0xff   :  { %7326 = vst [vmem:[#allocation21_spill] sm:$0xff] %v6028_v32  ;;  %7327 = vst [vmem:[#allocation22_spill] sm:$0xff] %v6033_v12  ;;  %v1787_v14 = vsel %vm270_vm0, %v1343_v61, 0.0  ;;  %4567 = vmatprep.subr.mxu1 %v3974_v24  ;;  %v1348_v17 = vmul.f32 %v6028_v32, %v6028_v32  ;;  %v1349_v48 = vmul.f32 %v6033_v12, %v6033_v12  ;;  %4341 = vmatpush2.msra.mxu0 %v3972_v37  ;;  %v3969_v24 = vld [vmem:[%s7233_s2 + $0x180] sm:$0xff] }
 0x100   :  { %v1118_v43 = vrot.slane %v648_v52, %v5273_v55  ;;  %v1125_v61 = vrot.slane %v649_v2, %v5273_v55  ;;  %1800 = vadd.xlane.f32.xlu1 %v1799_v47  ;;  %v545_v25 = vpop.xlane.xlu0 %544  ;;  %v565_v28 = vpop.xlane.xlu1 %564  ;;  %v1804_v62 = vadd.f32 %v1803_v26, %v1802_v11  ;;  %v1788_v15 = vsel %vm270_vm0, %v1471_v54, 0.0  ;;  %v4822_v37 = vld [vmem:[%s7232_s1 + $0xc0] sm:$0xff]  ;;  %v4823_v2 = vld [vmem:[%s7232_s1 + $0xc8] sm:$0xff]  ;;  %4568 = vmatpush3.msra.mxu1 %v3926_v3 }
 0x101   :  { %1785 = vadd.xlane.f32.xlu0 %v1784_v42  ;;  %v1475_v35 = vcombine.high %v1347_v56, %v1347_v56  ;;  %v1807_v7 = vsel %vm270_vm0, %v1347_v56, 0.0  ;;  %v646_v42 = vmul.f32 0.00390625, %v545_v25  ;;  %v650_v12 = vmul.f32 0.00390625, %v565_v28  ;;  %4342 = vmatprep.subr.mxu0 %v3970_v60 }
 0x102   :  { %v6060_v52 = vsub.f32 %v4822_v37, %v1118_v43  ;;  %v6065_v47 = vsub.f32 %v4823_v2, %v1125_v61  ;;  %v1789_v54 = vadd.f32 %v1788_v15, %v1787_v14  ;;  %v1476_v56 = vcombine.high %v1348_v17, %v1348_v17  ;;  %4569 = vmatprep.subr.mxu1 %v3971_v23 }
 0x103   :  { %v1808_v11 = vsel %vm270_vm0, %v1475_v35, 0.0  ;;  %v1812_v26 = vsel %vm270_vm0, %v1348_v17, 0.0  ;;  %4343 = vmatpush2.msra.mxu0 %v3969_v24  ;;  %v1104_v61 = vrot.slane %v646_v42, %v5273_v55  ;;  %v1132_v25 = vrot.slane %v650_v12, %v5273_v55  ;;  %v4824_v24 = vld [vmem:[%s7232_s1 + $0xb0] sm:$0xff] }
 0x104   :  { %7328 = vst [vmem:[#allocation23_spill] sm:$0xff] %v6060_v52  ;;  %7329 = vst [vmem:[#allocation24_spill] sm:$0xff] %v6065_v47  ;;  %v1352_v43 = vmul.f32 %v6060_v52, %v6060_v52  ;;  %v1353_v37 = vmul.f32 %v6065_v47, %v6065_v47  ;;  %1805 = vadd.xlane.f32.xlu1 %v1804_v62  ;;  %v550_v14 = vpop.xlane.xlu0 %549  ;;  %v570_v3 = vpop.xlane.xlu1 %569  ;;  %v1809_v60 = vadd.f32 %v1808_v11, %v1807_v7  ;;  %v4825_v12 = vld [vmem:[%s7232_s1 + $0xd0] sm:$0xff] }
 0x105   :  { %1790 = vadd.xlane.f32.xlu0 %v1789_v54  ;;  %v1813_v28 = vsel %vm270_vm0, %v1476_v56, 0.0  ;;  %v1477_v17 = vcombine.high %v1349_v48, %v1349_v48  ;;  %v1817_v23 = vsel %vm270_vm0, %v1349_v48, 0.0  ;;  %v6080_v15 = vsub.f32 %v4824_v24, %v1104_v61 }
 0x106   :  { %v6085_v62 = vsub.f32 %v4825_v12, %v1132_v25  ;;  %v647_v35 = vmul.f32 0.00390625, %v550_v14  ;;  %v651_v2 = vmul.f32 0.00390625, %v570_v3  ;;  %v1814_v7 = vadd.f32 %v1813_v28, %v1812_v26 }
 0x107   :  { %7330 = vst [vmem:[#allocation25_spill] sm:$0xff] %v6080_v15  ;;  %v1818_v42 = vsel %vm270_vm0, %v1477_v17, 0.0  ;;  %v1480_v54 = vcombine.high %v1352_v43, %v1352_v43  ;;  %v1832_v48 = vsel %vm270_vm0, %v1352_v43, 0.0  ;;  %v1350_v11 = vmul.f32 %v6080_v15, %v6080_v15  ;;  %v4826_v17 = vld [vmem:[%s7232_s1 + $0xb8] sm:$0xff] }
 0x108   :  { %7331 = vst [vmem:[#allocation26_spill] sm:$0xff] %v6085_v62  ;;  %v1354_v56 = vmul.f32 %v6085_v62, %v6085_v62  ;;  %v1111_v61 = vrot.slane %v647_v35, %v5273_v55  ;;  %v1139_v24 = vrot.slane %v651_v2, %v5273_v55  ;;  %1810 = vadd.xlane.f32.xlu1 %v1809_v60  ;;  %v575_v25 = vpop.xlane.xlu0 %574  ;;  %v580_v14 = vpop.xlane.xlu1 %579  ;;  %v1837_v43 = vsel %vm270_vm0, %v1353_v37, 0.0  ;;  %v4827_v35 = vld [vmem:[%s7232_s1 + $0xd8] sm:$0xff] }
 0x109   :  { %1815 = vadd.xlane.f32.xlu0 %v1814_v7  ;;  %v1819_v26 = vadd.f32 %v1818_v42, %v1817_v23  ;;  %v1833_v3 = vsel %vm270_vm0, %v1480_v54, 0.0  ;;  %v1481_v28 = vcombine.high %v1353_v37, %v1353_v37  ;;  %v652_v2 = vmul.f32 0.00390625, %v575_v25 }
 0x10a   :  { %v6100_v12 = vsub.f32 %v4826_v17, %v1111_v61  ;;  %v6105_v60 = vsub.f32 %v4827_v35, %v1139_v24  ;;  %v653_v7 = vmul.f32 0.00390625, %v580_v14  ;;  %v1834_v23 = vadd.f32 %v1833_v3, %v1832_v48 }
 0x10b   :  { %v1838_v42 = vsel %vm270_vm0, %v1481_v28, 0.0  ;;  %v1478_v54 = vcombine.high %v1350_v11, %v1350_v11  ;;  %v1822_v37 = vsel %vm270_vm0, %v1350_v11, 0.0  ;;  %v1146_v17 = vrot.slane %v652_v2, %v5273_v55  ;;  %v4828_v28 = vld [vmem:[%s7232_s1 + $0xe0] sm:$0xff]  ;;  %v4829_v2 = vld [vmem:[%s7232_s1 + $0xe8] sm:$0xff] }
 0x10c   :  { %7332 = vst [vmem:[#allocation27_spill] sm:$0xff] %v6100_v12  ;;  %7333 = vst [vmem:[#allocation28_spill] sm:$0xff] %v6105_v60  ;;  %v1351_v62 = vmul.f32 %v6100_v12, %v6100_v12  ;;  %v1355_v61 = vmul.f32 %v6105_v60, %v6105_v60  ;;  %v1153_v15 = vrot.slane %v653_v7, %v5273_v55  ;;  %1820 = vadd.xlane.f32.xlu1 %v1819_v26  ;;  %v585_v24 = vpop.xlane.xlu0 %584  ;;  %v590_v25 = vpop.xlane.xlu1 %589 }
 0x10d   :  { %1835 = vadd.xlane.f32.xlu0 %v1834_v23  ;;  %v1839_v48 = vadd.f32 %v1838_v42, %v1837_v43  ;;  %v1823_v14 = vsel %vm270_vm0, %v1478_v54, 0.0  ;;  %v1482_v3 = vcombine.high %v1354_v56, %v1354_v56  ;;  %v1842_v11 = vsel %vm270_vm0, %v1354_v56, 0.0  ;;  %v3923_v43 = vld [vmem:[%s7233_s2 + $0x10] sm:$0xff] }
 0x10e   :  { %v6120_v35 = vsub.f32 %v4828_v28, %v1146_v17  ;;  %v6125_v26 = vsub.f32 %v4829_v2, %v1153_v15  ;;  %v654_v7 = vmul.f32 0.00390625, %v585_v24  ;;  %v655_v23 = vmul.f32 0.00390625, %v590_v25  ;;  %4570 = vmatpush3.msra.mxu1 %v3923_v43  ;;  %v4831_v28 = vld [vmem:[%s7232_s1 + $0xf8] sm:$0xff] }
 0x10f   :  { %v1824_v42 = vadd.f32 %v1823_v14, %v1822_v37  ;;  %v1843_v56 = vsel %vm270_vm0, %v1482_v3, 0.0  ;;  %v1479_v54 = vcombine.high %v1351_v62, %v1351_v62  ;;  %v1827_v12 = vsel %vm270_vm0, %v1351_v62, 0.0  ;;  %v4830_v62 = vld [vmem:[%s7232_s1 + $0xf0] sm:$0xff] }
 0x110   :  { %7334 = vst [vmem:[#allocation29_spill] sm:$0xff] %v6120_v35  ;;  %7335 = vst [vmem:[#allocation30_spill] sm:$0xff] %v6125_v26  ;;  %v1356_v17 = vmul.f32 %v6120_v35, %v6120_v35  ;;  %v1357_v15 = vmul.f32 %v6125_v26, %v6125_v26  ;;  %v1160_v24 = vrot.slane %v654_v7, %v5273_v55  ;;  %1840 = vadd.xlane.f32.xlu1 %v1839_v48 }
 0x111   :  { %v1167_v25 = vrot.slane %v655_v23, %v5273_v55  ;;  %1825 = vadd.xlane.f32.xlu0 %v1824_v42  ;;  %v1828_v37 = vsel %vm270_vm0, %v1479_v54, 0.0  ;;  %v1483_v14 = vcombine.high %v1355_v61, %v1355_v61  ;;  %v1844_v23 = vadd.f32 %v1843_v56, %v1842_v11 }
 0x112   :  { %v6142_v3 = vsub.f32 %v4830_v62, %v1160_v24  ;;  %v1829_v7 = vadd.f32 %v1828_v37, %v1827_v12  ;;  %v1484_v43 = vcombine.high %v1356_v17, %v1356_v17  ;;  %v1847_v48 = vsel %vm270_vm0, %v1355_v61, 0.0 }
 0x113   :  { %v6147_v2 = vsub.f32 %v4831_v28, %v1167_v25  ;;  %v1848_v42 = vsel %vm270_vm0, %v1483_v14, 0.0  ;;  %v1852_v54 = vsel %vm270_vm0, %v1356_v17, 0.0  ;;  %v1485_v35 = vcombine.high %v1357_v15, %v1357_v15 }
 0x114   :  { %7336 = vst [vmem:[#allocation31_spill] sm:$0xff] %v6142_v3  ;;  %v1358_v26 = vmul.f32 %v6142_v3, %v6142_v3  ;;  %v1853_v62 = vsel %vm270_vm0, %v1484_v43, 0.0  ;;  %1845 = vadd.xlane.f32.xlu1 %v1844_v23  ;;  %v1849_v61 = vadd.f32 %v1848_v42, %v1847_v48  ;;  %v1857_v56 = vsel %vm270_vm0, %v1357_v15, 0.0 }
 0x115   :  { %7337 = vst [vmem:[#allocation32_spill] sm:$0xff] %v6147_v2  ;;  %v1359_v24 = vmul.f32 %v6147_v2, %v6147_v2  ;;  %1830 = vadd.xlane.f32.xlu0 %v1829_v7  ;;  %v1854_v12 = vadd.f32 %v1853_v62, %v1852_v54  ;;  %v1858_v17 = vsel %vm270_vm0, %v1485_v35, 0.0 }
 0x116   :  { %v1486_v25 = vcombine.high %v1358_v26, %v1358_v26  ;;  %v1862_v11 = vsel %vm270_vm0, %v1358_v26, 0.0  ;;  %v1859_v2 = vadd.f32 %v1858_v17, %v1857_v56 }
 0x117   :  { %v1487_v14 = vcombine.high %v1359_v24, %v1359_v24  ;;  %v1867_v43 = vsel %vm270_vm0, %v1359_v24, 0.0 }
 0x118   :  { %v1863_v37 = vsel %vm270_vm0, %v1486_v25, 0.0  ;;  %1850 = vadd.xlane.f32.xlu1 %v1849_v61 }
 0x119   :  { %1855 = vadd.xlane.f32.xlu0 %v1854_v12  ;;  %v1864_v28 = vadd.f32 %v1863_v37, %v1862_v11  ;;  %v1868_v7 = vsel %vm270_vm0, %v1487_v14, 0.0 }
 0x11a   :  { %v1869_v23 = vadd.f32 %v1868_v7, %v1867_v43 }
 0x11c   :  { %1860 = vadd.xlane.f32.xlu1 %v1859_v2 }
 0x11d   :  { %1865 = vadd.xlane.f32.xlu0 %v1864_v28 }
 0x120   :  { %1870 = vadd.xlane.f32.xlu1 %v1869_v23 }
 0x129   :  { %v1556_v26 = vpop.xlane.xlu0 %1555 }
 0x12a   :  { %v1872_v48 = vmul.f32 0.00390625, %v1556_v26 }
 0x12c   :  { %v1936_v15 = vadd.f32 1e-05, %v1872_v48 }
 0x12d   :  { %v1561_v42 = vpop.xlane.xlu1 %1560  ;;  %v1566_v35 = vpop.xlane.xlu0 %1565 }
 0x12e   :  { %4660 = vrsqrt.f32 %v1936_v15  ;;  %v1873_v54 = vmul.f32 0.00390625, %v1561_v42  ;;  %v1874_v62 = vmul.f32 0.00390625, %v1566_v35 }
 0x130   :  { %v1937_v25 = vadd.f32 1e-05, %v1873_v54  ;;  %v1938_v12 = vadd.f32 1e-05, %v1874_v62 }
 0x131   :  { %v1571_v11 = vpop.xlane.xlu1 %1570  ;;  %v1576_v61 = vpop.xlane.xlu0 %1575 }
 0x132   :  { %4662 = vrsqrt.f32 %v1937_v25  ;;  %v1875_v24 = vmul.f32 0.00390625, %v1571_v11  ;;  %v1876_v56 = vmul.f32 0.00390625, %v1576_v61 }
 0x133   :  { %4664 = vrsqrt.f32 %v1938_v12 }
 0x134   :  { %v1939_v2 = vadd.f32 1e-05, %v1875_v24  ;;  %v1940_v17 = vadd.f32 1e-05, %v1876_v56 }
 0x135   :  { %v1581_v37 = vpop.xlane.xlu1 %1580  ;;  %v1596_v14 = vpop.xlane.xlu0 %1595 }
 0x136   :  { %4666 = vrsqrt.f32 %v1939_v2  ;;  %v1877_v28 = vmul.f32 0.00390625, %v1581_v37  ;;  %v1880_v43 = vmul.f32 0.00390625, %v1596_v14 }
 0x137   :  { %4668 = vrsqrt.f32 %v1940_v17 }
 0x138   :  { %v1941_v7 = vadd.f32 1e-05, %v1877_v28  ;;  %v1944_v23 = vadd.f32 1e-05, %v1880_v43 }
 0x139   :  { %v1601_v26 = vpop.xlane.xlu1 %1600  ;;  %v1586_v48 = vpop.xlane.xlu0 %1585 }
 0x13a   :  { %4670 = vrsqrt.f32 %v1941_v7  ;;  %v1881_v15 = vmul.f32 0.00390625, %v1601_v26  ;;  %v1878_v42 = vmul.f32 0.00390625, %v1586_v48 }
 0x13b   :  { %v4661_v35 = vpop.eup %4660  ;;  %4672 = vrsqrt.f32 %v1944_v23 }
 0x13c   :  { %v2134_v54 = vrot.slane %v4661_v35, %v5273_v55  ;;  %v1945_v62 = vadd.f32 1e-05, %v1881_v15  ;;  %v1942_v25 = vadd.f32 1e-05, %v1878_v42 }
 0x13d   :  { %v1606_v12 = vpop.xlane.xlu1 %1605  ;;  %v1591_v11 = vpop.xlane.xlu0 %1590 }
 0x13e   :  { %v2640_v61 = vmul.f32 %v2134_v54, %v5278_v5  ;;  %4674 = vrsqrt.f32 %v1945_v62  ;;  %v1882_v24 = vmul.f32 0.00390625, %v1606_v12  ;;  %v1879_v56 = vmul.f32 0.00390625, %v1591_v11 }
 0x13f   :  { %v4663_v2 = vpop.eup %4662  ;;  %4676 = vrsqrt.f32 %v1942_v25 }
 0x140   :  { %v4665_v17 = vpop.eup %4664  ;;  %v2768_v37 = vcombine.high %v2640_v61, %v2640_v61  ;;  %v2896_v14 = vsel %vm270_vm0, %v2640_v61, 0.0  ;;  %v2141_v28 = vrot.slane %v4663_v2, %v5273_v55  ;;  %v1946_v43 = vadd.f32 1e-05, %v1882_v24 }
 0x141   :  { %v2897_v7 = vrot.slane %v2896_v14, 4  ;;  %v2148_v23 = vrot.slane %v4665_v17, %v5273_v55  ;;  %v1943_v26 = vadd.f32 1e-05, %v1879_v56  ;;  %v1611_v48 = vpop.xlane.xlu1 %1610  ;;  %v1616_v15 = vpop.xlane.xlu0 %1615 }
 0x142   :  { %v2903_v5 = vsel %vm270_vm0, %v2768_v37, 0.0  ;;  %v2641_v42 = vmul.f32 %v2141_v28, %v5290_v0  ;;  %4678 = vrsqrt.f32 %v1946_v43  ;;  %v1883_v35 = vmul.f32 0.00390625, %v1611_v48 }
 0x143   :  { %v4667_v54 = vpop.eup %4666  ;;  %v6170_v62 = vadd.f32 %v2897_v7, %v2896_v14  ;;  %v2642_v25 = vmul.f32 %v2148_v23, %v5281_v6  ;;  %4680 = vrsqrt.f32 %v1943_v26  ;;  %v2904_v11 = vrot.slane %v2903_v5, 4 }
 0x144   :  { %v4669_v12 = vpop.eup %4668  ;;  %v2769_v61 = vcombine.high %v2641_v42, %v2641_v42  ;;  %v2910_v24 = vsel %vm270_vm0, %v2641_v42, 0.0  ;;  %v2155_v56 = vrot.slane %v4667_v54, %v5273_v55  ;;  %v1947_v0 = vadd.f32 1e-05, %v1883_v35 }
 0x145   :  { %v2911_v17 = vrot.slane %v2910_v24, 4  ;;  %v2770_v37 = vcombine.high %v2642_v25, %v2642_v25  ;;  %v1621_v28 = vpop.xlane.xlu1 %1620  ;;  %v1636_v43 = vpop.xlane.xlu0 %1635  ;;  %v2924_v7 = vsel %vm270_vm0, %v2642_v25, 0.0  ;;  %v2162_v23 = vrot.slane %v4669_v12, %v5273_v55 }
 0x146   :  { %v2917_v14 = vsel %vm270_vm0, %v2769_v61, 0.0  ;;  %v6179_v6 = vmul.f32 %v2155_v56, %v5293_v1  ;;  %v2925_v54 = vrot.slane %v2924_v7, 4  ;;  %v6187_v3 = vadd.f32 %v2904_v11, %v2903_v5 }
 0x147   :  { %v4671_v26 = vpop.eup %4670  ;;  %v6182_v48 = vadd.f32 %v2911_v17, %v2910_v24  ;;  %v2918_v42 = vrot.slane %v2917_v14, 4  ;;  %v6185_v2 = vsel %vm270_vm0, %v2770_v37, 0.0  ;;  %v6202_v17 = vmul.f32 %v2162_v23, %v5306_v38 }
 0x148   :  { %v4673_v35 = vpop.eup %4672  ;;  %v6194_v1 = vsel %vm270_vm0, %v6179_v6, 0.0  ;;  %v6199_v56 = vadd.f32 %v2925_v54, %v2924_v7  ;;  %v2169_v37 = vrot.slane %v4671_v26, %v5273_v55  ;;  %4682 = vrsqrt.f32 %v1947_v0 }
 0x149   :  { %v6197_v24 = vadd.f32 %v2918_v42, %v2917_v14  ;;  %v1641_v5 = vpop.xlane.xlu1 %1640  ;;  %v1626_v11 = vpop.xlane.xlu0 %1625  ;;  %v2190_v61 = vrot.slane %v4673_v35, %v5273_v55  ;;  %v1884_v25 = vmul.f32 0.00390625, %v1616_v15  ;;  %v1885_v52 = vmul.f32 0.00390625, %v1621_v28 }
 0x14a   :  { %v1888_v12 = vmul.f32 0.00390625, %v1636_v43  ;;  %v1889_v14 = vmul.f32 0.00390625, %v1641_v5  ;;  %v1886_v54 = vmul.f32 0.00390625, %v1626_v11  ;;  %v6212_v26 = vmul.f32 %v2169_v37, %v5309_v39 }
 0x14b   :  { %v4675_v60 = vpop.eup %4674  ;;  %v2648_v7 = vmul.f32 %v2190_v61, %v5321_v58  ;;  %v1948_v23 = vadd.f32 1e-05, %v1884_v25  ;;  %v1949_v0 = vadd.f32 1e-05, %v1885_v52 }
 0x14c   :  { %v6207_v42 = vpop.eup %4676  ;;  %v2197_v38 = vrot.slane %v4675_v60, %v5273_v55  ;;  %v1952_v35 = vadd.f32 1e-05, %v1888_v12  ;;  %v1953_v61 = vadd.f32 1e-05, %v1889_v14  ;;  %v1950_v51 = vadd.f32 1e-05, %v1886_v54 }
 0x14d   :  { %v2176_v15 = vrot.slane %v6207_v42, %v5273_v55  ;;  %v1646_v47 = vpop.xlane.xlu1 %1645  ;;  %v1631_v28 = vpop.xlane.xlu0 %1630  ;;  %v2776_v43 = vcombine.high %v2648_v7, %v2648_v7  ;;  %v3008_v5 = vsel %vm270_vm0, %v2648_v7, 0.0  ;;  %4684 = vrsqrt.f32 %v1948_v23 }
 0x14e   :  { %v2649_v32 = vmul.f32 %v2197_v38, %v5324_v59  ;;  %v3009_v60 = vrot.slane %v3008_v5, 4  ;;  %4686 = vrsqrt.f32 %v1949_v0  ;;  %v1890_v25 = vmul.f32 0.00390625, %v1646_v47 }
 0x14f   :  { %v4679_v58 = vpop.eup %4678  ;;  %v3015_v11 = vsel %vm270_vm0, %v2776_v43, 0.0  ;;  %4688 = vrsqrt.f32 %v1952_v35  ;;  %v1887_v54 = vmul.f32 0.00390625, %v1631_v28 }
 0x150   :  { %v4681_v39 = vpop.eup %4680  ;;  %v2777_v37 = vcombine.high %v2649_v32, %v2649_v32  ;;  %v3022_v52 = vsel %vm270_vm0, %v2649_v32, 0.0  ;;  %v2204_v12 = vrot.slane %v4679_v58, %v5273_v55  ;;  %v6221_v42 = vadd.f32 %v3009_v60, %v3008_v5 }
 0x151   :  { %v3016_v36 = vrot.slane %v3015_v11, 4  ;;  %v3023_v7 = vrot.slane %v3022_v52, 4  ;;  %v1651_v59 = vpop.xlane.xlu1 %1650  ;;  %v1656_v38 = vpop.xlane.xlu0 %1655  ;;  %v1954_v47 = vadd.f32 1e-05, %v1890_v25  ;;  %v2183_v58 = vrot.slane %v4681_v39, %v5273_v55 }
 0x152   :  { %v3029_v23 = vsel %vm270_vm0, %v2777_v37, 0.0  ;;  %v2650_v14 = vmul.f32 %v2204_v12, %v5349_v30  ;;  %4690 = vrsqrt.f32 %v1953_v61  ;;  %v1891_v12 = vmul.f32 0.00390625, %v1651_v59 }
 0x153   :  { %v6226_v43 = vadd.f32 %v3023_v7, %v3022_v52  ;;  %v3030_v32 = vrot.slane %v3029_v23, 4  ;;  %v6230_v53 = vadd.f32 %v3016_v36, %v3015_v11  ;;  %4692 = vrsqrt.f32 %v1950_v51 }
 0x154   :  { %v2778_v5 = vcombine.high %v2650_v14, %v2650_v14  ;;  %v3036_v60 = vsel %vm270_vm0, %v2650_v14, 0.0  ;;  %4694 = vrsqrt.f32 %v1954_v47  ;;  %v1951_v52 = vadd.f32 1e-05, %v1887_v54 }
 0x155   :  { %7338 = vst [vmem:[#allocation33_spill] sm:$0xff] %v6226_v43  ;;  %v3037_v27 = vrot.slane %v3036_v60, 4  ;;  %v1661_v30 = vpop.xlane.xlu1 %1660  ;;  %v1676_v35 = vpop.xlane.xlu0 %1675  ;;  %v6236_v7 = vadd.f32 %v3030_v32, %v3029_v23  ;;  %v1892_v28 = vmul.f32 0.00390625, %v1656_v38  ;;  %v1955_v51 = vadd.f32 1e-05, %v1891_v12 }
 0x156   :  { %v6234_v25 = vsel %vm270_vm0, %v2778_v5, 0.0  ;;  %v4683_v39 = vpop.eup %4682  ;;  %v1893_v36 = vmul.f32 0.00390625, %v1661_v30  ;;  %v1896_v37 = vmul.f32 0.00390625, %v1676_v35  ;;  %4696 = vrsqrt.f32 %v1951_v52 }
 0x157   :  { %v6238_v14 = vadd.f32 %v3037_v27, %v3036_v60  ;;  %v2211_v11 = vrot.slane %v4683_v39, %v5273_v55  ;;  %v1956_v0 = vadd.f32 1e-05, %v1892_v28  ;;  %v6243_v59 = vmul.f32 %v2176_v15, %v5346_v29 }
 0x158   :  { %v1957_v5 = vadd.f32 1e-05, %v1893_v36  ;;  %4698 = vrsqrt.f32 %v1955_v51  ;;  %v1960_v27 = vadd.f32 1e-05, %v1896_v37  ;;  %v6249_v54 = vmul.f32 %v2183_v58, %v5362_v49 }
 0x159   :  { %v1681_v43 = vpop.xlane.xlu1 %1680  ;;  %v1666_v47 = vpop.xlane.xlu0 %1665  ;;  %v6246_v23 = vmul.f32 %v2211_v11, %v5365_v50  ;;  %4700 = vrsqrt.f32 %v1956_v0 }
 0x15a   :  { %v1897_v38 = vmul.f32 0.00390625, %v1681_v43  ;;  %v4685_v32 = vpop.eup %4684  ;;  %v1894_v60 = vmul.f32 0.00390625, %v1666_v47  ;;  %4702 = vrsqrt.f32 %v1957_v5 }
 0x15b   :  { %v4687_v35 = vpop.eup %4686  ;;  %v6255_v29 = vsel %vm270_vm0, %v6246_v23, 0.0  ;;  %v2218_v50 = vrot.slane %v4685_v32, %v5273_v55  ;;  %4704 = vrsqrt.f32 %v1960_v27 }
 0x15c   :  { %v2225_v49 = vrot.slane %v4687_v35, %v5273_v55  ;;  %v1961_v43 = vadd.f32 1e-05, %v1897_v38  ;;  %v1958_v12 = vadd.f32 1e-05, %v1894_v60  ;;  %v4689_v36 = vpop.eup %4688 }
 0x15d   :  { %v1686_v58 = vpop.xlane.xlu1 %1685  ;;  %v1671_v37 = vpop.xlane.xlu0 %1670  ;;  %v6264_v52 = vmul.f32 %v2218_v50, %v5390_v18  ;;  %v2246_v47 = vrot.slane %v4689_v36, %v5273_v55 }
 0x15e   :  { %v1898_v39 = vmul.f32 0.00390625, %v1686_v58  ;;  %v1895_v28 = vmul.f32 0.00390625, %v1671_v37  ;;  %v6268_v51 = vmul.f32 %v2225_v49, %v5393_v19  ;;  %4706 = vrsqrt.f32 %v1961_v43 }
 0x15f   :  { %4708 = vrsqrt.f32 %v1958_v12  ;;  %v4691_v38 = vpop.eup %4690  ;;  %v2906_v19 = vrot.slane %v6187_v3, 2  ;;  %v2656_v58 = vmul.f32 %v2246_v47, %v5412_v33 }
 0x160   :  { %v1962_v27 = vadd.f32 1e-05, %v1898_v39  ;;  %v1959_v60 = vadd.f32 1e-05, %v1895_v28  ;;  %v4693_v43 = vpop.eup %4692  ;;  %v2253_v37 = vrot.slane %v4691_v38, %v5273_v55  ;;  %v7339_v28 = vrot.slane %v6185_v2, 4 }
 0x161   :  { %v1691_v35 = vpop.xlane.xlu1 %1690  ;;  %v1696_v50 = vpop.xlane.xlu0 %1695  ;;  %v2232_v36 = vrot.slane %v4693_v43, %v5273_v55  ;;  %v2784_v0 = vcombine.high %v2656_v58, %v2656_v58  ;;  %v3120_v61 = vsel %vm270_vm0, %v2656_v58, 0.0 }
 0x162   :  { %4710 = vrsqrt.f32 %v1962_v27  ;;  %v1899_v12 = vmul.f32 0.00390625, %v1691_v35  ;;  %v4695_v39 = vpop.eup %4694  ;;  %v1900_v11 = vmul.f32 0.00390625, %v1696_v50  ;;  %v6285_v32 = vadd.f32 %v7339_v28, %v6185_v2 }
 0x163   :  { %4712 = vrsqrt.f32 %v1959_v60  ;;  %v2657_v18 = vmul.f32 %v2253_v37, %v5415_v45  ;;  %v2260_v33 = vrot.slane %v4695_v39, %v5273_v55  ;;  %v3121_v47 = vrot.slane %v3120_v61, 4  ;;  %v6296_v35 = vpop.eup %4696 }
 0x164   :  { %v6291_v27 = vmul.f32 %v2232_v36, %v5440_v21  ;;  %v1963_v38 = vadd.f32 1e-05, %v1899_v12  ;;  %v6294_v60 = vadd.f32 %v2906_v19, %v6187_v3  ;;  %v3127_v2 = vsel %vm270_vm0, %v2784_v0, 0.0 }
 0x165   :  { %v2785_v50 = vcombine.high %v2657_v18, %v2657_v18  ;;  %v3134_v43 = vsel %vm270_vm0, %v2657_v18, 0.0  ;;  %v2658_v58 = vmul.f32 %v2260_v33, %v5443_v22  ;;  %v4699_v45 = vpop.eup %4698  ;;  %v6301_v37 = vadd.f32 %v3121_v47, %v3120_v61  ;;  %v1701_v30 = vpop.xlane.xlu1 %1700 }
 0x166   :  { %v3128_v39 = vrot.slane %v3127_v2, 4  ;;  %v3135_v28 = vrot.slane %v3134_v43, 4  ;;  %v1964_v21 = vadd.f32 1e-05, %v1900_v11  ;;  %v4701_v36 = vpop.eup %4700  ;;  %v2267_v5 = vrot.slane %v4699_v45, %v5273_v55 }
 0x167   :  { %7340 = vst [vmem:[#allocation34_spill] sm:$0xff] %v6301_v37  ;;  %v3141_v12 = vsel %vm270_vm0, %v2785_v50, 0.0  ;;  %v2786_v3 = vcombine.high %v2658_v58, %v2658_v58  ;;  %v3148_v19 = vsel %vm270_vm0, %v2658_v58, 0.0  ;;  %v4703_v0 = vpop.eup %4702  ;;  %v2274_v58 = vrot.slane %v4701_v36, %v5273_v55 }
 0x168   :  { %v6307_v18 = vadd.f32 %v3135_v28, %v3134_v43  ;;  %v3142_v22 = vrot.slane %v3141_v12, 4  ;;  %v4705_v33 = vpop.eup %4704  ;;  %v3149_v47 = vrot.slane %v3148_v19, 4  ;;  %v6315_v50 = vmul.f32 %v2267_v5, %v5468_v41 }
 0x169   :  { %v6312_v11 = vsel %vm270_vm0, %v2786_v3, 0.0  ;;  %v6318_v45 = vadd.f32 %v3128_v39, %v3127_v2  ;;  %v2281_v28 = vrot.slane %v4703_v0, %v5273_v55  ;;  %v6332_v5 = vmul.f32 %v2274_v58, %v5492_v4  ;;  %v1716_v2 = vpop.xlane.xlu0 %1715 }
 0x16a   :  { %7341 = vst [vmem:[#allocation35_spill] sm:$0xff] %v6307_v18  ;;  %v6321_v43 = vadd.f32 %v3142_v22, %v3141_v12  ;;  %v6324_v49 = vadd.f32 %v3149_v47, %v3148_v19  ;;  %v6329_v41 = vsel %vm270_vm0, %v6315_v50, 0.0  ;;  %v2302_v0 = vrot.slane %v4705_v33, %v5273_v55 }
 0x16b   :  { %v4707_v61 = vpop.eup %4706  ;;  %7343 = vst [vmem:[#allocation37_spill] sm:$0xff] %v6329_v41  ;;  %7344 = vst [vmem:[#allocation38_spill] sm:$0xff] %v6332_v5  ;;  %v6340_v22 = vmul.f32 %v2281_v28, %v5497_v10  ;;  %4714 = vrsqrt.f32 %v1963_v38  ;;  %v1901_v15 = vmul.f32 0.00390625, %v1701_v30  ;;  %v1904_v36 = vmul.f32 0.00390625, %v1716_v2 }
 0x16c   :  { %7342 = vst [vmem:[#allocation36_spill] sm:$0xff] %v6324_v49  ;;  %v4709_v39 = vpop.eup %4708  ;;  %v2309_v19 = vrot.slane %v4707_v61, %v5273_v55  ;;  %v2664_v58 = vmul.f32 %v2302_v0, %v5521_v44  ;;  %4716 = vrsqrt.f32 %v1964_v21  ;;  %v2908_v0 = vrot.slane %v6294_v60, 1 }
 0x16d   :  { %v2288_v47 = vrot.slane %v4709_v39, %v5273_v55  ;;  %v1965_v28 = vadd.f32 1e-05, %v1901_v15 }
 0x16e   :  { %v2665_v3 = vmul.f32 %v2309_v19, %v5526_v46  ;;  %v2792_v38 = vcombine.high %v2664_v58, %v2664_v58  ;;  %v3232_v30 = vsel %vm270_vm0, %v2664_v58, 0.0 }
 0x16f   :  { %v4711_v4 = vpop.eup %4710  ;;  %v6350_v61 = vmul.f32 %v2288_v47, %v5550_v16  ;;  %v3233_v46 = vrot.slane %v3232_v30, 4  ;;  %4718 = vrsqrt.f32 %v1965_v28  ;;  %v1968_v47 = vadd.f32 1e-05, %v1904_v36 }
 0x170   :  { %v6345_v49 = vpop.eup %4712  ;;  %v2316_v10 = vrot.slane %v4711_v4, %v5273_v55  ;;  %v2793_v39 = vcombine.high %v2665_v3, %v2665_v3  ;;  %v3246_v44 = vsel %vm270_vm0, %v2665_v3, 0.0  ;;  %v3239_v19 = vsel %vm270_vm0, %v2792_v38, 0.0 }
 0x171   :  { %v3247_v21 = vrot.slane %v3246_v44, 4  ;;  %v6359_v4 = vadd.f32 %v3233_v46, %v3232_v30  ;;  %v3240_v15 = vrot.slane %v3239_v19, 4  ;;  %4720 = vrsqrt.f32 %v1968_v47 }
 0x172   :  { %v2666_v2 = vmul.f32 %v2316_v10, %v5555_v20  ;;  %v3253_v16 = vsel %vm270_vm0, %v2793_v39, 0.0  ;;  %v2909_v36 = vadd.f32 %v2908_v0, %v6294_v60  ;;  %v7352_v60 = vcombine.high %v6202_v17, %v6202_v17 }
 0x173   :  { %7345 = vst [vmem:[#allocation39_spill] sm:$0xff] %v6359_v4  ;;  %v6361_v12 = vadd.f32 %v3247_v21, %v3246_v44  ;;  %v3254_v58 = vrot.slane %v3253_v16, 4  ;;  %v6367_v38 = vadd.f32 %v3240_v15, %v3239_v19  ;;  %v7349_v44 = vrot.slane %v6197_v24, 2 }
 0x174   :  { %v2794_v33 = vcombine.high %v2666_v2, %v2666_v2  ;;  %v3260_v3 = vsel %vm270_vm0, %v2666_v2, 0.0  ;;  %v2934_v21 = vrot.slane %v6285_v32, 2  ;;  %v7351_v19 = vcombine.high %v6179_v6, %v6179_v6 }
 0x175   :  { %7346 = vst [vmem:[#allocation40_spill] sm:$0xff] %v6361_v12  ;;  %7347 = vst [vmem:[#allocation41_spill] sm:$0xff] %v6367_v38  ;;  %v3261_v30 = vrot.slane %v3260_v3, 4  ;;  %v2921_v46 = vadd.f32 %v7349_v44, %v6197_v24  ;;  %v6378_v2 = vadd.f32 %v3254_v58, %v3253_v16  ;;  %v2959_v0 = vsel %vm270_vm0, %v7352_v60, 0.0 }
 0x176   :  { %v6372_v39 = vsel %vm270_vm0, %v2794_v33, 0.0  ;;  %v2945_v47 = vsel %vm270_vm0, %v7351_v19, 0.0  ;;  %v7353_v33 = vcombine.high %v6212_v26, %v6212_v26  ;;  %v2935_v16 = vadd.f32 %v2934_v21, %v6285_v32 }
 0x177   :  { %7348 = vst [vmem:[#allocation42_spill] sm:$0xff] %v6372_v39  ;;  %7350 = vst [vmem:[#allocation43_spill] sm:$0xff] %v6378_v2  ;;  %v2922_v44 = vrot.slane %v2921_v46, 1  ;;  %v2946_v58 = vrot.slane %v2945_v47, 4  ;;  %v2960_v28 = vrot.slane %v2959_v0, 4  ;;  %v7354_v19 = vcombine.high %v6243_v59, %v6243_v59 }
 0x178   :  { %v2973_v15 = vsel %vm270_vm0, %v7353_v33, 0.0  ;;  %v7355_v60 = vcombine.high %v6249_v54, %v6249_v54  ;;  %v4715_v12 = vpop.eup %4714  ;;  %v6402_v33 = vadd.f32 %v3261_v30, %v3260_v3  ;;  %v2936_v24 = vrot.slane %v2935_v16, 1 }
 0x179   :  { %v2974_v6 = vrot.slane %v2973_v15, 4  ;;  %v2987_v10 = vsel %vm270_vm0, %v7354_v19, 0.0  ;;  %v2947_v4 = vadd.f32 %v2946_v58, %v2945_v47  ;;  %v4717_v32 = vpop.eup %4716  ;;  %v2323_v21 = vrot.slane %v4715_v12, %v5273_v55 }
 0x17a   :  { %v3001_v20 = vsel %vm270_vm0, %v7355_v60, 0.0  ;;  %7356 = vst [vmem:[#allocation44_spill] sm:$0xff] %v6402_v33  ;;  %v2988_v39 = vrot.slane %v2987_v10, 4  ;;  %v2961_v2 = vadd.f32 %v2960_v28, %v2959_v0  ;;  %v2330_v19 = vrot.slane %v4717_v32, %v5273_v55 }
 0x17b   :  { %v2975_v38 = vadd.f32 %v2974_v6, %v2973_v15  ;;  %v3002_v41 = vrot.slane %v3001_v20, 4  ;;  %v2923_v18 = vadd.f32 %v2922_v44, %v2921_v46  ;;  %v2948_v37 = vrot.slane %v2947_v4, 2 }
 0x17c   :  { %v2989_v5 = vadd.f32 %v2988_v39, %v2987_v10  ;;  %v6407_v60 = vmul.f32 %v2323_v21, %v5581_v8  ;;  %v2962_v3 = vrot.slane %v2961_v2, 2  ;;  %v6410_v47 = vmul.f32 %v2330_v19, %v5608_v31  ;;  %v4719_v15 = vpop.eup %4718 }
 0x17d   :  { %v2976_v30 = vrot.slane %v2975_v38, 2  ;;  %v3003_v33 = vadd.f32 %v3002_v41, %v3001_v20  ;;  %v2937_v12 = vadd.f32 %v2936_v24, %v2935_v16  ;;  %v2949_v28 = vadd.f32 %v2948_v37, %v2947_v4 }
 0x17e   :  { %7357 = vst [vmem:[#allocation45_spill] sm:$0xff] %v6407_v60  ;;  %7358 = vst [vmem:[#allocation46_spill] sm:$0xff] %v6410_v47  ;;  %v2990_v0 = vrot.slane %v2989_v5, 2  ;;  %v6414_v46 = vsel %vm270_vm0, %v6407_v60, 0.0  ;;  %v2963_v10 = vadd.f32 %v2962_v3, %v2961_v2  ;;  %v3794_v8 = vmul.f32 0.25, %v2909_v36  ;;  %v4721_v4 = vpop.eup %4720 }
 0x17f   :  { %7359 = vst [vmem:[#allocation47_spill] sm:$0xff] %v6414_v46  ;;  %v2977_v39 = vadd.f32 %v2976_v30, %v2975_v38  ;;  %v2950_v37 = vrot.slane %v2949_v28, 1  ;;  %v3004_v58 = vrot.slane %v3003_v33, 2  ;;  %v2337_v38 = vrot.slane %v4719_v15, %v5273_v55  ;;  %v1721_v15 = vpop.xlane.xlu1 %1720 }
 0x180   :  { %v2964_v24 = vrot.slane %v2963_v10, 1  ;;  %v2991_v16 = vadd.f32 %v2990_v0, %v2989_v5  ;;  %v2358_v36 = vrot.slane %v4721_v4, %v5273_v55  ;;  %v3796_v6 = vmul.f32 0.25, %v2923_v18 }
 0x181   :  { %v2978_v44 = vrot.slane %v2977_v39, 1  ;;  %v2951_v2 = vadd.f32 %v2950_v37, %v2949_v28  ;;  %v3005_v3 = vadd.f32 %v3004_v58, %v3003_v33  ;;  %v3798_v20 = vmul.f32 0.25, %v2937_v12 }
 0x182   :  { %v2965_v32 = vadd.f32 %v2964_v24, %v2963_v10  ;;  %v2992_v19 = vrot.slane %v2991_v16, 1  ;;  %v2672_v30 = vmul.f32 %v2358_v36, %v5643_v9  ;;  %v4159_v41 = vsel %vm4145_vm1, %v3796_v6, %v3794_v8  ;;  %v1706_v8 = vpop.xlane.xlu0 %1705 }
 0x183   :  { %v2979_v21 = vadd.f32 %v2978_v44, %v2977_v39  ;;  %v3800_v31 = vmul.f32 0.25, %v2951_v2  ;;  %v3006_v0 = vrot.slane %v3005_v3, 1  ;;  %v4160_v18 = vsel %vm4147_vm2, %v3798_v20, %v4159_v41 }
 0x184   :  { %v2993_v5 = vadd.f32 %v2992_v19, %v2991_v16  ;;  %v3802_v46 = vmul.f32 0.25, %v2965_v32  ;;  %v2800_v60 = vcombine.high %v2672_v30, %v2672_v30  ;;  %v3344_v28 = vsel %vm270_vm0, %v2672_v30, 0.0 }
 0x185   :  { %v3804_v47 = vmul.f32 0.25, %v2979_v21  ;;  %v7360_v10 = vrot.slane %v6170_v62, 2  ;;  %v3345_v39 = vrot.slane %v3344_v28, 4  ;;  %v3007_v9 = vadd.f32 %v3006_v0, %v3005_v3  ;;  %v1726_v21 = vpop.xlane.xlu1 %1725 }
 0x186   :  { %v3806_v12 = vmul.f32 0.25, %v2993_v5  ;;  %v4161_v37 = vsel %vm4149_vm3, %v3800_v31, %v4160_v18  ;;  %v6432_v4 = vsel %vm270_vm0, %v2800_v60, 0.0  ;;  %v7361_v16 = vrot.slane %v6182_v48, 2 }
 0x187   :  { %v2900_v33 = vadd.f32 %v7360_v10, %v6170_v62  ;;  %v4162_v24 = vsel %vm4151_vm4, %v3802_v46, %v4161_v37  ;;  %v6439_v20 = vmul.f32 %v2337_v38, %v5613_v34  ;;  %v6441_v62 = vadd.f32 %v3345_v39, %v3344_v28  ;;  %v1711_v10 = vpop.xlane.xlu0 %1710 }
 0x188   :  { %v2914_v41 = vadd.f32 %v7361_v16, %v6182_v48  ;;  %v3808_v58 = vmul.f32 0.25, %v3007_v9  ;;  %v4163_v36 = vsel %vm4153_vm5, %v3804_v47, %v4162_v24  ;;  %v2927_v6 = vrot.slane %v6199_v56, 2 }
 0x189   :  { %v2901_v44 = vrot.slane %v2900_v33, 1  ;;  %v4164_v31 = vsel %vm4155_vm6, %v3806_v12, %v4163_v36  ;;  %v3352_v32 = vrot.slane %v6432_v4, 4  ;;  %v7362_v34 = vrot.slane %v6194_v1, 4 }
 0x18a   :  { %v2915_v60 = vrot.slane %v2914_v41, 1  ;;  %v4165_v48 = vsel %vm4157_vm7, %v3808_v58, %v4164_v31  ;;  %v2928_v19 = vadd.f32 %v2927_v6, %v6199_v56  ;;  %v2952_v3 = vsel %vm270_vm0, %v6202_v17, 0.0 }
 0x18b   :  { %v2902_v2 = vadd.f32 %v2901_v44, %v2900_v33  ;;  %v2940_v38 = vadd.f32 %v7362_v34, %v6194_v1  ;;  %4344 = vmatprep.mubr.f32.mxu0 %v4165_v48  ;;  %4457 = vmatprep.mubr.f32.mxu1 %v4165_v48  ;;  %v2966_v30 = vsel %vm270_vm0, %v6212_v26, 0.0  ;;  %v2953_v0 = vrot.slane %v2952_v3, 4 }
 0x18c   :  { %v2916_v47 = vadd.f32 %v2915_v60, %v2914_v41  ;;  %v2967_v28 = vrot.slane %v2966_v30, 4  ;;  %v2980_v18 = vsel %vm270_vm0, %v6243_v59, 0.0  ;;  %v2929_v1 = vrot.slane %v2928_v19, 1  ;;  %v1731_v59 = vpop.xlane.xlu1 %1730 }
 0x18d   :  { %v2941_v5 = vrot.slane %v2940_v38, 2  ;;  %v2981_v33 = vrot.slane %v2980_v18, 4  ;;  %v2994_v39 = vsel %vm270_vm0, %v6249_v54, 0.0  ;;  %v3793_v9 = vmul.f32 0.25, %v2902_v2 }
 0x18e   :  { %v2954_v12 = vadd.f32 %v2953_v0, %v2952_v3  ;;  %v2968_v37 = vadd.f32 %v2967_v28, %v2966_v30  ;;  %v2995_v17 = vrot.slane %v2994_v39, 4  ;;  %v2930_v24 = vadd.f32 %v2929_v1, %v2928_v19  ;;  %v1736_v30 = vpop.xlane.xlu0 %1735 }
 0x18f   :  { %v2942_v56 = vadd.f32 %v2941_v5, %v2940_v38  ;;  %v2982_v44 = vadd.f32 %v2981_v33, %v2980_v18  ;;  %v3795_v26 = vmul.f32 0.25, %v2916_v47  ;;  %v1905_v16 = vmul.f32 0.00390625, %v1721_v15 }
 0x190   :  { %v2955_v58 = vrot.slane %v2954_v12, 2  ;;  %v2969_v36 = vrot.slane %v2968_v37, 2  ;;  %v2996_v31 = vadd.f32 %v2995_v17, %v2994_v39  ;;  %v3797_v6 = vmul.f32 0.25, %v2930_v24 }
 0x191   :  { %v2943_v41 = vrot.slane %v2942_v56, 1  ;;  %v2983_v60 = vrot.slane %v2982_v44, 2  ;;  %v4146_v48 = vsel %vm4145_vm1, %v3795_v26, %v3793_v9  ;;  %v1969_v34 = vadd.f32 1e-05, %v1905_v16 }
 0x192   :  { %v2956_v2 = vadd.f32 %v2955_v58, %v2954_v12  ;;  %v2970_v38 = vadd.f32 %v2969_v36, %v2968_v37  ;;  %v2997_v3 = vrot.slane %v2996_v31, 2  ;;  %v4148_v19 = vsel %vm4147_vm2, %v3797_v6, %v4146_v48  ;;  %v1741_v37 = vpop.xlane.xlu1 %1740 }
 0x193   :  { %v2944_v54 = vadd.f32 %v2943_v41, %v2942_v56  ;;  %v2984_v5 = vadd.f32 %v2983_v60, %v2982_v44  ;;  %4722 = vrsqrt.f32 %v1969_v34  ;;  %v1902_v15 = vmul.f32 0.00390625, %v1706_v8 }
 0x194   :  { %v2957_v47 = vrot.slane %v2956_v2, 1  ;;  %v2971_v0 = vrot.slane %v2970_v38, 1  ;;  %v2998_v28 = vadd.f32 %v2997_v3, %v2996_v31  ;;  %v1906_v39 = vmul.f32 0.00390625, %v1726_v21  ;;  %v1756_v31 = vpop.xlane.xlu0 %1755 }
 0x195   :  { %v3799_v18 = vmul.f32 0.25, %v2944_v54  ;;  %v2985_v1 = vrot.slane %v2984_v5, 1  ;;  %v1966_v33 = vadd.f32 1e-05, %v1902_v15  ;;  %v1903_v17 = vmul.f32 0.00390625, %v1711_v10 }
 0x196   :  { %v2958_v9 = vadd.f32 %v2957_v47, %v2956_v2  ;;  %v2972_v24 = vadd.f32 %v2971_v0, %v2970_v38  ;;  %v2999_v56 = vrot.slane %v2998_v28, 1  ;;  %v1970_v44 = vadd.f32 1e-05, %v1906_v39 }
 0x197   :  { %v4150_v12 = vsel %vm4149_vm3, %v3799_v18, %v4148_v19  ;;  %v2986_v26 = vadd.f32 %v2985_v1, %v2984_v5  ;;  %4724 = vrsqrt.f32 %v1966_v33  ;;  %v1967_v16 = vadd.f32 1e-05, %v1903_v17 }
 0x198   :  { %v3000_v41 = vadd.f32 %v2999_v56, %v2998_v28  ;;  %v3801_v8 = vmul.f32 0.25, %v2958_v9  ;;  %v3803_v58 = vmul.f32 0.25, %v2972_v24  ;;  %v1907_v36 = vmul.f32 0.00390625, %v1731_v59 }
 0x199   :  { %v3805_v60 = vmul.f32 0.25, %v2986_v26  ;;  %4726 = vrsqrt.f32 %v1970_v44  ;;  %v1908_v6 = vmul.f32 0.00390625, %v1736_v30  ;;  %v1909_v21 = vmul.f32 0.00390625, %v1741_v37 }
 0x19a   :  { %v3807_v10 = vmul.f32 0.25, %v3000_v41  ;;  %v4152_v48 = vsel %vm4151_vm4, %v3801_v8, %v4150_v12  ;;  %4728 = vrsqrt.f32 %v1967_v16  ;;  %v1971_v34 = vadd.f32 1e-05, %v1907_v36 }
 0x19b   :  { %v4154_v54 = vsel %vm4153_vm5, %v3803_v58, %v4152_v48  ;;  %v1972_v2 = vadd.f32 1e-05, %v1908_v6  ;;  %v1973_v38 = vadd.f32 1e-05, %v1909_v21  ;;  %v1912_v3 = vmul.f32 0.00390625, %v1756_v31 }
 0x19c   :  { %v6469_v5 = vadd.f32 %v3352_v32, %v6432_v4  ;;  %v4156_v59 = vsel %vm4155_vm6, %v3805_v60, %v4154_v54  ;;  %4730 = vrsqrt.f32 %v1971_v34  ;;  %v2781_v30 = vcombine.high %v6268_v51, %v6268_v51 }
 0x19d   :  { %v4158_v19 = vsel %vm4157_vm7, %v3807_v10, %v4156_v59  ;;  %4732 = vrsqrt.f32 %v1972_v2  ;;  %v1976_v15 = vadd.f32 1e-05, %v1912_v3  ;;  %v2782_v47 = vcombine.high %v6291_v27, %v6291_v27 }
 0x19e   :  { %4345 = vmatmul.mubr.f32.vlgmr.msra.gmra.mxu0 %v4158_v19  ;;  %4458 = vmatmul.mubr.f32.vlgmr.msra.gmra.mxu1 %v4158_v19  ;;  %4734 = vrsqrt.f32 %v1973_v38  ;;  %v7363_v4 = vrot.slane %v6296_v35, %v5273_v55  ;;  %v3018_v0 = vrot.slane %v6230_v53, 2  ;;  %v3032_v28 = vrot.slane %v6236_v7, 2 }
 0x19f   :  { %4736 = vrsqrt.f32 %v1976_v15  ;;  %v7364_v18 = vrot.slane %v6234_v25, 4  ;;  %v7365_v33 = vcombine.high %v6246_v23, %v6246_v23  ;;  %v7366_v17 = vcombine.high %v6264_v52, %v6264_v52 }
 0x1a0   :  { %v6481_v32 = vmul.f32 %v7363_v4, %v5465_v40  ;;  %v4723_v35 = vpop.eup %4722  ;;  %v3019_v9 = vadd.f32 %v3018_v0, %v6230_v53  ;;  %v3033_v24 = vadd.f32 %v3032_v28, %v6236_v7  ;;  %v3085_v26 = vsel %vm270_vm0, %v2781_v30, 0.0 }
 0x1a1   :  { %v3045_v1 = vadd.f32 %v7364_v18, %v6234_v25  ;;  %v3057_v39 = vsel %vm270_vm0, %v7365_v33, 0.0  ;;  %v3071_v40 = vsel %vm270_vm0, %v7366_v17, 0.0  ;;  %v2365_v37 = vrot.slane %v4723_v35, %v5273_v55 }
 0x1a2   :  { %v3058_v56 = vrot.slane %v3057_v39, 4  ;;  %v3072_v12 = vrot.slane %v3071_v40, 4  ;;  %v3099_v23 = vsel %vm270_vm0, %v2782_v47, 0.0  ;;  %v2783_v44 = vcombine.high %v6481_v32, %v6481_v32 }
 0x1a3   :  { %v3046_v25 = vrot.slane %v3045_v1, 2  ;;  %v3020_v16 = vrot.slane %v3019_v9, 1  ;;  %v2673_v58 = vmul.f32 %v2365_v37, %v5648_v13  ;;  %v3034_v53 = vrot.slane %v3033_v24, 1 }
 0x1a4   :  { %v3059_v41 = vadd.f32 %v3058_v56, %v3057_v39  ;;  %v3073_v8 = vadd.f32 %v3072_v12, %v3071_v40  ;;  %v3086_v7 = vrot.slane %v3085_v26, 4  ;;  %v4725_v31 = vpop.eup %4724  ;;  %v3100_v10 = vrot.slane %v3099_v23, 4 }
 0x1a5   :  { %v3047_v36 = vadd.f32 %v3046_v25, %v3045_v1  ;;  %v6504_v60 = vadd.f32 %v3020_v16, %v3019_v9  ;;  %v2801_v48 = vcombine.high %v2673_v58, %v2673_v58  ;;  %v3358_v34 = vsel %vm270_vm0, %v2673_v58, 0.0 }
 0x1a6   :  { %v3060_v6 = vrot.slane %v3059_v41, 2  ;;  %v3074_v21 = vrot.slane %v3073_v8, 2  ;;  %v2344_v54 = vrot.slane %v4725_v31, %v5273_v55  ;;  %v4727_v38 = vpop.eup %4726  ;;  %v3359_v3 = vrot.slane %v3358_v34, 4 }
 0x1a7   :  { %v3048_v2 = vrot.slane %v3047_v36, 1  ;;  %v3087_v13 = vadd.f32 %v3086_v7, %v3085_v26  ;;  %v6508_v19 = vpop.eup %4728  ;;  %v3365_v15 = vsel %vm270_vm0, %v2801_v48, 0.0  ;;  %v2372_v4 = vrot.slane %v4727_v38, %v5273_v55 }
 0x1a8   :  { %v3061_v59 = vadd.f32 %v3060_v6, %v3059_v41  ;;  %v3075_v30 = vadd.f32 %v3074_v21, %v3073_v8  ;;  %v6512_v47 = vmul.f32 %v2344_v54, %v5678_v63  ;;  %v3035_v0 = vadd.f32 %v3034_v53, %v3033_v24  ;;  %v7367_v53 = vld [vmem:[#allocation4_spill] sm:$0xff]  ;;  %v7368_v6 = vld [vmem:[#allocation5_spill] sm:$0xff] }
 0x1a9   :  { %v6515_v28 = vadd.f32 %v3359_v3, %v3358_v34  ;;  %v3366_v18 = vrot.slane %v3365_v15, 4  ;;  %v3049_v1 = vadd.f32 %v3048_v2, %v3047_v36  ;;  %v4731_v39 = vpop.eup %4730  ;;  %v2674_v17 = vmul.f32 %v2372_v4, %v5683_v57 }
 0x1aa   :  { %v3062_v33 = vrot.slane %v3061_v59, 1  ;;  %v2351_v40 = vrot.slane %v6508_v19, %v5273_v55  ;;  %v3088_v35 = vrot.slane %v3087_v13, 2  ;;  %v3101_v9 = vadd.f32 %v3100_v10, %v3099_v23  ;;  %v4733_v56 = vpop.eup %4732 }
 0x1ab   :  { %v6521_v12 = vadd.f32 %v3366_v18, %v3365_v15  ;;  %v2379_v24 = vrot.slane %v4731_v39, %v5273_v55  ;;  %v3076_v37 = vrot.slane %v3075_v30, 1  ;;  %v4735_v25 = vpop.eup %4734  ;;  %v2802_v26 = vcombine.high %v2674_v17, %v2674_v17  ;;  %v7369_v15 = vld [vmem:[#allocation7_spill] sm:$0xff]  ;;  %v7370_v18 = vld [vmem:[#allocation6_spill] sm:$0xff] }
 0x1ac   :  { %v3372_v16 = vsel %vm270_vm0, %v2674_v17, 0.0  ;;  %v2386_v41 = vrot.slane %v4733_v56, %v5273_v55  ;;  %v3063_v57 = vadd.f32 %v3062_v33, %v3061_v59  ;;  %v4737_v8 = vpop.eup %4736  ;;  %v2393_v23 = vrot.slane %v4735_v25, %v5273_v55 }
 0x1ad   :  { %v3373_v58 = vrot.slane %v3372_v16, 4  ;;  %v6527_v36 = vmul.f32 %v2379_v24, %v7367_v53  ;;  %v3089_v7 = vadd.f32 %v3088_v35, %v3087_v13  ;;  %v6531_v31 = vsel %vm270_vm0, %v2802_v26, 0.0 }
 0x1ae   :  { %v6534_v21 = vmul.f32 %v2386_v41, %v7368_v6  ;;  %v2414_v10 = vrot.slane %v4737_v8, %v5273_v55  ;;  %v3102_v48 = vrot.slane %v3101_v9, 2  ;;  %v3077_v38 = vadd.f32 %v3076_v37, %v3075_v30 }
 0x1af   :  { %v6537_v34 = vadd.f32 %v3373_v58, %v3372_v16  ;;  %v6542_v2 = vsel %vm270_vm0, %v6527_v36, 0.0  ;;  %v6551_v33 = vmul.f32 %v2393_v23, %v7370_v18  ;;  %v3090_v39 = vrot.slane %v3089_v7, 1 }
 0x1b0   :  { %v2680_v4 = vmul.f32 %v2414_v10, %v7369_v15  ;;  %v3103_v17 = vadd.f32 %v3102_v48, %v3101_v9  ;;  %v3113_v30 = vsel %vm270_vm0, %v2783_v44, 0.0  ;;  %v3812_v37 = vmul.f32 0.25, %v3035_v0 }
 0x1b1   :  { %v3114_v24 = vrot.slane %v3113_v30, 4  ;;  %v3091_v26 = vadd.f32 %v3090_v39, %v3089_v7  ;;  %v3814_v41 = vmul.f32 0.25, %v3049_v1  ;;  %v3810_v9 = vmul.f32 0.25, %v6504_v60  ;;  %v7372_v1 = vld [vmem:[#allocation33_spill] sm:$0xff]  ;;  %v1761_v39 = vpop.xlane.xlu1 %1760 }
 0x1b2   :  { %v2808_v35 = vcombine.high %v2680_v4, %v2680_v4  ;;  %v3456_v56 = vsel %vm270_vm0, %v2680_v4, 0.0  ;;  %v3104_v16 = vrot.slane %v3103_v17, 1  ;;  %v3816_v53 = vmul.f32 0.25, %v3063_v57 }
 0x1b3   :  { %v3457_v25 = vrot.slane %v3456_v56, 4  ;;  %v3115_v58 = vadd.f32 %v3114_v24, %v3113_v30  ;;  %v3818_v44 = vmul.f32 0.25, %v3077_v38  ;;  %v3820_v10 = vmul.f32 0.25, %v3091_v26  ;;  %v1746_v30 = vpop.xlane.xlu0 %1745 }
 0x1b4   :  { %v6559_v8 = vsel %vm270_vm0, %v2808_v35, 0.0  ;;  %v3105_v6 = vadd.f32 %v3104_v16, %v3103_v17  ;;  %v4173_v15 = vsel %vm4145_vm1, %v3812_v37, %v3810_v9  ;;  %v7371_v0 = vrot.slane %v6221_v42, 2 }
 0x1b5   :  { %v6562_v23 = vadd.f32 %v3457_v25, %v3456_v56  ;;  %v3116_v48 = vrot.slane %v3115_v58, 2  ;;  %v7373_v4 = vrot.slane %v7372_v1, 2  ;;  %v3464_v57 = vrot.slane %v6559_v8, 4 }
 0x1b6   :  { %v3012_v7 = vadd.f32 %v7371_v0, %v6221_v42  ;;  %v3822_v17 = vmul.f32 0.25, %v3105_v6  ;;  %v4174_v38 = vsel %vm4147_vm2, %v3814_v41, %v4173_v15  ;;  %v3039_v25 = vrot.slane %v6238_v14, 2 }
 0x1b7   :  { %v3026_v18 = vadd.f32 %v7373_v4, %v7372_v1  ;;  %v3117_v35 = vadd.f32 %v3116_v48, %v3115_v58  ;;  %v4175_v56 = vsel %vm4149_vm3, %v3816_v53, %v4174_v38  ;;  %v7374_v26 = vrot.slane %v6255_v29, 4  ;;  %v1766_v38 = vpop.xlane.xlu1 %1765 }
 0x1b8   :  { %v3013_v24 = vrot.slane %v3012_v7, 1  ;;  %v4176_v42 = vsel %vm4151_vm4, %v3818_v44, %v4175_v56  ;;  %v3064_v9 = vsel %vm270_vm0, %v6264_v52, 0.0  ;;  %v3040_v48 = vadd.f32 %v3039_v25, %v6238_v14 }
 0x1b9   :  { %v3027_v37 = vrot.slane %v3026_v18, 1  ;;  %v3052_v16 = vadd.f32 %v7374_v26, %v6255_v29  ;;  %v3118_v0 = vrot.slane %v3117_v35, 1  ;;  %v4177_v6 = vsel %vm4153_vm5, %v3820_v10, %v4176_v42  ;;  %v1751_v10 = vpop.xlane.xlu0 %1750 }
 0x1ba   :  { %v3014_v41 = vadd.f32 %v3013_v24, %v3012_v7  ;;  %v4178_v53 = vsel %vm4155_vm6, %v3822_v17, %v4177_v6  ;;  %v3065_v44 = vrot.slane %v3064_v9, 4  ;;  %v3078_v4 = vsel %vm270_vm0, %v6268_v51, 0.0 }
 0x1bb   :  { %v3028_v58 = vadd.f32 %v3027_v37, %v3026_v18  ;;  %v3053_v15 = vrot.slane %v3052_v16, 2  ;;  %v3119_v1 = vadd.f32 %v3118_v0, %v3117_v35  ;;  %v3092_v29 = vsel %vm270_vm0, %v6291_v27, 0.0 }
 0x1bc   :  { %v3106_v52 = vsel %vm270_vm0, %v6481_v32, 0.0  ;;  %v3041_v7 = vrot.slane %v3040_v48, 1  ;;  %v3066_v56 = vadd.f32 %v3065_v44, %v3064_v9  ;;  %v3079_v17 = vrot.slane %v3078_v4, 4 }
 0x1bd   :  { %v3054_v18 = vadd.f32 %v3053_v15, %v3052_v16  ;;  %v3824_v24 = vmul.f32 0.25, %v3119_v1  ;;  %v3093_v14 = vrot.slane %v3092_v29, 4  ;;  %v3107_v37 = vrot.slane %v3106_v52, 4 }
 0x1be   :  { %v3809_v42 = vmul.f32 0.25, %v3014_v41  ;;  %v3042_v35 = vadd.f32 %v3041_v7, %v3040_v48  ;;  %v3067_v26 = vrot.slane %v3066_v56, 2  ;;  %v3080_v51 = vadd.f32 %v3079_v17, %v3078_v4  ;;  %v1771_v48 = vpop.xlane.xlu1 %1770  ;;  %v1776_v7 = vpop.xlane.xlu0 %1775 }
 0x1bf   :  { %v3055_v25 = vrot.slane %v3054_v18, 1  ;;  %v4179_v0 = vsel %vm4157_vm7, %v3824_v24, %v4178_v53  ;;  %v3094_v27 = vadd.f32 %v3093_v14, %v3092_v29  ;;  %v3108_v6 = vadd.f32 %v3107_v37, %v3106_v52 }
 0x1c0   :  { %v3811_v60 = vmul.f32 0.25, %v3028_v58  ;;  %4350 = vmatprep.mubr.f32.mxu0 %v4179_v0  ;;  %4462 = vmatprep.mubr.f32.mxu1 %v4179_v0  ;;  %v3068_v59 = vadd.f32 %v3067_v26, %v3066_v56  ;;  %v3081_v16 = vrot.slane %v3080_v51, 2  ;;  %v3813_v9 = vmul.f32 0.25, %v3042_v35 }
 0x1c1   :  { %v3056_v32 = vadd.f32 %v3055_v25, %v3054_v18  ;;  %v3095_v15 = vrot.slane %v3094_v27, 2  ;;  %v3109_v44 = vrot.slane %v3108_v6, 2  ;;  %v1913_v41 = vmul.f32 0.00390625, %v1761_v39 }
 0x1c2   :  { %v4166_v1 = vsel %vm4145_vm1, %v3811_v60, %v3809_v42  ;;  %v3069_v63 = vrot.slane %v3068_v59, 1  ;;  %v3082_v4 = vadd.f32 %v3081_v16, %v3080_v51  ;;  %v1910_v24 = vmul.f32 0.00390625, %v1746_v30  ;;  %v1796_v16 = vpop.xlane.xlu0 %1795 }
 0x1c3   :  { %v3815_v17 = vmul.f32 0.25, %v3056_v32  ;;  %v4167_v53 = vsel %vm4147_vm2, %v3813_v9, %v4166_v1  ;;  %v3096_v29 = vadd.f32 %v3095_v15, %v3094_v27  ;;  %v3110_v58 = vadd.f32 %v3109_v44, %v3108_v6  ;;  %v1781_v6 = vpop.xlane.xlu1 %1780 }
 0x1c4   :  { %v1977_v52 = vadd.f32 1e-05, %v1913_v41  ;;  %v3070_v18 = vadd.f32 %v3069_v63, %v3068_v59  ;;  %v3083_v56 = vrot.slane %v3082_v4, 1  ;;  %v1914_v37 = vmul.f32 0.00390625, %v1766_v38 }
 0x1c5   :  { %v4168_v14 = vsel %vm4149_vm3, %v3815_v17, %v4167_v53  ;;  %v3097_v35 = vrot.slane %v3096_v29, 1  ;;  %v3111_v25 = vrot.slane %v3110_v58, 1  ;;  %v1974_v39 = vadd.f32 1e-05, %v1910_v24 }
 0x1c6   :  { %4738 = vrsqrt.f32 %v1977_v52  ;;  %v3084_v60 = vadd.f32 %v3083_v56, %v3082_v4  ;;  %v3817_v42 = vmul.f32 0.25, %v3070_v18  ;;  %v1978_v26 = vadd.f32 1e-05, %v1914_v37  ;;  %v7375_v52 = vld [vmem:[#allocation2_spill] sm:$0xff] }
 0x1c7   :  { %v1911_v51 = vmul.f32 0.00390625, %v1751_v10  ;;  %v3098_v0 = vadd.f32 %v3097_v35, %v3096_v29  ;;  %v3112_v32 = vadd.f32 %v3111_v25, %v3110_v58  ;;  %4740 = vrsqrt.f32 %v1974_v39 }
 0x1c8   :  { %v1915_v27 = vmul.f32 0.00390625, %v1771_v48  ;;  %v3819_v30 = vmul.f32 0.25, %v3084_v60  ;;  %v4169_v63 = vsel %vm4151_vm4, %v3817_v42, %v4168_v14  ;;  %4742 = vrsqrt.f32 %v1978_v26  ;;  %v7379_v60 = vld [vmem:[#allocation38_spill] sm:$0xff] }
 0x1c9   :  { %v1975_v59 = vadd.f32 1e-05, %v1911_v51  ;;  %v3821_v38 = vmul.f32 0.25, %v3098_v0  ;;  %v3823_v9 = vmul.f32 0.25, %v3112_v32  ;;  %v1916_v44 = vmul.f32 0.00390625, %v1776_v7 }
 0x1ca   :  { %v1979_v15 = vadd.f32 1e-05, %v1915_v27  ;;  %v4170_v1 = vsel %vm4153_vm5, %v3819_v30, %v4169_v63  ;;  %v1917_v41 = vmul.f32 0.00390625, %v1781_v6  ;;  %v1920_v10 = vmul.f32 0.00390625, %v1796_v16 }
 0x1cb   :  { %4744 = vrsqrt.f32 %v1975_v59  ;;  %v6600_v48 = vadd.f32 %v3464_v57, %v6559_v8  ;;  %v4171_v4 = vsel %vm4155_vm6, %v3821_v38, %v4170_v1  ;;  %v1980_v17 = vadd.f32 1e-05, %v1916_v44 }
 0x1cc   :  { %4746 = vrsqrt.f32 %v1979_v15  ;;  %v4172_v53 = vsel %vm4157_vm7, %v3823_v9, %v4171_v4  ;;  %v1981_v29 = vadd.f32 1e-05, %v1917_v41  ;;  %v1984_v58 = vadd.f32 1e-05, %v1920_v10 }
 0x1cd   :  { %v2789_v7 = vcombine.high %v6340_v22, %v6340_v22  ;;  %4351 = vmatmul.mubr.f32.gmra.mxu0 %v4172_v53  ;;  %4463 = vmatmul.mubr.f32.gmra.mxu1 %v4172_v53  ;;  %4748 = vrsqrt.f32 %v1980_v17  ;;  %v7376_v24 = vrot.slane %v6345_v49, %v5273_v55  ;;  %v2790_v57 = vcombine.high %v6350_v61, %v6350_v61 }
 0x1ce   :  { %v3130_v18 = vrot.slane %v6318_v45, 2  ;;  %4750 = vrsqrt.f32 %v1981_v29  ;;  %v3144_v56 = vrot.slane %v6321_v43, 2  ;;  %v7377_v14 = vrot.slane %v6312_v11, 4  ;;  %v7381_v29 = vld [vmem:[#allocation8_spill] sm:$0xff] }
 0x1cf   :  { %v6610_v8 = vmul.f32 %v7376_v24, %v7375_v52  ;;  %v7378_v35 = vcombine.high %v6315_v50, %v6315_v50  ;;  %4752 = vrsqrt.f32 %v1984_v58  ;;  %v7380_v42 = vcombine.high %v7379_v60, %v7379_v60 }
 0x1d0   :  { %v3157_v37 = vadd.f32 %v7377_v14, %v6312_v11  ;;  %v3131_v49 = vadd.f32 %v3130_v18, %v6318_v45  ;;  %v3145_v51 = vadd.f32 %v3144_v56, %v6321_v43  ;;  %v3197_v11 = vsel %vm270_vm0, %v2789_v7, 0.0 }
 0x1d1   :  { %v3169_v25 = vsel %vm270_vm0, %v7378_v35, 0.0  ;;  %v3183_v26 = vsel %vm270_vm0, %v7380_v42, 0.0  ;;  %v3198_v50 = vrot.slane %v3197_v11, 4  ;;  %v3211_v16 = vsel %vm270_vm0, %v2790_v57, 0.0 }
 0x1d2   :  { %v3170_v39 = vrot.slane %v3169_v25, 4  ;;  %v3158_v0 = vrot.slane %v3157_v37, 2  ;;  %v3184_v32 = vrot.slane %v3183_v26, 4  ;;  %v3132_v27 = vrot.slane %v3131_v49, 1 }
 0x1d3   :  { %v4739_v30 = vpop.eup %4738  ;;  %v3146_v63 = vrot.slane %v3145_v51, 1  ;;  %v3212_v38 = vrot.slane %v3211_v16, 4  ;;  %v2791_v15 = vcombine.high %v6610_v8, %v6610_v8  ;;  %v3199_v44 = vadd.f32 %v3198_v50, %v3197_v11  ;;  %v7383_v11 = vld [vmem:[#allocation10_spill] sm:$0xff] }
 0x1d4   :  { %v3171_v6 = vadd.f32 %v3170_v39, %v3169_v25  ;;  %v3159_v45 = vadd.f32 %v3158_v0, %v3157_v37  ;;  %v3185_v59 = vadd.f32 %v3184_v32, %v3183_v26  ;;  %v2421_v9 = vrot.slane %v4739_v30, %v5273_v55  ;;  %v4741_v1 = vpop.eup %4740  ;;  %v7382_v0 = vld [vmem:[#allocation9_spill] sm:$0xff] }
 0x1d5   :  { %v3133_v41 = vadd.f32 %v3132_v27, %v3131_v49  ;;  %v3213_v17 = vadd.f32 %v3212_v38, %v3211_v16  ;;  %v4743_v53 = vpop.eup %4742  ;;  %v2400_v7 = vrot.slane %v4741_v1, %v5273_v55  ;;  %v3147_v52 = vadd.f32 %v3146_v63, %v3145_v51 }
 0x1d6   :  { %v3172_v43 = vrot.slane %v3171_v6, 2  ;;  %v3160_v10 = vrot.slane %v3159_v45, 1  ;;  %v3186_v4 = vrot.slane %v3185_v59, 2  ;;  %v2681_v58 = vmul.f32 %v2421_v9, %v7381_v29 }
 0x1d7   :  { %v2428_v57 = vrot.slane %v4743_v53, %v5273_v55  ;;  %v3200_v14 = vrot.slane %v3199_v44, 2  ;;  %v3214_v39 = vrot.slane %v3213_v17, 2  ;;  %v6641_v32 = vmul.f32 %v2400_v7, %v7382_v0  ;;  %v7385_v0 = vld [vmem:[#allocation13_spill] sm:$0xff] }
 0x1d8   :  { %v3173_v24 = vadd.f32 %v3172_v43, %v3171_v6  ;;  %v3161_v18 = vadd.f32 %v3160_v10, %v3159_v45  ;;  %v3187_v56 = vadd.f32 %v3186_v4, %v3185_v59  ;;  %v6637_v37 = vpop.eup %4744  ;;  %v2809_v35 = vcombine.high %v2681_v58, %v2681_v58  ;;  %v7384_v10 = vld [vmem:[#allocation12_spill] sm:$0xff] }
 0x1d9   :  { %v3470_v25 = vsel %vm270_vm0, %v2681_v58, 0.0  ;;  %v4747_v42 = vpop.eup %4746  ;;  %v2682_v51 = vmul.f32 %v2428_v57, %v7383_v11  ;;  %v3201_v29 = vadd.f32 %v3200_v14, %v3199_v44 }
 0x1da   :  { %v3174_v49 = vrot.slane %v3173_v24, 1  ;;  %v3471_v26 = vrot.slane %v3470_v25, 4  ;;  %v3188_v27 = vrot.slane %v3187_v56, 1  ;;  %v3477_v6 = vsel %vm270_vm0, %v2809_v35, 0.0  ;;  %v4749_v63 = vpop.eup %4748 }
 0x1db   :  { %v2435_v16 = vrot.slane %v4747_v42, %v5273_v55  ;;  %v3478_v59 = vrot.slane %v3477_v6, 4  ;;  %v2810_v38 = vcombine.high %v2682_v51, %v2682_v51  ;;  %v3484_v9 = vsel %vm270_vm0, %v2682_v51, 0.0  ;;  %v4751_v43 = vpop.eup %4750  ;;  %v7386_v51 = vld [vmem:[#allocation14_spill] sm:$0xff] }
 0x1dc   :  { %v3175_v30 = vadd.f32 %v3174_v49, %v3173_v24  ;;  %v6648_v45 = vadd.f32 %v3471_v26, %v3470_v25  ;;  %v3485_v1 = vrot.slane %v3484_v9, 4  ;;  %v2442_v53 = vrot.slane %v4749_v63, %v5273_v55  ;;  %v4753_v58 = vpop.eup %4752 }
 0x1dd   :  { %v6652_v4 = vmul.f32 %v2435_v16, %v7384_v10  ;;  %v6657_v24 = vsel %vm270_vm0, %v2810_v38, 0.0  ;;  %v2449_v57 = vrot.slane %v4751_v43, %v5273_v55  ;;  %v3189_v35 = vadd.f32 %v3188_v27, %v3187_v56 }
 0x1de   :  { %v6660_v25 = vadd.f32 %v3478_v59, %v3477_v6  ;;  %v6662_v49 = vadd.f32 %v3485_v1, %v3484_v9  ;;  %v6673_v11 = vmul.f32 %v2442_v53, %v7385_v0  ;;  %v2470_v56 = vrot.slane %v4753_v58, %v5273_v55  ;;  %v7387_v59 = vld [vmem:[#allocation15_spill] sm:$0xff] }
 0x1df   :  { %v6667_v26 = vsel %vm270_vm0, %v6652_v4, 0.0  ;;  %v6677_v27 = vmul.f32 %v2449_v57, %v7386_v51  ;;  %v3202_v6 = vrot.slane %v3201_v29, 1  ;;  %v3215_v16 = vadd.f32 %v3214_v39, %v3213_v17 }
 0x1e0   :  { %v3225_v63 = vsel %vm270_vm0, %v2791_v15, 0.0  ;;  %v2688_v38 = vmul.f32 %v2470_v56, %v7387_v59  ;;  %v3826_v43 = vmul.f32 0.25, %v3133_v41  ;;  %v3828_v1 = vmul.f32 0.25, %v3147_v52  ;;  %v1801_v15 = vpop.xlane.xlu1 %1800 }
 0x1e1   :  { %v3226_v9 = vrot.slane %v3225_v63, 4  ;;  %v3203_v10 = vadd.f32 %v3202_v6, %v3201_v29  ;;  %v3216_v7 = vrot.slane %v3215_v16, 1  ;;  %v3830_v14 = vmul.f32 0.25, %v3161_v18  ;;  %v7388_v29 = vld [vmem:[#allocation34_spill] sm:$0xff] }
 0x1e2   :  { %v3832_v44 = vmul.f32 0.25, %v3175_v30  ;;  %v2816_v53 = vcombine.high %v2688_v38, %v2688_v38  ;;  %v3568_v0 = vsel %vm270_vm0, %v2688_v38, 0.0  ;;  %v3834_v42 = vmul.f32 0.25, %v3189_v35  ;;  %v7391_v38 = vld [vmem:[#allocation35_spill] sm:$0xff] }
 0x1e3   :  { %v3227_v58 = vadd.f32 %v3226_v9, %v3225_v63  ;;  %v3569_v57 = vrot.slane %v3568_v0, 4  ;;  %v3217_v51 = vadd.f32 %v3216_v7, %v3215_v16  ;;  %v3836_v46 = vmul.f32 0.25, %v3203_v10 }
 0x1e4   :  { %v4187_v17 = vsel %vm4145_vm1, %v3828_v1, %v3826_v43  ;;  %v6684_v39 = vsel %vm270_vm0, %v2816_v53, 0.0  ;;  %v7389_v18 = vrot.slane %v7388_v29, 2  ;;  %v7392_v9 = vrot.slane %v7391_v38, 2  ;;  %v1786_v43 = vpop.xlane.xlu0 %1785 }
 0x1e5   :  { %v3228_v41 = vrot.slane %v3227_v58, 2  ;;  %v4188_v52 = vsel %vm4147_vm2, %v3830_v14, %v4187_v17  ;;  %v6692_v35 = vadd.f32 %v3569_v57, %v3568_v0  ;;  %v3838_v7 = vmul.f32 0.25, %v3217_v51  ;;  %v7393_v0 = vld [vmem:[#allocation36_spill] sm:$0xff] }
 0x1e6   :  { %v3124_v30 = vadd.f32 %v7389_v18, %v7388_v29  ;;  %v4189_v6 = vsel %vm4149_vm3, %v3832_v44, %v4188_v52  ;;  %v3138_v14 = vadd.f32 %v7392_v9, %v7391_v38  ;;  %v3576_v10 = vrot.slane %v6684_v39, 4 }
 0x1e7   :  { %7390 = vst [vmem:[#allocation4_spill] sm:$0xff] %v6692_v35  ;;  %v3229_v16 = vadd.f32 %v3228_v41, %v3227_v58  ;;  %v4190_v63 = vsel %vm4151_vm4, %v3834_v42, %v4189_v6  ;;  %v3151_v57 = vrot.slane %v7393_v0, 2  ;;  %v7394_v41 = vld [vmem:[#allocation37_spill] sm:$0xff]  ;;  %v3176_v18 = vsel %vm270_vm0, %v7379_v60, 0.0 }
 0x1e8   :  { %v3125_v59 = vrot.slane %v3124_v30, 1  ;;  %v4191_v53 = vsel %vm4153_vm5, %v3836_v46, %v4190_v63  ;;  %v3139_v17 = vrot.slane %v3138_v14, 1  ;;  %v7395_v52 = vrot.slane %v7394_v41, 4  ;;  %v1806_v46 = vpop.xlane.xlu1 %1805 }
 0x1e9   :  { %v3230_v51 = vrot.slane %v3229_v16, 1  ;;  %v4192_v44 = vsel %vm4155_vm6, %v3838_v7, %v4191_v53  ;;  %v3152_v42 = vadd.f32 %v3151_v57, %v7393_v0  ;;  %v3190_v6 = vsel %vm270_vm0, %v6340_v22, 0.0 }
 0x1ea   :  { %v3126_v58 = vadd.f32 %v3125_v59, %v3124_v30  ;;  %v3164_v29 = vadd.f32 %v7395_v52, %v7394_v41  ;;  %v3140_v38 = vadd.f32 %v3139_v17, %v3138_v14  ;;  %v3177_v9 = vrot.slane %v3176_v18, 4  ;;  %v1791_v52 = vpop.xlane.xlu0 %1790 }
 0x1eb   :  { %v3231_v63 = vadd.f32 %v3230_v51, %v3229_v16  ;;  %v3191_v1 = vrot.slane %v3190_v6, 4  ;;  %v3153_v7 = vrot.slane %v3152_v42, 1  ;;  %v3204_v59 = vsel %vm270_vm0, %v6350_v61, 0.0 }
 0x1ec   :  { %v3165_v30 = vrot.slane %v3164_v29, 2  ;;  %v3218_v53 = vsel %vm270_vm0, %v6610_v8, 0.0  ;;  %v3178_v57 = vadd.f32 %v3177_v9, %v3176_v18  ;;  %v3205_v60 = vrot.slane %v3204_v59, 4 }
 0x1ed   :  { %v3840_v0 = vmul.f32 0.25, %v3231_v63  ;;  %v3192_v41 = vadd.f32 %v3191_v1, %v3190_v6  ;;  %v3154_v56 = vadd.f32 %v3153_v7, %v3152_v42  ;;  %v3219_v13 = vrot.slane %v3218_v53, 4  ;;  %v1811_v63 = vpop.xlane.xlu1 %1810 }
 0x1ee   :  { %v3166_v22 = vadd.f32 %v3165_v30, %v3164_v29  ;;  %v3825_v16 = vmul.f32 0.25, %v3126_v58  ;;  %v3179_v51 = vrot.slane %v3178_v57, 2  ;;  %v3206_v3 = vadd.f32 %v3205_v60, %v3204_v59  ;;  %v1816_v60 = vpop.xlane.xlu0 %1815 }
 0x1ef   :  { %v4193_v14 = vsel %vm4157_vm7, %v3840_v0, %v4192_v44  ;;  %v3193_v17 = vrot.slane %v3192_v41, 2  ;;  %v3220_v54 = vadd.f32 %v3219_v13, %v3218_v53  ;;  %v3827_v50 = vmul.f32 0.25, %v3140_v38 }
 0x1f0   :  { %4356 = vmatprep.mubr.f32.mxu0 %v4193_v14  ;;  %4467 = vmatprep.mubr.f32.mxu1 %v4193_v14  ;;  %v3167_v61 = vrot.slane %v3166_v22, 1  ;;  %v3829_v8 = vmul.f32 0.25, %v3154_v56  ;;  %v3180_v18 = vadd.f32 %v3179_v51, %v3178_v57  ;;  %v3207_v6 = vrot.slane %v3206_v3, 2 }
 0x1f1   :  { %v3194_v1 = vadd.f32 %v3193_v17, %v3192_v41  ;;  %v1921_v9 = vmul.f32 0.00390625, %v1801_v15  ;;  %v3221_v29 = vrot.slane %v3220_v54, 2  ;;  %v4180_v58 = vsel %vm4145_vm1, %v3827_v50, %v3825_v16 }
 0x1f2   :  { %v3168_v42 = vadd.f32 %v3167_v61, %v3166_v22  ;;  %v1918_v7 = vmul.f32 0.00390625, %v1786_v43  ;;  %v3181_v44 = vrot.slane %v3180_v18, 1  ;;  %v3208_v0 = vadd.f32 %v3207_v6, %v3206_v3  ;;  %v1821_v43 = vpop.xlane.xlu1 %1820 }
 0x1f3   :  { %v3195_v30 = vrot.slane %v3194_v1, 1  ;;  %v4181_v59 = vsel %vm4147_vm2, %v3829_v8, %v4180_v58  ;;  %v3222_v14 = vadd.f32 %v3221_v29, %v3220_v54  ;;  %v1985_v38 = vadd.f32 1e-05, %v1921_v9 }
 0x1f4   :  { %v3831_v13 = vmul.f32 0.25, %v3168_v42  ;;  %v1982_v56 = vadd.f32 1e-05, %v1918_v7  ;;  %v3182_v53 = vadd.f32 %v3181_v44, %v3180_v18  ;;  %v3209_v41 = vrot.slane %v3208_v0, 1 }
 0x1f5   :  { %v3196_v57 = vadd.f32 %v3195_v30, %v3194_v1  ;;  %v1922_v51 = vmul.f32 0.00390625, %v1806_v46  ;;  %v3223_v15 = vrot.slane %v3222_v14, 1  ;;  %4754 = vrsqrt.f32 %v1985_v38  ;;  %v1836_v46 = vpop.xlane.xlu0 %1835  ;;  %v7397_v38 = vld [vmem:[#allocation41_spill] sm:$0xff] }
 0x1f6   :  { %v4182_v22 = vsel %vm4149_vm3, %v3831_v13, %v4181_v59  ;;  %v1919_v50 = vmul.f32 0.00390625, %v1791_v52  ;;  %v3210_v16 = vadd.f32 %v3209_v41, %v3208_v0  ;;  %v3833_v17 = vmul.f32 0.25, %v3182_v53  ;;  %v7396_v59 = vld [vmem:[#allocation3_spill] sm:$0xff] }
 0x1f7   :  { %v3835_v3 = vmul.f32 0.25, %v3196_v57  ;;  %4756 = vrsqrt.f32 %v1982_v56  ;;  %v3224_v61 = vadd.f32 %v3223_v15, %v3222_v14  ;;  %v1986_v8 = vadd.f32 1e-05, %v1922_v51  ;;  %v7398_v41 = vld [vmem:[#allocation43_spill] sm:$0xff]  ;;  %v7399_v51 = vld [vmem:[#allocation42_spill] sm:$0xff] }
 0x1f8   :  { %v1983_v54 = vadd.f32 1e-05, %v1919_v50  ;;  %v1923_v6 = vmul.f32 0.00390625, %v1811_v63  ;;  %v3837_v9 = vmul.f32 0.25, %v3210_v16  ;;  %v4183_v18 = vsel %vm4151_vm4, %v3833_v17, %v4182_v22  ;;  %v7401_v50 = vld [vmem:[#allocation45_spill] sm:$0xff]  ;;  %v7403_v17 = vld [vmem:[#allocation46_spill] sm:$0xff] }
 0x1f9   :  { %v1924_v1 = vmul.f32 0.00390625, %v1816_v60  ;;  %v1925_v42 = vmul.f32 0.00390625, %v1821_v43  ;;  %v3839_v29 = vmul.f32 0.25, %v3224_v61  ;;  %v4184_v58 = vsel %vm4153_vm5, %v3835_v3, %v4183_v18 }
 0x1fa   :  { %4758 = vrsqrt.f32 %v1986_v8  ;;  %v1987_v52 = vadd.f32 1e-05, %v1923_v6  ;;  %v4185_v7 = vsel %vm4155_vm6, %v3837_v9, %v4184_v58  ;;  %v1928_v63 = vmul.f32 0.00390625, %v1836_v46 }
 0x1fb   :  { %4760 = vrsqrt.f32 %v1983_v54  ;;  %v1988_v44 = vadd.f32 1e-05, %v1924_v1  ;;  %v1989_v30 = vadd.f32 1e-05, %v1925_v42  ;;  %v4186_v0 = vsel %vm4157_vm7, %v3839_v29, %v4185_v7 }
 0x1fc   :  { %4762 = vrsqrt.f32 %v1987_v52  ;;  %v6728_v60 = vmul.f32 %v2351_v40, %v7396_v59  ;;  %4357 = vmatmul.mubr.f32.gmra.mxu0 %v4186_v0  ;;  %4468 = vmatmul.mubr.f32.gmra.mxu1 %v4186_v0  ;;  %v2797_v14 = vcombine.high %v6439_v20, %v6439_v20  ;;  %v2798_v13 = vcombine.high %v6512_v47, %v6512_v47 }
 0x1fd   :  { %4764 = vrsqrt.f32 %v1988_v44  ;;  %v3242_v56 = vrot.slane %v7397_v38, 2  ;;  %v1992_v53 = vadd.f32 1e-05, %v1928_v63  ;;  %v3256_v19 = vrot.slane %v7398_v41, 2 }
 0x1fe   :  { %4766 = vrsqrt.f32 %v1989_v30  ;;  %v2799_v57 = vcombine.high %v6728_v60, %v6728_v60  ;;  %v7400_v15 = vrot.slane %v7399_v51, 4  ;;  %v7402_v43 = vcombine.high %v7401_v50, %v7401_v50 }
 0x1ff   :  { %v3243_v40 = vadd.f32 %v3242_v56, %v7397_v38  ;;  %v7404_v3 = vcombine.high %v7403_v17, %v7403_v17  ;;  %4768 = vrsqrt.f32 %v1992_v53  ;;  %v3257_v8 = vadd.f32 %v3256_v19, %v7398_v41 }
 0x200   :  { %v3269_v22 = vadd.f32 %v7400_v15, %v7399_v51  ;;  %v3281_v16 = vsel %vm270_vm0, %v7402_v43, 0.0  ;;  %v3309_v1 = vsel %vm270_vm0, %v2797_v14, 0.0  ;;  %v3323_v42 = vsel %vm270_vm0, %v2798_v13, 0.0  ;;  %v7405_v15 = vld [vmem:[#allocation16_spill] sm:$0xff] }
 0x201   :  { %v3295_v61 = vsel %vm270_vm0, %v7404_v3, 0.0  ;;  %v3282_v54 = vrot.slane %v3281_v16, 4  ;;  %v3244_v9 = vrot.slane %v3243_v40, 1  ;;  %v3258_v46 = vrot.slane %v3257_v8, 1 }
 0x202   :  { %v3296_v6 = vrot.slane %v3295_v61, 4  ;;  %v3270_v18 = vrot.slane %v3269_v22, 2  ;;  %v3310_v52 = vrot.slane %v3309_v1, 4  ;;  %v4755_v7 = vpop.eup %4754  ;;  %v6756_v44 = vadd.f32 %v3576_v10, %v6684_v39 }
 0x203   :  { %v3283_v29 = vadd.f32 %v3282_v54, %v3281_v16  ;;  %v3245_v30 = vadd.f32 %v3244_v9, %v3243_v40  ;;  %v3324_v63 = vrot.slane %v3323_v42, 4  ;;  %v2477_v38 = vrot.slane %v4755_v7, %v5273_v55 }
 0x204   :  { %v3297_v58 = vadd.f32 %v3296_v6, %v3295_v61  ;;  %v3271_v0 = vadd.f32 %v3270_v18, %v3269_v22  ;;  %v4757_v59 = vpop.eup %4756  ;;  %v3337_v13 = vsel %vm270_vm0, %v2799_v57, 0.0  ;;  %v3311_v19 = vadd.f32 %v3310_v52, %v3309_v1  ;;  %v7406_v22 = vld [vmem:[#allocation17_spill] sm:$0xff] }
 0x205   :  { %v3284_v56 = vrot.slane %v3283_v29, 2  ;;  %v2456_v53 = vrot.slane %v4757_v59, %v5273_v55  ;;  %v3325_v51 = vadd.f32 %v3324_v63, %v3323_v42  ;;  %v2689_v50 = vmul.f32 %v2477_v38, %v7405_v15 }
 0x206   :  { %v3298_v14 = vrot.slane %v3297_v58, 2  ;;  %v3272_v41 = vrot.slane %v3271_v0, 1  ;;  %v3259_v43 = vadd.f32 %v3258_v46, %v3257_v8  ;;  %v3312_v61 = vrot.slane %v3311_v19, 2 }
 0x207   :  { %v3285_v39 = vadd.f32 %v3284_v56, %v3283_v29  ;;  %v4759_v40 = vpop.eup %4758  ;;  %v6763_v16 = vmul.f32 %v2456_v53, %v7406_v22  ;;  %v3338_v54 = vrot.slane %v3337_v13, 4  ;;  %v2817_v57 = vcombine.high %v2689_v50, %v2689_v50  ;;  %v7409_v22 = vld [vmem:[#allocation20_spill] sm:$0xff] }
 0x208   :  { %v3299_v10 = vadd.f32 %v3298_v14, %v3297_v58  ;;  %v3273_v3 = vadd.f32 %v3272_v41, %v3271_v0  ;;  %v6765_v6 = vpop.eup %4760  ;;  %v3582_v9 = vsel %vm270_vm0, %v2689_v50, 0.0  ;;  %v2484_v18 = vrot.slane %v4759_v40, %v5273_v55  ;;  %v7407_v0 = vld [vmem:[#allocation18_spill] sm:$0xff] }
 0x209   :  { %v3286_v1 = vrot.slane %v3285_v39, 1  ;;  %v4763_v42 = vpop.eup %4762  ;;  %v3583_v52 = vrot.slane %v3582_v9, 4  ;;  %v3326_v29 = vrot.slane %v3325_v51, 2  ;;  %v3589_v7 = vsel %vm270_vm0, %v2817_v57, 0.0 }
 0x20a   :  { %v3300_v46 = vrot.slane %v3299_v10, 1  ;;  %v4765_v58 = vpop.eup %4764  ;;  %v2690_v63 = vmul.f32 %v2484_v18, %v7407_v0  ;;  %v2491_v59 = vrot.slane %v4763_v42, %v5273_v55  ;;  %v3313_v38 = vadd.f32 %v3312_v61, %v3311_v19 }
 0x20b   :  { %v4767_v56 = vpop.eup %4766  ;;  %v6774_v14 = vadd.f32 %v3583_v52, %v3582_v9  ;;  %v3590_v53 = vrot.slane %v3589_v7, 4  ;;  %v2498_v41 = vrot.slane %v4765_v58, %v5273_v55  ;;  %v3287_v15 = vadd.f32 %v3286_v1, %v3285_v39  ;;  %v7413_v52 = vld [vmem:[#allocation21_spill] sm:$0xff] }
 0x20c   :  { %v2818_v50 = vcombine.high %v2690_v63, %v2690_v63  ;;  %v3596_v40 = vsel %vm270_vm0, %v2690_v63, 0.0  ;;  %v6779_v8 = vmul.f32 %v2491_v59, %v7409_v22  ;;  %v2505_v57 = vrot.slane %v4767_v56, %v5273_v55  ;;  %v4769_v35 = vpop.eup %4768 }
 0x20d   :  { %7408 = vst [vmem:[#allocation5_spill] sm:$0xff] %v6774_v14  ;;  %v6783_v42 = vadd.f32 %v3590_v53, %v3589_v7  ;;  %v3597_v19 = vrot.slane %v3596_v40, 4  ;;  %v3301_v61 = vadd.f32 %v3300_v46, %v3299_v10  ;;  %v6795_v58 = vmul.f32 %v2498_v41, %v7413_v52  ;;  %v7416_v10 = vld [vmem:[#allocation22_spill] sm:$0xff]  ;;  %v7417_v41 = vld [vmem:[#allocation23_spill] sm:$0xff] }
 0x20e   :  { %7410 = vst [vmem:[#allocation7_spill] sm:$0xff] %v6779_v8  ;;  %v6786_v9 = vsel %vm270_vm0, %v2818_v50, 0.0  ;;  %v6792_v1 = vsel %vm270_vm0, %v6779_v8, 0.0  ;;  %v6802_v46 = vmul.f32 %v2505_v57, %v7416_v10  ;;  %v2526_v59 = vrot.slane %v4769_v35, %v5273_v55  ;;  %v7420_v35 = vld [vmem:[#allocation40_spill] sm:$0xff] }
 0x20f   :  { %7411 = vst [vmem:[#allocation6_spill] sm:$0xff] %v6786_v9  ;;  %7412 = vst [vmem:[#allocation33_spill] sm:$0xff] %v6792_v1  ;;  %v6797_v0 = vadd.f32 %v3597_v19, %v3596_v40  ;;  %v3314_v56 = vrot.slane %v3313_v38, 1  ;;  %v3327_v53 = vadd.f32 %v3326_v29, %v3325_v51  ;;  %v3339_v50 = vadd.f32 %v3338_v54, %v3337_v13  ;;  %v7418_v1 = vld [vmem:[#allocation39_spill] sm:$0xff] }
 0x210   :  { %7414 = vst [vmem:[#allocation2_spill] sm:$0xff] %v6795_v58  ;;  %v3842_v22 = vmul.f32 0.25, %v3245_v30  ;;  %v3844_v18 = vmul.f32 0.25, %v3259_v43  ;;  %v3846_v39 = vmul.f32 0.25, %v3273_v3  ;;  %v3848_v14 = vmul.f32 0.25, %v3287_v15 }
 0x211   :  { %7415 = vst [vmem:[#allocation38_spill] sm:$0xff] %v6797_v0  ;;  %v2696_v52 = vmul.f32 %v2526_v59, %v7417_v41  ;;  %v3315_v40 = vadd.f32 %v3314_v56, %v3313_v38  ;;  %v3328_v19 = vrot.slane %v3327_v53, 1  ;;  %v3340_v0 = vrot.slane %v3339_v50, 2  ;;  %v1841_v59 = vpop.xlane.xlu1 %1840 }
 0x212   :  { %v3850_v7 = vmul.f32 0.25, %v3301_v61  ;;  %v4201_v63 = vsel %vm4145_vm1, %v3844_v18, %v3842_v22  ;;  %v7419_v57 = vrot.slane %v7418_v1, 2  ;;  %v7421_v51 = vrot.slane %v7420_v35, 2  ;;  %v1826_v18 = vpop.xlane.xlu0 %1825 }
 0x213   :  { %v2824_v30 = vcombine.high %v2696_v52, %v2696_v52  ;;  %v3680_v43 = vsel %vm270_vm0, %v2696_v52, 0.0  ;;  %v3329_v3 = vadd.f32 %v3328_v19, %v3327_v53  ;;  %v3341_v54 = vadd.f32 %v3340_v0, %v3339_v50 }
 0x214   :  { %v3236_v10 = vadd.f32 %v7419_v57, %v7418_v1  ;;  %v3250_v13 = vadd.f32 %v7421_v51, %v7420_v35  ;;  %v3681_v29 = vrot.slane %v3680_v43, 4  ;;  %v3852_v38 = vmul.f32 0.25, %v3315_v40  ;;  %v7423_v40 = vld [vmem:[#allocation44_spill] sm:$0xff] }
 0x215   :  { %v4202_v15 = vsel %vm4147_vm2, %v3846_v39, %v4201_v63  ;;  %v6816_v56 = vsel %vm270_vm0, %v2824_v30, 0.0  ;;  %v3342_v1 = vrot.slane %v3341_v54, 1  ;;  %v3854_v22 = vmul.f32 0.25, %v3329_v3  ;;  %v7424_v30 = vld [vmem:[#allocation47_spill] sm:$0xff] }
 0x216   :  { %v3237_v61 = vrot.slane %v3236_v10, 1  ;;  %v4203_v41 = vsel %vm4149_vm3, %v3848_v14, %v4202_v15  ;;  %v6821_v52 = vadd.f32 %v3681_v29, %v3680_v43  ;;  %v3251_v50 = vrot.slane %v3250_v13, 1 }
 0x217   :  { %v4204_v53 = vsel %vm4151_vm4, %v3850_v7, %v4203_v41  ;;  %v3343_v39 = vadd.f32 %v3342_v1, %v3341_v54  ;;  %v3263_v19 = vrot.slane %v7423_v40, 2  ;;  %v7425_v3 = vrot.slane %v7424_v30, 4 }
 0x218   :  { %7422 = vst [vmem:[#allocation8_spill] sm:$0xff] %v6821_v52  ;;  %v4205_v63 = vsel %vm4153_vm5, %v3852_v38, %v4204_v53  ;;  %v3238_v14 = vadd.f32 %v3237_v61, %v3236_v10  ;;  %v3252_v15 = vadd.f32 %v3251_v50, %v3250_v13  ;;  %v3288_v7 = vsel %vm270_vm0, %v7403_v17, 0.0  ;;  %v1846_v10 = vpop.xlane.xlu1 %1845  ;;  %v1831_v61 = vpop.xlane.xlu0 %1830 }
 0x219   :  { %v4206_v51 = vsel %vm4155_vm6, %v3854_v22, %v4205_v63  ;;  %v3276_v43 = vadd.f32 %v7425_v3, %v7424_v30  ;;  %v3856_v29 = vmul.f32 0.25, %v3343_v39  ;;  %v3264_v57 = vadd.f32 %v3263_v19, %v7423_v40 }
 0x21a   :  { %v3289_v38 = vrot.slane %v3288_v7, 4  ;;  %v3302_v1 = vsel %vm270_vm0, %v6439_v20, 0.0  ;;  %v3316_v22 = vsel %vm270_vm0, %v6512_v47, 0.0  ;;  %v3330_v17 = vsel %vm270_vm0, %v6728_v60, 0.0 }
 0x21b   :  { %v3277_v54 = vrot.slane %v3276_v43, 2  ;;  %v4207_v41 = vsel %vm4157_vm7, %v3856_v29, %v4206_v51  ;;  %v3265_v53 = vrot.slane %v3264_v57, 1  ;;  %v3303_v39 = vrot.slane %v3302_v1, 4 }
 0x21c   :  { %v3317_v13 = vrot.slane %v3316_v22, 4  ;;  %4362 = vmatprep.mubr.f32.mxu0 %v4207_v41  ;;  %4472 = vmatprep.mubr.f32.mxu1 %v4207_v41  ;;  %v3290_v50 = vadd.f32 %v3289_v38, %v3288_v7  ;;  %v3841_v40 = vmul.f32 0.25, %v3238_v14  ;;  %v3331_v3 = vrot.slane %v3330_v17, 4  ;;  %v1856_v60 = vpop.xlane.xlu0 %1855 }
 0x21d   :  { %v3278_v63 = vadd.f32 %v3277_v54, %v3276_v43  ;;  %v3266_v19 = vadd.f32 %v3265_v53, %v3264_v57  ;;  %v3304_v20 = vadd.f32 %v3303_v39, %v3302_v1  ;;  %v3843_v0 = vmul.f32 0.25, %v3252_v15  ;;  %v1851_v54 = vpop.xlane.xlu1 %1850 }
 0x21e   :  { %v3318_v30 = vadd.f32 %v3317_v13, %v3316_v22  ;;  %v3291_v35 = vrot.slane %v3290_v50, 2  ;;  %v1929_v52 = vmul.f32 0.00390625, %v1841_v59  ;;  %v3332_v58 = vadd.f32 %v3331_v3, %v3330_v17 }
 0x21f   :  { %v3279_v47 = vrot.slane %v3278_v63, 1  ;;  %v3305_v51 = vrot.slane %v3304_v20, 2  ;;  %v3845_v8 = vmul.f32 0.25, %v3266_v19  ;;  %v4194_v43 = vsel %vm4145_vm1, %v3843_v0, %v3841_v40 }
 0x220   :  { %v3319_v29 = vrot.slane %v3318_v30, 2  ;;  %v3292_v41 = vadd.f32 %v3291_v35, %v3290_v50  ;;  %v1993_v7 = vadd.f32 1e-05, %v1929_v52  ;;  %v3333_v38 = vrot.slane %v3332_v58, 2 }
 0x221   :  { %v3280_v9 = vadd.f32 %v3279_v47, %v3278_v63  ;;  %v3306_v14 = vadd.f32 %v3305_v51, %v3304_v20  ;;  %v4195_v1 = vsel %vm4147_vm2, %v3845_v8, %v4194_v43  ;;  %v1926_v59 = vmul.f32 0.00390625, %v1826_v18  ;;  %v1866_v47 = vpop.xlane.xlu0 %1865 }
 0x222   :  { %v3320_v57 = vadd.f32 %v3319_v29, %v3318_v30  ;;  %v3293_v22 = vrot.slane %v3292_v41, 1  ;;  %4770 = vrsqrt.f32 %v1993_v7  ;;  %v3334_v13 = vadd.f32 %v3333_v38, %v3332_v58 }
 0x223   :  { %v3847_v53 = vmul.f32 0.25, %v3280_v9  ;;  %v3307_v15 = vrot.slane %v3306_v14, 1  ;;  %v1930_v17 = vmul.f32 0.00390625, %v1846_v10  ;;  %v1990_v0 = vadd.f32 1e-05, %v1926_v59  ;;  %v1861_v9 = vpop.xlane.xlu1 %1860 }
 0x224   :  { %v3321_v39 = vrot.slane %v3320_v57, 1  ;;  %v3294_v63 = vadd.f32 %v3293_v22, %v3292_v41  ;;  %v1927_v52 = vmul.f32 0.00390625, %v1831_v61  ;;  %v3335_v19 = vrot.slane %v3334_v13, 1 }
 0x225   :  { %v4196_v35 = vsel %vm4149_vm3, %v3847_v53, %v4195_v1  ;;  %v3308_v50 = vadd.f32 %v3307_v15, %v3306_v14  ;;  %v1994_v20 = vadd.f32 1e-05, %v1930_v17  ;;  %4772 = vrsqrt.f32 %v1990_v0  ;;  %v7427_v15 = vld [vmem:[#allocation11_spill] sm:$0xff] }
 0x226   :  { %v3322_v40 = vadd.f32 %v3321_v39, %v3320_v57  ;;  %v3849_v30 = vmul.f32 0.25, %v3294_v63  ;;  %v1991_v8 = vadd.f32 1e-05, %v1927_v52  ;;  %v1931_v3 = vmul.f32 0.00390625, %v1851_v54 }
 0x227   :  { %v3336_v18 = vadd.f32 %v3335_v19, %v3334_v13  ;;  %v3851_v51 = vmul.f32 0.25, %v3308_v50  ;;  %4774 = vrsqrt.f32 %v1994_v20  ;;  %v1932_v41 = vmul.f32 0.00390625, %v1856_v60 }
 0x228   :  { %v3853_v29 = vmul.f32 0.25, %v3322_v40  ;;  %v4197_v58 = vsel %vm4151_vm4, %v3849_v30, %v4196_v35  ;;  %4776 = vrsqrt.f32 %v1991_v8  ;;  %v1995_v10 = vadd.f32 1e-05, %v1931_v3 }
 0x229   :  { %v3855_v61 = vmul.f32 0.25, %v3336_v18  ;;  %v4198_v43 = vsel %vm4153_vm5, %v3851_v51, %v4197_v58  ;;  %v1933_v7 = vmul.f32 0.00390625, %v1861_v9  ;;  %v1934_v14 = vmul.f32 0.00390625, %v1866_v47 }
 0x22a   :  { %v7426_v57 = vrot.slane %v6816_v56, 4  ;;  %v4199_v38 = vsel %vm4155_vm6, %v3853_v29, %v4198_v43  ;;  %4778 = vrsqrt.f32 %v1995_v10  ;;  %v1996_v1 = vadd.f32 1e-05, %v1932_v41  ;;  %v7432_v41 = vld [vmem:[#allocation24_spill] sm:$0xff] }
 0x22b   :  { %v4200_v22 = vsel %vm4157_vm7, %v3855_v61, %v4199_v38  ;;  %v1997_v53 = vadd.f32 1e-05, %v1933_v7  ;;  %v1998_v59 = vadd.f32 1e-05, %v1934_v14  ;;  %v2805_v60 = vcombine.high %v6551_v33, %v6551_v33 }
 0x22c   :  { %v6850_v54 = vadd.f32 %v7426_v57, %v6816_v56  ;;  %4363 = vmatmul.mubr.f32.gmra.mxu0 %v4200_v22  ;;  %4473 = vmatmul.mubr.f32.gmra.mxu1 %v4200_v22  ;;  %4780 = vrsqrt.f32 %v1996_v1  ;;  %v7428_v39 = vrot.slane %v6637_v37, %v5273_v55  ;;  %v2806_v13 = vcombine.high %v6641_v32, %v6641_v32 }
 0x22d   :  { %v3354_v17 = vrot.slane %v6469_v5, 2  ;;  %4782 = vrsqrt.f32 %v1997_v53  ;;  %v3368_v63 = vrot.slane %v6521_v12, 2  ;;  %v7429_v35 = vrot.slane %v6531_v31, 4 }
 0x22e   :  { %v6860_v56 = vmul.f32 %v7428_v39, %v7427_v15  ;;  %v7430_v52 = vcombine.high %v6527_v36, %v6527_v36  ;;  %4784 = vrsqrt.f32 %v1998_v59  ;;  %v7431_v19 = vcombine.high %v6534_v21, %v6534_v21 }
 0x22f   :  { %v3381_v0 = vadd.f32 %v7429_v35, %v6531_v31  ;;  %v3355_v37 = vadd.f32 %v3354_v17, %v6469_v5  ;;  %v4771_v30 = vpop.eup %4770  ;;  %v3369_v8 = vadd.f32 %v3368_v63, %v6521_v12  ;;  %v3421_v31 = vsel %vm270_vm0, %v2805_v60, 0.0 }
 0x230   :  { %v3393_v50 = vsel %vm270_vm0, %v7430_v52, 0.0  ;;  %v3407_v20 = vsel %vm270_vm0, %v7431_v19, 0.0  ;;  %v2533_v36 = vrot.slane %v4771_v30, %v5273_v55  ;;  %v3422_v51 = vrot.slane %v3421_v31, 4 }
 0x231   :  { %v3394_v40 = vrot.slane %v3393_v50, 4  ;;  %v3382_v3 = vrot.slane %v3381_v0, 2  ;;  %v3408_v9 = vrot.slane %v3407_v20, 4  ;;  %v3356_v47 = vrot.slane %v3355_v37, 1 }
 0x232   :  { %v3370_v29 = vrot.slane %v3369_v8, 1  ;;  %v3435_v10 = vsel %vm270_vm0, %v2806_v13, 0.0  ;;  %v2697_v61 = vmul.f32 %v2533_v36, %v7432_v41  ;;  %v2807_v43 = vcombine.high %v6860_v56, %v6860_v56  ;;  %v4773_v14 = vpop.eup %4772 }
 0x233   :  { %v3395_v18 = vadd.f32 %v3394_v40, %v3393_v50  ;;  %v3383_v5 = vadd.f32 %v3382_v3, %v3381_v0  ;;  %v3409_v58 = vadd.f32 %v3408_v9, %v3407_v20  ;;  %v3357_v12 = vadd.f32 %v3356_v47, %v3355_v37  ;;  %v7433_v50 = vld [vmem:[#allocation25_spill] sm:$0xff]  ;;  %v7434_v9 = vld [vmem:[#allocation26_spill] sm:$0xff] }
 0x234   :  { %v3423_v1 = vadd.f32 %v3422_v51, %v3421_v31  ;;  %v3436_v22 = vrot.slane %v3435_v10, 4  ;;  %v4775_v53 = vpop.eup %4774  ;;  %v2825_v59 = vcombine.high %v2697_v61, %v2697_v61  ;;  %v3694_v60 = vsel %vm270_vm0, %v2697_v61, 0.0 }
 0x235   :  { %v3396_v7 = vrot.slane %v3395_v18, 2  ;;  %v3384_v57 = vrot.slane %v3383_v5, 1  ;;  %v3410_v38 = vrot.slane %v3409_v58, 2  ;;  %v2512_v15 = vrot.slane %v4773_v14, %v5273_v55  ;;  %v6887_v13 = vpop.eup %4776 }
 0x236   :  { %v3695_v17 = vrot.slane %v3694_v60, 4  ;;  %v2540_v63 = vrot.slane %v4775_v53, %v5273_v55  ;;  %v3371_v35 = vadd.f32 %v3370_v29, %v3369_v8  ;;  %v3701_v52 = vsel %vm270_vm0, %v2825_v59, 0.0 }
 0x237   :  { %v3397_v39 = vadd.f32 %v3396_v7, %v3395_v18  ;;  %v3411_v0 = vadd.f32 %v3410_v38, %v3409_v58  ;;  %v6892_v37 = vmul.f32 %v2512_v15, %v7433_v50  ;;  %v3385_v40 = vadd.f32 %v3384_v57, %v3383_v5  ;;  %v4779_v20 = vpop.eup %4778  ;;  %v7435_v38 = vld [vmem:[#allocation28_spill] sm:$0xff] }
 0x238   :  { %v6894_v30 = vadd.f32 %v3695_v17, %v3694_v60  ;;  %v3702_v3 = vrot.slane %v3701_v52, 4  ;;  %v2698_v31 = vmul.f32 %v2540_v63, %v7434_v9  ;;  %v2519_v36 = vrot.slane %v6887_v13, %v5273_v55  ;;  %v7437_v9 = vld [vmem:[#allocation30_spill] sm:$0xff] }
 0x239   :  { %v3398_v19 = vrot.slane %v3397_v39, 1  ;;  %v2547_v47 = vrot.slane %v4779_v20, %v5273_v55  ;;  %v3412_v8 = vrot.slane %v3411_v0, 1  ;;  %v3424_v18 = vrot.slane %v3423_v1, 2  ;;  %v4781_v29 = vpop.eup %4780  ;;  %v7436_v20 = vld [vmem:[#allocation29_spill] sm:$0xff] }
 0x23a   :  { %v3437_v51 = vadd.f32 %v3436_v22, %v3435_v10  ;;  %v2826_v41 = vcombine.high %v2698_v31, %v2698_v31  ;;  %v3708_v5 = vsel %vm270_vm0, %v2698_v31, 0.0  ;;  %v4783_v7 = vpop.eup %4782  ;;  %v6902_v14 = vadd.f32 %v3702_v3, %v3701_v52 }
 0x23b   :  { %v3399_v61 = vadd.f32 %v3398_v19, %v3397_v39  ;;  %v3709_v57 = vrot.slane %v3708_v5, 4  ;;  %v6905_v53 = vmul.f32 %v2547_v47, %v7435_v38  ;;  %v2554_v59 = vrot.slane %v4781_v29, %v5273_v55  ;;  %v4785_v60 = vpop.eup %4784 }
 0x23c   :  { %v6909_v15 = vsel %vm270_vm0, %v2826_v41, 0.0  ;;  %v2561_v10 = vrot.slane %v4783_v7, %v5273_v55  ;;  %v3425_v22 = vadd.f32 %v3424_v18, %v3423_v1  ;;  %v3438_v17 = vrot.slane %v3437_v51, 2 }
 0x23d   :  { %v6912_v63 = vadd.f32 %v3709_v57, %v3708_v5  ;;  %v3716_v39 = vrot.slane %v6909_v15, 4  ;;  %v2827_v52 = vcombine.high %v6905_v53, %v6905_v53  ;;  %v3413_v50 = vadd.f32 %v3412_v8, %v3411_v0  ;;  %v7438_v8 = vld [vmem:[#allocation31_spill] sm:$0xff] }
 0x23e   :  { %v6919_v19 = vsel %vm270_vm0, %v6905_v53, 0.0  ;;  %v6922_v3 = vmul.f32 %v2554_v59, %v7436_v20  ;;  %v6925_v31 = vmul.f32 %v2561_v10, %v7437_v9  ;;  %v2568_v1 = vrot.slane %v4785_v60, %v5273_v55 }
 0x23f   :  { %v3426_v47 = vrot.slane %v3425_v22, 1  ;;  %v3439_v18 = vadd.f32 %v3438_v17, %v3437_v51  ;;  %v3449_v29 = vsel %vm270_vm0, %v2807_v43, 0.0  ;;  %v3858_v41 = vmul.f32 0.25, %v3357_v12 }
 0x240   :  { %v6932_v5 = vmul.f32 %v2568_v1, %v7438_v8  ;;  %v3450_v7 = vrot.slane %v3449_v29, 4  ;;  %v3860_v57 = vmul.f32 0.25, %v3371_v35  ;;  %v3862_v20 = vmul.f32 0.25, %v3385_v40 }
 0x241   :  { %v3427_v38 = vadd.f32 %v3426_v47, %v3425_v22  ;;  %v3440_v59 = vrot.slane %v3439_v18, 1  ;;  %v3864_v10 = vmul.f32 0.25, %v3399_v61  ;;  %v3866_v58 = vmul.f32 0.25, %v3413_v50 }
 0x242   :  { %v3451_v9 = vadd.f32 %v3450_v7, %v3449_v29  ;;  %v4215_v60 = vsel %vm4145_vm1, %v3860_v57, %v3858_v41  ;;  %v7439_v43 = vrot.slane %v6441_v62, 2  ;;  %v7440_v1 = vrot.slane %v6515_v28, 2 }
 0x243   :  { %v3441_v51 = vadd.f32 %v3440_v59, %v3439_v18  ;;  %v3868_v17 = vmul.f32 0.25, %v3427_v38  ;;  %v4216_v0 = vsel %vm4147_vm2, %v3862_v20, %v4215_v60  ;;  %v3375_v50 = vrot.slane %v6537_v34, 2 }
 0x244   :  { %v3348_v12 = vadd.f32 %v7439_v43, %v6441_v62  ;;  %v3362_v35 = vadd.f32 %v7440_v1, %v6515_v28  ;;  %v3452_v22 = vrot.slane %v3451_v9, 2  ;;  %v4217_v40 = vsel %vm4149_vm3, %v3864_v10, %v4216_v0 }
 0x245   :  { %v3870_v47 = vmul.f32 0.25, %v3441_v51  ;;  %v4218_v29 = vsel %vm4151_vm4, %v3866_v58, %v4217_v40  ;;  %v7441_v62 = vrot.slane %v6542_v2, 4  ;;  %v3376_v28 = vadd.f32 %v3375_v50, %v6537_v34 }
 0x246   :  { %v3349_v61 = vrot.slane %v3348_v12, 1  ;;  %v3363_v41 = vrot.slane %v3362_v35, 1  ;;  %v3453_v8 = vadd.f32 %v3452_v22, %v3451_v9  ;;  %v4219_v7 = vsel %vm4153_vm5, %v3868_v17, %v4218_v29 }
 0x247   :  { %v3388_v18 = vadd.f32 %v7441_v62, %v6542_v2  ;;  %v4220_v38 = vsel %vm4155_vm6, %v3870_v47, %v4219_v7  ;;  %v3400_v20 = vsel %vm270_vm0, %v6534_v21, 0.0  ;;  %v3377_v58 = vrot.slane %v3376_v28, 1 }
 0x248   :  { %v3350_v57 = vadd.f32 %v3349_v61, %v3348_v12  ;;  %v3364_v0 = vadd.f32 %v3363_v41, %v3362_v35  ;;  %v3454_v10 = vrot.slane %v3453_v8, 1  ;;  %v3401_v60 = vrot.slane %v3400_v20, 4 }
 0x249   :  { %v3389_v59 = vrot.slane %v3388_v18, 2  ;;  %v3414_v43 = vsel %vm270_vm0, %v6551_v33, 0.0  ;;  %v3428_v12 = vsel %vm270_vm0, %v6641_v32, 0.0  ;;  %v3442_v34 = vsel %vm270_vm0, %v6860_v56, 0.0  ;;  %v1871_v32 = vpop.xlane.xlu1 %1870 }
 0x24a   :  { %v3415_v9 = vrot.slane %v3414_v43, 4  ;;  %v3455_v51 = vadd.f32 %v3454_v10, %v3453_v8  ;;  %v3378_v17 = vadd.f32 %v3377_v58, %v3376_v28  ;;  %v3402_v1 = vadd.f32 %v3401_v60, %v3400_v20 }
 0x24b   :  { %v3390_v2 = vadd.f32 %v3389_v59, %v3388_v18  ;;  %v3429_v35 = vrot.slane %v3428_v12, 4  ;;  %v3443_v40 = vrot.slane %v3442_v34, 4  ;;  %v3857_v61 = vmul.f32 0.25, %v3350_v57 }
 0x24c   :  { %v3416_v21 = vadd.f32 %v3415_v9, %v3414_v43  ;;  %v3872_v50 = vmul.f32 0.25, %v3455_v51  ;;  %v3403_v47 = vrot.slane %v3402_v1, 2  ;;  %v3859_v33 = vmul.f32 0.25, %v3364_v0 }
 0x24d   :  { %v3391_v22 = vrot.slane %v3390_v2, 1  ;;  %v3430_v29 = vadd.f32 %v3429_v35, %v3428_v12  ;;  %v3444_v18 = vadd.f32 %v3443_v40, %v3442_v34  ;;  %v3861_v7 = vmul.f32 0.25, %v3378_v17 }
 0x24e   :  { %v3417_v62 = vrot.slane %v3416_v21, 2  ;;  %v4221_v59 = vsel %vm4157_vm7, %v3872_v50, %v4220_v38  ;;  %v3404_v56 = vadd.f32 %v3403_v47, %v3402_v1  ;;  %v4208_v28 = vsel %vm4145_vm1, %v3859_v33, %v3857_v61 }
 0x24f   :  { %v3392_v41 = vadd.f32 %v3391_v22, %v3390_v2  ;;  %v3431_v8 = vrot.slane %v3430_v29, 2  ;;  %4368 = vmatprep.mubr.f32.mxu0 %v4221_v59  ;;  %4477 = vmatprep.mubr.f32.mxu1 %v4221_v59  ;;  %v3445_v10 = vrot.slane %v3444_v18, 2  ;;  %v4209_v58 = vsel %vm4147_vm2, %v3861_v7, %v4208_v28  ;;  %v7442_v2 = vld [vmem:[#allocation19_spill] sm:$0xff] }
 0x250   :  { %v3418_v20 = vadd.f32 %v3417_v62, %v3416_v21  ;;  %v3405_v60 = vrot.slane %v3404_v56, 1  ;;  %v1935_v43 = vmul.f32 0.00390625, %v1871_v32  ;;  %v7443_v9 = vrot.slane %v6765_v6, %v5273_v55 }
 0x251   :  { %v3863_v57 = vmul.f32 0.25, %v3392_v41  ;;  %v3432_v0 = vadd.f32 %v3431_v8, %v3430_v29  ;;  %v3446_v34 = vadd.f32 %v3445_v10, %v3444_v18  ;;  %v2813_v17 = vcombine.high %v6677_v27, %v6677_v27 }
 0x252   :  { %v6966_v12 = vmul.f32 %v7443_v9, %v7442_v2  ;;  %v3419_v38 = vrot.slane %v3418_v20, 1  ;;  %v3406_v1 = vadd.f32 %v3405_v60, %v3404_v56  ;;  %v1999_v22 = vadd.f32 1e-05, %v1935_v43 }
 0x253   :  { %v4210_v51 = vsel %vm4149_vm3, %v3863_v57, %v4209_v58  ;;  %v3433_v35 = vrot.slane %v3432_v0, 1  ;;  %v2814_v21 = vcombine.high %v6763_v16, %v6763_v16  ;;  %v3447_v61 = vrot.slane %v3446_v34, 1 }
 0x254   :  { %v3420_v40 = vadd.f32 %v3419_v38, %v3418_v20  ;;  %v2815_v6 = vcombine.high %v6966_v12, %v6966_v12  ;;  %v3466_v50 = vrot.slane %v6600_v48, 2  ;;  %v3865_v29 = vmul.f32 0.25, %v3406_v1 }
 0x255   :  { %v3434_v47 = vadd.f32 %v3433_v35, %v3432_v0  ;;  %4786 = vrsqrt.f32 %v1999_v22  ;;  %v3480_v33 = vrot.slane %v6660_v25, 2  ;;  %v3448_v41 = vadd.f32 %v3447_v61, %v3446_v34 }
 0x256   :  { %v3867_v62 = vmul.f32 0.25, %v3420_v40  ;;  %v3467_v18 = vadd.f32 %v3466_v50, %v6600_v48  ;;  %v7444_v7 = vrot.slane %v6657_v24, 4  ;;  %v4211_v56 = vsel %vm4151_vm4, %v3865_v29, %v4210_v51 }
 0x257   :  { %v3869_v59 = vmul.f32 0.25, %v3434_v47  ;;  %v3481_v8 = vadd.f32 %v3480_v33, %v6660_v25  ;;  %v7445_v28 = vcombine.high %v6652_v4, %v6652_v4  ;;  %v3871_v10 = vmul.f32 0.25, %v3448_v41 }
 0x258   :  { %v3493_v32 = vadd.f32 %v7444_v7, %v6657_v24  ;;  %v4212_v57 = vsel %vm4153_vm5, %v3867_v62, %v4211_v56  ;;  %v3468_v58 = vrot.slane %v3467_v18, 1  ;;  %v7446_v24 = vcombine.high %v6673_v11, %v6673_v11 }
 0x259   :  { %v3505_v20 = vsel %vm270_vm0, %v7445_v28, 0.0  ;;  %v4213_v48 = vsel %vm4155_vm6, %v3869_v59, %v4212_v57  ;;  %v3482_v0 = vrot.slane %v3481_v8, 1  ;;  %v3533_v1 = vsel %vm270_vm0, %v2813_v17, 0.0 }
 0x25a   :  { %v3494_v60 = vrot.slane %v3493_v32, 2  ;;  %v3506_v43 = vrot.slane %v3505_v20, 4  ;;  %v3519_v2 = vsel %vm270_vm0, %v7446_v24, 0.0  ;;  %v4214_v25 = vsel %vm4157_vm7, %v3871_v10, %v4213_v48 }
 0x25b   :  { %v3469_v9 = vadd.f32 %v3468_v58, %v3467_v18  ;;  %v3520_v38 = vrot.slane %v3519_v2, 4  ;;  %4369 = vmatmul.mubr.f32.gmra.mxu0 %v4214_v25  ;;  %4478 = vmatmul.mubr.f32.gmra.mxu1 %v4214_v25  ;;  %v3483_v34 = vadd.f32 %v3482_v0, %v3481_v8  ;;  %v3547_v35 = vsel %vm270_vm0, %v2814_v21, 0.0 }
 0x25c   :  { %v3495_v4 = vadd.f32 %v3494_v60, %v3493_v32  ;;  %v3507_v51 = vadd.f32 %v3506_v43, %v3505_v20  ;;  %v3534_v61 = vrot.slane %v3533_v1, 4  ;;  %v3548_v50 = vrot.slane %v3547_v35, 4 }
 0x25d   :  { %v3521_v40 = vadd.f32 %v3520_v38, %v3519_v2  ;;  %v3561_v29 = vsel %vm270_vm0, %v2815_v6, 0.0  ;;  %v3874_v33 = vmul.f32 0.25, %v3469_v9  ;;  %v3876_v41 = vmul.f32 0.25, %v3483_v34 }
 0x25e   :  { %v3496_v22 = vrot.slane %v3495_v4, 1  ;;  %v3508_v47 = vrot.slane %v3507_v51, 2  ;;  %v3535_v7 = vadd.f32 %v3534_v61, %v3533_v1  ;;  %v3549_v32 = vadd.f32 %v3548_v50, %v3547_v35  ;;  %v4346_v58 = vpop.f32.mrf.mxu0 }
 0x25f   :  { %v3522_v18 = vrot.slane %v3521_v40, 2  ;;  %v3562_v56 = vrot.slane %v3561_v29, 4  ;;  %v4229_v8 = vsel %vm4145_vm1, %v3876_v41, %v3874_v33  ;;  %v7447_v17 = vrot.slane %v6562_v23, 2  ;;  %4498 = vst [vmem:[%s7234_s3] sm:$0xff] %v4346_v58 }
 0x260   :  { %v3497_v62 = vadd.f32 %v3496_v22, %v3495_v4  ;;  %v3509_v59 = vadd.f32 %v3508_v47, %v3507_v51  ;;  %v3536_v20 = vrot.slane %v3535_v7, 2  ;;  %v3550_v10 = vrot.slane %v3549_v32, 2  ;;  %v4348_v4 = vpop.f32.mrf.mxu0 }
 0x261   :  { %v3460_v21 = vadd.f32 %v7447_v17, %v6562_v23  ;;  %v3523_v28 = vadd.f32 %v3522_v18, %v3521_v40  ;;  %v3563_v60 = vadd.f32 %v3562_v56, %v3561_v29  ;;  %v7448_v0 = vrot.slane %v6648_v45, 2  ;;  %4499 = vst [vmem:[%s7234_s3 + $0x8] sm:$0xff] %v4348_v4 }
 0x262   :  { %v3878_v57 = vmul.f32 0.25, %v3497_v62  ;;  %v3510_v6 = vrot.slane %v3509_v59, 1  ;;  %v7007_v24 = vpop.eup %4786  ;;  %v3537_v23 = vadd.f32 %v3536_v20, %v3535_v7  ;;  %v3551_v25 = vadd.f32 %v3550_v10, %v3549_v32 }
 0x263   :  { %v3461_v48 = vrot.slane %v3460_v21, 1  ;;  %v3474_v43 = vadd.f32 %v7448_v0, %v6648_v45  ;;  %v3524_v2 = vrot.slane %v3523_v28, 1  ;;  %v2575_v38 = vrot.slane %v7007_v24, %v5273_v55 }
 0x264   :  { %v4230_v9 = vsel %vm4147_vm2, %v3878_v57, %v4229_v8  ;;  %v3511_v34 = vadd.f32 %v3510_v6, %v3509_v59  ;;  %v3564_v51 = vrot.slane %v3563_v60, 2  ;;  %v3538_v35 = vrot.slane %v3537_v23, 1 }
 0x265   :  { %v3462_v1 = vadd.f32 %v3461_v48, %v3460_v21  ;;  %v3525_v45 = vadd.f32 %v3524_v2, %v3523_v28  ;;  %v3552_v22 = vrot.slane %v3551_v25, 1  ;;  %v3475_v40 = vrot.slane %v3474_v43, 1 }
 0x266   :  { %v3565_v61 = vadd.f32 %v3564_v51, %v3563_v60  ;;  %v3880_v50 = vmul.f32 0.25, %v3511_v34  ;;  %v3487_v47 = vrot.slane %v6662_v49, 2  ;;  %v7449_v29 = vrot.slane %v6667_v26, 4 }
 0x267   :  { %v3539_v41 = vadd.f32 %v3538_v35, %v3537_v23  ;;  %v3553_v62 = vadd.f32 %v3552_v22, %v3551_v25  ;;  %v3882_v18 = vmul.f32 0.25, %v3525_v45  ;;  %v3476_v7 = vadd.f32 %v3475_v40, %v3474_v43 }
 0x268   :  { %v3500_v33 = vadd.f32 %v7449_v29, %v6667_v26  ;;  %v3566_v32 = vrot.slane %v3565_v61, 1  ;;  %v4231_v59 = vsel %vm4149_vm3, %v3880_v50, %v4230_v9  ;;  %v3488_v56 = vadd.f32 %v3487_v47, %v6662_v49  ;;  %v7450_v47 = vld [vmem:[#allocation27_spill] sm:$0xff] }
 0x269   :  { %v3884_v17 = vmul.f32 0.25, %v3539_v41  ;;  %v3886_v21 = vmul.f32 0.25, %v3553_v62  ;;  %v4232_v28 = vsel %vm4151_vm4, %v3882_v18, %v4231_v59  ;;  %v3512_v20 = vsel %vm270_vm0, %v6673_v11, 0.0 }
 0x26a   :  { %v3501_v8 = vrot.slane %v3500_v33, 2  ;;  %v3567_v10 = vadd.f32 %v3566_v32, %v3565_v61  ;;  %v3489_v57 = vrot.slane %v3488_v56, 1  ;;  %v3513_v58 = vrot.slane %v3512_v20, 4 }
 0x26b   :  { %v4233_v6 = vsel %vm4153_vm5, %v3884_v17, %v4232_v28  ;;  %v3526_v60 = vsel %vm270_vm0, %v6677_v27, 0.0  ;;  %v3540_v49 = vsel %vm270_vm0, %v6763_v16, 0.0  ;;  %v3554_v48 = vsel %vm270_vm0, %v6966_v12, 0.0 }
 0x26c   :  { %v3502_v26 = vadd.f32 %v3501_v8, %v3500_v33  ;;  %v3888_v0 = vmul.f32 0.25, %v3567_v10  ;;  %v4234_v43 = vsel %vm4155_vm6, %v3886_v21, %v4233_v6  ;;  %v3490_v2 = vadd.f32 %v3489_v57, %v3488_v56 }
 0x26d   :  { %v3514_v23 = vadd.f32 %v3513_v58, %v3512_v20  ;;  %v3527_v25 = vrot.slane %v3526_v60, 4  ;;  %v3541_v9 = vrot.slane %v3540_v49, 4  ;;  %v3555_v4 = vrot.slane %v3554_v48, 4  ;;  %v7451_v20 = vld [vmem:[#allocation6_spill] sm:$0xff] }
 0x26e   :  { %v3503_v11 = vrot.slane %v3502_v26, 1  ;;  %v4235_v34 = vsel %vm4157_vm7, %v3888_v0, %v4234_v43  ;;  %v3873_v45 = vmul.f32 0.25, %v3462_v1  ;;  %v3875_v27 = vmul.f32 0.25, %v3476_v7  ;;  %v7453_v43 = vld [vmem:[#allocation7_spill] sm:$0xff] }
 0x26f   :  { %4374 = vmatprep.mubr.f32.mxu0 %v4235_v34  ;;  %4482 = vmatprep.mubr.f32.mxu1 %v4235_v34  ;;  %v3515_v16 = vrot.slane %v3514_v23, 2  ;;  %v3528_v35 = vadd.f32 %v3527_v25, %v3526_v60  ;;  %v3542_v22 = vadd.f32 %v3541_v9, %v3540_v49  ;;  %v3556_v12 = vadd.f32 %v3555_v4, %v3554_v48 }
 0x270   :  { %v3504_v51 = vadd.f32 %v3503_v11, %v3502_v26  ;;  %v3877_v40 = vmul.f32 0.25, %v3490_v2  ;;  %v4222_v50 = vsel %vm4145_vm1, %v3875_v27, %v3873_v45  ;;  %v7038_v29 = vmul.f32 %v2519_v36, %v7450_v47  ;;  %v7455_v47 = vld [vmem:[#allocation2_spill] sm:$0xff] }
 0x271   :  { %v3516_v33 = vadd.f32 %v3515_v16, %v3514_v23  ;;  %v3529_v41 = vrot.slane %v3528_v35, 2  ;;  %v3543_v1 = vrot.slane %v3542_v22, 2  ;;  %v3557_v62 = vrot.slane %v3556_v12, 2 }
 0x272   :  { %v3879_v61 = vmul.f32 0.25, %v3504_v51  ;;  %v4223_v18 = vsel %vm4147_vm2, %v3877_v40, %v4222_v50  ;;  %v2821_v7 = vcombine.high %v6802_v46, %v6802_v46  ;;  %v2822_v32 = vcombine.high %v6892_v37, %v6892_v37 }
 0x273   :  { %v2823_v59 = vcombine.high %v7038_v29, %v7038_v29  ;;  %v3517_v56 = vrot.slane %v3516_v33, 1  ;;  %v3530_v8 = vadd.f32 %v3529_v41, %v3528_v35  ;;  %v3544_v13 = vadd.f32 %v3543_v1, %v3542_v22 }
 0x274   :  { %v3558_v36 = vadd.f32 %v3557_v62, %v3556_v12  ;;  %v4224_v17 = vsel %vm4149_vm3, %v3879_v61, %v4223_v18  ;;  %v3578_v21 = vrot.slane %v6756_v44, 2  ;;  %v3592_v28 = vrot.slane %v6783_v42, 2 }
 0x275   :  { %v7452_v10 = vrot.slane %v7451_v20, 4  ;;  %v3518_v26 = vadd.f32 %v3517_v56, %v3516_v33  ;;  %v3531_v58 = vrot.slane %v3530_v8, 1  ;;  %v3545_v6 = vrot.slane %v3544_v13, 1 }
 0x276   :  { %v3559_v60 = vrot.slane %v3558_v36, 1  ;;  %v3579_v49 = vadd.f32 %v3578_v21, %v6756_v44  ;;  %v3593_v48 = vadd.f32 %v3592_v28, %v6783_v42  ;;  %v7454_v2 = vcombine.high %v7453_v43, %v7453_v43 }
 0x277   :  { %v3605_v57 = vadd.f32 %v7452_v10, %v7451_v20  ;;  %v3532_v23 = vadd.f32 %v3531_v58, %v3530_v8  ;;  %v3546_v25 = vadd.f32 %v3545_v6, %v3544_v13  ;;  %v3881_v4 = vmul.f32 0.25, %v3518_v26 }
 0x278   :  { %v3617_v11 = vsel %vm270_vm0, %v7454_v2, 0.0  ;;  %v3560_v9 = vadd.f32 %v3559_v60, %v3558_v36  ;;  %v3580_v34 = vrot.slane %v3579_v49, 1  ;;  %v3594_v51 = vrot.slane %v3593_v48, 1 }
 0x279   :  { %v3606_v0 = vrot.slane %v3605_v57, 2  ;;  %v3618_v27 = vrot.slane %v3617_v11, 4  ;;  %v3883_v16 = vmul.f32 0.25, %v3532_v23  ;;  %v3885_v35 = vmul.f32 0.25, %v3546_v25  ;;  %v7459_v25 = vld [vmem:[#allocation5_spill] sm:$0xff] }
 0x27a   :  { %v3887_v22 = vmul.f32 0.25, %v3560_v9  ;;  %v4225_v44 = vsel %vm4151_vm4, %v3881_v4, %v4224_v17  ;;  %v3581_v42 = vadd.f32 %v3580_v34, %v3579_v49  ;;  %v3595_v12 = vadd.f32 %v3594_v51, %v3593_v48 }
 0x27b   :  { %v3607_v45 = vadd.f32 %v3606_v0, %v3605_v57  ;;  %v3619_v61 = vadd.f32 %v3618_v27, %v3617_v11  ;;  %v4226_v50 = vsel %vm4153_vm5, %v3883_v16, %v4225_v44  ;;  %v7456_v33 = vcombine.high %v7455_v47, %v7455_v47  ;;  %v7457_v0 = vld [vmem:[#allocation4_spill] sm:$0xff] }
 0x27c   :  { %v3645_v1 = vsel %vm270_vm0, %v2821_v7, 0.0  ;;  %v3659_v62 = vsel %vm270_vm0, %v2822_v32, 0.0  ;;  %v4227_v18 = vsel %vm4155_vm6, %v3885_v35, %v4226_v50  ;;  %v3673_v28 = vsel %vm270_vm0, %v2823_v59, 0.0 }
 0x27d   :  { %v3608_v40 = vrot.slane %v3607_v45, 1  ;;  %v3631_v41 = vsel %vm270_vm0, %v7456_v33, 0.0  ;;  %v3620_v8 = vrot.slane %v3619_v61, 2  ;;  %v4228_v36 = vsel %vm4157_vm7, %v3887_v22, %v4227_v18 }
 0x27e   :  { %v3632_v13 = vrot.slane %v3631_v41, 4  ;;  %v3646_v17 = vrot.slane %v3645_v1, 4  ;;  %v3660_v21 = vrot.slane %v3659_v62, 4  ;;  %4375 = vmatmul.mubr.f32.gmra.mxu0 %v4228_v36  ;;  %4483 = vmatmul.mubr.f32.gmra.mxu1 %v4228_v36  ;;  %v3674_v57 = vrot.slane %v3673_v28, 4 }
 0x27f   :  { %v3609_v56 = vadd.f32 %v3608_v40, %v3607_v45  ;;  %v3621_v20 = vadd.f32 %v3620_v8, %v3619_v61  ;;  %v3890_v26 = vmul.f32 0.25, %v3581_v42  ;;  %v3892_v32 = vmul.f32 0.25, %v3595_v12  ;;  %v7461_v61 = vld [vmem:[#allocation38_spill] sm:$0xff] }
 0x280   :  { %v3633_v10 = vadd.f32 %v3632_v13, %v3631_v41  ;;  %v3647_v7 = vadd.f32 %v3646_v17, %v3645_v1  ;;  %v3661_v58 = vadd.f32 %v3660_v21, %v3659_v62  ;;  %v3675_v48 = vadd.f32 %v3674_v57, %v3673_v28  ;;  %v7462_v21 = vld [vmem:[#allocation33_spill] sm:$0xff] }
 0x281   :  { %v3894_v6 = vmul.f32 0.25, %v3609_v56  ;;  %v3622_v60 = vrot.slane %v3621_v20, 1  ;;  %v7458_v43 = vrot.slane %v7457_v0, 2  ;;  %v4243_v59 = vsel %vm4145_vm1, %v3892_v32, %v3890_v26 }
 0x282   :  { %v3634_v49 = vrot.slane %v3633_v10, 2  ;;  %v3648_v11 = vrot.slane %v3647_v7, 2  ;;  %v3662_v23 = vrot.slane %v3661_v58, 2  ;;  %v7460_v9 = vrot.slane %v7459_v25, 2 }
 0x283   :  { %v3572_v2 = vadd.f32 %v7458_v43, %v7457_v0  ;;  %v3623_v34 = vadd.f32 %v3622_v60, %v3621_v20  ;;  %v3676_v45 = vrot.slane %v3675_v48, 2  ;;  %v4244_v27 = vsel %vm4147_vm2, %v3894_v6, %v4243_v59 }
 0x284   :  { %v3586_v4 = vadd.f32 %v7460_v9, %v7459_v25  ;;  %v3635_v51 = vadd.f32 %v3634_v49, %v3633_v10  ;;  %v3649_v16 = vadd.f32 %v3648_v11, %v3647_v7  ;;  %v3663_v35 = vadd.f32 %v3662_v23, %v3661_v58 }
 0x285   :  { %v3573_v22 = vrot.slane %v3572_v2, 1  ;;  %v3677_v12 = vadd.f32 %v3676_v45, %v3675_v48  ;;  %v3896_v40 = vmul.f32 0.25, %v3623_v34  ;;  %v3599_v50 = vrot.slane %v7461_v61, 2 }
 0x286   :  { %v3587_v44 = vrot.slane %v3586_v4, 1  ;;  %v3636_v42 = vrot.slane %v3635_v51, 1  ;;  %v3650_v33 = vrot.slane %v3649_v16, 1  ;;  %v3664_v41 = vrot.slane %v3663_v35, 1 }
 0x287   :  { %v3574_v1 = vadd.f32 %v3573_v22, %v3572_v2  ;;  %v3678_v56 = vrot.slane %v3677_v12, 1  ;;  %v4245_v8 = vsel %vm4149_vm3, %v3896_v40, %v4244_v27  ;;  %v3600_v13 = vadd.f32 %v3599_v50, %v7461_v61 }
 0x288   :  { %v3588_v62 = vadd.f32 %v3587_v44, %v3586_v4  ;;  %v3637_v18 = vadd.f32 %v3636_v42, %v3635_v51  ;;  %v3651_v36 = vadd.f32 %v3650_v33, %v3649_v16  ;;  %v3665_v17 = vadd.f32 %v3664_v41, %v3663_v35 }
 0x289   :  { %v7463_v28 = vrot.slane %v7462_v21, 4  ;;  %v3624_v10 = vsel %vm270_vm0, %v7455_v47, 0.0  ;;  %v3679_v57 = vadd.f32 %v3678_v56, %v3677_v12  ;;  %v3601_v7 = vrot.slane %v3600_v13, 1 }
 0x28a   :  { %v3898_v26 = vmul.f32 0.25, %v3637_v18  ;;  %v3625_v58 = vrot.slane %v3624_v10, 4  ;;  %v3900_v32 = vmul.f32 0.25, %v3651_v36  ;;  %v3902_v6 = vmul.f32 0.25, %v3665_v17 }
 0x28b   :  { %v3612_v20 = vadd.f32 %v7463_v28, %v7462_v21  ;;  %v3638_v49 = vsel %vm270_vm0, %v6802_v46, 0.0  ;;  %v3904_v48 = vmul.f32 0.25, %v3679_v57  ;;  %v3602_v43 = vadd.f32 %v3601_v7, %v3600_v13 }
 0x28c   :  { %v4246_v0 = vsel %vm4151_vm4, %v3898_v26, %v4245_v8  ;;  %v3626_v2 = vadd.f32 %v3625_v58, %v3624_v10  ;;  %v3639_v59 = vrot.slane %v3638_v49, 4  ;;  %v3652_v47 = vsel %vm270_vm0, %v6892_v37, 0.0 }
 0x28d   :  { %v3613_v60 = vrot.slane %v3612_v20, 2  ;;  %v4247_v11 = vsel %vm4153_vm5, %v3900_v32, %v4246_v0  ;;  %v3653_v4 = vrot.slane %v3652_v47, 4  ;;  %v3666_v34 = vsel %vm270_vm0, %v7038_v29, 0.0  ;;  %v7464_v29 = vld [vmem:[#allocation32_spill] sm:$0xff]  ;;  %v4352_v18 = vpop.f32.mrf.mxu0 }
 0x28e   :  { %v4248_v25 = vsel %vm4155_vm6, %v3902_v6, %v4247_v11  ;;  %v3627_v9 = vrot.slane %v3626_v2, 2  ;;  %v3640_v45 = vadd.f32 %v3639_v59, %v3638_v49  ;;  %v3667_v27 = vrot.slane %v3666_v34, 4  ;;  %4501 = vst [vmem:[%s7234_s3 + $0x30] sm:$0xff] %v4352_v18 }
 0x28f   :  { %v3614_v23 = vadd.f32 %v3613_v60, %v3612_v20  ;;  %v4249_v46 = vsel %vm4157_vm7, %v3904_v48, %v4248_v25  ;;  %v3654_v35 = vadd.f32 %v3653_v4, %v3652_v47  ;;  %v3889_v22 = vmul.f32 0.25, %v3574_v1  ;;  %v4354_v24 = vpop.f32.mrf.mxu0 }
 0x290   :  { %4380 = vmatprep.mubr.f32.mxu0 %v4249_v46  ;;  %4487 = vmatprep.mubr.f32.mxu1 %v4249_v46  ;;  %v3628_v16 = vadd.f32 %v3627_v9, %v3626_v2  ;;  %v3891_v44 = vmul.f32 0.25, %v3588_v62  ;;  %v3641_v37 = vrot.slane %v3640_v45, 2  ;;  %v3668_v12 = vadd.f32 %v3667_v27, %v3666_v34  ;;  %4502 = vst [vmem:[%s7234_s3 + $0x38] sm:$0xff] %v4354_v24 }
 0x291   :  { %v3615_v51 = vrot.slane %v3614_v23, 1  ;;  %v3893_v40 = vmul.f32 0.25, %v3602_v43  ;;  %v3655_v50 = vrot.slane %v3654_v35, 2  ;;  %v7101_v41 = vmul.f32 %v2575_v38, %v7464_v29 }
 0x292   :  { %v3629_v61 = vrot.slane %v3628_v16, 1  ;;  %v4236_v33 = vsel %vm4145_vm1, %v3891_v44, %v3889_v22  ;;  %v3642_v56 = vadd.f32 %v3641_v37, %v3640_v45  ;;  %v3669_v8 = vrot.slane %v3668_v12, 2 }
 0x293   :  { %v3616_v42 = vadd.f32 %v3615_v51, %v3614_v23  ;;  %v4237_v1 = vsel %vm4147_vm2, %v3893_v40, %v4236_v33  ;;  %v3656_v36 = vadd.f32 %v3655_v50, %v3654_v35  ;;  %v2829_v17 = vcombine.high %v6925_v31, %v6925_v31 }
 0x294   :  { %v3630_v62 = vadd.f32 %v3629_v61, %v3628_v16  ;;  %v2830_v55 = vcombine.high %v6932_v5, %v6932_v5  ;;  %v3643_v38 = vrot.slane %v3642_v56, 1  ;;  %v3670_v21 = vadd.f32 %v3669_v8, %v3668_v12 }
 0x295   :  { %v3895_v13 = vmul.f32 0.25, %v3616_v42  ;;  %v2831_v20 = vcombine.high %v7101_v41, %v7101_v41  ;;  %v3657_v10 = vrot.slane %v3656_v36, 1  ;;  %v3690_v26 = vrot.slane %v6850_v54, 2 }
 0x296   :  { %v3897_v57 = vmul.f32 0.25, %v3630_v62  ;;  %v3704_v7 = vrot.slane %v6902_v14, 2  ;;  %v3644_v58 = vadd.f32 %v3643_v38, %v3642_v56  ;;  %v3671_v32 = vrot.slane %v3670_v21, 1  ;;  %v7466_v38 = vld [vmem:[#allocation8_spill] sm:$0xff] }
 0x297   :  { %v4238_v28 = vsel %vm4149_vm3, %v3895_v13, %v4237_v1  ;;  %v3717_v6 = vadd.f32 %v3716_v39, %v6909_v15  ;;  %v3729_v60 = vsel %vm270_vm0, %v2827_v52, 0.0  ;;  %v3658_v49 = vadd.f32 %v3657_v10, %v3656_v36 }
 0x298   :  { %v4239_v48 = vsel %vm4151_vm4, %v3897_v57, %v4238_v28  ;;  %v3691_v0 = vadd.f32 %v3690_v26, %v6850_v54  ;;  %v3705_v43 = vadd.f32 %v3704_v7, %v6902_v14  ;;  %v3672_v2 = vadd.f32 %v3671_v32, %v3670_v21 }
 0x299   :  { %v3899_v11 = vmul.f32 0.25, %v3644_v58  ;;  %v3718_v23 = vrot.slane %v3717_v6, 2  ;;  %v3730_v59 = vrot.slane %v3729_v60, 4  ;;  %v3901_v47 = vmul.f32 0.25, %v3658_v49 }
 0x29a   :  { %v3692_v25 = vrot.slane %v3691_v0, 1  ;;  %v3706_v9 = vrot.slane %v3705_v43, 1  ;;  %v7465_v15 = vcombine.high %v6922_v3, %v6922_v3  ;;  %v3903_v39 = vmul.f32 0.25, %v3672_v2 }
 0x29b   :  { %v4240_v52 = vsel %vm4153_vm5, %v3899_v11, %v4239_v48  ;;  %v3719_v4 = vadd.f32 %v3718_v23, %v3717_v6  ;;  %v3731_v34 = vadd.f32 %v3730_v59, %v3729_v60  ;;  %v3757_v35 = vsel %vm270_vm0, %v2829_v17, 0.0  ;;  %v4571_v60 = vpop.f32.mrf.mxu1 }
 0x29c   :  { %v3743_v53 = vsel %vm270_vm0, %v7465_v15, 0.0  ;;  %v4241_v54 = vsel %vm4155_vm6, %v3901_v47, %v4240_v52  ;;  %v3693_v14 = vadd.f32 %v3692_v25, %v3691_v0  ;;  %v3707_v46 = vadd.f32 %v3706_v9, %v3705_v43 }
 0x29d   :  { %v3744_v51 = vrot.slane %v3743_v53, 4  ;;  %v4242_v45 = vsel %vm4157_vm7, %v3903_v39, %v4241_v54  ;;  %v3720_v27 = vrot.slane %v3719_v4, 1  ;;  %v3732_v16 = vrot.slane %v3731_v34, 2 }
 0x29e   :  { %4381 = vmatmul.mubr.f32.gmra.mxu0 %v4242_v45  ;;  %4488 = vmatmul.mubr.f32.gmra.mxu1 %v4242_v45  ;;  %v3758_v44 = vrot.slane %v3757_v35, 4  ;;  %v3771_v42 = vsel %vm270_vm0, %v2830_v55, 0.0  ;;  %v3785_v37 = vsel %vm270_vm0, %v2831_v20, 0.0  ;;  %v3723_v33 = vrot.slane %v6919_v19, 4 }
 0x29f   :  { %v3745_v22 = vadd.f32 %v3744_v51, %v3743_v53  ;;  %v3721_v12 = vadd.f32 %v3720_v27, %v3719_v4  ;;  %v3733_v40 = vadd.f32 %v3732_v16, %v3731_v34  ;;  %v3772_v61 = vrot.slane %v3771_v42, 4  ;;  %v4572_v4 = vpop.f32.mrf.mxu1 }
 0x2a0   :  { %v3786_v50 = vrot.slane %v3785_v37, 4  ;;  %v3759_v18 = vadd.f32 %v3758_v44, %v3757_v35  ;;  %v3908_v56 = vmul.f32 0.25, %v3707_v46  ;;  %v3906_v62 = vmul.f32 0.25, %v3693_v14 }
 0x2a1   :  { %v3746_v29 = vrot.slane %v3745_v22, 2  ;;  %v3734_v8 = vrot.slane %v3733_v40, 1  ;;  %v3773_v13 = vadd.f32 %v3772_v61, %v3771_v42  ;;  %v3910_v24 = vmul.f32 0.25, %v3721_v12  ;;  %v4574_v35 = vpop.f32.mrf.mxu1 }
 0x2a2   :  { %v3787_v1 = vadd.f32 %v3786_v50, %v3785_v37  ;;  %v3760_v17 = vrot.slane %v3759_v18, 2  ;;  %v7467_v55 = vrot.slane %v7466_v38, 2  ;;  %v4257_v57 = vsel %vm4145_vm1, %v3908_v56, %v3906_v62 }
 0x2a3   :  { %v3747_v36 = vadd.f32 %v3746_v29, %v3745_v22  ;;  %v3735_v28 = vadd.f32 %v3734_v8, %v3733_v40  ;;  %v3774_v20 = vrot.slane %v3773_v13, 2  ;;  %v7468_v32 = vrot.slane %v6894_v30, 2 }
 0x2a4   :  { %v3684_v21 = vadd.f32 %v7467_v55, %v7466_v38  ;;  %v3788_v10 = vrot.slane %v3787_v1, 2  ;;  %v3761_v7 = vadd.f32 %v3760_v17, %v3759_v18  ;;  %v3711_v43 = vrot.slane %v6912_v63, 2 }
 0x2a5   :  { %v3748_v26 = vrot.slane %v3747_v36, 1  ;;  %v3698_v6 = vadd.f32 %v7468_v32, %v6894_v30  ;;  %v3775_v49 = vadd.f32 %v3774_v20, %v3773_v13  ;;  %v3912_v0 = vmul.f32 0.25, %v3735_v28 }
 0x2a6   :  { %v3685_v58 = vrot.slane %v3684_v21, 1  ;;  %v3789_v48 = vadd.f32 %v3788_v10, %v3787_v1  ;;  %v3762_v11 = vrot.slane %v3761_v7, 1  ;;  %v4258_v23 = vsel %vm4147_vm2, %v3910_v24, %v4257_v57 }
 0x2a7   :  { %v3749_v2 = vadd.f32 %v3748_v26, %v3747_v36  ;;  %v3699_v59 = vrot.slane %v3698_v6, 1  ;;  %v3776_v47 = vrot.slane %v3775_v49, 1  ;;  %v3712_v15 = vadd.f32 %v3711_v43, %v6912_v63 }
 0x2a8   :  { %v3790_v25 = vrot.slane %v3789_v48, 1  ;;  %v3686_v9 = vadd.f32 %v3685_v58, %v3684_v21  ;;  %v3763_v53 = vadd.f32 %v3762_v11, %v3761_v7  ;;  %v4259_v30 = vsel %vm4149_vm3, %v3912_v0, %v4258_v23 }
 0x2a9   :  { %v3914_v39 = vmul.f32 0.25, %v3749_v2  ;;  %v3724_v52 = vadd.f32 %v3723_v33, %v6919_v19  ;;  %v3777_v34 = vadd.f32 %v3776_v47, %v3775_v49  ;;  %v3713_v14 = vrot.slane %v3712_v15, 1 }
 0x2aa   :  { %v3791_v54 = vadd.f32 %v3790_v25, %v3789_v48  ;;  %v3736_v46 = vsel %vm270_vm0, %v6922_v3, 0.0  ;;  %v3916_v51 = vmul.f32 0.25, %v3763_v53  ;;  %v3700_v45 = vadd.f32 %v3699_v59, %v3698_v6 }
 0x2ab   :  { %v3725_v27 = vrot.slane %v3724_v52, 2  ;;  %v3737_v16 = vrot.slane %v3736_v46, 4  ;;  %v3918_v22 = vmul.f32 0.25, %v3777_v34  ;;  %v4260_v44 = vsel %vm4151_vm4, %v3914_v39, %v4259_v30 }
 0x2ac   :  { %v3920_v63 = vmul.f32 0.25, %v3791_v54  ;;  %v3750_v42 = vsel %vm270_vm0, %v6925_v31, 0.0  ;;  %v4261_v19 = vsel %vm4153_vm5, %v3916_v51, %v4260_v44  ;;  %v3714_v3 = vadd.f32 %v3713_v14, %v3712_v15  ;;  %v4575_v31 = vpop.f32.mrf.mxu1 }
 0x2ad   :  { %v3726_v37 = vadd.f32 %v3725_v27, %v3724_v52  ;;  %v3738_v12 = vadd.f32 %v3737_v16, %v3736_v46  ;;  %v3751_v40 = vrot.slane %v3750_v42, 4  ;;  %v4262_v61 = vsel %vm4155_vm6, %v3918_v22, %v4261_v19 }
 0x2ae   :  { %v3764_v50 = vsel %vm270_vm0, %v6932_v5, 0.0  ;;  %v3778_v33 = vsel %vm270_vm0, %v7101_v41, 0.0  ;;  %v4263_v29 = vsel %vm4157_vm7, %v3920_v63, %v4262_v61  ;;  %v3907_v62 = vmul.f32 0.25, %v3700_v45 }
 0x2af   :  { %v3727_v18 = vrot.slane %v3726_v37, 1  ;;  %v3739_v56 = vrot.slane %v3738_v12, 2  ;;  %v3752_v8 = vadd.f32 %v3751_v40, %v3750_v42  ;;  %4386 = vmatprep.mubr.f32.mxu0 %v4263_v29  ;;  %4492 = vmatprep.mubr.f32.mxu1 %v4263_v29  ;;  %v3765_v13 = vrot.slane %v3764_v50, 4 }
 0x2b0   :  { %v3779_v1 = vrot.slane %v3778_v33, 4  ;;  %v4573_v38 = vadd.f32 %v4572_v4, %v4571_v60  ;;  %v3909_v21 = vmul.f32 0.25, %v3714_v3  ;;  %v4576_v28 = vadd.f32 %v4575_v31, %v4574_v35 }
 0x2b1   :  { %v3728_v36 = vadd.f32 %v3727_v18, %v3726_v37  ;;  %v3740_v17 = vadd.f32 %v3739_v56, %v3738_v12  ;;  %v3753_v24 = vrot.slane %v3752_v8, 2  ;;  %v3766_v55 = vadd.f32 %v3765_v13, %v3764_v50 }
 0x2b2   :  { %v3780_v5 = vadd.f32 %v3779_v1, %v3778_v33  ;;  %v3905_v10 = vmul.f32 0.25, %v3686_v9  ;;  %4500 = vst [vmem:[%s7234_s3 + $0x10] sm:$0xff] %v4573_v38  ;;  %4503 = vst [vmem:[%s7234_s3 + $0x40] sm:$0xff] %v4576_v28 }
 0x2b3   :  { %v3741_v41 = vrot.slane %v3740_v17, 1  ;;  %v3754_v20 = vadd.f32 %v3753_v24, %v3752_v8  ;;  %v3911_v57 = vmul.f32 0.25, %v3728_v36  ;;  %v3767_v26 = vrot.slane %v3766_v55, 2 }
 0x2b4   :  { %v3781_v7 = vrot.slane %v3780_v5, 2  ;;  %v4250_v6 = vsel %vm4145_vm1, %v3907_v62, %v3905_v10 }
 0x2b5   :  { %v3742_v58 = vadd.f32 %v3741_v41, %v3740_v17  ;;  %v3755_v32 = vrot.slane %v3754_v20, 1  ;;  %v3768_v60 = vadd.f32 %v3767_v26, %v3766_v55  ;;  %v4251_v48 = vsel %vm4147_vm2, %v3909_v21, %v4250_v6 }
 0x2b6   :  { %v3782_v49 = vadd.f32 %v3781_v7, %v3780_v5  ;;  %v4252_v2 = vsel %vm4149_vm3, %v3911_v57, %v4251_v48 }
 0x2b7   :  { %v3756_v0 = vadd.f32 %v3755_v32, %v3754_v20  ;;  %v3913_v43 = vmul.f32 0.25, %v3742_v58  ;;  %v3769_v11 = vrot.slane %v3768_v60, 1 }
 0x2b8   :  { %v3783_v23 = vrot.slane %v3782_v49, 1 }
 0x2b9   :  { %v3915_v59 = vmul.f32 0.25, %v3756_v0  ;;  %v3770_v47 = vadd.f32 %v3769_v11, %v3768_v60  ;;  %v4253_v9 = vsel %vm4151_vm4, %v3913_v43, %v4252_v2 }
 0x2ba   :  { %v3784_v25 = vadd.f32 %v3783_v23, %v3782_v49 }
 0x2bb   :  { %v4254_v15 = vsel %vm4153_vm5, %v3915_v59, %v4253_v9  ;;  %v3917_v53 = vmul.f32 0.25, %v3770_v47 }
 0x2bc   :  { %v3919_v39 = vmul.f32 0.25, %v3784_v25  ;;  %v4358_v4 = vpop.f32.mrf.mxu0  ;;  %v4577_v34 = vpop.f32.mrf.mxu1 }
 0x2bd   :  { %v4255_v30 = vsel %vm4155_vm6, %v3917_v53, %v4254_v15  ;;  %4504 = vst [vmem:[%s7234_s3 + $0x18] sm:$0xff] %v4358_v4 }
 0x2be   :  { %v4256_v52 = vsel %vm4157_vm7, %v3919_v39, %v4255_v30  ;;  %v4360_v54 = vpop.f32.mrf.mxu0  ;;  %v4578_v14 = vpop.f32.mrf.mxu1 }
 0x2bf   :  { %4387 = vmatmul.mubr.f32.gmra.mxu0 %v4256_v52  ;;  %4493 = vmatmul.mubr.f32.gmra.mxu1 %v4256_v52  ;;  %4505 = vst [vmem:[%s7234_s3 + $0x20] sm:$0xff] %v4360_v54  ;;  %v4579_v46 = vadd.f32 %v4578_v14, %v4577_v34 }
 0x2c1   :  { %4506 = vst [vmem:[%s7234_s3 + $0x28] sm:$0xff] %v4579_v46 }
 0x2ec   :  { %v4364_v51 = vpop.f32.mrf.mxu0  ;;  %v4580_v45 = vpop.f32.mrf.mxu1 }
 0x2ed   :  { %4507 = vst [vmem:[%s7234_s3 + $0x48] sm:$0xff] %v4364_v51 }
 0x2ee   :  { %v4366_v27 = vpop.f32.mrf.mxu0  ;;  %v4581_v16 = vpop.f32.mrf.mxu1 }
 0x2ef   :  { %4508 = vst [vmem:[%s7234_s3 + $0x50] sm:$0xff] %v4366_v27  ;;  %v4582_v35 = vadd.f32 %v4581_v16, %v4580_v45 }
 0x2f1   :  { %4509 = vst [vmem:[%s7234_s3 + $0x58] sm:$0xff] %v4582_v35 }
 0x31b   :  { %v4370_v22 = vpop.f32.mrf.mxu0  ;;  %v4583_v63 = vpop.f32.mrf.mxu1 }
 0x31c   :  { %4527 = vst [vmem:[%s7234_s3 + $0x60] sm:$0xff] %v4370_v22 }
 0x31d   :  { %v4372_v44 = vpop.f32.mrf.mxu0  ;;  %v4584_v42 = vpop.f32.mrf.mxu1 }
 0x31e   :  { %4528 = vst [vmem:[%s7234_s3 + $0x68] sm:$0xff] %v4372_v44  ;;  %v4585_v19 = vadd.f32 %v4584_v42, %v4583_v63 }
 0x320   :  { %4529 = vst [vmem:[%s7234_s3 + $0x70] sm:$0xff] %v4585_v19 }
 0x33e   :  { %v4376_v37 = vpop.f32.mrf.mxu0  ;;  %v4586_v12 = vpop.f32.mrf.mxu1 }
 0x33f   :  { %4530 = vst [vmem:[%s7234_s3 + $0x90] sm:$0xff] %v4376_v37 }
 0x340   :  { %v4378_v40 = vpop.f32.mrf.mxu0  ;;  %v4587_v61 = vpop.f32.mrf.mxu1 }
 0x341   :  { %4531 = vst [vmem:[%s7234_s3 + $0x98] sm:$0xff] %v4378_v40  ;;  %v4588_v3 = vadd.f32 %v4587_v61, %v4586_v12 }
 0x343   :  { %4532 = vst [vmem:[%s7234_s3 + $0xa0] sm:$0xff] %v4588_v3 }
 0x35e   :  { %v4382_v50 = vpop.f32.mrf.mxu0  ;;  %v4589_v33 = vpop.f32.mrf.mxu1 }
 0x35f   :  { %4533 = vst [vmem:[%s7234_s3 + $0x78] sm:$0xff] %v4382_v50 }
 0x360   :  { %v4384_v29 = vpop.f32.mrf.mxu0  ;;  %v4590_v18 = vpop.f32.mrf.mxu1 }
 0x361   :  { %4534 = vst [vmem:[%s7234_s3 + $0x80] sm:$0xff] %v4384_v29  ;;  %v4591_v56 = vadd.f32 %v4590_v18, %v4589_v33 }
 0x363   :  { %4535 = vst [vmem:[%s7234_s3 + $0x88] sm:$0xff] %v4591_v56 }
 0x37f   :  { %v4388_v8 = vpop.f32.mrf.mxu0  ;;  %v4592_v31 = vpop.f32.mrf.mxu1 }
 0x380   :  { %4536 = vst [vmem:[%s7234_s3 + $0xa8] sm:$0xff] %v4388_v8 }
 0x381   :  { %v4390_v13 = vpop.f32.mrf.mxu0  ;;  %v4593_v1 = vpop.f32.mrf.mxu1 }
 0x382   :  { %4537 = vst [vmem:[%s7234_s3 + $0xb0] sm:$0xff] %v4390_v13  ;;  %v4594_v62 = vadd.f32 %v4593_v1, %v4592_v31 }
 0x384   :  { %4538 = vst [vmem:[%s7234_s3 + $0xb8] sm:$0xff] %v4594_v62 }

// kernel: hupr_forward.4
= control target key start
LH: loop header
LB: loop body
LE: loop exit
PB: predicated region body
PF: predicated region fallthrough
CT: control target
= control target key end

     0   :  { %s9512_s29 = smov 0   ;;  %s13513_s0 = inlined_call_operand.vmem [shape: f32[2,16,768], index: 0, kind: input, shape index: {}]   ;;  %s13514_s1 = inlined_call_operand.vmem [shape: bf16[2,16,144], index: 1, kind: input, shape index: {}]   ;;  %s13515_s2 = inlined_call_operand.vmem [shape: f32[2,16,1], index: 2, kind: input, shape index: {}]   ;;  %s13516_s3 = inlined_call_operand.vmem [shape: bf16[2,16,144], index: 3, kind: input, shape index: {}]   ;;  %s13517_s4 = inlined_call_operand.vmem [shape: f32[2,16,1], index: 4, kind: input, shape index: {}]   ;;  %s13518_s5 = inlined_call_operand.vmem [shape: bf16[2,32,144], index: 5, kind: input, shape index: {}]   ;;  %s13519_s6 = inlined_call_operand.vmem [shape: f32[2,32,1], index: 6, kind: input, shape index: {}]   ;;  %s13520_s7 = inlined_call_operand.vmem [shape: bf16[2,32,288], index: 7, kind: input, shape index: {}]   ;;  %s13521_s8 = inlined_call_operand.vmem [shape: f32[2,32,1], index: 8, kind: input, shape index: {}]   ;;  %s13522_s9 = inlined_call_operand.vmem [shape: f32[1,768], index: 9, kind: input, shape index: {}]   ;;  %s13523_s10 = inlined_call_operand.vmem [shape: bf16[768,256], index: 10, kind: input, shape index: {}]   ;;  %s13524_s11 = inlined_call_operand.vmem [shape: bf16[768,512], index: 11, kind: input, shape index: {}]   ;;  %s13525_s12 = inlined_call_operand.vmem [shape: bf16[768,512], index: 12, kind: input, shape index: {}]   ;;  %s13526_s13 = inlined_call_operand.vmem [shape: bf16[256,512], index: 13, kind: input, shape index: {}]   ;;  %s13527_s14 = inlined_call_operand.vmem [shape: f32[2,40,512], index: 14, kind: output, shape index: {}]  }
   0x1 LB: > { %s7062_s30 = sadd.s32 4294967295, %s9420_s29   ;;  %p7066_p0 = scmp.ge.s32.totalorder %s9420_s29, 1  ;;  %s9420_s29 = sphi %s9512_s29, %s24_s29  }
   0x2   : > { %p492_p1 = scmp.lt.s32.totalorder %s9420_s29, 3 }
   0x4   : > { %p493_p2 = pnand %p7066_p0, %p492_p1 }
   0x5   : > { %p578_p3 = scmp.lt.s32.totalorder (!%p493_p2), %s7062_s30, 1  ;;  %s9422_s19 = smov (!%p493_p2), 110  }
   0x6   : > { %496 = sbr.rel (%p493_p2) target bundleno = 2321 (0x911), region = 76  ;;  %s9423_s20 = smov (!%p493_p2), 111  }
   0x7   : > { %s9424_s21 = smov (!%p493_p2), 127   ;;  %s9425_s22 = smov (!%p493_p2), 1  }
   0x8   : > { %s9426_s23 = smov (!%p493_p2), 17   ;;  %s9427_s24 = smov (!%p493_p2), 18  }
   0x9   : > { %s9428_s25 = smov (!%p493_p2), 19   ;;  %s9429_s16 = smov (!%p493_p2), 109  }
   0xa   : > { %s9431_s27 = smov (!%p493_p2), 9  }
   0xb   : > { %s13637_s30 = smov (!%p578_p3, %s7062_s30), 1  ;;  %vm1017_vm0 = vcmask 130048   ;;  %v13528_v23 = vmov 0   ;;  %v13530_v26 = vlaneseq }
   0xc   : > { %s7665_s15 = smul.u32 96, %s13637_s30  ;;  %s9600_s26 = sshll.u32 %s13637_s30, 4  ;;  %7932 = vset.pattern.permute.xlu1 %v13528_v23  ;;  %7931 = vset.pattern.permute.xlu0 %v13528_v23 }
   0xd   : > { %s592_s28 = scalar_lea.vmem %s13515_s2, %s9600_s26  ;;  %v9649_v27 = vand.u32 127, %v13530_v26  ;;  %s602_s17 = scalar_lea.vmem %s13517_s4, %s9600_s26 }
   0xe   : > { %s9526_s18 = scalar_lea.vmem %s13513_s0, %s7665_s15  ;;  %s9606_s15 = scalar_lea.vmem %s13514_s1, %s9600_s26  ;;  %v996_v24 = vld [vmem:[%s592_s28] sm:$0xff]  ;;  %v997_v25 = vld [vmem:[%s592_s28 + $0x8] sm:$0xff] }
   0xf   : > { %v9529_v0 = vld [vmem:[%s9526_s18 + $0x8] sm:$0xff]  ;;  %v9532_v1 = vld [vmem:[%s9526_s18 + $0x38] sm:$0xff]  ;;  %v9535_v2 = vld [vmem:[%s9526_s18] sm:$0xff]  ;;  %vm890_vm1 = vcmp.lt.s32.totalorder %v9649_v27, 110  ;;  %vm853_vm2 = vcmp.lt.s32.totalorder %v9649_v27, 111  ;;  %vm816_vm3 = vcmp.lt.s32.totalorder %v9649_v27, 127  ;;  %s10278_s28 = scalar_lea.vmem %s13516_s3, %s9600_s26 }
  0x10   : > { %v7691_v3 = vpack.i.bf16 %v9532_v1, %v9529_v0  ;;  %v9540_v4 = vld [vmem:[%s9526_s18 + $0x30] sm:$0xff]  ;;  %v9546_v6 = vld [vmem:[%s9526_s18 + $0x40] sm:$0xff]  ;;  %v965_v9 = vpack.c.bf16 %v9532_v1, %v9529_v0  ;;  %v635_v11 = vld [vmem:[%s9526_s18 + $0x28] sm:$0xff]  ;;  %vm779_vm4 = vcmp.lt.s32.totalorder %v9649_v27, 1  ;;  %vm742_vm5 = vcmp.lt.s32.totalorder %v9649_v27, 17  ;;  %s10843_s26 = sshll.u32 %s13637_s30, 5 }
  0x11   : > { %v9543_v5 = vld [vmem:[%s9526_s18 + $0x10] sm:$0xff]  ;;  %v7701_v7 = vpack.i.bf16 %v9540_v4, %v9535_v2  ;;  %v964_v10 = vpack.c.bf16 %v9540_v4, %v9535_v2  ;;  %v641_v12 = vld [vmem:[%s9526_s18 + $0x58] sm:$0xff]  ;;  %v9578_v15 = vld [vmem:[%s9526_s18 + $0x48] sm:$0xff]  ;;  %vm705_vm6 = vcmp.lt.s32.totalorder %v9649_v27, 18  ;;  %vm668_vm7 = vcmp.lt.s32.totalorder %v9649_v27, 19 }
  0x12   : > { %7692 = vrot.lane.b32.xlu0 %v7691_v3, %s9422_s19  ;;  %v9553_v8 = vpack.i.bf16 %v9546_v6, %v9543_v5  ;;  %v7746_v13 = vpack.i.bf16 %v641_v12, %v635_v11  ;;  %v9575_v14 = vld [vmem:[%s9526_s18 + $0x18] sm:$0xff]  ;;  %v634_v16 = vld [vmem:[%s9526_s18 + $0x20] sm:$0xff]  ;;  %v640_v17 = vld [vmem:[%s9526_s18 + $0x50] sm:$0xff]  ;;  %v966_v22 = vpack.c.bf16 %v9546_v6, %v9543_v5  ;;  %vm927_vm8 = vcmp.lt.s32.totalorder %v9649_v27, 109 }
  0x13   : > { %7702 = vrot.lane.b32.xlu1 %v7701_v7, %s9422_s19  ;;  %v7766_v18 = vpack.i.bf16 %v9578_v15, %v9575_v14  ;;  %v7771_v19 = vpack.i.bf16 %v640_v17, %v634_v16  ;;  %v8573_v20 = vld [vmem:[%s9606_s15 + $0x4] ss:$8 sps:$4 sm:$0xff]   ;;  %v967_v21 = vpack.c.bf16 %v9578_v15, %v9575_v14 }
  0x14   : > { %7086 = vmatprep.mubr.msk.bf16.mxu0 %vm1017_vm0, %v8573_v20  ;;  %7087 = vmatprep.mubr.msk.bf16.mxu1 %vm1017_vm0, %v8573_v20 }
  0x16   : > { %7697 = vrot.lane.b32.xlu0 %v9553_v8, %s9422_s19 }
  0x17   : > { %7707 = vrot.lane.b32.xlu1 %v7691_v3, %s9423_s20 }
  0x1a   : > { %7712 = vrot.lane.b32.xlu0 %v9553_v8, %s9423_s20 }
  0x1b   : > { %7717 = vrot.lane.b32.xlu1 %v7701_v7, %s9423_s20 }
  0x1e   : > { %7722 = vrot.lane.b32.xlu0 %v7691_v3, %s9424_s21 }
  0x1f   : > { %7727 = vrot.lane.b32.xlu1 %v9553_v8, %s9424_s21 }
  0x22   : > { %7732 = vrot.lane.b32.xlu0 %v7701_v7, %s9424_s21 }
  0x23   : > { %7737 = vrot.lane.b32.xlu1 %v7701_v7, %s9425_s22 }
  0x26   : > { %7742 = vrot.lane.b32.xlu0 %v7691_v3, %s9425_s22 }
  0x27   : > { %7747 = vrot.lane.b32.xlu1 %v7746_v13, %s9425_s22 }
  0x2a   : > { %7752 = vrot.lane.b32.xlu0 %v7701_v7, %s9426_s23 }
  0x2b   : > { %7757 = vrot.lane.b32.xlu1 %v7691_v3, %s9426_s23 }
  0x2e   : > { %7762 = vrot.lane.b32.xlu0 %v7746_v13, %s9426_s23 }
  0x2f   : > { %7767 = vrot.lane.b32.xlu1 %v7766_v18, %s9422_s19 }
  0x32   : > { %7772 = vrot.lane.b32.xlu0 %v7771_v19, %s9422_s19 }
  0x33   : > { %7777 = vrot.lane.b32.xlu1 %v7701_v7, %s9427_s24 }
  0x36   : > { %7782 = vrot.lane.b32.xlu0 %v7691_v3, %s9427_s24 }
  0x37   : > { %7787 = vrot.lane.b32.xlu1 %v7746_v13, %s9427_s24 }
  0x3a   : > { %7792 = vrot.lane.b32.xlu0 %v7766_v18, %s9423_s20 }
  0x3b   : > { %7797 = vrot.lane.b32.xlu1 %v7771_v19, %s9423_s20 }
  0x3e   : > { %7802 = vrot.lane.b32.xlu0 %v7701_v7, %s9428_s25 }
  0x3f   : > { %7807 = vrot.lane.b32.xlu1 %v7691_v3, %s9428_s25 }
  0x42   : > { %7812 = vrot.lane.b32.xlu0 %v7746_v13, %s9428_s25 }
  0x43   : > { %7817 = vrot.lane.b32.xlu1 %v7766_v18, %s9424_s21 }
  0x46   : > { %7822 = vrot.lane.b32.xlu0 %v7771_v19, %s9424_s21 }
  0x47   : > { %7827 = vrot.lane.b32.xlu1 %v7691_v3, %s9429_s16 }
  0x4a   : > { %7832 = vrot.lane.b32.xlu0 %v9553_v8, %s9429_s16 }
  0x4b   : > { %7837 = vrot.lane.b32.xlu1 %v7701_v7, %s9429_s16 }
  0x4e   : > { %7842 = vrot.lane.b32.xlu0 %v7746_v13, %s9422_s19 }
  0x4f   : > { %7847 = vrot.lane.b32.xlu1 %v9553_v8, %s9425_s22 }
  0x52   : > { %7852 = vrot.lane.b32.xlu0 %v7766_v18, %s9425_s22 }
  0x53   : > { %7857 = vrot.lane.b32.xlu1 %v7746_v13, %s9423_s20 }
  0x56   : > { %7862 = vrot.lane.b32.xlu0 %v9553_v8, %s9426_s23 }
  0x57   : > { %7867 = vrot.lane.b32.xlu1 %v7766_v18, %s9426_s23 }
  0x5a   : > { %7872 = vrot.lane.b32.xlu0 %v7746_v13, %s9424_s21 }
  0x5b   : > { %7877 = vrot.lane.b32.xlu1 %v9553_v8, %s9427_s24 }
  0x5e   : > { %7882 = vrot.lane.b32.xlu0 %v7766_v18, %s9427_s24 }
  0x5f   : > { %7887 = vrot.lane.b32.xlu1 %v9553_v8, %s9428_s25 }
  0x62   : > { %7892 = vrot.lane.b32.xlu0 %v7766_v18, %s9428_s25 }
  0x63   : > { %7897 = vrot.lane.b32.xlu1 %v7771_v19, %s9425_s22 }
  0x66   : > { %7902 = vrot.lane.b32.xlu0 %v7766_v18, %s9429_s16 }
  0x67   : > { %7907 = vrot.lane.b32.xlu1 %v7771_v19, %s9429_s16 }
  0x6a   : > { %7912 = vrot.lane.b32.xlu0 %v7771_v19, %s9426_s23 }
  0x6b   : > { %7917 = vrot.lane.b32.xlu1 %v7771_v19, %s9427_s24 }
  0x6e   : > { %7922 = vrot.lane.b32.xlu0 %v7771_v19, %s9428_s25 }
  0x6f   : > { %7927 = vrot.lane.b32.xlu1 %v7746_v13, %s9429_s16 }
  0x72   : > { %1000 = vperm.xlu0 %7931, %v996_v24  }
  0x73   : > { %1005 = vperm.xlu1 %7932, %v997_v25  }
  0x84   : > { %v7693_v28 = vpop.permute.xlu0 %7692 }
  0x85   : > { %v7695_v29 = vunpack.i.h.bf16 %v7693_v28  ;;  %v7694_v30 = vunpack.i.l.bf16 %v7693_v28  ;;  %v9651_v31 = vpop.permute.xlu1 %7702 }
  0x86   : > { %v7705_v32 = vunpack.i.h.bf16 %v9651_v31  ;;  %v7704_v33 = vunpack.i.l.bf16 %v9651_v31 }
  0x88   : > { %v9656_v34 = vpop.permute.xlu0 %7697  ;;  %v899_v38 = vsel %vm890_vm1, %v7704_v33, %v7694_v30  ;;  %v900_v39 = vsel %vm890_vm1, %v7705_v32, %v7695_v29 }
  0x89   : > { %v7700_v35 = vunpack.i.h.bf16 %v9656_v34  ;;  %v7699_v36 = vunpack.i.l.bf16 %v9656_v34  ;;  %v7708_v37 = vpop.permute.xlu1 %7707  ;;  %v982_v44 = vpack.c.bf16 %v900_v39, %v899_v38 }
  0x8a   : > { %v7710_v45 = vunpack.i.h.bf16 %v7708_v37  ;;  %v7709_v46 = vunpack.i.l.bf16 %v7708_v37 }
  0x8b   : > { %v897_v40 = vsel %vm890_vm1, %v7694_v30, %v7699_v36  ;;  %v898_v41 = vsel %vm890_vm1, %v7695_v29, %v7700_v35 }
  0x8c   : > { %v9676_v42 = vpop.permute.xlu0 %7712  ;;  %v983_v43 = vpack.c.bf16 %v898_v41, %v897_v40 }
  0x8d   : > { %v7715_v47 = vunpack.i.h.bf16 %v9676_v42  ;;  %v7714_v48 = vunpack.i.l.bf16 %v9676_v42  ;;  %v9681_v49 = vpop.permute.xlu1 %7717 }
  0x8e   : > { %v7720_v50 = vunpack.i.h.bf16 %v9681_v49  ;;  %v7719_v51 = vunpack.i.l.bf16 %v9681_v49  ;;  %1021 = vmatprep.subr.bf16.mxu0 %v983_v43 }
  0x8f   : > { %1022 = vmatpush1.bf16.msra.mxu0 %v982_v44  ;;  %v860_v52 = vsel %vm853_vm2, %v7709_v46, %v7714_v48  ;;  %v861_v53 = vsel %vm853_vm2, %v7710_v45, %v7715_v47 }
  0x90   : > { %v7723_v54 = vpop.permute.xlu0 %7722  ;;  %v977_v55 = vpack.c.bf16 %v861_v53, %v860_v52  ;;  %v862_v56 = vsel %vm853_vm2, %v7719_v51, %v7709_v46  ;;  %v863_v57 = vsel %vm853_vm2, %v7720_v50, %v7710_v45 }
  0x91   : > { %v7725_v58 = vunpack.i.h.bf16 %v7723_v54  ;;  %v7724_v59 = vunpack.i.l.bf16 %v7723_v54  ;;  %v9701_v60 = vpop.permute.xlu1 %7727  ;;  %v976_v61 = vpack.c.bf16 %v863_v57, %v862_v56 }
  0x92   : > { %v7730_v62 = vunpack.i.h.bf16 %v9701_v60  ;;  %v7729_v63 = vunpack.i.l.bf16 %v9701_v60  ;;  %1023 = vmatprep.subr.bf16.mxu0 %v977_v55 }
  0x93   : > { %1024 = vmatpush1.bf16.msra.mxu0 %v976_v61 }
  0x94   : > { %v9706_v3 = vpop.permute.xlu0 %7732  ;;  %v823_v7 = vsel %vm816_vm3, %v7724_v59, %v7729_v63  ;;  %v824_v8 = vsel %vm816_vm3, %v7725_v58, %v7730_v62 }
  0x95   : > { %v7735_v11 = vunpack.i.h.bf16 %v9706_v3  ;;  %v7734_v12 = vunpack.i.l.bf16 %v9706_v3  ;;  %v7738_v13 = vpop.permute.xlu1 %7737  ;;  %v971_v16 = vpack.c.bf16 %v824_v8, %v823_v7 }
  0x96   : > { %v7740_v24 = vunpack.i.h.bf16 %v7738_v13  ;;  %v7739_v25 = vunpack.i.l.bf16 %v7738_v13 }
  0x97   : > { %1025 = vmatprep.subr.bf16.mxu0 %v971_v16  ;;  %v825_v17 = vsel %vm816_vm3, %v7734_v12, %v7724_v59  ;;  %v826_v18 = vsel %vm816_vm3, %v7735_v11, %v7725_v58 }
  0x98   : > { %v9726_v19 = vpop.permute.xlu0 %7742  ;;  %v970_v20 = vpack.c.bf16 %v826_v18, %v825_v17 }
  0x99   : > { %v7745_v28 = vunpack.i.h.bf16 %v9726_v19  ;;  %v7744_v29 = vunpack.i.l.bf16 %v9726_v19  ;;  %v9731_v30 = vpop.permute.xlu1 %7747 }
  0x9a   : > { %v7750_v37 = vunpack.i.h.bf16 %v9731_v30  ;;  %v7749_v38 = vunpack.i.l.bf16 %v9731_v30  ;;  %1026 = vmatpush1.bf16.msra.mxu0 %v970_v20 }
  0x9b   : > { %1027 = vmatprep.subr.bf16.mxu0 %v965_v9  ;;  %v788_v39 = vsel %vm779_vm4, %v7739_v25, %v7744_v29  ;;  %v789_v40 = vsel %vm779_vm4, %v7740_v24, %v7745_v28 }
  0x9c   : > { %v7753_v41 = vpop.permute.xlu0 %7752  ;;  %v959_v43 = vpack.c.bf16 %v789_v40, %v788_v39  ;;  %v790_v0 = vsel %vm779_vm4, %v7749_v38, %v7739_v25  ;;  %v791_v1 = vsel %vm779_vm4, %v7750_v37, %v7740_v24 }
  0x9d   : > { %v7755_v44 = vunpack.i.h.bf16 %v7753_v41  ;;  %v7754_v45 = vunpack.i.l.bf16 %v7753_v41  ;;  %v9747_v46 = vpop.permute.xlu1 %7757  ;;  %v958_v54 = vpack.c.bf16 %v791_v1, %v790_v0 }
  0x9e   : > { %v7760_v9 = vunpack.i.h.bf16 %v9747_v46  ;;  %v7759_v52 = vunpack.i.l.bf16 %v9747_v46  ;;  %1028 = vmatpush1.bf16.msra.mxu0 %v964_v10 }
  0x9f   : > { %1029 = vmatprep.subr.bf16.mxu0 %v959_v43 }
  0xa0   : > { %v9762_v53 = vpop.permute.xlu0 %7762  ;;  %v751_v55 = vsel %vm742_vm5, %v7754_v45, %v7759_v52  ;;  %v752_v56 = vsel %vm742_vm5, %v7755_v44, %v7760_v9 }
  0xa1   : > { %v7765_v57 = vunpack.i.h.bf16 %v9762_v53  ;;  %v7764_v58 = vunpack.i.l.bf16 %v9762_v53  ;;  %v7768_v2 = vpop.permute.xlu1 %7767  ;;  %v953_v4 = vpack.c.bf16 %v752_v56, %v751_v55 }
  0xa2   : > { %v7770_v10 = vunpack.i.h.bf16 %v7768_v2  ;;  %v7769_v59 = vunpack.i.l.bf16 %v7768_v2  ;;  %1030 = vmatpush1.bf16.msra.mxu0 %v958_v54 }
  0xa3   : > { %1031 = vmatprep.subr.bf16.mxu0 %v953_v4  ;;  %v753_v61 = vsel %vm742_vm5, %v7764_v58, %v7754_v45  ;;  %v754_v7 = vsel %vm742_vm5, %v7765_v57, %v7755_v44 }
  0xa4   : > { %v9782_v8 = vpop.permute.xlu0 %7772  ;;  %v952_v13 = vpack.c.bf16 %v754_v7, %v753_v61  ;;  %v895_v20 = vsel %vm890_vm1, %v7699_v36, %v7769_v59  ;;  %v896_v24 = vsel %vm890_vm1, %v7700_v35, %v7770_v10 }
  0xa5   : > { %v7775_v16 = vunpack.i.h.bf16 %v9782_v8  ;;  %v7774_v17 = vunpack.i.l.bf16 %v9782_v8  ;;  %v7778_v18 = vpop.permute.xlu1 %7777  ;;  %v984_v36 = vpack.c.bf16 %v896_v24, %v895_v20 }
  0xa6   : > { %1032 = vmatpush1.bf16.msra.mxu0 %v952_v13  ;;  %v7780_v34 = vunpack.i.h.bf16 %v7778_v18  ;;  %v7779_v43 = vunpack.i.l.bf16 %v7778_v18 }
  0xa7   : > { %v893_v25 = vsel %vm890_vm1, %v7769_v59, %v7774_v17  ;;  %v894_v39 = vsel %vm890_vm1, %v7770_v10, %v7775_v16 }
  0xa8   : > { %v9802_v40 = vpop.permute.xlu0 %7782  ;;  %v985_v41 = vpack.c.bf16 %v894_v39, %v893_v25 }
  0xa9   : > { %v7785_v35 = vunpack.i.h.bf16 %v9802_v40  ;;  %v7784_v44 = vunpack.i.l.bf16 %v9802_v40  ;;  %v9807_v45 = vpop.permute.xlu1 %7787 }
  0xaa   : > { %v13533_v0 = vunpack.i.h.bf16 %v9807_v45  ;;  %v13534_v1 = vunpack.i.l.bf16 %v9807_v45  ;;  %1064 = vmatprep.subr.bf16.mxu1 %v985_v41 }
  0xab   : > { %1065 = vmatpush1.bf16.msra.mxu1 %v984_v36  ;;  %v714_v54 = vsel %vm705_vm6, %v7779_v43, %v7784_v44  ;;  %v715_v55 = vsel %vm705_vm6, %v7780_v34, %v7785_v35 }
  0xac   : > { %v7793_v56 = vpop.permute.xlu0 %7792  ;;  %v947_v2 = vpack.c.bf16 %v715_v55, %v714_v54  ;;  %v716_v4 = vsel %vm705_vm6, %v13534_v1, %v7779_v43  ;;  %v717_v10 = vsel %vm705_vm6, %v13533_v0, %v7780_v34 }
  0xad   : > { %v7795_v59 = vunpack.i.h.bf16 %v7793_v56  ;;  %v7794_v61 = vunpack.i.l.bf16 %v7793_v56  ;;  %v9827_v7 = vpop.permute.xlu1 %7797  ;;  %v946_v13 = vpack.c.bf16 %v717_v10, %v716_v4 }
  0xae   : > { %v7800_v18 = vunpack.i.h.bf16 %v9827_v7  ;;  %v7799_v20 = vunpack.i.l.bf16 %v9827_v7  ;;  %1033 = vmatprep.subr.bf16.mxu0 %v947_v2 }
  0xaf   : > { %1034 = vmatpush1.bf16.msra.mxu0 %v946_v13  ;;  %v858_v24 = vsel %vm853_vm2, %v7714_v48, %v7794_v61  ;;  %v859_v25 = vsel %vm853_vm2, %v7715_v47, %v7795_v59 }
  0xb0   : > { %v7803_v39 = vpop.permute.xlu0 %7802  ;;  %v856_v41 = vsel %vm853_vm2, %v7794_v61, %v7799_v20  ;;  %v857_v36 = vsel %vm853_vm2, %v7795_v59, %v7800_v18  ;;  %v978_v34 = vpack.c.bf16 %v859_v25, %v858_v24 }
  0xb1   : > { %v7805_v43 = vunpack.i.h.bf16 %v7803_v39  ;;  %v7804_v54 = vunpack.i.l.bf16 %v7803_v39  ;;  %v9847_v48 = vpop.permute.xlu1 %7807  ;;  %v979_v42 = vpack.c.bf16 %v857_v36, %v856_v41 }
  0xb2   : > { %v7810_v47 = vunpack.i.h.bf16 %v9847_v48  ;;  %v7809_v55 = vunpack.i.l.bf16 %v9847_v48 }
  0xb3   : > { %1066 = vmatprep.subr.bf16.mxu1 %v979_v42 }
  0xb4   : > { %1067 = vmatpush1.bf16.msra.mxu1 %v978_v34  ;;  %v9852_v56 = vpop.permute.xlu0 %7812  ;;  %v677_v2 = vsel %vm668_vm7, %v7804_v54, %v7809_v55  ;;  %v678_v4 = vsel %vm668_vm7, %v7805_v43, %v7810_v47 }
  0xb5   : > { %v13531_v10 = vunpack.i.h.bf16 %v9852_v56  ;;  %v13532_v59 = vunpack.i.l.bf16 %v9852_v56  ;;  %v7818_v61 = vpop.permute.xlu1 %7817  ;;  %v941_v13 = vpack.c.bf16 %v678_v4, %v677_v2 }
  0xb6   : > { %v7820_v24 = vunpack.i.h.bf16 %v7818_v61  ;;  %v7819_v25 = vunpack.i.l.bf16 %v7818_v61 }
  0xb7   : > { %1035 = vmatprep.subr.bf16.mxu0 %v941_v13  ;;  %v679_v39 = vsel %vm668_vm7, %v13532_v59, %v7804_v54  ;;  %v680_v41 = vsel %vm668_vm7, %v13531_v10, %v7805_v43 }
  0xb8   : > { %v9872_v36 = vpop.permute.xlu0 %7822  ;;  %v940_v34 = vpack.c.bf16 %v680_v41, %v679_v39  ;;  %v821_v61 = vsel %vm816_vm3, %v7729_v63, %v7819_v25  ;;  %v822_v54 = vsel %vm816_vm3, %v7730_v62, %v7820_v24 }
  0xb9   : > { %v7825_v42 = vunpack.i.h.bf16 %v9872_v36  ;;  %v7824_v2 = vunpack.i.l.bf16 %v9872_v36  ;;  %v7828_v4 = vpop.permute.xlu1 %7827  ;;  %v972_v63 = vpack.c.bf16 %v822_v54, %v821_v61 }
  0xba   : > { %1036 = vmatpush1.bf16.msra.mxu0 %v940_v34  ;;  %v7830_v60 = vunpack.i.h.bf16 %v7828_v4  ;;  %v7829_v62 = vunpack.i.l.bf16 %v7828_v4 }
  0xbb   : > { %v819_v43 = vsel %vm816_vm3, %v7819_v25, %v7824_v2  ;;  %v820_v13 = vsel %vm816_vm3, %v7820_v24, %v7825_v42 }
  0xbc   : > { %v9892_v39 = vpop.permute.xlu0 %7832  ;;  %v973_v41 = vpack.c.bf16 %v820_v13, %v819_v43 }
  0xbd   : > { %v7835_v34 = vunpack.i.h.bf16 %v9892_v39  ;;  %v7834_v23 = vunpack.i.l.bf16 %v9892_v39  ;;  %v9897_v26 = vpop.permute.xlu1 %7837 }
  0xbe   : > { %v7840_v25 = vunpack.i.h.bf16 %v9897_v26  ;;  %v7839_v10 = vunpack.i.l.bf16 %v9897_v26  ;;  %1068 = vmatprep.subr.bf16.mxu1 %v973_v41  ;;  %v9921_v41 = vld [vmem:[%s9606_s15] ss:$8 sps:$4 sm:$0xff]  }
  0xbf   : > { %1069 = vmatpush1.bf16.msra.mxu1 %v972_v63  ;;  %v934_v24 = vsel %vm927_vm8, %v7829_v62, %v7834_v23  ;;  %v935_v4 = vsel %vm927_vm8, %v7830_v60, %v7835_v34 }
  0xc0   : > { %v7843_v61 = vpop.permute.xlu0 %7842  ;;  %v989_v54 = vpack.c.bf16 %v935_v4, %v934_v24  ;;  %v936_v43 = vsel %vm927_vm8, %v7839_v10, %v7829_v62  ;;  %v937_v13 = vsel %vm927_vm8, %v7840_v25, %v7830_v60  ;;  %1070 = vmatprep.subr.bf16.mxu1 %v967_v21 }
  0xc1   : > { %v7845_v63 = vunpack.i.h.bf16 %v7843_v61  ;;  %v7844_v59 = vunpack.i.l.bf16 %v7843_v61  ;;  %v7848_v0 = vpop.permute.xlu1 %7847  ;;  %v988_v24 = vpack.c.bf16 %v937_v13, %v936_v43 }
  0xc2   : > { %v7850_v4 = vunpack.i.h.bf16 %v7848_v0  ;;  %v7849_v1 = vunpack.i.l.bf16 %v7848_v0  ;;  %1051 = vmatprep.subr.bf16.mxu0 %v989_v54 }
  0xc3   : > { %v891_v62 = vsel %vm890_vm1, %v7774_v17, %v7844_v59  ;;  %v892_v14 = vsel %vm890_vm1, %v7775_v16, %v7845_v63  ;;  %1052 = vmatpush2.bf16.msra.mxu0 %v988_v24  ;;  %v901_v15 = vsel %vm890_vm1, %v7844_v59, %v7704_v33  ;;  %v902_v21 = vsel %vm890_vm1, %v7845_v63, %v7705_v32 }
  0xc4   : > { %v9939_v0 = vpop.permute.xlu0 %7852  ;;  %v987_v60 = vpack.c.bf16 %v902_v21, %v901_v15  ;;  %1071 = vmatpush1.bf16.msra.mxu1 %v966_v22  ;;  %v986_v8 = vpack.c.bf16 %v892_v14, %v891_v62  ;;  %v786_v16 = vsel %vm779_vm4, %v7744_v29, %v7849_v1  ;;  %v787_v31 = vsel %vm779_vm4, %v7745_v28, %v7850_v4  ;;  %v9409_v28 = vld [vmem:[%s9606_s15 + $0x4] ss:$8 sps:$4 sm:$0xff]   ;;  %s612_s15 = scalar_lea.vmem %s13519_s6, %s10843_s26 }
  0xc5   : > { %v7855_v32 = vunpack.i.h.bf16 %v9939_v0  ;;  %v7854_v33 = vunpack.i.l.bf16 %v9939_v0  ;;  %v7858_v17 = vpop.permute.xlu1 %7857  ;;  %v960_v19 = vpack.c.bf16 %v787_v31, %v786_v16 }
  0xc6   : > { %v7860_v59 = vunpack.i.h.bf16 %v7858_v17  ;;  %v7859_v5 = vunpack.i.l.bf16 %v7858_v17  ;;  %1107 = vmatprep.subr.bf16.mxu0 %v987_v60  ;;  %1054 = vmatmul.mubr.bf16.vlgmr.msra.gmra.mxu0 %v9921_v41 }
  0xc7   : > { %1108 = vmatpush1.bf16.msra.mxu0 %v986_v8  ;;  %v784_v6 = vsel %vm779_vm4, %v7849_v1, %v7854_v33  ;;  %v785_v22 = vsel %vm779_vm4, %v7850_v4, %v7855_v32  ;;  %7088 = vmatprep.mubr.msk.bf16.mxu0 %vm1017_vm0, %v9409_v28 }
  0xc8   : > { %v854_v29 = vsel %vm853_vm2, %v7799_v20, %v7859_v5  ;;  %v855_v61 = vsel %vm853_vm2, %v7800_v18, %v7860_v59  ;;  %v7863_v1 = vpop.permute.xlu0 %7862  ;;  %v961_v54 = vpack.c.bf16 %v785_v22, %v784_v6  ;;  %v864_v43 = vsel %vm853_vm2, %v7859_v5, %v7719_v51  ;;  %v9410_v22 = vld [vmem:[%s9526_s18 + $0x28] sm:$0xff] }
  0xc9   : > { %v7865_v13 = vunpack.i.h.bf16 %v7863_v1  ;;  %v7864_v63 = vunpack.i.l.bf16 %v7863_v1  ;;  %v9977_v24 = vpop.permute.xlu1 %7867  ;;  %v865_v20 = vsel %vm853_vm2, %v7860_v59, %v7720_v50  ;;  %v980_v7 = vpack.c.bf16 %v855_v61, %v854_v29 }
  0xca   : > { %v7870_v4 = vunpack.i.h.bf16 %v9977_v24  ;;  %v7869_v18 = vunpack.i.l.bf16 %v9977_v24  ;;  %1072 = vmatprep.subr.bf16.mxu1 %v961_v54  ;;  %v981_v62 = vpack.c.bf16 %v865_v20, %v864_v43 }
  0xcb   : > { %1073 = vmatpush1.bf16.msra.mxu1 %v960_v19  ;;  %v749_v51 = vsel %vm742_vm5, %v7759_v52, %v7864_v63  ;;  %v750_v49 = vsel %vm742_vm5, %v7760_v9, %v7865_v13 }
  0xcc   : > { %1109 = vmatprep.subr.bf16.mxu0 %v981_v62  ;;  %v7873_v50 = vpop.permute.xlu0 %7872  ;;  %v747_v14 = vsel %vm742_vm5, %v7864_v63, %v7869_v18  ;;  %v748_v15 = vsel %vm742_vm5, %v7865_v13, %v7870_v4  ;;  %v954_v21 = vpack.c.bf16 %v750_v49, %v749_v51  ;;  %v9412_v13 = vld [vmem:[%s9526_s18 + $0x20] sm:$0xff]  ;;  %v9413_v63 = vld [vmem:[%s9526_s18 + $0x50] sm:$0xff] }
  0xcd   : > { %1110 = vmatpush1.bf16.msra.mxu0 %v980_v7  ;;  %v7875_v52 = vunpack.i.h.bf16 %v7873_v50  ;;  %v7874_v46 = vunpack.i.l.bf16 %v7873_v50  ;;  %v7878_v60 = vpop.permute.xlu1 %7877  ;;  %v955_v9 = vpack.c.bf16 %v748_v15, %v747_v14  ;;  %v968_v20 = vpack.c.bf16 %v9413_v63, %v9412_v13 }
  0xce   : > { %v7880_v8 = vunpack.i.h.bf16 %v7878_v60  ;;  %v7879_v16 = vunpack.i.l.bf16 %v7878_v60 }
  0xcf   : > { %v817_v31 = vsel %vm816_vm3, %v7824_v2, %v7874_v46  ;;  %v818_v17 = vsel %vm816_vm3, %v7825_v42, %v7875_v52  ;;  %1074 = vmatprep.subr.bf16.mxu1 %v955_v9  ;;  %v827_v59 = vsel %vm816_vm3, %v7874_v46, %v7734_v12  ;;  %v828_v5 = vsel %vm816_vm3, %v7875_v52, %v7735_v11  ;;  %v9411_v42 = vld [vmem:[%s9526_s18 + $0x58] sm:$0xff]  ;;  %s10849_s18 = scalar_lea.vmem %s13518_s5, %s10843_s26 }
  0xd0   : > { %1075 = vmatpush1.bf16.msra.mxu1 %v954_v21  ;;  %v10017_v6 = vpop.permute.xlu0 %7882  ;;  %v975_v2 = vpack.c.bf16 %v828_v5, %v827_v59  ;;  %v974_v36 = vpack.c.bf16 %v818_v17, %v817_v31  ;;  %v969_v19 = vpack.c.bf16 %v9411_v42, %v9410_v22  ;;  %v712_v11 = vsel %vm705_vm6, %v7784_v44, %v7879_v16 }
  0xd1   : > { %v7885_v28 = vunpack.i.h.bf16 %v10017_v6  ;;  %v7884_v29 = vunpack.i.l.bf16 %v10017_v6  ;;  %v7888_v12 = vpop.permute.xlu1 %7887  ;;  %v713_v1 = vsel %vm705_vm6, %v7785_v35, %v7880_v8 }
  0xd2   : > { %v7890_v61 = vunpack.i.h.bf16 %v7888_v12  ;;  %v7889_v3 = vunpack.i.l.bf16 %v7888_v12  ;;  %1111 = vmatprep.subr.bf16.mxu0 %v975_v2  ;;  %v948_v50 = vpack.c.bf16 %v713_v1, %v712_v11 }
  0xd3   : > { %1112 = vmatpush1.bf16.msra.mxu0 %v974_v36  ;;  %v710_v54 = vsel %vm705_vm6, %v7879_v16, %v7884_v29  ;;  %v711_v43 = vsel %vm705_vm6, %v7880_v8, %v7885_v28 }
  0xd4   : > { %v10041_v44 = vpop.permute.xlu0 %7892  ;;  %v949_v40 = vpack.c.bf16 %v711_v43, %v710_v54  ;;  %1113 = vmatprep.subr.bf16.mxu0 %v969_v19  ;;  %v675_v35 = vsel %vm668_vm7, %v7809_v55, %v7889_v3  ;;  %v676_v7 = vsel %vm668_vm7, %v7810_v47, %v7890_v61 }
  0xd5   : > { %v7895_v62 = vunpack.i.h.bf16 %v10041_v44  ;;  %v7894_v51 = vunpack.i.l.bf16 %v10041_v44  ;;  %v7898_v49 = vpop.permute.xlu1 %7897  ;;  %v942_v47 = vpack.c.bf16 %v676_v7, %v675_v35 }
  0xd6   : > { %v7900_v14 = vunpack.i.h.bf16 %v7898_v49  ;;  %v7899_v15 = vunpack.i.l.bf16 %v7898_v49  ;;  %1076 = vmatprep.subr.bf16.mxu1 %v949_v40 }
  0xd7   : > { %1077 = vmatpush1.bf16.msra.mxu1 %v948_v50  ;;  %1114 = vmatpush1.bf16.msra.mxu0 %v968_v20  ;;  %v673_v55 = vsel %vm668_vm7, %v7889_v3, %v7894_v51  ;;  %v674_v48 = vsel %vm668_vm7, %v7890_v61, %v7895_v62  ;;  %v13578_v20 = vunpack.i.h.bf16 %v9807_v45 }
  0xd8   : > { %v783_v21 = vsel %vm779_vm4, %v7855_v32, %v7900_v14  ;;  %v782_v52 = vsel %vm779_vm4, %v7854_v33, %v7899_v15  ;;  %v7903_v46 = vpop.permute.xlu0 %7902  ;;  %v943_v60 = vpack.c.bf16 %v674_v48, %v673_v55  ;;  %v780_v9 = vsel %vm779_vm4, %v7899_v15, %v7749_v38 }
  0xd9   : > { %v7905_v8 = vunpack.i.h.bf16 %v7903_v46  ;;  %v7904_v16 = vunpack.i.l.bf16 %v7903_v46  ;;  %v7908_v31 = vpop.permute.xlu1 %7907  ;;  %v781_v32 = vsel %vm779_vm4, %v7900_v14, %v7750_v37  ;;  %v962_v17 = vpack.c.bf16 %v783_v21, %v782_v52 }
  0xda   : > { %v7910_v0 = vunpack.i.h.bf16 %v7908_v31  ;;  %v7909_v59 = vunpack.i.l.bf16 %v7908_v31  ;;  %1078 = vmatprep.subr.bf16.mxu1 %v943_v60  ;;  %v963_v33 = vpack.c.bf16 %v781_v32, %v780_v9 }
  0xdb   : > { %1079 = vmatpush1.bf16.msra.mxu1 %v942_v47  ;;  %v932_v5 = vsel %vm927_vm8, %v7834_v23, %v7904_v16  ;;  %v933_v38 = vsel %vm927_vm8, %v7835_v34, %v7905_v8 }
  0xdc   : > { %1115 = vmatprep.subr.bf16.mxu0 %v963_v33  ;;  %v7913_v30 = vpop.permute.xlu0 %7912  ;;  %v930_v37 = vsel %vm927_vm8, %v7904_v16, %v7909_v59  ;;  %v931_v2 = vsel %vm927_vm8, %v7905_v8, %v7910_v0  ;;  %v990_v36 = vpack.c.bf16 %v933_v38, %v932_v5 }
  0xdd   : > { %1116 = vmatpush1.bf16.msra.mxu0 %v962_v17  ;;  %v7915_v22 = vunpack.i.h.bf16 %v7913_v30  ;;  %v7914_v42 = vunpack.i.l.bf16 %v7913_v30  ;;  %v7918_v19 = vpop.permute.xlu1 %7917  ;;  %v991_v12 = vpack.c.bf16 %v931_v2, %v930_v37 }
  0xde   : > { %v7920_v23 = vunpack.i.h.bf16 %v7918_v19  ;;  %v7919_v61 = vunpack.i.l.bf16 %v7918_v19 }
  0xdf   : > { %v745_v39 = vsel %vm742_vm5, %v7869_v18, %v7914_v42  ;;  %v746_v34 = vsel %vm742_vm5, %v7870_v4, %v7915_v22  ;;  %1094 = vmatprep.subr.bf16.mxu1 %v991_v12  ;;  %v743_v3 = vsel %vm742_vm5, %v7914_v42, %v7764_v58  ;;  %v744_v11 = vsel %vm742_vm5, %v7915_v22, %v7765_v57 }
  0xe0   : > { %1095 = vmatpush2.bf16.msra.mxu1 %v990_v36  ;;  %v7923_v1 = vpop.permute.xlu0 %7922  ;;  %v957_v54 = vpack.c.bf16 %v744_v11, %v743_v3  ;;  %v956_v18 = vpack.c.bf16 %v746_v34, %v745_v39  ;;  %v13577_v4 = vunpack.i.l.bf16 %v9807_v45  ;;  %v707_v53 = vsel %vm705_vm6, %v7920_v23, %v13578_v20 }
  0xe1   : > { %v7925_v43 = vunpack.i.h.bf16 %v7923_v1  ;;  %v7924_v24 = vunpack.i.l.bf16 %v7923_v1  ;;  %v7928_v13 = vpop.permute.xlu1 %7927  ;;  %v709_v57 = vsel %vm705_vm6, %v7885_v28, %v7920_v23  ;;  %v708_v58 = vsel %vm705_vm6, %v7884_v29, %v7919_v61 }
  0xe2   : > { %v706_v63 = vsel %vm705_vm6, %v7919_v61, %v13577_v4  ;;  %1117 = vmatprep.subr.bf16.mxu0 %v957_v54  ;;  %v7930_v35 = vunpack.i.h.bf16 %v7928_v13  ;;  %v7929_v7 = vunpack.i.l.bf16 %v7928_v13  ;;  %v13579_v45 = vunpack.i.l.bf16 %v9852_v56 }
  0xe3   : > { %v951_v40 = vpack.c.bf16 %v707_v53, %v706_v63  ;;  %1097 = vmatmul.mubr.bf16.vlgmr.msra.gmra.mxu1 %v9921_v41  ;;  %1118 = vmatpush1.bf16.msra.mxu0 %v956_v18  ;;  %v13580_v28 = vunpack.i.h.bf16 %v9852_v56  ;;  %v950_v50 = vpack.c.bf16 %v709_v57, %v708_v58  ;;  %v671_v29 = vsel %vm668_vm7, %v7894_v51, %v7924_v24 }
  0xe4   : > { %v669_v49 = vsel %vm668_vm7, %v7924_v24, %v13579_v45  ;;  %v672_v14 = vsel %vm668_vm7, %v7895_v62, %v7925_v43  ;;  %v938_v56 = vsel %vm927_vm8, %v7929_v7, %v7839_v10  ;;  %v939_v55 = vsel %vm927_vm8, %v7930_v35, %v7840_v25  ;;  %v629_v25 = vld [vmem:[%s13522_s9] sm:$0x3f] }
  0xe5   : > { %1119 = vmatprep.subr.bf16.mxu0 %v951_v40  ;;  %v670_v6 = vsel %vm668_vm7, %v7925_v43, %v13580_v28  ;;  %v944_v48 = vpack.c.bf16 %v672_v14, %v671_v29  ;;  %v928_v44 = vsel %vm927_vm8, %v7909_v59, %v7929_v7  ;;  %v929_v62 = vsel %vm927_vm8, %v7910_v0, %v7930_v35 }
  0xe6   : > { %v945_v15 = vpack.c.bf16 %v670_v6, %v669_v49  ;;  %v993_v51 = vpack.c.bf16 %v939_v55, %v938_v56  ;;  %v992_v47 = vpack.c.bf16 %v929_v62, %v928_v44  ;;  %v13581_v10 = vlaneseq }
  0xe7   : > { %1120 = vmatpush1.bf16.msra.mxu0 %v950_v50 }
  0xe8   : > { %1121 = vmatprep.subr.bf16.mxu0 %v945_v15  ;;  %v1164_v26 = vshrl.u32 %v13581_v10, 7 }
  0xea   : > { %v1181_v21 = vsub.s32 4, %v1164_v26  ;;  %v1185_v46 = vsub.s32 5, %v1164_v26  ;;  %v1165_v8 = vsub.s32 0, %v1164_v26  ;;  %v1169_v0 = vsub.s32 1, %v1164_v26 }
  0xeb   : > { %1122 = vmatpush1.bf16.msra.mxu0 %v944_v48  ;;  %v1173_v54 = vsub.s32 2, %v1164_v26  ;;  %v1177_v43 = vsub.s32 3, %v1164_v26 }
  0xec   : > { %1137 = vmatprep.subr.bf16.mxu0 %v993_v51  ;;  %v10155_v52 = vrot.slane %v629_v25, %v1181_v21  ;;  %v10157_v60 = vrot.slane %v629_v25, %v1185_v46  ;;  %v10161_v37 = vrot.slane %v629_v25, %v1169_v0 }
  0xed   : > { %v1001_v9 = vpop.permute.xlu0 %1000  ;;  %v10185_v4 = vrot.slane %v629_v25, %v1173_v54  ;;  %v10187_v40 = vrot.slane %v629_v25, %v1177_v43 }
  0xee   : > { %v1006_v17 = vpop.permute.xlu1 %1005 }
  0xef   : > { %1138 = vmatpush2.bf16.msra.mxu0 %v992_v47 }
  0xf2   : > { %1140 = vmatmul.mubr.bf16.vlgmr.msra.gmra.mxu0 %v9921_v41  ;;  %v10159_v41 = vrot.slane %v629_v25, %v1165_v8 }
 0x186   : > { %v1055_v16 = vpop.f32.mrf.mxu0 }
 0x187   : > { %v1056_v31 = vadd.f32 %v1055_v16, %v1001_v9 }
 0x188   : > { %v1057_v32 = vpop.f32.mrf.mxu0 }
 0x189   : > { %v1058_v59 = vadd.f32 %v1057_v32, %v1001_v9  ;;  %v1150_v33 = vmax.f32 %v1056_v31, 0.0 }
 0x18a   : > { %v1059_v5 = vpop.f32.mrf.mxu0 }
 0x18b   : > { %v1060_v38 = vadd.f32 %v1059_v5, %v1006_v17  ;;  %v1151_v2 = vmax.f32 %v1058_v59, 0.0  ;;  %v10164_v36 = vmul.f32 %v10159_v41, %v1150_v33  ;;  %v10285_v5 = vld [vmem:[%s10278_s28 + $0x4] ss:$8 sps:$4 sm:$0xff]  }
 0x18c   : > { %v1061_v30 = vpop.f32.mrf.mxu0  ;;  %7091 = vmatprep.mubr.msk.bf16.mxu1 %vm1017_vm0, %v10285_v5  ;;  %7092 = vmatprep.mubr.msk.bf16.mxu0 %vm1017_vm0, %v10285_v5 }
 0x18d   : > { %v1156_v22 = vmax.f32 %v1060_v38, 0.0  ;;  %v1062_v42 = vadd.f32 %v1061_v30, %v1006_v17  ;;  %v10170_v23 = vmul.f32 %v10161_v37, %v1151_v2  ;;  %v1549_v38 = vld [vmem:[%s602_s17] sm:$0xff]  ;;  %v1550_v30 = vld [vmem:[%s602_s17 + $0x8] sm:$0xff] }
 0x18f   : > { %v10167_v19 = vmul.f32 %v10159_v41, %v1156_v22  ;;  %v1157_v12 = vmax.f32 %v1062_v42, 0.0 }
 0x191   : > { %v10173_v61 = vmul.f32 %v10161_v37, %v1157_v12  ;;  %v10177_v39 = vpack.i.bf16 %v10167_v19, %v10164_v36  ;;  %v1517_v3 = vpack.c.bf16 %v10167_v19, %v10164_v36 }
 0x193   : > { %7939 = vrot.lane.b32.xlu1 %v10177_v39, %s9422_s19  ;;  %v1518_v34 = vpack.c.bf16 %v10173_v61, %v10170_v23 }
 0x1a3   : > { %v1098_v11 = vpop.f32.mrf.mxu1 }
 0x1a4   : > { %v1099_v1 = vadd.f32 %v1098_v11, %v1001_v9 }
 0x1a5   : > { %v1100_v18 = vpop.f32.mrf.mxu1 }
 0x1a6   : > { %v1152_v13 = vmax.f32 %v1099_v1, 0.0  ;;  %v1101_v63 = vadd.f32 %v1100_v18, %v1001_v9 }
 0x1a7   : > { %v1102_v24 = vpop.f32.mrf.mxu1 }
 0x1a8   : > { %v1103_v20 = vadd.f32 %v1102_v24, %v1006_v17  ;;  %v10190_v35 = vmul.f32 %v10185_v4, %v1152_v13  ;;  %v1153_v7 = vmax.f32 %v1101_v63, 0.0 }
 0x1a9   : > { %v1104_v53 = vpop.f32.mrf.mxu1 }
 0x1aa   : > { %v1158_v57 = vmax.f32 %v1103_v20, 0.0  ;;  %v1105_v58 = vadd.f32 %v1104_v53, %v1006_v17  ;;  %v10203_v50 = vmul.f32 %v10187_v40, %v1153_v7 }
 0x1ac   : > { %v10193_v45 = vmul.f32 %v10185_v4, %v1158_v57  ;;  %v1159_v49 = vmax.f32 %v1105_v58, 0.0 }
 0x1ae   : > { %v10196_v28 = vmul.f32 %v10187_v40, %v1159_v49  ;;  %v10200_v6 = vpack.i.bf16 %v10193_v45, %v10190_v35 }
 0x1b0   : > { %7934 = vrot.lane.b32.xlu0 %v10200_v6, %s9422_s19  ;;  %7944 = vrot.lane.b32.xlu1 %v10200_v6, %s9423_s20  ;;  %v8013_v0 = vpack.i.bf16 %v10196_v28, %v10203_v50 }
 0x1b2   : > { %v1141_v29 = vpop.f32.mrf.mxu0 }
 0x1b3   : > { %v1142_v48 = vadd.f32 %v1141_v29, %v1001_v9 }
 0x1b4   : > { %7949 = vrot.lane.b32.xlu0 %v10177_v39, %s9423_s20  ;;  %7959 = vrot.lane.b32.xlu1 %v10177_v39, %s9424_s21  ;;  %v1143_v56 = vpop.f32.mrf.mxu0 }
 0x1b5   : > { %v1144_v44 = vadd.f32 %v1143_v56, %v1001_v9  ;;  %v1154_v26 = vmax.f32 %v1142_v48, 0.0 }
 0x1b6   : > { %v1145_v55 = vpop.f32.mrf.mxu0 }
 0x1b7   : > { %v1146_v62 = vadd.f32 %v1145_v55, %v1006_v17  ;;  %v1155_v21 = vmax.f32 %v1144_v44, 0.0  ;;  %v10232_v8 = vmul.f32 %v10155_v52, %v1154_v26 }
 0x1b8   : > { %7954 = vrot.lane.b32.xlu0 %v10200_v6, %s9424_s21  ;;  %7969 = vrot.lane.b32.xlu1 %v10177_v39, %s9426_s23  ;;  %v1147_v51 = vpop.f32.mrf.mxu0 }
 0x1b9   : > { %v1160_v47 = vmax.f32 %v1146_v62, 0.0  ;;  %v1148_v10 = vadd.f32 %v1147_v51, %v1006_v17  ;;  %v10235_v16 = vmul.f32 %v10157_v60, %v1155_v21  ;;  %v7993_v17 = vpack.i.bf16 %v10173_v61, %v10170_v23 }
 0x1bb   : > { %v1161_v25 = vmax.f32 %v1148_v10, 0.0  ;;  %v10226_v46 = vmul.f32 %v10155_v52, %v1160_v47 }
 0x1bc   : > { %7964 = vrot.lane.b32.xlu0 %v10177_v39, %s9425_s22  ;;  %7979 = vrot.lane.b32.xlu1 %v10177_v39, %s9428_s25 }
 0x1bd   : > { %v10229_v9 = vmul.f32 %v10157_v60, %v1161_v25  ;;  %v8043_v59 = vpack.i.bf16 %v10226_v46, %v10232_v8 }
 0x1bf   : > { %v8058_v33 = vpack.i.bf16 %v10229_v9, %v10235_v16 }
 0x1c0   : > { %7974 = vrot.lane.b32.xlu0 %v10177_v39, %s9427_s24  ;;  %7984 = vrot.lane.b32.xlu1 %v10200_v6, %s9429_s16 }
 0x1c4   : > { %7994 = vrot.lane.b32.xlu0 %v7993_v17, %s9423_s20  ;;  %7989 = vrot.lane.b32.xlu1 %v7993_v17, %s9422_s19 }
 0x1c8   : > { %8009 = vrot.lane.b32.xlu0 %v7993_v17, %s9426_s23  ;;  %7999 = vrot.lane.b32.xlu1 %v7993_v17, %s9424_s21 }
 0x1cc   : > { %8014 = vrot.lane.b32.xlu0 %v8013_v0, %s9422_s19  ;;  %8004 = vrot.lane.b32.xlu1 %v7993_v17, %s9425_s22 }
 0x1d0   : > { %8029 = vrot.lane.b32.xlu0 %v7993_v17, %s9428_s25  ;;  %8019 = vrot.lane.b32.xlu1 %v7993_v17, %s9427_s24 }
 0x1d4   : > { %8034 = vrot.lane.b32.xlu0 %v8013_v0, %s9424_s21  ;;  %8024 = vrot.lane.b32.xlu1 %v8013_v0, %s9423_s20 }
 0x1d8   : > { %8039 = vrot.lane.b32.xlu0 %v7993_v17, %s9429_s16  ;;  %8044 = vrot.lane.b32.xlu1 %v8043_v59, %s9422_s19 }
 0x1dc   : > { %8049 = vrot.lane.b32.xlu0 %v8043_v59, %s9423_s20  ;;  %8054 = vrot.lane.b32.xlu1 %v8043_v59, %s9424_s21 }
 0x1e0   : > { %8059 = vrot.lane.b32.xlu0 %v8058_v33, %s9425_s22  ;;  %8069 = vrot.lane.b32.xlu1 %v8058_v33, %s9426_s23 }
 0x1e4   : > { %8064 = vrot.lane.b32.xlu0 %v10177_v39, %s9429_s16  ;;  %8084 = vrot.lane.b32.xlu1 %v8013_v0, %s9425_s22 }
 0x1e8   : > { %8074 = vrot.lane.b32.xlu0 %v8058_v33, %s9427_s24  ;;  %8089 = vrot.lane.b32.xlu1 %v8058_v33, %s9428_s25 }
 0x1ec   : > { %8079 = vrot.lane.b32.xlu0 %v10200_v6, %s9425_s22  ;;  %8094 = vrot.lane.b32.xlu1 %v10200_v6, %s9426_s23 }
 0x1f0   : > { %8099 = vrot.lane.b32.xlu0 %v8013_v0, %s9426_s23  ;;  %8104 = vrot.lane.b32.xlu1 %v8058_v33, %s9422_s19 }
 0x1f4   : > { %8109 = vrot.lane.b32.xlu0 %v8058_v33, %s9423_s20  ;;  %8119 = vrot.lane.b32.xlu1 %v8013_v0, %s9427_s24 }
 0x1f8   : > { %8114 = vrot.lane.b32.xlu0 %v10200_v6, %s9427_s24  ;;  %8129 = vrot.lane.b32.xlu1 %v8058_v33, %s9424_s21 }
 0x1fc   : > { %8124 = vrot.lane.b32.xlu0 %v10200_v6, %s9428_s25  ;;  %8134 = vrot.lane.b32.xlu1 %v8013_v0, %s9428_s25 }
 0x200   : > { %8139 = vrot.lane.b32.xlu0 %v8043_v59, %s9425_s22  ;;  %8144 = vrot.lane.b32.xlu1 %v8013_v0, %s9429_s16 }
 0x204   : > { %8149 = vrot.lane.b32.xlu0 %v8043_v59, %s9429_s16  ;;  %8154 = vrot.lane.b32.xlu1 %v8043_v59, %s9426_s23 }
 0x205   : > { %v10312_v2 = vpop.permute.xlu1 %7939 }
 0x206   : > { %v13539_v13 = vunpack.i.h.bf16 %v10312_v2  ;;  %v13540_v53 = vunpack.i.l.bf16 %v10312_v2 }
 0x208   : > { %8159 = vrot.lane.b32.xlu0 %v8043_v59, %s9427_s24  ;;  %8164 = vrot.lane.b32.xlu1 %v8043_v59, %s9428_s25 }
 0x20c   : > { %8169 = vrot.lane.b32.xlu0 %v8058_v33, %s9429_s16  ;;  %1553 = vperm.xlu1 %7932, %v1549_v38  }
 0x210   : > { %1558 = vperm.xlu0 %7931, %v1550_v30  }
 0x222   : > { %v10314_v22 = vpop.permute.xlu0 %7934  ;;  %v10316_v42 = vpop.permute.xlu1 %7944 }
 0x223   : > { %v7937_v49 = vunpack.i.h.bf16 %v10314_v22  ;;  %v7936_v6 = vunpack.i.l.bf16 %v10314_v22  ;;  %v7946_v56 = vunpack.i.l.bf16 %v10316_v42  ;;  %v7947_v44 = vunpack.i.h.bf16 %v10316_v42 }
 0x226   : > { %v10318_v12 = vpop.permute.xlu0 %7949  ;;  %v10320_v39 = vpop.permute.xlu1 %7959 }
 0x227   : > { %v13536_v0 = vunpack.i.h.bf16 %v10318_v12  ;;  %v13538_v59 = vunpack.i.l.bf16 %v10318_v12 }
 0x22a   : > { %v10322_v11 = vpop.permute.xlu0 %7954  ;;  %v10324_v1 = vpop.permute.xlu1 %7969 }
 0x22b   : > { %v7957_v30 = vunpack.i.h.bf16 %v10322_v11  ;;  %v7956_v22 = vunpack.i.l.bf16 %v10322_v11 }
 0x22e   : > { %v10326_v54 = vpop.permute.xlu0 %7964  ;;  %v10328_v18 = vpop.permute.xlu1 %7979 }
 0x232   : > { %v10330_v43 = vpop.permute.xlu0 %7974  ;;  %v10332_v24 = vpop.permute.xlu1 %7984 }
 0x233   : > { %v7976_v42 = vunpack.i.l.bf16 %v10330_v43 }
 0x236   : > { %v7995_v63 = vpop.permute.xlu0 %7994  ;;  %v7990_v20 = vpop.permute.xlu1 %7989 }
 0x237   : > { %v7996_v57 = vunpack.i.l.bf16 %v7995_v63  ;;  %v7992_v58 = vunpack.i.h.bf16 %v7990_v20  ;;  %v7991_v7 = vunpack.i.l.bf16 %v7990_v20  ;;  %v7997_v29 = vunpack.i.h.bf16 %v7995_v63 }
 0x239   : > { %v1453_v55 = vsel %vm890_vm1, %v13540_v53, %v7991_v7  ;;  %v1454_v48 = vsel %vm890_vm1, %v13539_v13, %v7992_v58  ;;  %v1451_v47 = vsel %vm890_vm1, %v7991_v7, %v7936_v6  ;;  %v1452_v10 = vsel %vm890_vm1, %v7992_v58, %v7937_v49 }
 0x23a   : > { %v10348_v62 = vpop.permute.xlu0 %8009  ;;  %v8000_v51 = vpop.permute.xlu1 %7999  ;;  %v1535_v25 = vpack.c.bf16 %v1454_v48, %v1453_v55  ;;  %v1415_v17 = vsel %vm853_vm2, %v7996_v57, %v7946_v56  ;;  %v1536_v33 = vpack.c.bf16 %v1452_v10, %v1451_v47  ;;  %v1416_v38 = vsel %vm853_vm2, %v7997_v29, %v7947_v44 }
 0x23b   : > { %v8002_v26 = vunpack.i.h.bf16 %v8000_v51  ;;  %v8001_v21 = vunpack.i.l.bf16 %v8000_v51  ;;  %v1417_v63 = vsel %vm853_vm2, %v13538_v59, %v7996_v57  ;;  %v1418_v20 = vsel %vm853_vm2, %v13536_v0, %v7997_v29 }
 0x23c   : > { %1573 = vmatprep.subr.bf16.mxu1 %v1536_v33  ;;  %v1530_v55 = vpack.c.bf16 %v1416_v38, %v1415_v17  ;;  %v13537_v51 = vunpack.i.h.bf16 %v10320_v39  ;;  %v13535_v29 = vunpack.i.l.bf16 %v10320_v39  ;;  %v1529_v47 = vpack.c.bf16 %v1418_v20, %v1417_v63 }
 0x23d   : > { %1574 = vmatpush1.bf16.msra.mxu1 %v1535_v25  ;;  %v1379_v48 = vsel %vm816_vm3, %v8001_v21, %v7956_v22  ;;  %v1380_v57 = vsel %vm816_vm3, %v8002_v26, %v7957_v30  ;;  %v7967_v63 = vunpack.i.h.bf16 %v10326_v54  ;;  %v7972_v59 = vunpack.i.h.bf16 %v10324_v1 }
 0x23e   : > { %v8015_v58 = vpop.permute.xlu0 %8014  ;;  %v10374_v7 = vpop.permute.xlu1 %8004  ;;  %1575 = vmatprep.subr.bf16.mxu1 %v1530_v55  ;;  %v1381_v10 = vsel %vm816_vm3, %v13535_v29, %v8001_v21  ;;  %v1382_v25 = vsel %vm816_vm3, %v13537_v51, %v8002_v26  ;;  %v1524_v38 = vpack.c.bf16 %v1380_v57, %v1379_v48  ;;  %v7966_v21 = vunpack.i.l.bf16 %v10326_v54 }
 0x23f   : > { %v13541_v32 = vunpack.i.h.bf16 %v10374_v7  ;;  %v13543_v55 = vunpack.i.l.bf16 %v10374_v7  ;;  %v8017_v20 = vunpack.i.h.bf16 %v8015_v58  ;;  %v1523_v31 = vpack.c.bf16 %v1382_v25, %v1381_v10 }
 0x240   : > { %v8016_v29 = vunpack.i.l.bf16 %v8015_v58  ;;  %v7971_v13 = vunpack.i.l.bf16 %v10324_v1  ;;  %v13582_v1 = vunpack.i.l.bf16 %v10328_v18 }
 0x241   : > { %1576 = vmatpush1.bf16.msra.mxu1 %v1529_v47  ;;  %v1345_v48 = vsel %vm779_vm4, %v7966_v21, %v13543_v55  ;;  %v1346_v57 = vsel %vm779_vm4, %v7967_v63, %v13541_v32 }
 0x242   : > { %v10394_v17 = vpop.permute.xlu0 %8029  ;;  %v10396_v33 = vpop.permute.xlu1 %8019  ;;  %1577 = vmatprep.subr.bf16.mxu1 %v1524_v38  ;;  %v1449_v58 = vsel %vm890_vm1, %v7936_v6, %v8016_v29  ;;  %v1512_v51 = vpack.c.bf16 %v1346_v57, %v1345_v48  ;;  %v13547_v6 = vunpack.i.h.bf16 %v10348_v62 }
 0x245   : > { %1578 = vmatpush1.bf16.msra.mxu1 %v1523_v31  ;;  %v1450_v31 = vsel %vm890_vm1, %v7937_v49, %v8017_v20 }
 0x246   : > { %v8035_v0 = vpop.permute.xlu0 %8034  ;;  %v8025_v26 = vpop.permute.xlu1 %8024  ;;  %1579 = vmatprep.subr.bf16.mxu1 %v1518_v34 }
 0x247   : > { %v8027_v47 = vunpack.i.h.bf16 %v8025_v26  ;;  %v8026_v10 = vunpack.i.l.bf16 %v8025_v26  ;;  %v13545_v26 = vunpack.i.l.bf16 %v10348_v62  ;;  %v8037_v48 = vunpack.i.h.bf16 %v8035_v0 }
 0x248   : > { %v8036_v57 = vunpack.i.l.bf16 %v8035_v0 }
 0x249   : > { %1580 = vmatpush1.bf16.msra.mxu1 %v1517_v3  ;;  %v1537_v3 = vpack.c.bf16 %v1450_v31, %v1449_v58  ;;  %v1413_v53 = vsel %vm853_vm2, %v7946_v56, %v8026_v10  ;;  %v7977_v56 = vunpack.i.h.bf16 %v10330_v43  ;;  %v1310_v58 = vsel %vm742_vm5, %v7972_v59, %v13547_v6 }
 0x24a   : > { %v10421_v25 = vpop.permute.xlu0 %8039  ;;  %v10423_v38 = vpop.permute.xlu1 %8044  ;;  %1581 = vmatprep.subr.bf16.mxu1 %v1512_v51  ;;  %v1414_v51 = vsel %vm853_vm2, %v7947_v44, %v8027_v47  ;;  %v1309_v44 = vsel %vm742_vm5, %v7971_v13, %v13545_v26  ;;  %v8021_v26 = vunpack.i.l.bf16 %v10396_v33  ;;  %v1378_v34 = vsel %vm816_vm3, %v7957_v30, %v8037_v48 }
 0x24b   : > { %v13544_v23 = vunpack.i.h.bf16 %v10423_v38  ;;  %v13542_v61 = vunpack.i.l.bf16 %v10423_v38  ;;  %v8042_v30 = vunpack.i.h.bf16 %v10421_v25 }
 0x24c   : > { %v1273_v54 = vsel %vm705_vm6, %v7976_v42, %v8021_v26 }
 0x24d   : > { %v1447_v36 = vsel %vm890_vm1, %v8016_v29, %v13542_v61  ;;  %v1448_v19 = vsel %vm890_vm1, %v8017_v20, %v13544_v23  ;;  %v8022_v23 = vunpack.i.h.bf16 %v10396_v33 }
 0x24e   : > { %v10452_v32 = vpop.permute.xlu0 %8049  ;;  %v10454_v29 = vpop.permute.xlu1 %8054  ;;  %v1538_v61 = vpack.c.bf16 %v1448_v19, %v1447_v36 }
 0x24f   : > { %v13548_v55 = vunpack.i.h.bf16 %v10452_v32  ;;  %v13546_v20 = vunpack.i.l.bf16 %v10452_v32  ;;  %v13550_v0 = vunpack.i.h.bf16 %v10454_v29  ;;  %v13549_v31 = vunpack.i.l.bf16 %v10454_v29 }
 0x250   : > { %1616 = vmatprep.subr.bf16.mxu0 %v1538_v61 }
 0x251   : > { %1617 = vmatpush1.bf16.msra.mxu0 %v1537_v3  ;;  %v1411_v36 = vsel %vm853_vm2, %v8026_v10, %v13546_v20  ;;  %v1412_v61 = vsel %vm853_vm2, %v8027_v47, %v13548_v55  ;;  %v1375_v19 = vsel %vm816_vm3, %v8036_v57, %v13549_v31  ;;  %v1376_v3 = vsel %vm816_vm3, %v8037_v48, %v13550_v0 }
 0x252   : > { %v10490_v10 = vpop.permute.xlu0 %8059  ;;  %v10492_v20 = vpop.permute.xlu1 %8069  ;;  %v1532_v6 = vpack.c.bf16 %v1412_v61, %v1411_v36  ;;  %v1531_v47 = vpack.c.bf16 %v1414_v51, %v1413_v53  ;;  %v1377_v0 = vsel %vm816_vm3, %v7956_v22, %v8036_v57  ;;  %v1526_v53 = vpack.c.bf16 %v1376_v3, %v1375_v19 }
 0x253   : > { %v13553_v55 = vunpack.i.h.bf16 %v10490_v10  ;;  %v8061_v15 = vunpack.i.l.bf16 %v10490_v10  ;;  %v13551_v31 = vunpack.i.h.bf16 %v10492_v20  ;;  %v13552_v14 = vunpack.i.l.bf16 %v10492_v20 }
 0x254   : > { %1618 = vmatprep.subr.bf16.mxu0 %v1532_v6  ;;  %v1506_v51 = vpack.c.bf16 %v1310_v58, %v1309_v44  ;;  %v8032_v36 = vunpack.i.h.bf16 %v10394_v17  ;;  %v8031_v61 = vunpack.i.l.bf16 %v10394_v17  ;;  %v8041_v22 = vunpack.i.l.bf16 %v10421_v25 }
 0x255   : > { %v1347_v49 = vsel %vm779_vm4, %v8061_v15, %v7966_v21  ;;  %v1348_v11 = vsel %vm779_vm4, %v13553_v55, %v7967_v63  ;;  %1619 = vmatpush1.bf16.msra.mxu0 %v1531_v47  ;;  %v1311_v63 = vsel %vm742_vm5, %v13552_v14, %v7971_v13  ;;  %v1312_v21 = vsel %vm742_vm5, %v13551_v31, %v7972_v59 }
 0x256   : > { %v10522_v6 = vpop.permute.xlu0 %8064  ;;  %v10524_v48 = vpop.permute.xlu1 %8084  ;;  %1620 = vmatprep.subr.bf16.mxu0 %v1526_v53  ;;  %v1511_v57 = vpack.c.bf16 %v1348_v11, %v1347_v49  ;;  %v1525_v25 = vpack.c.bf16 %v1378_v34, %v1377_v0  ;;  %v1274_v49 = vsel %vm705_vm6, %v7977_v56, %v8022_v23  ;;  %v7987_v44 = vunpack.i.h.bf16 %v10332_v24 }
 0x257   : > { %v7986_v58 = vunpack.i.l.bf16 %v10332_v24  ;;  %v1237_v13 = vsel %vm668_vm7, %v13582_v1, %v8031_v61  ;;  %v13583_v59 = vunpack.i.h.bf16 %v10328_v18  ;;  %v13584_v3 = vpack.c.bf16 %v10196_v28, %v10203_v50 }
 0x258   : > { %1582 = vmatpush1.bf16.msra.mxu1 %v1511_v57  ;;  %v1505_v47 = vpack.c.bf16 %v1312_v21, %v1311_v63  ;;  %v1500_v53 = vpack.c.bf16 %v1274_v49, %v1273_v54  ;;  %v1488_v11 = vsel %vm927_vm8, %v8042_v30, %v7987_v44  ;;  %v13554_v50 = vunpack.i.h.bf16 %v10522_v6 }
 0x259   : > { %1583 = vmatprep.subr.bf16.mxu1 %v1506_v51  ;;  %1621 = vmatpush1.bf16.msra.mxu0 %v1525_v25  ;;  %v1238_v34 = vsel %vm668_vm7, %v13583_v59, %v8032_v36  ;;  %v1487_v51 = vsel %vm927_vm8, %v8041_v22, %v7986_v58  ;;  %v13555_v54 = vunpack.i.l.bf16 %v10522_v6  ;;  %v13585_v49 = vpack.c.bf16 %v10193_v45, %v10190_v35 }
 0x25a   : > { %v10560_v0 = vpop.permute.xlu0 %8074  ;;  %v10562_v19 = vpop.permute.xlu1 %8089  ;;  %1622 = vmatprep.subr.bf16.mxu0 %v13584_v3  ;;  %v1494_v31 = vpack.c.bf16 %v1238_v34, %v1237_v13  ;;  %v1542_v14 = vpack.c.bf16 %v1488_v11, %v1487_v51  ;;  %v13586_v55 = vunpack.i.l.bf16 %v10328_v18  ;;  %v1490_v34 = vsel %vm927_vm8, %v13554_v50, %v8042_v30 }
 0x25b   : > { %v8077_v57 = vunpack.i.h.bf16 %v10560_v0  ;;  %v8076_v25 = vunpack.i.l.bf16 %v10560_v0  ;;  %v8092_v1 = vunpack.i.h.bf16 %v10562_v19  ;;  %v8091_v28 = vunpack.i.l.bf16 %v10562_v19 }
 0x25c   : > { %1584 = vmatpush1.bf16.msra.mxu1 %v1505_v47  ;;  %v1489_v13 = vsel %vm927_vm8, %v13555_v54, %v8041_v22  ;;  %v13589_v11 = vunpack.i.h.bf16 %v10374_v7  ;;  %v13609_v19 = vunpack.i.l.bf16 %v10522_v6 }
 0x25d   : > { %v1275_v63 = vsel %vm705_vm6, %v8076_v25, %v7976_v42  ;;  %v1276_v21 = vsel %vm705_vm6, %v8077_v57, %v7977_v56  ;;  %1585 = vmatprep.subr.bf16.mxu1 %v1500_v53  ;;  %1623 = vmatpush1.bf16.msra.mxu0 %v13585_v49  ;;  %v1239_v43 = vsel %vm668_vm7, %v8091_v28, %v13586_v55  ;;  %v13587_v42 = vunpack.i.h.bf16 %v10328_v18 }
 0x25e   : > { %v8080_v59 = vpop.permute.xlu0 %8079  ;;  %v8095_v3 = vpop.permute.xlu1 %8094  ;;  %v1499_v47 = vpack.c.bf16 %v1276_v21, %v1275_v63  ;;  %v8087_v55 = vunpack.i.h.bf16 %v10524_v48  ;;  %v8086_v18 = vunpack.i.l.bf16 %v10524_v48  ;;  %v13588_v53 = vunpack.i.l.bf16 %v10374_v7 }
 0x25f   : > { %v1240_v35 = vsel %vm668_vm7, %v8092_v1, %v13587_v42  ;;  %v8082_v45 = vunpack.i.h.bf16 %v8080_v59  ;;  %v8081_v56 = vunpack.i.l.bf16 %v8080_v59  ;;  %v8097_v63 = vunpack.i.h.bf16 %v8095_v3 }
 0x260   : > { %1586 = vmatpush1.bf16.msra.mxu1 %v1499_v47  ;;  %v8096_v21 = vunpack.i.l.bf16 %v8095_v3  ;;  %v1493_v59 = vpack.c.bf16 %v1240_v35, %v1239_v43  ;;  %v13590_v43 = vunpack.i.h.bf16 %v10348_v62 }
 0x261   : > { %v1343_v51 = vsel %vm779_vm4, %v13588_v53, %v8081_v56  ;;  %v1344_v22 = vsel %vm779_vm4, %v13589_v11, %v8082_v45  ;;  %1587 = vmatprep.subr.bf16.mxu1 %v1494_v31  ;;  %v1341_v47 = vsel %vm779_vm4, %v8081_v56, %v8086_v18  ;;  %v1342_v7 = vsel %vm779_vm4, %v8082_v45, %v8087_v55 }
 0x262   : > { %v10624_v49 = vpop.permute.xlu0 %8099  ;;  %v8105_v30 = vpop.permute.xlu1 %8104  ;;  %v1513_v42 = vpack.c.bf16 %v1344_v22, %v1343_v51  ;;  %v1514_v50 = vpack.c.bf16 %v1342_v7, %v1341_v47  ;;  %v1308_v35 = vsel %vm742_vm5, %v13590_v43, %v8097_v63  ;;  %v13591_v56 = vunpack.i.l.bf16 %v10348_v62 }
 0x263   : > { %v8102_v53 = vunpack.i.h.bf16 %v10624_v49  ;;  %v8101_v3 = vunpack.i.l.bf16 %v10624_v49  ;;  %v8107_v31 = vunpack.i.h.bf16 %v8105_v30  ;;  %v8106_v11 = vunpack.i.l.bf16 %v8105_v30 }
 0x264   : > { %1588 = vmatpush1.bf16.msra.mxu1 %v1493_v59  ;;  %v1307_v54 = vsel %vm742_vm5, %v13591_v56, %v8096_v21  ;;  %1624 = vmatprep.subr.bf16.mxu0 %v1514_v50  ;;  %v1541_v62 = vpack.c.bf16 %v1490_v34, %v1489_v13  ;;  %v13592_v47 = vunpack.i.l.bf16 %v10312_v2  ;;  %v13593_v7 = vunpack.i.h.bf16 %v10312_v2 }
 0x265   : > { %1603 = vmatprep.subr.bf16.mxu1 %v1542_v14  ;;  %v1305_v45 = vsel %vm742_vm5, %v8096_v21, %v8101_v3  ;;  %v1306_v51 = vsel %vm742_vm5, %v8097_v63, %v8102_v53  ;;  %v13594_v43 = vunpack.i.l.bf16 %v10423_v38  ;;  %v13595_v63 = vunpack.i.h.bf16 %v10423_v38  ;;  %1625 = vmatpush1.bf16.msra.mxu0 %v1513_v42 }
 0x266   : > { %v8110_v22 = vpop.permute.xlu0 %8109  ;;  %v10652_v30 = vpop.permute.xlu1 %8119  ;;  %v1508_v59 = vpack.c.bf16 %v1306_v51, %v1305_v45  ;;  %v1455_v14 = vsel %vm890_vm1, %v8106_v11, %v13592_v47  ;;  %v1456_v21 = vsel %vm890_vm1, %v8107_v31, %v13593_v7  ;;  %v10671_v45 = vld [vmem:[%s10278_s28] ss:$8 sps:$4 sm:$0xff]   ;;  %v1507_v2 = vpack.c.bf16 %v1308_v35, %v1307_v54  ;;  %s9432_s28 = smov 10  }
 0x267   : > { %v1445_v50 = vsel %vm890_vm1, %v13594_v43, %v8106_v11  ;;  %v1446_v13 = vsel %vm890_vm1, %v13595_v63, %v8107_v31  ;;  %v8112_v34 = vunpack.i.h.bf16 %v8110_v22  ;;  %v8111_v56 = vunpack.i.l.bf16 %v8110_v22 }
 0x268   : > { %1604 = vmatpush2.bf16.msra.mxu1 %v1541_v62  ;;  %1626 = vmatprep.subr.bf16.mxu0 %v1508_v59  ;;  %v1540_v51 = vpack.c.bf16 %v1456_v21, %v1455_v14  ;;  %v13596_v47 = vunpack.i.l.bf16 %v10452_v32  ;;  %v13597_v11 = vunpack.i.h.bf16 %v10452_v32  ;;  %v13598_v42 = vunpack.i.l.bf16 %v10318_v12 }
 0x269   : > { %v13599_v22 = vunpack.i.h.bf16 %v10318_v12  ;;  %v1539_v59 = vpack.c.bf16 %v1446_v13, %v1445_v50  ;;  %1627 = vmatpush1.bf16.msra.mxu0 %v1507_v2 }
 0x26a   : > { %v1409_v7 = vsel %vm853_vm2, %v13596_v47, %v8111_v56  ;;  %v1410_v38 = vsel %vm853_vm2, %v13597_v11, %v8112_v34  ;;  %v1419_v31 = vsel %vm853_vm2, %v8111_v56, %v13598_v42  ;;  %1659 = vmatprep.subr.bf16.mxu1 %v1540_v51  ;;  %v8115_v35 = vpop.permute.xlu0 %8114  ;;  %v8130_v62 = vpop.permute.xlu1 %8129  ;;  %v8122_v47 = vunpack.i.h.bf16 %v10652_v30 }
 0x26b   : > { %v1420_v54 = vsel %vm853_vm2, %v8112_v34, %v13599_v22  ;;  %v8117_v32 = vunpack.i.h.bf16 %v8115_v35  ;;  %v8116_v21 = vunpack.i.l.bf16 %v8115_v35  ;;  %v8132_v43 = vunpack.i.h.bf16 %v8130_v62  ;;  %1606 = vmatmul.mubr.bf16.vlgmr.msra.gmra.mxu1 %v10671_v45 }
 0x26c   : > { %v1534_v14 = vpack.c.bf16 %v1420_v54, %v1419_v31  ;;  %v8131_v63 = vunpack.i.l.bf16 %v8130_v62  ;;  %v8121_v56 = vunpack.i.l.bf16 %v10652_v30  ;;  %1660 = vmatpush1.bf16.msra.mxu1 %v1539_v59  ;;  %v1533_v12 = vpack.c.bf16 %v1410_v38, %v1409_v7  ;;  %7093 = vmatprep.mubr.msk.bf16.mxu1 %vm1017_vm0, %v10285_v5 }
 0x26d   : > { %v1271_v50 = vsel %vm705_vm6, %v8021_v26, %v8116_v21  ;;  %v1272_v13 = vsel %vm705_vm6, %v8022_v23, %v8117_v32  ;;  %v13600_v34 = vunpack.i.l.bf16 %v10454_v29  ;;  %v13601_v51 = vunpack.i.h.bf16 %v10454_v29 }
 0x26e   : > { %1661 = vmatprep.subr.bf16.mxu1 %v1534_v14  ;;  %v8125_v7 = vpop.permute.xlu0 %8124  ;;  %v10710_v11 = vpop.permute.xlu1 %8134  ;;  %v1269_v33 = vsel %vm705_vm6, %v8116_v21, %v8121_v56  ;;  %v1270_v23 = vsel %vm705_vm6, %v8117_v32, %v8122_v47  ;;  %v1501_v26 = vpack.c.bf16 %v1272_v13, %v1271_v50  ;;  %v13602_v29 = vunpack.i.l.bf16 %v10320_v39 }
 0x26f   : > { %v1373_v2 = vsel %vm816_vm3, %v13600_v34, %v8131_v63  ;;  %v1374_v5 = vsel %vm816_vm3, %v13601_v51, %v8132_v43  ;;  %v8127_v42 = vunpack.i.h.bf16 %v8125_v7  ;;  %v8126_v31 = vunpack.i.l.bf16 %v8125_v7 }
 0x270   : > { %v1383_v38 = vsel %vm816_vm3, %v8131_v63, %v13602_v29  ;;  %v8137_v22 = vunpack.i.h.bf16 %v10710_v11  ;;  %v8136_v54 = vunpack.i.l.bf16 %v10710_v11  ;;  %v1502_v35 = vpack.c.bf16 %v1270_v23, %v1269_v33  ;;  %1662 = vmatpush1.bf16.msra.mxu1 %v1533_v12 }
 0x271   : > { %v13603_v62 = vunpack.i.h.bf16 %v10320_v39  ;;  %v1235_v14 = vsel %vm668_vm7, %v8031_v61, %v8126_v31  ;;  %v1236_v32 = vsel %vm668_vm7, %v8032_v36, %v8127_v42  ;;  %v1527_v61 = vpack.c.bf16 %v1374_v5, %v1373_v2 }
 0x272   : > { %v1233_v63 = vsel %vm668_vm7, %v8126_v31, %v8136_v54  ;;  %1628 = vmatprep.subr.bf16.mxu0 %v1502_v35  ;;  %v8140_v39 = vpop.permute.xlu0 %8139  ;;  %v8145_v12 = vpop.permute.xlu1 %8144  ;;  %v1495_v50 = vpack.c.bf16 %v1236_v32, %v1235_v14  ;;  %v13604_v2 = vpack.c.bf16 %v10229_v9, %v10235_v16  ;;  %v13605_v9 = vunpack.i.h.bf16 %v10490_v10 }
 0x273   : > { %v1384_v59 = vsel %vm816_vm3, %v8132_v43, %v13603_v62  ;;  %v1234_v43 = vsel %vm668_vm7, %v8127_v42, %v8137_v22  ;;  %1629 = vmatpush1.bf16.msra.mxu0 %v1501_v26  ;;  %v8142_v17 = vunpack.i.h.bf16 %v8140_v39  ;;  %v8141_v36 = vunpack.i.l.bf16 %v8140_v39 }
 0x274   : > { %v1528_v21 = vpack.c.bf16 %v1384_v59, %v1383_v38  ;;  %v8147_v13 = vunpack.i.h.bf16 %v8145_v12  ;;  %v8146_v34 = vunpack.i.l.bf16 %v8145_v12  ;;  %v1496_v51 = vpack.c.bf16 %v1234_v43, %v1233_v63 }
 0x275   : > { %v1339_v7 = vsel %vm779_vm4, %v8086_v18, %v8141_v36  ;;  %v1340_v33 = vsel %vm779_vm4, %v8087_v55, %v8142_v17  ;;  %v1337_v55 = vsel %vm779_vm4, %v8141_v36, %v8061_v15  ;;  %v1338_v16 = vsel %vm779_vm4, %v8142_v17, %v13605_v9 }
 0x276   : > { %1663 = vmatprep.subr.bf16.mxu1 %v1528_v21  ;;  %v1485_v5 = vsel %vm927_vm8, %v7986_v58, %v8146_v34  ;;  %v1486_v23 = vsel %vm927_vm8, %v7987_v44, %v8147_v13  ;;  %1630 = vmatprep.subr.bf16.mxu0 %v1496_v51  ;;  %v8150_v18 = vpop.permute.xlu0 %8149  ;;  %v8155_v48 = vpop.permute.xlu1 %8154  ;;  %v13606_v44 = vpack.c.bf16 %v10226_v46, %v10232_v8  ;;  %v13607_v14 = vunpack.i.l.bf16 %v10492_v20 }
 0x277   : > { %1664 = vmatpush1.bf16.msra.mxu1 %v1527_v61  ;;  %1631 = vmatpush1.bf16.msra.mxu0 %v1495_v50  ;;  %v8152_v58 = vunpack.i.h.bf16 %v8150_v18  ;;  %v8151_v26 = vunpack.i.l.bf16 %v8150_v18  ;;  %v8157_v24 = vunpack.i.h.bf16 %v8155_v48  ;;  %v8156_v29 = vunpack.i.l.bf16 %v8155_v48 }
 0x278   : > { %1665 = vmatprep.subr.bf16.mxu1 %v13604_v2  ;;  %v1516_v38 = vpack.c.bf16 %v1338_v16, %v1337_v55  ;;  %v1515_v42 = vpack.c.bf16 %v1340_v33, %v1339_v7  ;;  %v1543_v10 = vpack.c.bf16 %v1486_v23, %v1485_v5  ;;  %v13608_v46 = vunpack.i.h.bf16 %v10492_v20 }
 0x279   : > { %v1483_v31 = vsel %vm927_vm8, %v8146_v34, %v8151_v26  ;;  %v1484_v15 = vsel %vm927_vm8, %v8147_v13, %v8152_v58  ;;  %v1301_v32 = vsel %vm742_vm5, %v8156_v29, %v13607_v14  ;;  %v1304_v21 = vsel %vm742_vm5, %v8102_v53, %v8157_v24 }
 0x27a   : > { %v8160_v35 = vpop.permute.xlu0 %8159  ;;  %v8165_v62 = vpop.permute.xlu1 %8164  ;;  %v1544_v59 = vpack.c.bf16 %v1484_v15, %v1483_v31  ;;  %v1302_v8 = vsel %vm742_vm5, %v8157_v24, %v13608_v46  ;;  %v1303_v63 = vsel %vm742_vm5, %v8101_v3, %v8156_v29 }
 0x27b   : > { %1666 = vmatpush1.bf16.msra.mxu1 %v13606_v44  ;;  %v8162_v39 = vunpack.i.h.bf16 %v8160_v35  ;;  %v8161_v12 = vunpack.i.l.bf16 %v8160_v35  ;;  %v8167_v43 = vunpack.i.h.bf16 %v8165_v62  ;;  %v8166_v61 = vunpack.i.l.bf16 %v8165_v62 }
 0x27c   : > { %1667 = vmatprep.subr.bf16.mxu1 %v1516_v38  ;;  %1646 = vmatprep.subr.bf16.mxu0 %v1544_v59  ;;  %v1510_v20 = vpack.c.bf16 %v1302_v8, %v1301_v32  ;;  %v1509_v50 = vpack.c.bf16 %v1304_v21, %v1303_v63 }
 0x27d   : > { %1647 = vmatpush2.bf16.msra.mxu0 %v1543_v10  ;;  %v1265_v53 = vsel %vm705_vm6, %v8161_v12, %v8076_v25  ;;  %v1266_v49 = vsel %vm705_vm6, %v8162_v39, %v8077_v57  ;;  %v1267_v3 = vsel %vm705_vm6, %v8121_v56, %v8161_v12  ;;  %v1268_v36 = vsel %vm705_vm6, %v8122_v47, %v8162_v39 }
 0x27e   : > { %v8170_v17 = vpop.permute.xlu0 %8169  ;;  %v1504_v13 = vpack.c.bf16 %v1266_v49, %v1265_v53  ;;  %v1229_v0 = vsel %vm668_vm7, %v8166_v61, %v8091_v28  ;;  %v1230_v57 = vsel %vm668_vm7, %v8167_v43, %v8092_v1  ;;  %v1503_v25 = vpack.c.bf16 %v1268_v36, %v1267_v3 }
 0x27f   : > { %1668 = vmatpush1.bf16.msra.mxu1 %v1515_v42  ;;  %v8172_v34 = vunpack.i.h.bf16 %v8170_v17  ;;  %v8171_v51 = vunpack.i.l.bf16 %v8170_v17  ;;  %v1231_v30 = vsel %vm668_vm7, %v8136_v54, %v8166_v61  ;;  %v1232_v47 = vsel %vm668_vm7, %v8137_v22, %v8167_v43 }
 0x280   : > { %1669 = vmatprep.subr.bf16.mxu1 %v1510_v20  ;;  %1649 = vmatmul.mubr.bf16.vlgmr.msra.gmra.mxu0 %v10671_v45  ;;  %v1498_v56 = vpack.c.bf16 %v1230_v57, %v1229_v0  ;;  %v13610_v28 = vunpack.i.h.bf16 %v10522_v6  ;;  %v1497_v54 = vpack.c.bf16 %v1232_v47, %v1231_v30 }
 0x281   : > { %v1491_v1 = vsel %vm927_vm8, %v8171_v51, %v13609_v19  ;;  %v1481_v11 = vsel %vm927_vm8, %v8151_v26, %v8171_v51  ;;  %v1482_v22 = vsel %vm927_vm8, %v8152_v58, %v8172_v34 }
 0x282   : > { %v1492_v7 = vsel %vm927_vm8, %v8172_v34, %v13610_v28  ;;  %v1545_v2 = vpack.c.bf16 %v1482_v22, %v1481_v11 }
 0x283   : > { %1670 = vmatpush1.bf16.msra.mxu1 %v1509_v50  ;;  %v1546_v33 = vpack.c.bf16 %v1492_v7, %v1491_v1 }
 0x284   : > { %1671 = vmatprep.subr.bf16.mxu1 %v1504_v13 }
 0x287   : > { %1672 = vmatpush1.bf16.msra.mxu1 %v1503_v25  ;;  %v10851_v6 = vpop.permute.xlu1 %1553 }
 0x288   : > { %1673 = vmatprep.subr.bf16.mxu1 %v1498_v56 }
 0x28b   : > { %1674 = vmatpush1.bf16.msra.mxu1 %v1497_v54  ;;  %v10855_v9 = vpop.permute.xlu0 %1558 }
 0x28c   : > { %1689 = vmatprep.subr.bf16.mxu1 %v1546_v33 }
 0x28f   : > { %1690 = vmatpush2.bf16.msra.mxu1 %v1545_v2 }
 0x292   : > { %1692 = vmatmul.mubr.bf16.vlgmr.msra.gmra.mxu1 %v10671_v45 }
 0x32b   : > { %v1607_v5 = vpop.f32.mrf.mxu1 }
 0x32c   : > { %v1608_v23 = vadd.f32 %v1607_v5, %v10851_v6 }
 0x32d   : > { %v1609_v18 = vpop.f32.mrf.mxu1 }
 0x32e   : > { %vm1702_vm9 = vcmp.gt.f32.partialorder %v1608_v23, 0.0  ;;  %v1714_v48 = vmul.f32 0.25, %v1608_v23  ;;  %v1610_v55 = vadd.f32 %v1609_v18, %v10851_v6 }
 0x32f   : > { %v1611_v45 = vpop.f32.mrf.mxu1 }
 0x330   : > { %v1612_v16 = vadd.f32 %v1611_v45, %v10855_v9  ;;  %v1726_v58 = vsel %vm1702_vm9, %v1608_v23, %v1714_v48  ;;  %v1715_v24 = vmul.f32 0.25, %v1610_v55  ;;  %vm1703_vm11 = vcmp.gt.f32.partialorder %v1610_v55, 0.0 }
 0x331   : > { %v1613_v26 = vpop.f32.mrf.mxu1  ;;  %v10860_v31 = vmul.f32 %v1726_v58, %v10159_v41 }
 0x332   : > { %vm1708_vm10 = vcmp.gt.f32.partialorder %v1612_v16, 0.0  ;;  %v1720_v29 = vmul.f32 0.25, %v1612_v16  ;;  %v1614_v44 = vadd.f32 %v1613_v26, %v10855_v9  ;;  %v1727_v10 = vsel %vm1703_vm11, %v1610_v55, %v1715_v24 }
 0x333   : > { %v10873_v14 = vmul.f32 %v1727_v10, %v10161_v37  ;;  %v10996_v10 = vld [vmem:[%s10849_s18 + $0x4] ss:$8 sps:$4 sm:$0xff]  }
 0x334   : > { %v1732_v38 = vsel %vm1708_vm10, %v1612_v16, %v1720_v29  ;;  %vm1709_vm12 = vcmp.gt.f32.partialorder %v1614_v44, 0.0  ;;  %v1721_v42 = vmul.f32 0.25, %v1614_v44  ;;  %7098 = vmatprep.mubr.msk.bf16.mxu0 %vm1017_vm0, %v10996_v10  ;;  %7100 = vmatprep.mubr.msk.bf16.mxu1 %vm1017_vm0, %v10996_v10 }
 0x335   : > { %v10863_v15 = vmul.f32 %v1732_v38, %v10159_v41 }
 0x336   : > { %v1733_v35 = vsel %vm1709_vm12, %v1614_v44, %v1721_v42 }
 0x337   : > { %v10866_v62 = vmul.f32 %v1733_v35, %v10161_v37  ;;  %v10870_v59 = vpack.i.bf16 %v10863_v15, %v10860_v31  ;;  %v2062_v46 = vpack.c.bf16 %v10863_v15, %v10860_v31  ;;  %v10893_v8 = vadd.f32 %v10863_v15, %v10860_v31 }
 0x339   : > { %8179 = vrot.lane.b32.xlu0 %v10870_v59, %s9423_s20  ;;  %8174 = vrot.lane.b32.xlu1 %v10870_v59, %s9422_s19  ;;  %v10881_v41 = vpack.i.bf16 %v10866_v62, %v10873_v14  ;;  %v2063_v32 = vpack.c.bf16 %v10866_v62, %v10873_v14  ;;  %v10889_v37 = vadd.f32 %v10866_v62, %v10873_v14 }
 0x33d   : > { %8194 = vrot.lane.b32.xlu0 %v10881_v41, %s9423_s20  ;;  %8184 = vrot.lane.b32.xlu1 %v10870_v59, %s9424_s21 }
 0x340   : > { %v1650_v21 = vpop.f32.mrf.mxu0 }
 0x341   : > { %v1651_v63 = vadd.f32 %v1650_v21, %v10851_v6  ;;  %8189 = vrot.lane.b32.xlu1 %v10881_v41, %s9422_s19  ;;  %v2097_v21 = vld [vmem:[%s612_s15 + $0x8] sm:$0xff] }
 0x342   : > { %v1652_v39 = vpop.f32.mrf.mxu0 }
 0x343   : > { %vm1704_vm13 = vcmp.gt.f32.partialorder %v1651_v63, 0.0  ;;  %v1716_v12 = vmul.f32 0.25, %v1651_v63  ;;  %v1653_v43 = vadd.f32 %v1652_v39, %v10851_v6 }
 0x344   : > { %v1654_v61 = vpop.f32.mrf.mxu0 }
 0x345   : > { %v1655_v20 = vadd.f32 %v1654_v61, %v10855_v9  ;;  %8199 = vrot.lane.b32.xlu1 %v10881_v41, %s9424_s21  ;;  %v1728_v50 = vsel %vm1704_vm13, %v1651_v63, %v1716_v12  ;;  %v1717_v53 = vmul.f32 0.25, %v1653_v43  ;;  %vm1705_vm15 = vcmp.gt.f32.partialorder %v1653_v43, 0.0  ;;  %v2099_v63 = vld [vmem:[%s612_s15 + $0x18] sm:$0xff] }
 0x346   : > { %v1656_v17 = vpop.f32.mrf.mxu0  ;;  %v10908_v34 = vmul.f32 %v1728_v50, %v10185_v4 }
 0x347   : > { %vm1710_vm14 = vcmp.gt.f32.partialorder %v1655_v20, 0.0  ;;  %v1722_v49 = vmul.f32 0.25, %v1655_v20  ;;  %v1657_v3 = vadd.f32 %v1656_v17, %v10855_v9  ;;  %v1729_v0 = vsel %vm1705_vm15, %v1653_v43, %v1717_v53 }
 0x348   : > { %v10921_v47 = vmul.f32 %v1729_v0, %v10187_v40 }
 0x349   : > { %v1734_v36 = vsel %vm1710_vm14, %v1655_v20, %v1722_v49  ;;  %vm1711_vm9 = vcmp.gt.f32.partialorder %v1657_v3, 0.0  ;;  %v1723_v13 = vmul.f32 0.25, %v1657_v3 }
 0x34a   : > { %v10911_v51 = vmul.f32 %v1734_v36, %v10185_v4 }
 0x34b   : > { %v1735_v57 = vsel %vm1711_vm9, %v1657_v3, %v1723_v13 }
 0x34c   : > { %v10914_v25 = vmul.f32 %v1735_v57, %v10187_v40  ;;  %v10918_v30 = vpack.i.bf16 %v10911_v51, %v10908_v34  ;;  %v10937_v40 = vadd.f32 %v10911_v51, %v10908_v34 }
 0x34e   : > { %8204 = vrot.lane.b32.xlu0 %v10918_v30, %s9422_s19  ;;  %8214 = vrot.lane.b32.xlu1 %v10918_v30, %s9423_s20  ;;  %v2065_v56 = vpack.c.bf16 %v10914_v25, %v10921_v47  ;;  %v10933_v28 = vadd.f32 %v10914_v25, %v10921_v47  ;;  %v8293_v42 = vpack.i.bf16 %v10914_v25, %v10921_v47 }
 0x352   : > { %v1693_v4 = vpop.f32.mrf.mxu1  ;;  %8209 = vrot.lane.b32.xlu0 %v10870_v59, %s9425_s22  ;;  %8219 = vrot.lane.b32.xlu1 %v10881_v41, %s9425_s22 }
 0x353   : > { %v1694_v7 = vadd.f32 %v1693_v4, %v10851_v6 }
 0x354   : > { %v1695_v19 = vpop.f32.mrf.mxu1 }
 0x355   : > { %v1696_v54 = vadd.f32 %v1695_v19, %v10851_v6  ;;  %v1718_v5 = vmul.f32 0.25, %v1694_v7  ;;  %vm1706_vm12 = vcmp.gt.f32.partialorder %v1694_v7, 0.0 }
 0x356   : > { %v1697_v11 = vpop.f32.mrf.mxu1  ;;  %8229 = vrot.lane.b32.xlu0 %v10918_v30, %s9424_s21  ;;  %8224 = vrot.lane.b32.xlu1 %v10870_v59, %s9426_s23 }
 0x357   : > { %v1719_v22 = vmul.f32 0.25, %v1696_v54  ;;  %v1698_v33 = vadd.f32 %v1697_v11, %v10855_v9  ;;  %vm1707_vm10 = vcmp.gt.f32.partialorder %v1696_v54, 0.0  ;;  %v1730_v45 = vsel %vm1706_vm12, %v1694_v7, %v1718_v5 }
 0x358   : > { %v1699_v2 = vpop.f32.mrf.mxu1  ;;  %v10965_v24 = vmul.f32 %v1730_v45, %v10155_v52 }
 0x359   : > { %vm1712_vm11 = vcmp.gt.f32.partialorder %v1698_v33, 0.0  ;;  %v1724_v23 = vmul.f32 0.25, %v1698_v33  ;;  %v1700_v18 = vadd.f32 %v1699_v2, %v10855_v9  ;;  %v1731_v6 = vsel %vm1707_vm10, %v1696_v54, %v1719_v22 }
 0x35a   : > { %8234 = vrot.lane.b32.xlu0 %v10881_v41, %s9426_s23  ;;  %8244 = vrot.lane.b32.xlu1 %v10881_v41, %s9427_s24  ;;  %v10956_v9 = vmul.f32 %v1731_v6, %v10157_v60 }
 0x35b   : > { %v1736_v48 = vsel %vm1712_vm11, %v1698_v33, %v1724_v23  ;;  %vm1713_vm13 = vcmp.gt.f32.partialorder %v1700_v18, 0.0  ;;  %v1725_v55 = vmul.f32 0.25, %v1700_v18 }
 0x35c   : > { %v10959_v58 = vmul.f32 %v1736_v48, %v10155_v52 }
 0x35d   : > { %v1737_v16 = vsel %vm1713_vm13, %v1700_v18, %v1725_v55 }
 0x35e   : > { %v10962_v26 = vmul.f32 %v1737_v16, %v10157_v60  ;;  %8239 = vrot.lane.b32.xlu0 %v10870_v59, %s9427_s24  ;;  %v10982_v52 = vadd.f32 %v10959_v58, %v10965_v24  ;;  %v8308_v35 = vpack.i.bf16 %v10959_v58, %v10965_v24 }
 0x360   : > { %v8253_v29 = vpack.i.bf16 %v10962_v26, %v10956_v9  ;;  %v10978_v60 = vadd.f32 %v10962_v26, %v10956_v9 }
 0x362   : > { %8254 = vrot.lane.b32.xlu1 %v8253_v29, %s9426_s23  ;;  %8249 = vrot.lane.b32.xlu0 %v8253_v29, %s9425_s22 }
 0x366   : > { %8259 = vrot.lane.b32.xlu1 %v10870_v59, %s9428_s25  ;;  %8264 = vrot.lane.b32.xlu0 %v10881_v41, %s9428_s25 }
 0x36a   : > { %8279 = vrot.lane.b32.xlu1 %v8253_v29, %s9428_s25  ;;  %8269 = vrot.lane.b32.xlu0 %v8253_v29, %s9427_s24 }
 0x36e   : > { %8284 = vrot.lane.b32.xlu1 %v10918_v30, %s9429_s16  ;;  %8274 = vrot.lane.b32.xlu0 %v10881_v41, %s9429_s16  ;;  %v2098_v41 = vld [vmem:[%s612_s15 + $0x10] sm:$0xff] }
 0x372   : > { %8294 = vrot.lane.b32.xlu1 %v8293_v42, %s9422_s19  ;;  %8289 = vrot.lane.b32.xlu0 %v10870_v59, %s9429_s16  ;;  %v2096_v59 = vld [vmem:[%s612_s15] sm:$0xff]  ;;  %s7666_s15 = smul.u32 48, %s13637_s30 }
 0x376   : > { %8309 = vrot.lane.b32.xlu1 %v8308_v35, %s9423_s20  ;;  %8299 = vrot.lane.b32.xlu0 %v8308_v35, %s9422_s19 }
 0x37a   : > { %8314 = vrot.lane.b32.xlu1 %v8293_v42, %s9424_s21  ;;  %8304 = vrot.lane.b32.xlu0 %v8293_v42, %s9423_s20 }
 0x37e   : > { %8329 = vrot.lane.b32.xlu1 %v8253_v29, %s9422_s19  ;;  %8319 = vrot.lane.b32.xlu0 %v8308_v35, %s9424_s21  ;;  %s9434_s19 = smov 118  }
 0x382   : > { %8334 = vrot.lane.b32.xlu1 %v8293_v42, %s9425_s22  ;;  %8324 = vrot.lane.b32.xlu0 %v10918_v30, %s9425_s22 }
 0x386   : > { %8349 = vrot.lane.b32.xlu1 %v8253_v29, %s9424_s21  ;;  %8339 = vrot.lane.b32.xlu0 %v8253_v29, %s9423_s20  ;;  %s9436_s20 = smov 117  }
 0x38a   : > { %8354 = vrot.lane.b32.xlu1 %v10918_v30, %s9426_s23  ;;  %8344 = vrot.lane.b32.xlu0 %v8308_v35, %s9425_s22 }
 0x38e   : > { %8364 = vrot.lane.b32.xlu1 %v8308_v35, %s9426_s23  ;;  %8359 = vrot.lane.b32.xlu0 %v8293_v42, %s9426_s23 }
 0x392   : > { %8374 = vrot.lane.b32.xlu1 %v8293_v42, %s9427_s24  ;;  %8369 = vrot.lane.b32.xlu0 %v10918_v30, %s9427_s24 }
 0x396   : > { %8384 = vrot.lane.b32.xlu1 %v10918_v30, %s9428_s25  ;;  %8379 = vrot.lane.b32.xlu0 %v8308_v35, %s9427_s24 }
 0x39a   : > { %8394 = vrot.lane.b32.xlu1 %v8308_v35, %s9428_s25  ;;  %8389 = vrot.lane.b32.xlu0 %v8293_v42, %s9428_s25  ;;  %s622_s25 = scalar_lea.vmem %s13521_s8, %s10843_s26  ;;  %s7667_s26 = smul.u32 160, %s13637_s30 }
 0x39c   : > { %s13101_s24 = scalar_lea.vmem %s13527_s14, %s7667_s26 }
 0x39e   : > { %8404 = vrot.lane.b32.xlu1 %v8308_v35, %s9429_s16  ;;  %8399 = vrot.lane.b32.xlu0 %v8293_v42, %s9429_s16 }
 0x3a2   : > { %2102 = vperm.xlu1 %7932, %v2096_v59   ;;  %8409 = vrot.lane.b32.xlu0 %v8253_v29, %s9429_s16 }
 0x3a6   : > { %2112 = vperm.xlu1 %7932, %v2098_v41   ;;  %2107 = vperm.xlu0 %7931, %v2097_v21  }
 0x3aa   : > { %2117 = vperm.xlu0 %7931, %v2099_v63  }
 0x3ab   : > { %v11040_v39 = vpop.permute.xlu1 %8174  ;;  %v11044_v43 = vpop.permute.xlu0 %8179 }
 0x3ac   : > { %v8177_v49 = vunpack.i.h.bf16 %v11040_v39  ;;  %v8176_v3 = vunpack.i.l.bf16 %v11040_v39  ;;  %v13565_v54 = vunpack.i.l.bf16 %v11044_v43  ;;  %v13558_v18 = vunpack.i.h.bf16 %v11044_v43 }
 0x3af   : > { %v11042_v12 = vpop.permute.xlu1 %8184  ;;  %v8195_v20 = vpop.permute.xlu0 %8194 }
 0x3b0   : > { %v8197_v36 = vunpack.i.h.bf16 %v8195_v20  ;;  %v8196_v13 = vunpack.i.l.bf16 %v8195_v20  ;;  %v13576_v41 = vunpack.i.h.bf16 %v11042_v12  ;;  %v8186_v21 = vunpack.i.l.bf16 %v11042_v12 }
 0x3b2   : > { %v1962_v45 = vsel %vm853_vm2, %v13565_v54, %v8196_v13  ;;  %v1963_v29 = vsel %vm853_vm2, %v13558_v18, %v8197_v36 }
 0x3b3   : > { %v8190_v61 = vpop.permute.xlu1 %8189  ;;  %v2074_v20 = vpack.c.bf16 %v1963_v29, %v1962_v45 }
 0x3b4   : > { %v8192_v17 = vunpack.i.h.bf16 %v8190_v61  ;;  %v8191_v53 = vunpack.i.l.bf16 %v8190_v61 }
 0x3b6   : > { %v1998_v11 = vsel %vm890_vm1, %v8176_v3, %v8191_v53  ;;  %v1999_v22 = vsel %vm890_vm1, %v8177_v49, %v8192_v17 }
 0x3b7   : > { %v8200_v50 = vpop.permute.xlu1 %8199  ;;  %v2080_v16 = vpack.c.bf16 %v1999_v22, %v1998_v11 }
 0x3b8   : > { %v8202_v42 = vunpack.i.h.bf16 %v8200_v50  ;;  %v8201_v35 = vunpack.i.l.bf16 %v8200_v50 }
 0x3ba   : > { %v1926_v50 = vsel %vm816_vm3, %v8186_v21, %v8201_v35 }
 0x3c0   : > { %v11048_v0 = vpop.permute.xlu0 %8204  ;;  %v11050_v57 = vpop.permute.xlu1 %8214 }
 0x3c1   : > { %v8207_v30 = vunpack.i.h.bf16 %v11048_v0  ;;  %v8206_v4 = vunpack.i.l.bf16 %v11048_v0  ;;  %v8217_v19 = vunpack.i.h.bf16 %v11050_v57  ;;  %v8216_v7 = vunpack.i.l.bf16 %v11050_v57 }
 0x3c3   : > { %v1996_v33 = vsel %vm890_vm1, %v8191_v53, %v8206_v4  ;;  %v1997_v2 = vsel %vm890_vm1, %v8192_v17, %v8207_v30  ;;  %v1960_v5 = vsel %vm853_vm2, %v8196_v13, %v8216_v7  ;;  %v1961_v23 = vsel %vm853_vm2, %v8197_v36, %v8217_v19 }
 0x3c4   : > { %v8210_v6 = vpop.permute.xlu0 %8209  ;;  %v11082_v48 = vpop.permute.xlu1 %8219  ;;  %v2081_v55 = vpack.c.bf16 %v1997_v2, %v1996_v33  ;;  %v2075_v59 = vpack.c.bf16 %v1961_v23, %v1960_v5  ;;  %v1927_v36 = vsel %vm816_vm3, %v13576_v41, %v8202_v42 }
 0x3c5   : > { %v8212_v13 = vunpack.i.h.bf16 %v8210_v6  ;;  %v8211_v11 = vunpack.i.l.bf16 %v8210_v6  ;;  %v8222_v22 = vunpack.i.h.bf16 %v11082_v48  ;;  %v8221_v33 = vunpack.i.l.bf16 %v11082_v48 }
 0x3c6   : > { %2144 = vmatprep.subr.bf16.mxu0 %v2081_v55  ;;  %v2068_v45 = vpack.c.bf16 %v1927_v36, %v1926_v50 }
 0x3c7   : > { %2145 = vmatpush1.bf16.msra.mxu0 %v2080_v16  ;;  %v1890_v16 = vsel %vm779_vm4, %v8211_v11, %v8221_v33  ;;  %v1891_v29 = vsel %vm779_vm4, %v8212_v13, %v8222_v22 }
 0x3c8   : > { %v11094_v63 = vpop.permute.xlu0 %8229  ;;  %v8225_v61 = vpop.permute.xlu1 %8224  ;;  %2146 = vmatprep.subr.bf16.mxu0 %v2075_v59 }
 0x3c9   : > { %v8232_v17 = vunpack.i.h.bf16 %v11094_v63  ;;  %v8231_v53 = vunpack.i.l.bf16 %v11094_v63  ;;  %v8227_v50 = vunpack.i.h.bf16 %v8225_v61  ;;  %v8226_v36 = vunpack.i.l.bf16 %v8225_v61 }
 0x3cb   : > { %2147 = vmatpush1.bf16.msra.mxu0 %v2074_v20  ;;  %v1924_v2 = vsel %vm816_vm3, %v8201_v35, %v8231_v53  ;;  %v1925_v5 = vsel %vm816_vm3, %v8202_v42, %v8232_v17 }
 0x3cc   : > { %v11116_v23 = vpop.permute.xlu0 %8234  ;;  %v11118_v55 = vpop.permute.xlu1 %8244  ;;  %v2069_v6 = vpack.c.bf16 %v1925_v5, %v1924_v2  ;;  %v2057_v2 = vpack.c.bf16 %v1891_v29, %v1890_v16 }
 0x3cd   : > { %v13557_v42 = vunpack.i.h.bf16 %v11116_v23  ;;  %v13556_v35 = vunpack.i.l.bf16 %v11116_v23  ;;  %v13560_v16 = vunpack.i.h.bf16 %v11118_v55  ;;  %v13559_v29 = vunpack.i.l.bf16 %v11118_v55 }
 0x3ce   : > { %2148 = vmatprep.subr.bf16.mxu0 %v2069_v6 }
 0x3cf   : > { %2149 = vmatpush1.bf16.msra.mxu0 %v2068_v45  ;;  %v1854_v62 = vsel %vm742_vm5, %v8226_v36, %v13556_v35  ;;  %v1855_v14 = vsel %vm742_vm5, %v8227_v50, %v13557_v42 }
 0x3d0   : > { %v8240_v59 = vpop.permute.xlu0 %8239  ;;  %2150 = vmatprep.subr.bf16.mxu0 %v2063_v32  ;;  %v2051_v35 = vpack.c.bf16 %v1855_v14, %v1854_v62 }
 0x3d1   : > { %v8242_v5 = vunpack.i.h.bf16 %v8240_v59  ;;  %v8241_v6 = vunpack.i.l.bf16 %v8240_v59 }
 0x3d3   : > { %2151 = vmatpush1.bf16.msra.mxu0 %v2062_v46  ;;  %v1818_v42 = vsel %vm705_vm6, %v8241_v6, %v13559_v29  ;;  %v1819_v18 = vsel %vm705_vm6, %v8242_v5, %v13560_v16 }
 0x3d4   : > { %v11133_v20 = vpop.permute.xlu1 %8254  ;;  %v11138_v45 = vpop.permute.xlu0 %8249  ;;  %2152 = vmatprep.subr.bf16.mxu0 %v2057_v2 }
 0x3d5   : > { %v13564_v32 = vunpack.i.h.bf16 %v11133_v20  ;;  %v13562_v31 = vunpack.i.l.bf16 %v11133_v20  ;;  %v13561_v15 = vunpack.i.h.bf16 %v11138_v45  ;;  %v13563_v46 = vunpack.i.l.bf16 %v11138_v45 }
 0x3d7   : > { %v1892_v59 = vsel %vm779_vm4, %v13563_v46, %v8211_v11  ;;  %v1893_v2 = vsel %vm779_vm4, %v13561_v15, %v8212_v13  ;;  %v1856_v11 = vsel %vm742_vm5, %v13562_v31, %v8226_v36  ;;  %v1857_v13 = vsel %vm742_vm5, %v13564_v32, %v8227_v50 }
 0x3d8   : > { %v8260_v61 = vpop.permute.xlu1 %8259  ;;  %v2056_v38 = vpack.c.bf16 %v1893_v2, %v1892_v59  ;;  %v11162_v44 = vpop.permute.xlu0 %8264  ;;  %v2050_v16 = vpack.c.bf16 %v1857_v13, %v1856_v11  ;;  %v2045_v46 = vpack.c.bf16 %v1819_v18, %v1818_v42 }
 0x3d9   : > { %v13567_v62 = vunpack.i.h.bf16 %v11162_v44  ;;  %v13566_v14 = vunpack.i.l.bf16 %v11162_v44  ;;  %v8262_v2 = vunpack.i.h.bf16 %v8260_v61  ;;  %v8261_v29 = vunpack.i.l.bf16 %v8260_v61 }
 0x3da   : > { %2153 = vmatpush1.bf16.msra.mxu0 %v2056_v38 }
 0x3db   : > { %2154 = vmatprep.subr.bf16.mxu0 %v2051_v35  ;;  %v1782_v38 = vsel %vm668_vm7, %v8261_v29, %v13566_v14  ;;  %v1783_v35 = vsel %vm668_vm7, %v8262_v2, %v13567_v62 }
 0x3dc   : > { %v11182_v59 = vpop.permute.xlu1 %8279  ;;  %v11186_v31 = vpop.permute.xlu0 %8269  ;;  %v2039_v14 = vpack.c.bf16 %v1783_v35, %v1782_v38 }
 0x3dd   : > { %v13569_v15 = vunpack.i.h.bf16 %v11182_v59  ;;  %v13573_v36 = vunpack.i.l.bf16 %v11182_v59  ;;  %v13575_v50 = vunpack.i.h.bf16 %v11186_v31  ;;  %v13568_v32 = vunpack.i.l.bf16 %v11186_v31 }
 0x3de   : > { %2155 = vmatpush1.bf16.msra.mxu0 %v2050_v16 }
 0x3df   : > { %v1820_v18 = vsel %vm705_vm6, %v13568_v32, %v8241_v6  ;;  %v1821_v42 = vsel %vm705_vm6, %v13575_v50, %v8242_v5  ;;  %2156 = vmatprep.subr.bf16.mxu0 %v2045_v46  ;;  %v1784_v61 = vsel %vm668_vm7, %v13573_v36, %v8261_v29  ;;  %v1785_v16 = vsel %vm668_vm7, %v13569_v15, %v8262_v2 }
 0x3e0   : > { %v11190_v54 = vpop.permute.xlu1 %8284  ;;  %v2044_v11 = vpack.c.bf16 %v1821_v42, %v1820_v18  ;;  %v8275_v13 = vpop.permute.xlu0 %8274  ;;  %v2038_v38 = vpack.c.bf16 %v1785_v16, %v1784_v61 }
 0x3e1   : > { %v13570_v6 = vunpack.i.h.bf16 %v11190_v54  ;;  %v13572_v62 = vunpack.i.l.bf16 %v11190_v54  ;;  %v8277_v32 = vunpack.i.h.bf16 %v8275_v13  ;;  %v8276_v5 = vunpack.i.l.bf16 %v8275_v13 }
 0x3e2   : > { %2157 = vmatpush1.bf16.msra.mxu0 %v2044_v11 }
 0x3e3   : > { %2158 = vmatprep.subr.bf16.mxu0 %v2039_v14  ;;  %v2032_v29 = vsel %vm927_vm8, %v8276_v5, %v13572_v62  ;;  %v2033_v2 = vsel %vm927_vm8, %v8277_v32, %v13570_v6  ;;  %v11249_v62 = vld [vmem:[%s10849_s18] ss:$8 sps:$4 sm:$0xff]  }
 0x3e4   : > { %v8295_v46 = vpop.permute.xlu1 %8294  ;;  %v11226_v35 = vpop.permute.xlu0 %8289  ;;  %v2087_v18 = vpack.c.bf16 %v2033_v2, %v2032_v29 }
 0x3e5   : > { %v8297_v42 = vunpack.i.h.bf16 %v8295_v46  ;;  %v8296_v13 = vunpack.i.l.bf16 %v8295_v46  ;;  %v13574_v11 = vunpack.i.h.bf16 %v11226_v35  ;;  %v13571_v14 = vunpack.i.l.bf16 %v11226_v35 }
 0x3e6   : > { %2159 = vmatpush1.bf16.msra.mxu0 %v2038_v38 }
 0x3e7   : > { %v2034_v6 = vsel %vm927_vm8, %v13571_v14, %v8276_v5  ;;  %v2035_v61 = vsel %vm927_vm8, %v13574_v11, %v8277_v32  ;;  %2174 = vmatprep.subr.bf16.mxu0 %v2087_v18  ;;  %v1995_v29 = vsel %vm890_vm1, %v8207_v30, %v8297_v42  ;;  %v1994_v2 = vsel %vm890_vm1, %v8206_v4, %v8296_v13  ;;  %v11252_v32 = vld [vmem:[%s10849_s18 + $0x14] ss:$8 sps:$4 sm:$0xff]  }
 0x3e8   : > { %v11230_v15 = vpop.permute.xlu1 %8309  ;;  %v2086_v16 = vpack.c.bf16 %v2035_v61, %v2034_v6  ;;  %v8300_v46 = vpop.permute.xlu0 %8299  ;;  %v2082_v18 = vpack.c.bf16 %v1995_v29, %v1994_v2 }
 0x3e9   : > { %v8302_v38 = vunpack.i.h.bf16 %v8300_v46  ;;  %v8301_v5 = vunpack.i.l.bf16 %v8300_v46  ;;  %v8312_v0 = vunpack.i.h.bf16 %v11230_v15  ;;  %v8311_v46 = vunpack.i.l.bf16 %v11230_v15 }
 0x3ea   : > { %2175 = vmatpush2.bf16.msra.mxu0 %v2086_v16 }
 0x3eb   : > { %v1992_v6 = vsel %vm890_vm1, %v8296_v13, %v8301_v5  ;;  %v1993_v30 = vsel %vm890_vm1, %v8297_v42, %v8302_v38 }
 0x3ec   : > { %v8315_v14 = vpop.permute.xlu1 %8314  ;;  %v8305_v61 = vpop.permute.xlu0 %8304  ;;  %v2083_v4 = vpack.c.bf16 %v1993_v30, %v1992_v6 }
 0x3ed   : > { %v8317_v36 = vunpack.i.h.bf16 %v8315_v14  ;;  %v8316_v11 = vunpack.i.l.bf16 %v8315_v14  ;;  %v8307_v50 = vunpack.i.h.bf16 %v8305_v61  ;;  %v8306_v1 = vunpack.i.l.bf16 %v8305_v61  ;;  %2177 = vmatmul.mubr.bf16.vlgmr.msra.gmra.mxu0 %v11249_v62 }
 0x3ee   : > { %2197 = vmatprep.subr.bf16.mxu1 %v2083_v4  ;;  %7099 = vmatprep.mubr.msk.bf16.mxu0 %vm1017_vm0, %v11252_v32 }
 0x3ef   : > { %v1923_v13 = vsel %vm816_vm3, %v8232_v17, %v8317_v36  ;;  %v1958_v14 = vsel %vm853_vm2, %v8216_v7, %v8306_v1  ;;  %v1959_v29 = vsel %vm853_vm2, %v8217_v19, %v8307_v50  ;;  %2198 = vmatpush1.bf16.msra.mxu1 %v2082_v18  ;;  %v1957_v17 = vsel %vm853_vm2, %v8307_v50, %v8312_v0 }
 0x3f0   : > { %v8330_v41 = vpop.permute.xlu1 %8329  ;;  %v2076_v2 = vpack.c.bf16 %v1959_v29, %v1958_v14  ;;  %v8320_v6 = vpop.permute.xlu0 %8319  ;;  %v1922_v30 = vsel %vm816_vm3, %v8231_v53, %v8316_v11 }
 0x3f1   : > { %v8332_v16 = vunpack.i.h.bf16 %v8330_v41  ;;  %v8331_v42 = vunpack.i.l.bf16 %v8330_v41  ;;  %v1956_v41 = vsel %vm853_vm2, %v8306_v1, %v8311_v46  ;;  %v8322_v1 = vunpack.i.h.bf16 %v8320_v6 }
 0x3f2   : > { %v2077_v19 = vpack.c.bf16 %v1957_v17, %v1956_v41  ;;  %v8321_v18 = vunpack.i.l.bf16 %v8320_v6  ;;  %v2070_v29 = vpack.c.bf16 %v1923_v13, %v1922_v30 }
 0x3f3   : > { %v1991_v7 = vsel %vm890_vm1, %v8302_v38, %v8332_v16  ;;  %v1990_v57 = vsel %vm890_vm1, %v8301_v5, %v8331_v42  ;;  %v2000_v50 = vsel %vm890_vm1, %v8331_v42, %v8176_v3  ;;  %v11298_v38 = vld [vmem:[%s10849_s18 + $0x10] ss:$8 sps:$4 sm:$0xff]   ;;  %v2001_v63 = vsel %vm890_vm1, %v8332_v16, %v8177_v49  ;;  %s9433_s18 = smov 11  }
 0x3f4   : > { %v11291_v61 = vpop.permute.xlu1 %8334  ;;  %v2084_v4 = vpack.c.bf16 %v1991_v7, %v1990_v57  ;;  %2199 = vmatprep.subr.bf16.mxu1 %v2077_v19  ;;  %v2085_v53 = vpack.c.bf16 %v2001_v63, %v2000_v50  ;;  %v1920_v5 = vsel %vm816_vm3, %v8316_v11, %v8321_v18  ;;  %v1921_v14 = vsel %vm816_vm3, %v8317_v36, %v8322_v1  ;;  %v8325_v41 = vpop.permute.xlu0 %8324 }
 0x3f5   : > { %2200 = vmatpush1.bf16.msra.mxu1 %v2076_v2  ;;  %v2071_v3 = vpack.c.bf16 %v1921_v14, %v1920_v5  ;;  %v8337_v42 = vunpack.i.h.bf16 %v11291_v61  ;;  %v8336_v17 = vunpack.i.l.bf16 %v11291_v61  ;;  %v8327_v39 = vunpack.i.h.bf16 %v8325_v41  ;;  %2187 = vmatmul.mubr.bf16.gmra.mxu0 %v11298_v38 }
 0x3f6   : > { %2250 = vmatprep.subr.bf16.mxu0 %v2085_v53  ;;  %v8326_v7 = vunpack.i.l.bf16 %v8325_v41  ;;  %7102 = vmatprep.mubr.msk.bf16.mxu0 %vm1017_vm0, %v10996_v10  ;;  %v13611_v50 = vunpack.i.h.bf16 %v11042_v12  ;;  %v13613_v10 = vunpack.i.l.bf16 %v11044_v43 }
 0x3f7   : > { %2251 = vmatpush1.bf16.msra.mxu0 %v2084_v4  ;;  %2201 = vmatprep.subr.bf16.mxu1 %v2071_v3  ;;  %v1889_v11 = vsel %vm779_vm4, %v8222_v22, %v8327_v39  ;;  %v1887_v2 = vsel %vm779_vm4, %v8327_v39, %v8337_v42  ;;  %v13615_v39 = vunpack.i.h.bf16 %v11116_v23 }
 0x3f8   : > { %v8350_v57 = vpop.permute.xlu1 %8349  ;;  %v1888_v36 = vsel %vm779_vm4, %v8221_v33, %v8326_v7  ;;  %v1886_v13 = vsel %vm779_vm4, %v8326_v7, %v8336_v17  ;;  %v8340_v6 = vpop.permute.xlu0 %8339 }
 0x3f9   : > { %v8352_v49 = vunpack.i.h.bf16 %v8350_v57  ;;  %v8351_v16 = vunpack.i.l.bf16 %v8350_v57  ;;  %2202 = vmatpush1.bf16.msra.mxu1 %v2070_v29  ;;  %v8342_v19 = vunpack.i.h.bf16 %v8340_v6  ;;  %v8341_v30 = vunpack.i.l.bf16 %v8340_v6 }
 0x3fa   : > { %2203 = vmatprep.subr.bf16.mxu1 %v2065_v56  ;;  %v2058_v48 = vpack.c.bf16 %v1889_v11, %v1888_v36  ;;  %v2059_v22 = vpack.c.bf16 %v1887_v2, %v1886_v13  ;;  %v13612_v56 = vpack.c.bf16 %v10911_v51, %v10908_v34  ;;  %v13616_v57 = vunpack.i.l.bf16 %v11116_v23 }
 0x3fb   : > { %v1928_v61 = vsel %vm816_vm3, %v8351_v16, %v8186_v21  ;;  %v1929_v4 = vsel %vm816_vm3, %v8352_v49, %v13611_v50  ;;  %v1954_v25 = vsel %vm853_vm2, %v8311_v46, %v8341_v30  ;;  %v1955_v47 = vsel %vm853_vm2, %v8312_v0, %v8342_v19 }
 0x3fc   : > { %v8355_v33 = vpop.permute.xlu1 %8354  ;;  %v1964_v12 = vsel %vm853_vm2, %v8341_v30, %v13613_v10  ;;  %v13614_v21 = vunpack.i.h.bf16 %v11044_v43  ;;  %v2078_v46 = vpack.c.bf16 %v1955_v47, %v1954_v25  ;;  %v8345_v5 = vpop.permute.xlu0 %8344  ;;  %v1919_v34 = vsel %vm816_vm3, %v8322_v1, %v8352_v49 }
 0x3fd   : > { %2204 = vmatpush1.bf16.msra.mxu1 %v13612_v56  ;;  %v8357_v53 = vunpack.i.h.bf16 %v8355_v33  ;;  %v8356_v15 = vunpack.i.l.bf16 %v8355_v33  ;;  %v1918_v51 = vsel %vm816_vm3, %v8321_v18, %v8351_v16  ;;  %v8347_v14 = vunpack.i.h.bf16 %v8345_v5 }
 0x3fe   : > { %v1965_v63 = vsel %vm853_vm2, %v8342_v19, %v13614_v21  ;;  %2205 = vmatprep.subr.bf16.mxu1 %v2059_v22  ;;  %v8346_v29 = vunpack.i.l.bf16 %v8345_v5  ;;  %v2073_v43 = vpack.c.bf16 %v1929_v4, %v1928_v61  ;;  %v2072_v3 = vpack.c.bf16 %v1919_v34, %v1918_v51 }
 0x3ff   : > { %v2079_v0 = vpack.c.bf16 %v1965_v63, %v1964_v12  ;;  %v1853_v7 = vsel %vm742_vm5, %v13615_v39, %v8357_v53  ;;  %v1852_v1 = vsel %vm742_vm5, %v13616_v57, %v8356_v15  ;;  %v1885_v36 = vsel %vm779_vm4, %v8337_v42, %v8347_v14 }
 0x400   : > { %v8365_v41 = vpop.permute.xlu1 %8364  ;;  %v8360_v18 = vpop.permute.xlu0 %8359  ;;  %v1884_v16 = vsel %vm779_vm4, %v8336_v17, %v8346_v29  ;;  %v13617_v30 = vunpack.i.l.bf16 %v11138_v45  ;;  %v13618_v17 = vunpack.i.h.bf16 %v11138_v45  ;;  %v13619_v50 = vpack.c.bf16 %v10962_v26, %v10956_v9 }
 0x401   : > { %2252 = vmatprep.subr.bf16.mxu0 %v2079_v0  ;;  %2206 = vmatpush1.bf16.msra.mxu1 %v2058_v48  ;;  %v8366_v49 = vunpack.i.l.bf16 %v8365_v41  ;;  %v8362_v11 = vunpack.i.h.bf16 %v8360_v18  ;;  %v8361_v13 = vunpack.i.l.bf16 %v8360_v18  ;;  %v8367_v6 = vunpack.i.h.bf16 %v8365_v41 }
 0x402   : > { %2253 = vmatpush1.bf16.msra.mxu0 %v2078_v46  ;;  %v1882_v33 = vsel %vm779_vm4, %v8346_v29, %v13617_v30  ;;  %v1883_v42 = vsel %vm779_vm4, %v8347_v14, %v13618_v17  ;;  %v2052_v48 = vpack.c.bf16 %v1853_v7, %v1852_v1  ;;  %v2060_v22 = vpack.c.bf16 %v1885_v36, %v1884_v16 }
 0x403   : > { %2254 = vmatprep.subr.bf16.mxu0 %v2073_v43  ;;  %v1850_v23 = vsel %vm742_vm5, %v8356_v15, %v8361_v13  ;;  %v1851_v19 = vsel %vm742_vm5, %v8357_v53, %v8362_v11  ;;  %v13620_v12 = vunpack.i.l.bf16 %v11133_v20  ;;  %v1848_v21 = vsel %vm742_vm5, %v8361_v13, %v8366_v49 }
 0x404   : > { %v8375_v2 = vpop.permute.xlu1 %8374  ;;  %v8370_v61 = vpop.permute.xlu0 %8369  ;;  %v2053_v4 = vpack.c.bf16 %v1851_v19, %v1850_v23  ;;  %v2061_v46 = vpack.c.bf16 %v1883_v42, %v1882_v33  ;;  %v13621_v53 = vunpack.i.h.bf16 %v11133_v20  ;;  %v13622_v26 = vunpack.i.l.bf16 %v11118_v55 }
 0x405   : > { %v8376_v25 = vunpack.i.l.bf16 %v8375_v2  ;;  %v8372_v47 = vunpack.i.h.bf16 %v8370_v61  ;;  %v8371_v56 = vunpack.i.l.bf16 %v8370_v61  ;;  %v1846_v45 = vsel %vm742_vm5, %v8366_v49, %v13620_v12 }
 0x406   : > { %2255 = vmatpush1.bf16.msra.mxu0 %v2072_v3  ;;  %v8377_v63 = vunpack.i.h.bf16 %v8375_v2  ;;  %2207 = vmatprep.subr.bf16.mxu1 %v2053_v4  ;;  %v1847_v9 = vsel %vm742_vm5, %v8367_v6, %v13621_v53  ;;  %v13623_v5 = vunpack.i.h.bf16 %v11118_v55  ;;  %v13624_v34 = vpack.c.bf16 %v10959_v58, %v10965_v24 }
 0x407   : > { %2256 = vmatprep.subr.bf16.mxu0 %v13619_v50  ;;  %v1816_v15 = vsel %vm705_vm6, %v13622_v26, %v8371_v56  ;;  %2208 = vmatpush1.bf16.msra.mxu1 %v2052_v48  ;;  %v1814_v20 = vsel %vm705_vm6, %v8371_v56, %v8376_v25  ;;  %v1849_v51 = vsel %vm742_vm5, %v8362_v11, %v8367_v6  ;;  %v13625_v49 = vunpack.i.l.bf16 %v11186_v31 }
 0x408   : > { %v8385_v10 = vpop.permute.xlu1 %8384  ;;  %v1817_v0 = vsel %vm705_vm6, %v13623_v5, %v8372_v47  ;;  %v8380_v41 = vpop.permute.xlu0 %8379  ;;  %v1815_v55 = vsel %vm705_vm6, %v8372_v47, %v8377_v63  ;;  %v2055_v58 = vpack.c.bf16 %v1847_v9, %v1846_v45  ;;  %v2054_v16 = vpack.c.bf16 %v1849_v51, %v1848_v21 }
 0x409   : > { %v2046_v14 = vpack.c.bf16 %v1817_v0, %v1816_v15  ;;  %v8387_v29 = vunpack.i.h.bf16 %v8385_v10  ;;  %v8386_v43 = vunpack.i.l.bf16 %v8385_v10  ;;  %v8382_v3 = vunpack.i.h.bf16 %v8380_v41 }
 0x40a   : > { %2257 = vmatpush1.bf16.msra.mxu0 %v13624_v34  ;;  %v8381_v39 = vunpack.i.l.bf16 %v8380_v41  ;;  %v2047_v57 = vpack.c.bf16 %v1815_v55, %v1814_v20  ;;  %v13626_v11 = vunpack.i.h.bf16 %v11186_v31  ;;  %v13627_v2 = vunpack.i.h.bf16 %v11162_v44 }
 0x40b   : > { %2258 = vmatprep.subr.bf16.mxu0 %v2061_v46  ;;  %v13628_v23 = vunpack.i.l.bf16 %v11162_v44  ;;  %v1813_v31 = vsel %vm705_vm6, %v8377_v63, %v8382_v3  ;;  %v13629_v61 = vunpack.i.l.bf16 %v11182_v59  ;;  %v13630_v4 = vunpack.i.h.bf16 %v11182_v59 }
 0x40c   : > { %v8395_v7 = vpop.permute.xlu1 %8394  ;;  %2209 = vmatprep.subr.bf16.mxu1 %v2047_v57  ;;  %v1810_v18 = vsel %vm705_vm6, %v8381_v39, %v13625_v49  ;;  %v8390_v36 = vpop.permute.xlu0 %8389  ;;  %v1811_v13 = vsel %vm705_vm6, %v8382_v3, %v13626_v11  ;;  %v1781_v6 = vsel %vm668_vm7, %v13627_v2, %v8387_v29  ;;  %v1812_v17 = vsel %vm705_vm6, %v8376_v25, %v8381_v39  ;;  %v8588_v11 = vld [vmem:[%s13523_s10 + $0x60] ss:$8 sps:$4 sm:$0xff]   ;;  %v8591_v2 = vld [vmem:[%s13523_s10 + $0x50] ss:$8 sps:$4 sm:$0xff]  }
 0x40d   : > { %v8397_v24 = vunpack.i.h.bf16 %v8395_v7  ;;  %v8396_v1 = vunpack.i.l.bf16 %v8395_v7  ;;  %2210 = vmatpush1.bf16.msra.mxu1 %v2046_v14  ;;  %v1780_v19 = vsel %vm668_vm7, %v13628_v23, %v8386_v43  ;;  %v8392_v30 = vunpack.i.h.bf16 %v8390_v36  ;;  %v8597_v23 = vld [vmem:[%s13523_s10 + $0x30] ss:$8 sps:$4 sm:$0xff]  }
 0x40e   : > { %2259 = vmatpush1.bf16.msra.mxu0 %v2060_v22  ;;  %v8391_v33 = vunpack.i.l.bf16 %v8390_v36  ;;  %v2049_v48 = vpack.c.bf16 %v1811_v13, %v1810_v18  ;;  %v2040_v47 = vpack.c.bf16 %v1781_v6, %v1780_v19  ;;  %v2048_v12 = vpack.c.bf16 %v1813_v31, %v1812_v17  ;;  %v8585_v18 = vld [vmem:[%s13523_s10 + $0x70] ss:$8 sps:$4 sm:$0xff]   ;;  %v8590_v36 = vld [vmem:[%s13523_s10 + $0x64] ss:$8 sps:$4 sm:$0xff]   ;;  %v8593_v13 = vld [vmem:[%s13523_s10 + $0x54] ss:$8 sps:$4 sm:$0xff]  }
 0x40f   : > { %2260 = vmatprep.subr.bf16.mxu0 %v2055_v58  ;;  %v1779_v44 = vsel %vm668_vm7, %v8387_v29, %v8392_v30  ;;  %v1774_v50 = vsel %vm668_vm7, %v8396_v1, %v13629_v61  ;;  %v1775_v25 = vsel %vm668_vm7, %v8397_v24, %v13630_v4  ;;  %v1777_v53 = vsel %vm668_vm7, %v8392_v30, %v8397_v24  ;;  %v8596_v6 = vld [vmem:[%s13523_s10 + $0x44] ss:$8 sps:$4 sm:$0xff]   ;;  %v8600_v30 = vld [vmem:[%s13523_s10 + $0x20] ss:$8 sps:$4 sm:$0xff]   ;;  %v8603_v17 = vld [vmem:[%s13523_s10 + $0x10] ss:$8 sps:$4 sm:$0xff]  }
 0x410   : > { %v8405_v42 = vpop.permute.xlu1 %8404  ;;  %v1778_v22 = vsel %vm668_vm7, %v8386_v43, %v8391_v33  ;;  %v8400_v56 = vpop.permute.xlu0 %8399  ;;  %v1776_v46 = vsel %vm668_vm7, %v8391_v33, %v8396_v1  ;;  %v2043_v59 = vpack.c.bf16 %v1775_v25, %v1774_v50  ;;  %v13631_v26 = vunpack.i.l.bf16 %v11190_v54  ;;  %v8602_v19 = vld [vmem:[%s13523_s10 + $0x24] ss:$8 sps:$4 sm:$0xff]   ;;  %v8627_v31 = vld [vmem:[%s13523_s10 + $0x160] ss:$8 sps:$4 sm:$0xff]   ;;  %v8611_v61 = vld [vmem:[%s13523_s10 + $0xf4] ss:$8 sps:$4 sm:$0xff]  }
 0x411   : > { %v2041_v10 = vpack.c.bf16 %v1779_v44, %v1778_v22  ;;  %v8406_v45 = vunpack.i.l.bf16 %v8405_v42  ;;  %v8402_v21 = vunpack.i.h.bf16 %v8400_v56  ;;  %v8401_v63 = vunpack.i.l.bf16 %v8400_v56  ;;  %v8629_v33 = vld [vmem:[%s13523_s10 + $0x164] ss:$8 sps:$4 sm:$0xff]   ;;  %v8606_v22 = vld [vmem:[%s13523_s10] ss:$8 sps:$4 sm:$0xff]   ;;  %v8633_v44 = vld [vmem:[%s13523_s10 + $0x150] ss:$8 sps:$4 sm:$0xff]  }
 0x412   : > { %2261 = vmatpush1.bf16.msra.mxu0 %v2054_v16  ;;  %v8407_v9 = vunpack.i.h.bf16 %v8405_v42  ;;  %v13632_v5 = vunpack.i.h.bf16 %v11190_v54  ;;  %v2042_v29 = vpack.c.bf16 %v1777_v53, %v1776_v46  ;;  %v8587_v54 = vld [vmem:[%s13523_s10 + $0x74] ss:$8 sps:$4 sm:$0xff]   ;;  %v13633_v7 = vunpack.i.l.bf16 %v11226_v35  ;;  %v8608_v42 = vld [vmem:[%s13523_s10 + $0x4] ss:$8 sps:$4 sm:$0xff]   ;;  %v8639_v50 = vld [vmem:[%s13523_s10 + $0x140] ss:$8 sps:$4 sm:$0xff]  }
 0x413   : > { %2262 = vmatprep.subr.bf16.mxu0 %v2049_v48  ;;  %2211 = vmatprep.subr.bf16.mxu1 %v2041_v10  ;;  %v2030_v15 = vsel %vm927_vm8, %v13631_v26, %v8401_v63  ;;  %v2028_v34 = vsel %vm927_vm8, %v8401_v63, %v8406_v45  ;;  %v13634_v24 = vunpack.i.h.bf16 %v11226_v35  ;;  %v8623_v16 = vld [vmem:[%s13523_s10 + $0x174] ss:$8 sps:$4 sm:$0xff]   ;;  %v8621_v35 = vld [vmem:[%s13523_s10 + $0x170] ss:$8 sps:$4 sm:$0xff]   ;;  %v8641_v4 = vld [vmem:[%s13523_s10 + $0x144] ss:$8 sps:$4 sm:$0xff]  }
 0x414   : > { %v2031_v0 = vsel %vm927_vm8, %v13632_v5, %v8402_v21  ;;  %2212 = vmatpush1.bf16.msra.mxu1 %v2040_v47  ;;  %v8410_v51 = vpop.permute.xlu0 %8409  ;;  %v2029_v14 = vsel %vm927_vm8, %v8402_v21, %v8407_v9  ;;  %v8635_v48 = vld [vmem:[%s13523_s10 + $0x154] ss:$8 sps:$4 sm:$0xff]   ;;  %v8609_v25 = vld [vmem:[%s13523_s10 + $0xf0] ss:$8 sps:$4 sm:$0xff]   ;;  %v8614_v47 = vld [vmem:[%s13523_s10 + $0xe4] ss:$8 sps:$4 sm:$0xff]  }
 0x415   : > { %v2088_v20 = vpack.c.bf16 %v2031_v0, %v2030_v15  ;;  %v8412_v41 = vunpack.i.h.bf16 %v8410_v51  ;;  %v8411_v55 = vunpack.i.l.bf16 %v8410_v51  ;;  %v2089_v43 = vpack.c.bf16 %v2029_v14, %v2028_v34  ;;  %v8645_v56 = vld [vmem:[%s13523_s10 + $0x130] ss:$8 sps:$4 sm:$0xff]   ;;  %v8647_v10 = vld [vmem:[%s13523_s10 + $0x134] ss:$8 sps:$4 sm:$0xff]   ;;  %v8651_v21 = vld [vmem:[%s13523_s10 + $0x120] ss:$8 sps:$4 sm:$0xff]  }
 0x416   : > { %2263 = vmatpush1.bf16.msra.mxu0 %v2048_v12  ;;  %v8612_v12 = vld [vmem:[%s13523_s10 + $0xe0] ss:$8 sps:$4 sm:$0xff]   ;;  %v8653_v63 = vld [vmem:[%s13523_s10 + $0x124] ss:$8 sps:$4 sm:$0xff]   ;;  %v8615_v46 = vld [vmem:[%s13523_s10 + $0xd0] ss:$8 sps:$4 sm:$0xff]  }
 0x417   : > { %2264 = vmatprep.subr.bf16.mxu0 %v2043_v59  ;;  %v2026_v3 = vsel %vm927_vm8, %v8406_v45, %v8411_v55  ;;  %v2027_v39 = vsel %vm927_vm8, %v8407_v9, %v8412_v41  ;;  %2227 = vmatprep.subr.bf16.mxu1 %v2089_v43  ;;  %v2036_v57 = vsel %vm927_vm8, %v8411_v55, %v13633_v7  ;;  %v8617_v45 = vld [vmem:[%s13523_s10 + $0xd4] ss:$8 sps:$4 sm:$0xff]   ;;  %v8620_v9 = vld [vmem:[%s13523_s10 + $0xc4] ss:$8 sps:$4 sm:$0xff]   ;;  %v8657_v59 = vld [vmem:[%s13523_s10 + $0x110] ss:$8 sps:$4 sm:$0xff]  }
 0x418   : > { %v2090_v58 = vpack.c.bf16 %v2027_v39, %v2026_v3  ;;  %2228 = vmatpush2.bf16.msra.mxu1 %v2088_v20  ;;  %v2037_v1 = vsel %vm927_vm8, %v8412_v41, %v13634_v24  ;;  %v8659_v53 = vld [vmem:[%s13523_s10 + $0x114] ss:$8 sps:$4 sm:$0xff]   ;;  %v8618_v26 = vld [vmem:[%s13523_s10 + $0xc0] ss:$8 sps:$4 sm:$0xff]   ;;  %v8665_v15 = vld [vmem:[%s13523_s10 + $0x104] ss:$8 sps:$4 sm:$0xff]  }
 0x419   : > { %v2091_v49 = vpack.c.bf16 %v2037_v1, %v2036_v57  ;;  %2963 = vmatprep.subr.bf16.mxu1 %v8587_v54  ;;  %v8626_v5 = vld [vmem:[%s13523_s10 + $0xb4] ss:$8 sps:$4 sm:$0xff]   ;;  %v8663_v0 = vld [vmem:[%s13523_s10 + $0x100] ss:$8 sps:$4 sm:$0xff]   ;;  %v8624_v34 = vld [vmem:[%s13523_s10 + $0xb0] ss:$8 sps:$4 sm:$0xff]  }
 0x41a   : > { %2265 = vmatpush1.bf16.msra.mxu0 %v2042_v29  ;;  %v8671_v20 = vld [vmem:[%s13523_s10 + $0x1f4] ss:$8 sps:$4 sm:$0xff]   ;;  %v8632_v51 = vld [vmem:[%s13523_s10 + $0xa4] ss:$8 sps:$4 sm:$0xff]   ;;  %v8669_v14 = vld [vmem:[%s13523_s10 + $0x1f0] ss:$8 sps:$4 sm:$0xff]  }
 0x41b   : > { %2230 = vmatmul.mubr.bf16.vlgmr.msra.gmra.mxu1 %v11249_v62  ;;  %2280 = vmatprep.subr.bf16.mxu0 %v2091_v49  ;;  %v8630_v29 = vld [vmem:[%s13523_s10 + $0xa0] ss:$8 sps:$4 sm:$0xff]   ;;  %v8677_v41 = vld [vmem:[%s13523_s10 + $0x1e4] ss:$8 sps:$4 sm:$0xff]   ;;  %v8638_v55 = vld [vmem:[%s13523_s10 + $0x94] ss:$8 sps:$4 sm:$0xff]  }
 0x41c   : > { %7101 = vmatprep.mubr.msk.bf16.mxu1 %vm1017_vm0, %v11252_v32  ;;  %2964 = vmatpush1.bf16.msra.mxu1 %v8585_v18  ;;  %v8675_v43 = vld [vmem:[%s13523_s10 + $0x1e0] ss:$8 sps:$4 sm:$0xff]   ;;  %v8636_v54 = vld [vmem:[%s13523_s10 + $0x90] ss:$8 sps:$4 sm:$0xff]   ;;  %v8683_v3 = vld [vmem:[%s13523_s10 + $0x1d4] ss:$8 sps:$4 sm:$0xff]  }
 0x41d   : > { %2965 = vmatprep.subr.bf16.mxu1 %v8590_v36  ;;  %v8644_v39 = vld [vmem:[%s13523_s10 + $0x84] ss:$8 sps:$4 sm:$0xff]   ;;  %v8681_v7 = vld [vmem:[%s13523_s10 + $0x1d0] ss:$8 sps:$4 sm:$0xff]   ;;  %v8642_v57 = vld [vmem:[%s13523_s10 + $0x80] ss:$8 sps:$4 sm:$0xff]  }
 0x41e   : > { %2281 = vmatpush2.bf16.msra.mxu0 %v2090_v58  ;;  %v8689_v58 = vld [vmem:[%s13523_s10 + $0x1c4] ss:$8 sps:$4 sm:$0xff]   ;;  %v8650_v24 = vld [vmem:[%s13523_s10 + $0x274] ss:$8 sps:$4 sm:$0xff]   ;;  %v8687_v1 = vld [vmem:[%s13523_s10 + $0x1c0] ss:$8 sps:$4 sm:$0xff]  }
 0x41f   : > { %3016 = vmatprep.subr.bf16.mxu0 %v8623_v16  ;;  %v8695_v49 = vld [vmem:[%s13523_s10 + $0x1b4] ss:$8 sps:$4 sm:$0xff]   ;;  %v8693_v18 = vld [vmem:[%s13523_s10 + $0x1b0] ss:$8 sps:$4 sm:$0xff]   ;;  %v8699_v16 = vld [vmem:[%s13523_s10 + $0x1a0] ss:$8 sps:$4 sm:$0xff]  }
 0x420   : > { %2966 = vmatpush1.bf16.msra.mxu1 %v8588_v11  ;;  %v8701_v36 = vld [vmem:[%s13523_s10 + $0x1a4] ss:$8 sps:$4 sm:$0xff]   ;;  %v8705_v11 = vld [vmem:[%s13523_s10 + $0x190] ss:$8 sps:$4 sm:$0xff]  }
 0x421   : > { %2283 = vmatmul.mubr.bf16.vlgmr.msra.gmra.mxu0 %v11249_v62  ;;  %2967 = vmatprep.subr.bf16.mxu1 %v8593_v13  ;;  %v8594_v62 = vld [vmem:[%s13523_s10 + $0x40] ss:$8 sps:$4 sm:$0xff]   ;;  %v8713_v13 = vld [vmem:[%s13523_s10 + $0x184] ss:$8 sps:$4 sm:$0xff]  }
 0x422   : > { %7103 = vmatprep.mubr.msk.bf16.mxu0 %vm1017_vm0, %v11252_v32  ;;  %3017 = vmatpush1.bf16.msra.mxu0 %v8621_v35  ;;  %v8599_v32 = vld [vmem:[%s13523_s10 + $0x34] ss:$8 sps:$4 sm:$0xff]  }
 0x423   : > { %2240 = vmatmul.mubr.bf16.gmra.mxu1 %v11298_v38  ;;  %3018 = vmatprep.subr.bf16.mxu0 %v8629_v33  ;;  %v8707_v35 = vld [vmem:[%s13523_s10 + $0x194] ss:$8 sps:$4 sm:$0xff]  }
 0x424   : > { %2968 = vmatpush1.bf16.msra.mxu1 %v8591_v2  ;;  %v8711_v2 = vld [vmem:[%s13523_s10 + $0x180] ss:$8 sps:$4 sm:$0xff]  }
 0x425   : > { %2969 = vmatprep.subr.bf16.mxu1 %v8596_v6 }
 0x426   : > { %3019 = vmatpush1.bf16.msra.mxu0 %v8627_v31 }
 0x427   : > { %3020 = vmatprep.subr.bf16.mxu0 %v8635_v48 }
 0x428   : > { %2970 = vmatpush1.bf16.msra.mxu1 %v8594_v62  ;;  %v11676_v62 = vpop.permute.xlu1 %2102 }
 0x429   : > { %2293 = vmatmul.mubr.bf16.gmra.mxu0 %v11298_v38  ;;  %2971 = vmatprep.subr.bf16.mxu1 %v8599_v32  ;;  %v8605_v38 = vld [vmem:[%s13523_s10 + $0x14] ss:$8 sps:$4 sm:$0xff]  }
 0x42a   : > { %3021 = vmatpush1.bf16.msra.mxu0 %v8633_v44 }
 0x42b   : > { %3022 = vmatprep.subr.bf16.mxu0 %v8641_v4 }
 0x42c   : > { %2972 = vmatpush1.bf16.msra.mxu1 %v8597_v23  ;;  %v11684_v44 = vpop.permute.xlu1 %2112 }
 0x42d   : > { %2973 = vmatprep.subr.bf16.mxu1 %v8602_v19 }
 0x42e   : > { %3023 = vmatpush1.bf16.msra.mxu0 %v8639_v50 }
 0x42f   : > { %3024 = vmatprep.subr.bf16.mxu0 %v8647_v10 }
 0x430   : > { %2974 = vmatpush1.bf16.msra.mxu1 %v8600_v30  ;;  %v11680_v30 = vpop.permute.xlu0 %2107 }
 0x431   : > { %2975 = vmatprep.subr.bf16.mxu1 %v8605_v38 }
 0x432   : > { %3025 = vmatpush1.bf16.msra.mxu0 %v8645_v56 }
 0x433   : > { %3026 = vmatprep.subr.bf16.mxu0 %v8653_v63 }
 0x434   : > { %2976 = vmatpush1.bf16.msra.mxu1 %v8603_v17  ;;  %v11688_v63 = vpop.permute.xlu0 %2117 }
 0x435   : > { %2977 = vmatprep.subr.bf16.mxu1 %v8608_v42 }
 0x436   : > { %3027 = vmatpush1.bf16.msra.mxu0 %v8651_v21 }
 0x437   : > { %3028 = vmatprep.subr.bf16.mxu0 %v8659_v53 }
 0x438   : > { %2978 = vmatpush1.bf16.msra.mxu1 %v8606_v22 }
 0x439   : > { %2979 = vmatprep.subr.bf16.mxu1 %v8611_v61 }
 0x43a   : > { %3029 = vmatpush1.bf16.msra.mxu0 %v8657_v59  ;;  %v8648_v59 = vld [vmem:[%s13523_s10 + $0x270] ss:$8 sps:$4 sm:$0xff]  }
 0x43b   : > { %3030 = vmatprep.subr.bf16.mxu0 %v8665_v15 }
 0x43c   : > { %2980 = vmatpush2.bf16.msra.mxu1 %v8609_v25 }
 0x43d   : > { %2981 = vmatprep.subr.bf16.mxu1 %v8614_v47 }
 0x43e   : > { %3031 = vmatpush1.bf16.msra.mxu0 %v8663_v0 }
 0x43f   : > { %3032 = vmatprep.subr.bf16.mxu0 %v8671_v20 }
 0x440   : > { %2982 = vmatpush2.bf16.msra.mxu1 %v8612_v12 }
 0x441   : > { %2983 = vmatprep.subr.bf16.mxu1 %v8617_v45 }
 0x442   : > { %3033 = vmatpush2.bf16.msra.mxu0 %v8669_v14 }
 0x443   : > { %3034 = vmatprep.subr.bf16.mxu0 %v8677_v41  ;;  %v8654_v41 = vld [vmem:[%s13523_s10 + $0x260] ss:$8 sps:$4 sm:$0xff]  }
 0x444   : > { %2984 = vmatpush2.bf16.msra.mxu1 %v8615_v46 }
 0x445   : > { %2985 = vmatprep.subr.bf16.mxu1 %v8620_v9 }
 0x446   : > { %3035 = vmatpush2.bf16.msra.mxu0 %v8675_v43 }
 0x447   : > { %3036 = vmatprep.subr.bf16.mxu0 %v8683_v3 }
 0x448   : > { %2986 = vmatpush2.bf16.msra.mxu1 %v8618_v26 }
 0x449   : > { %2987 = vmatprep.subr.bf16.mxu1 %v8626_v5  ;;  %v8656_v5 = vld [vmem:[%s13523_s10 + $0x264] ss:$8 sps:$4 sm:$0xff]  }
 0x44a   : > { %3037 = vmatpush2.bf16.msra.mxu0 %v8681_v7 }
 0x44b   : > { %3038 = vmatprep.subr.bf16.mxu0 %v8689_v58 }
 0x44c   : > { %2988 = vmatpush2.bf16.msra.mxu1 %v8624_v34 }
 0x44d   : > { %2989 = vmatprep.subr.bf16.mxu1 %v8632_v51 }
 0x44e   : > { %3039 = vmatpush2.bf16.msra.mxu0 %v8687_v1 }
 0x44f   : > { %3040 = vmatprep.subr.bf16.mxu0 %v8695_v49 }
 0x450   : > { %2990 = vmatpush2.bf16.msra.mxu1 %v8630_v29 }
 0x451   : > { %2991 = vmatprep.subr.bf16.mxu1 %v8638_v55 }
 0x452   : > { %3041 = vmatpush2.bf16.msra.mxu0 %v8693_v18 }
 0x453   : > { %3042 = vmatprep.subr.bf16.mxu0 %v8701_v36 }
 0x454   : > { %2992 = vmatpush2.bf16.msra.mxu1 %v8636_v54  ;;  %v8662_v54 = vld [vmem:[%s13523_s10 + $0x254] ss:$8 sps:$4 sm:$0xff]  }
 0x455   : > { %2993 = vmatprep.subr.bf16.mxu1 %v8644_v39 }
 0x456   : > { %3043 = vmatpush2.bf16.msra.mxu0 %v8699_v16  ;;  %v8668_v16 = vld [vmem:[%s13523_s10 + $0x244] ss:$8 sps:$4 sm:$0xff]  }
 0x457   : > { %3044 = vmatprep.subr.bf16.mxu0 %v8707_v35 }
 0x458   : > { %2994 = vmatpush2.bf16.msra.mxu1 %v8642_v57 }
 0x459   : > { %3069 = vmatprep.subr.bf16.mxu1 %v8650_v24  ;;  %v8660_v24 = vld [vmem:[%s13523_s10 + $0x250] ss:$8 sps:$4 sm:$0xff]  }
 0x45a   : > { %3045 = vmatpush2.bf16.msra.mxu0 %v8705_v11 }
 0x45b   : > { %3046 = vmatprep.subr.bf16.mxu0 %v8713_v13  ;;  %v8666_v13 = vld [vmem:[%s13523_s10 + $0x240] ss:$8 sps:$4 sm:$0xff]  }
 0x45e   : > { %3047 = vmatpush2.bf16.msra.mxu0 %v8711_v2 }
 0x4ad   : > { %v2178_v6 = vpop.f32.mrf.mxu0 }
 0x4ae   : > { %v2179_v32 = vadd.f32 %v2178_v6, %v11676_v62  ;;  %v8674_v6 = vld [vmem:[%s13523_s10 + $0x234] ss:$8 sps:$4 sm:$0xff]  }
 0x4af   : > { %v2180_v23 = vpop.f32.mrf.mxu0 }
 0x4b0   : > { %v2181_v19 = vadd.f32 %v2180_v23, %v11676_v62  ;;  %vm2303_vm0 = vcmp.gt.f32.partialorder %v2179_v32, 0.0  ;;  %v2327_v17 = vmul.f32 0.25, %v2179_v32  ;;  %v8680_v23 = vld [vmem:[%s13523_s10 + $0x224] ss:$8 sps:$4 sm:$0xff]  }
 0x4b1   : > { %v2182_v38 = vpop.f32.mrf.mxu0 }
 0x4b2   : > { %v2183_v33 = vadd.f32 %v2182_v38, %v11680_v30  ;;  %v2328_v31 = vmul.f32 0.25, %v2181_v19  ;;  %vm2304_vm1 = vcmp.gt.f32.partialorder %v2181_v19, 0.0  ;;  %v2351_v47 = vsel %vm2303_vm0, %v2179_v32, %v2327_v17  ;;  %v8672_v32 = vld [vmem:[%s13523_s10 + $0x230] ss:$8 sps:$4 sm:$0xff]   ;;  %v8686_v38 = vld [vmem:[%s13523_s10 + $0x214] ss:$8 sps:$4 sm:$0xff]  }
 0x4b3   : > { %v2184_v42 = vpop.f32.mrf.mxu0  ;;  %v8692_v17 = vld [vmem:[%s13523_s10 + $0x204] ss:$8 sps:$4 sm:$0xff]  }
 0x4b4   : > { %vm2309_vm2 = vcmp.gt.f32.partialorder %v2183_v33, 0.0  ;;  %v2333_v48 = vmul.f32 0.25, %v2183_v33  ;;  %v2185_v22 = vadd.f32 %v2184_v42, %v11680_v30  ;;  %v2352_v10 = vsel %vm2304_vm1, %v2181_v19, %v2328_v31  ;;  %v8678_v19 = vld [vmem:[%s13523_s10 + $0x220] ss:$8 sps:$4 sm:$0xff]   ;;  %v8698_v42 = vld [vmem:[%s13523_s10 + $0x2f4] ss:$8 sps:$4 sm:$0xff]  }
 0x4b5   : > { %v2188_v61 = vpop.f32.mrf.mxu0  ;;  %v8690_v31 = vld [vmem:[%s13523_s10 + $0x200] ss:$8 sps:$4 sm:$0xff]  }
 0x4b6   : > { %v2357_v50 = vsel %vm2309_vm2, %v2183_v33, %v2333_v48  ;;  %vm2310_vm5 = vcmp.gt.f32.partialorder %v2185_v22, 0.0  ;;  %v2334_v4 = vmul.f32 0.25, %v2185_v22  ;;  %v2189_v25 = vadd.f32 %v2188_v61, %v11684_v44  ;;  %v8684_v33 = vld [vmem:[%s13523_s10 + $0x210] ss:$8 sps:$4 sm:$0xff]  }
 0x4b7   : > { %v2190_v56 = vpop.f32.mrf.mxu0  ;;  %v2375_v46 = vpack.c.bf16 %v2357_v50, %v2351_v47  ;;  %v8696_v48 = vld [vmem:[%s13523_s10 + $0x2f0] ss:$8 sps:$4 sm:$0xff]  }
 0x4b8   : > { %vm2315_vm6 = vcmp.gt.f32.partialorder %v2189_v25, 0.0  ;;  %v2339_v12 = vmul.f32 0.25, %v2189_v25  ;;  %v2191_v45 = vadd.f32 %v2190_v56, %v11684_v44  ;;  %v2358_v21 = vsel %vm2310_vm5, %v2185_v22, %v2334_v4  ;;  %v8704_v22 = vld [vmem:[%s13523_s10 + $0x2e4] ss:$8 sps:$4 sm:$0xff]   ;;  %v8710_v56 = vld [vmem:[%s13523_s10 + $0x2d4] ss:$8 sps:$4 sm:$0xff]  }
 0x4b9   : > { %v2192_v53 = vpop.f32.mrf.mxu0  ;;  %v2376_v9 = vpack.c.bf16 %v2358_v21, %v2352_v10 }
 0x4ba   : > { %vm2316_vm7 = vcmp.gt.f32.partialorder %v2191_v45, 0.0  ;;  %v2340_v26 = vmul.f32 0.25, %v2191_v45  ;;  %v2193_v15 = vadd.f32 %v2192_v53, %v11688_v63  ;;  %v2363_v0 = vsel %vm2315_vm6, %v2189_v25, %v2339_v12  ;;  %v8702_v25 = vld [vmem:[%s13523_s10 + $0x2e0] ss:$8 sps:$4 sm:$0xff]  }
 0x4bb   : > { %v2194_v34 = vpop.f32.mrf.mxu0  ;;  %2995 = vmatprep.mubr.bf16.mxu1 %v2376_v9  ;;  %v3567_v20 = vadd.f32 %v2363_v0, %v2351_v47 }
 0x4bc   : > { %vm2321_vm8 = vcmp.gt.f32.partialorder %v2193_v15, 0.0  ;;  %v2345_v51 = vmul.f32 0.25, %v2193_v15  ;;  %v2195_v14 = vadd.f32 %v2194_v34, %v11688_v63  ;;  %2996 = vmatmul.mubr.bf16.vlgmr.msra.gmra.mxu1 %v2375_v46  ;;  %v2364_v29 = vsel %vm2316_vm7, %v2191_v45, %v2340_v26  ;;  %v8708_v26 = vld [vmem:[%s13523_s10 + $0x2d0] ss:$8 sps:$4 sm:$0xff]   ;;  %v8716_v34 = vld [vmem:[%s13523_s10 + $0x2c4] ss:$8 sps:$4 sm:$0xff]  }
 0x4bd   : > { %3070 = vmatpush1.bf16.msra.mxu1 %v8648_v59  ;;  %v3568_v55 = vadd.f32 %v2364_v29, %v2352_v10  ;;  %v3579_v1 = vmul.f32 0.5, %v3567_v20 }
 0x4be   : > { %vm2322_vm14 = vcmp.gt.f32.partialorder %v2195_v14, 0.0  ;;  %v2346_v43 = vmul.f32 0.25, %v2195_v14  ;;  %3071 = vmatprep.subr.bf16.mxu1 %v8656_v5  ;;  %v2369_v3 = vsel %vm2321_vm8, %v2193_v15, %v2345_v51 }
 0x4bf   : > { %v3573_v39 = vadd.f32 %v2369_v3, %v2357_v50  ;;  %v2381_v18 = vpack.c.bf16 %v2369_v3, %v2363_v0  ;;  %v3580_v36 = vmul.f32 0.5, %v3568_v55 }
 0x4c0   : > { %v2370_v7 = vsel %vm2322_vm14, %v2195_v14, %v2346_v43 }
 0x4c1   : > { %3072 = vmatpush1.bf16.msra.mxu1 %v8654_v41  ;;  %v2382_v57 = vpack.c.bf16 %v2370_v7, %v2364_v29  ;;  %v3574_v58 = vadd.f32 %v2370_v7, %v2358_v21  ;;  %v3585_v49 = vmul.f32 0.5, %v3573_v39  ;;  %v8714_v39 = vld [vmem:[%s13523_s10 + $0x2c0] ss:$8 sps:$4 sm:$0xff]  }
 0x4c2   : > { %3073 = vmatprep.subr.bf16.mxu1 %v8662_v54 }
 0x4c3   : > { %3005 = vmatprep.mubr.bf16.mxu1 %v2382_v57  ;;  %v3586_v35 = vmul.f32 0.5, %v3574_v58  ;;  %v11710_v11 = vpack.c.bf16 %v3585_v49, %v3579_v1  ;;  %v8719_v49 = vld [vmem:[%s13523_s10 + $0x2b4] ss:$8 sps:$4 sm:$0xff]  }
 0x4c4   : > { %3006 = vmatmul.mubr.bf16.gmra.mxu1 %v2381_v18 }
 0x4c5   : > { %3074 = vmatpush1.bf16.msra.mxu1 %v8660_v24  ;;  %v11715_v2 = vpack.c.bf16 %v3586_v35, %v3580_v36 }
 0x4c6   : > { %3075 = vmatprep.subr.bf16.mxu1 %v8668_v16 }
 0x4c9   : > { %3076 = vmatpush1.bf16.msra.mxu1 %v8666_v13 }
 0x4ca   : > { %3077 = vmatprep.subr.bf16.mxu1 %v8674_v6 }
 0x4cd   : > { %3078 = vmatpush1.bf16.msra.mxu1 %v8672_v32 }
 0x4ce   : > { %3079 = vmatprep.subr.bf16.mxu1 %v8680_v23 }
 0x4d1   : > { %3080 = vmatpush1.bf16.msra.mxu1 %v8678_v19 }
 0x4d2   : > { %3081 = vmatprep.subr.bf16.mxu1 %v8686_v38 }
 0x4d5   : > { %3082 = vmatpush1.bf16.msra.mxu1 %v8684_v33 }
 0x4d6   : > { %3083 = vmatprep.subr.bf16.mxu1 %v8692_v17 }
 0x4d9   : > { %3084 = vmatpush1.bf16.msra.mxu1 %v8690_v31  ;;  %v8717_v31 = vld [vmem:[%s13523_s10 + $0x2b0] ss:$8 sps:$4 sm:$0xff]  }
 0x4da   : > { %3085 = vmatprep.subr.bf16.mxu1 %v8698_v42 }
 0x4db   : > { %v2231_v61 = vpop.f32.mrf.mxu1 }
 0x4dc   : > { %v2232_v50 = vadd.f32 %v2231_v61, %v11676_v62 }
 0x4dd   : > { %v2233_v4 = vpop.f32.mrf.mxu1  ;;  %3086 = vmatpush2.bf16.msra.mxu1 %v8696_v48 }
 0x4de   : > { %v2234_v47 = vadd.f32 %v2233_v4, %v11676_v62  ;;  %3087 = vmatprep.subr.bf16.mxu1 %v8704_v22  ;;  %v2329_v10 = vmul.f32 0.25, %v2232_v50  ;;  %vm2305_vm15 = vcmp.gt.f32.partialorder %v2232_v50, 0.0  ;;  %v8722_v22 = vld [vmem:[%s13523_s10 + $0x2a4] ss:$8 sps:$4 sm:$0xff]  }
 0x4df   : > { %v2235_v12 = vpop.f32.mrf.mxu1 }
 0x4e0   : > { %v2236_v21 = vadd.f32 %v2235_v12, %v11680_v30  ;;  %vm2306_vm9 = vcmp.gt.f32.partialorder %v2234_v47, 0.0  ;;  %v2330_v46 = vmul.f32 0.25, %v2234_v47  ;;  %v11768_v20 = vsel %vm2305_vm15, %v2232_v50, %v2329_v10 }
 0x4e1   : > { %v2284_v45 = vpop.f32.mrf.mxu0  ;;  %v2237_v9 = vpop.f32.mrf.mxu1  ;;  %3088 = vmatpush2.bf16.msra.mxu1 %v8702_v25 }
 0x4e2   : > { %v2285_v53 = vadd.f32 %v2284_v45, %v11676_v62  ;;  %vm2311_vm10 = vcmp.gt.f32.partialorder %v2236_v21, 0.0  ;;  %v2335_v15 = vmul.f32 0.25, %v2236_v21  ;;  %v2238_v5 = vadd.f32 %v2237_v9, %v11680_v30  ;;  %3089 = vmatprep.subr.bf16.mxu1 %v8710_v56  ;;  %v8720_v45 = vld [vmem:[%s13523_s10 + $0x2a0] ss:$8 sps:$4 sm:$0xff]  }
 0x4e3   : > { %v2286_v59 = vpop.f32.mrf.mxu0  ;;  %v2241_v14 = vpop.f32.mrf.mxu1  ;;  %v2354_v7 = vsel %vm2306_vm9, %v2234_v47, %v2330_v46 }
 0x4e4   : > { %v2287_v0 = vadd.f32 %v2286_v59, %v11676_v62  ;;  %v2331_v51 = vmul.f32 0.25, %v2285_v53  ;;  %v11770_v41 = vsel %vm2311_vm10, %v2236_v21, %v2335_v15  ;;  %vm2307_vm11 = vcmp.gt.f32.partialorder %v2285_v53, 0.0 }
 0x4e5   : > { %v2288_v29 = vpop.f32.mrf.mxu0  ;;  %vm2312_vm12 = vcmp.gt.f32.partialorder %v2238_v5, 0.0  ;;  %v2336_v55 = vmul.f32 0.25, %v2238_v5  ;;  %v11773_v54 = vadd.f32 %v2241_v14, %v11684_v44  ;;  %v2243_v62 = vpop.f32.mrf.mxu1  ;;  %3090 = vmatpush2.bf16.msra.mxu1 %v8708_v26  ;;  %v2377_v18 = vpack.c.bf16 %v11770_v41, %v11768_v20  ;;  %v8725_v26 = vld [vmem:[%s13523_s10 + $0x294] ss:$8 sps:$4 sm:$0xff]  }
 0x4e6   : > { %vm2308_vm13 = vcmp.gt.f32.partialorder %v2287_v0, 0.0  ;;  %v2332_v43 = vmul.f32 0.25, %v2287_v0  ;;  %v11780_v57 = vadd.f32 %v2288_v29, %v11680_v30  ;;  %v2244_v58 = vadd.f32 %v2243_v62, %v11684_v44  ;;  %3091 = vmatprep.subr.bf16.mxu1 %v8716_v34  ;;  %v8728_v62 = vld [vmem:[%s13523_s10 + $0x284] ss:$8 sps:$4 sm:$0xff]  }
 0x4e7   : > { %v2290_v3 = vpop.f32.mrf.mxu0  ;;  %v2360_v1 = vsel %vm2312_vm12, %v2238_v5, %v2336_v55  ;;  %v11790_v16 = vsel %vm2307_vm11, %v2285_v53, %v2331_v51  ;;  %v2245_v36 = vpop.f32.mrf.mxu1  ;;  %vm2317_vm0 = vcmp.gt.f32.partialorder %v11773_v54, 0.0  ;;  %v2341_v6 = vmul.f32 0.25, %v11773_v54 }
 0x4e8   : > { %v2291_v24 = vadd.f32 %v2290_v3, %v11680_v30  ;;  %v2378_v13 = vpack.c.bf16 %v2360_v1, %v2354_v7  ;;  %vm2313_vm1 = vcmp.gt.f32.partialorder %v11780_v57, 0.0  ;;  %v11796_v30 = vsel %vm2308_vm13, %v2287_v0, %v2332_v43  ;;  %v8723_v43 = vld [vmem:[%s13523_s10 + $0x290] ss:$8 sps:$4 sm:$0xff]  }
 0x4e9   : > { %v2294_v35 = vpop.f32.mrf.mxu0  ;;  %v2342_v32 = vmul.f32 0.25, %v2244_v58  ;;  %v2246_v19 = vadd.f32 %v2245_v36, %v11688_v63  ;;  %v2247_v33 = vpop.f32.mrf.mxu1  ;;  %3092 = vmatpush2.bf16.msra.mxu1 %v8714_v39  ;;  %vm2318_vm2 = vcmp.gt.f32.partialorder %v2244_v58, 0.0  ;;  %v2337_v61 = vmul.f32 0.25, %v11780_v57  ;;  %v8726_v36 = vld [vmem:[%s13523_s10 + $0x280] ss:$8 sps:$4 sm:$0xff]  }
 0x4ea   : > { %v2338_v23 = vmul.f32 0.25, %v2291_v24  ;;  %v2295_v38 = vadd.f32 %v2294_v35, %v11684_v44  ;;  %3048 = vmatprep.mubr.bf16.mxu0 %v2378_v13  ;;  %vm2314_vm5 = vcmp.gt.f32.partialorder %v2291_v24, 0.0  ;;  %v2248_v42 = vadd.f32 %v2247_v33, %v11688_v63  ;;  %3093 = vmatprep.subr.bf16.mxu1 %v8719_v49 }
 0x4eb   : > { %v2296_v17 = vpop.f32.mrf.mxu0  ;;  %3049 = vmatmul.mubr.bf16.vlgmr.msra.gmra.mxu0 %v2377_v18  ;;  %vm2323_vm6 = vcmp.gt.f32.partialorder %v2246_v19, 0.0  ;;  %v2347_v50 = vmul.f32 0.25, %v2246_v19  ;;  %v2366_v21 = vsel %vm2318_vm2, %v2244_v58, %v2342_v32  ;;  %vm3188_vm10 = vcmp.lt.s32.totalorder %v9649_v27, 9 }
 0x4ec   : > { %v2297_v48 = vadd.f32 %v2296_v17, %v11684_v44  ;;  %vm2319_vm7 = vcmp.gt.f32.partialorder %v2295_v38, 0.0  ;;  %v2343_v25 = vmul.f32 0.25, %v2295_v38  ;;  %vm2324_vm8 = vcmp.gt.f32.partialorder %v2248_v42, 0.0 }
 0x4ed   : > { %v2298_v4 = vpop.f32.mrf.mxu0  ;;  %v2348_v47 = vmul.f32 0.25, %v2248_v42  ;;  %3094 = vmatpush2.bf16.msra.mxu1 %v8717_v31  ;;  %v2362_v12 = vsel %vm2314_vm5, %v2291_v24, %v2338_v23  ;;  %v3570_v59 = vadd.f32 %v2366_v21, %v2354_v7  ;;  %v2371_v51 = vsel %vm2323_vm6, %v2246_v19, %v2347_v50 }
 0x4ee   : > { %vm2320_vm14 = vcmp.gt.f32.partialorder %v2297_v48, 0.0  ;;  %v2344_v56 = vmul.f32 0.25, %v2297_v48  ;;  %v2299_v10 = vadd.f32 %v2298_v4, %v11688_v63  ;;  %v2380_v53 = vpack.c.bf16 %v2362_v12, %v11796_v30  ;;  %3095 = vmatprep.subr.bf16.mxu1 %v8722_v22 }
 0x4ef   : > { %v2300_v44 = vpop.f32.mrf.mxu0  ;;  %v2372_v9 = vsel %vm2324_vm8, %v2248_v42, %v2348_v47  ;;  %v3575_v55 = vadd.f32 %v2371_v51, %v11770_v41  ;;  %v2367_v39 = vsel %vm2319_vm7, %v2295_v38, %v2343_v25  ;;  %v3582_v35 = vmul.f32 0.5, %v3570_v59 }
 0x4f0   : > { %v2301_v46 = vadd.f32 %v2300_v44, %v11688_v63  ;;  %vm2325_vm15 = vcmp.gt.f32.partialorder %v2299_v10, 0.0  ;;  %v2349_v15 = vmul.f32 0.25, %v2299_v10  ;;  %v2384_v5 = vpack.c.bf16 %v2372_v9, %v2366_v21  ;;  %3101 = vmatprep.mubr.bf16.mxu1 %v2380_v53 }
 0x4f1   : > { %v3576_v0 = vadd.f32 %v2372_v9, %v2360_v1  ;;  %v2365_v63 = vsel %vm2317_vm0, %v11773_v54, %v2341_v6  ;;  %3096 = vmatpush2.bf16.msra.mxu1 %v8720_v45  ;;  %v2368_v54 = vsel %vm2320_vm14, %v2297_v48, %v2344_v56  ;;  %v3587_v58 = vmul.f32 0.5, %v3575_v55 }
 0x4f2   : > { %vm2326_vm9 = vcmp.gt.f32.partialorder %v2301_v46, 0.0  ;;  %v2350_v34 = vmul.f32 0.25, %v2301_v46  ;;  %3058 = vmatprep.mubr.bf16.mxu0 %v2384_v5  ;;  %v2383_v14 = vpack.c.bf16 %v2371_v51, %v2365_v63  ;;  %v3569_v29 = vadd.f32 %v2365_v63, %v11768_v20  ;;  %3097 = vmatprep.subr.bf16.mxu1 %v8725_v26 }
 0x4f3   : > { %v2373_v7 = vsel %vm2325_vm15, %v2299_v10, %v2349_v15  ;;  %v2361_v20 = vsel %vm2313_vm1, %v11780_v57, %v2337_v61  ;;  %v3572_v24 = vadd.f32 %v2368_v54, %v11796_v30  ;;  %v3571_v49 = vadd.f32 %v2367_v39, %v11790_v16 }
 0x4f4   : > { %v2374_v3 = vsel %vm2326_vm9, %v2301_v46, %v2350_v34  ;;  %3059 = vmatmul.mubr.bf16.gmra.mxu0 %v2383_v14  ;;  %v3581_v41 = vmul.f32 0.5, %v3569_v29  ;;  %v3577_v18 = vadd.f32 %v2373_v7, %v2361_v20  ;;  %v3588_v13 = vmul.f32 0.5, %v3576_v0 }
 0x4f5   : > { %v3578_v1 = vadd.f32 %v2374_v3, %v2362_v12  ;;  %3098 = vmatpush2.bf16.msra.mxu1 %v8723_v43  ;;  %v3583_v57 = vmul.f32 0.5, %v3571_v49  ;;  %v3584_v23 = vmul.f32 0.5, %v3572_v24  ;;  %v2379_v17 = vpack.c.bf16 %v2361_v20, %v11790_v16 }
 0x4f6   : > { %v11843_v6 = vpack.c.bf16 %v3587_v58, %v3581_v41  ;;  %3099 = vmatprep.subr.bf16.mxu1 %v8728_v62  ;;  %v3589_v32 = vmul.f32 0.5, %v3577_v18  ;;  %v11845_v38 = vpack.c.bf16 %v3588_v13, %v3582_v35  ;;  %v2386_v31 = vpack.c.bf16 %v2374_v3, %v2368_v54 }
 0x4f7   : > { %v3590_v19 = vmul.f32 0.5, %v3578_v1  ;;  %v2385_v42 = vpack.c.bf16 %v2373_v7, %v2367_v39  ;;  %v13635_v48 = vmov 0   ;;  %vm3138_vm11 = vcmp.lt.s32.totalorder %v9649_v27, 11 }
 0x4f8   : > { %v11849_v33 = vpack.c.bf16 %v3589_v32, %v3583_v57  ;;  %vm3286_vm12 = vcmp.lt.s32.totalorder %v9649_v27, 118  ;;  %vm3261_vm13 = vcmp.lt.s32.totalorder %v9649_v27, 119  ;;  %vm3311_vm0 = vcmp.lt.s32.totalorder %v9649_v27, 117 }
 0x4f9   : > { %v11847_v30 = vpack.c.bf16 %v3590_v19, %v3584_v23  ;;  %3100 = vmatpush2.bf16.msra.mxu1 %v8726_v36 }
 0x4fc   : > { %3102 = vmatmul.mubr.bf16.vlgmr.msra.gmra.mxu1 %v2379_v17 }
 0x4fd   : > { %3111 = vmatprep.mubr.bf16.mxu1 %v2386_v31 }
 0x504   : > { %3112 = vmatmul.mubr.bf16.gmra.mxu1 %v2385_v42  ;;  %v3364_v42 = vld [vmem:[%s622_s25] sm:$0xff] }
 0x505   : > { %3510 = vmatprep.mubr.bf16.mxu1 %v13635_v48 }
 0x57c   : > { %v2997_v22 = vpop.f32.mrf.mxu1 }
 0x57e   : > { %v2999_v61 = vpop.f32.mrf.mxu1 }
 0x580   : > { %v3001_v50 = vpop.f32.mrf.mxu1 }
 0x582   : > { %v3003_v4 = vpop.f32.mrf.mxu1 }
 0x584   : > { %v3007_v47 = vpop.f32.mrf.mxu1 }
 0x586   : > { %v3009_v10 = vpop.f32.mrf.mxu1 }
 0x588   : > { %v3011_v12 = vpop.f32.mrf.mxu1 }
 0x58a   : > { %v3013_v21 = vpop.f32.mrf.mxu1 }
 0x5ab   : > { %v3050_v25 = vpop.f32.mrf.mxu0 }
 0x5ac   : > { %v3051_v51 = vadd.f32 %v3050_v25, %v2997_v22  ;;  %v3365_v22 = vld [vmem:[%s622_s25 + $0x8] sm:$0xff] }
 0x5ad   : > { %v3052_v56 = vpop.f32.mrf.mxu0 }
 0x5ae   : > { %v3053_v34 = vadd.f32 %v3052_v56, %v2999_v61  ;;  %v3366_v61 = vld [vmem:[%s622_s25 + $0x10] sm:$0xff] }
 0x5af   : > { %v3054_v44 = vpop.f32.mrf.mxu0 }
 0x5b0   : > { %v3055_v15 = vadd.f32 %v3054_v44, %v3001_v50  ;;  %v3367_v50 = vld [vmem:[%s622_s25 + $0x18] sm:$0xff] }
 0x5b1   : > { %v3056_v45 = vpop.f32.mrf.mxu0 }
 0x5b2   : > { %v3057_v26 = vadd.f32 %v3056_v45, %v3003_v4 }
 0x5b4   : > { %v3060_v16 = vpop.f32.mrf.mxu0 }
 0x5b5   : > { %v3061_v3 = vadd.f32 %v3060_v16, %v3007_v47 }
 0x5b6   : > { %v3062_v53 = vpop.f32.mrf.mxu0 }
 0x5b7   : > { %v3063_v58 = vadd.f32 %v3062_v53, %v3009_v10 }
 0x5b8   : > { %v3064_v5 = vpop.f32.mrf.mxu0 }
 0x5b9   : > { %v3065_v39 = vadd.f32 %v3064_v5, %v3011_v12 }
 0x5ba   : > { %v3066_v43 = vpop.f32.mrf.mxu0 }
 0x5bb   : > { %v3067_v24 = vadd.f32 %v3066_v43, %v3013_v21 }
 0x5bc   : > { %v3103_v46 = vpop.f32.mrf.mxu1 }
 0x5bd   : > { %v11859_v62 = vadd.f32 %v3103_v46, %v3051_v51 }
 0x5be   : > { %v3105_v9 = vpop.f32.mrf.mxu1 }
 0x5bf   : > { %v11857_v55 = vadd.f32 %v3105_v9, %v3053_v34 }
 0x5c0   : > { %v3107_v59 = vpop.f32.mrf.mxu1 }
 0x5c1   : > { %v11855_v14 = vadd.f32 %v3107_v59, %v3055_v15 }
 0x5c2   : > { %v3109_v0 = vpop.f32.mrf.mxu1 }
 0x5c3   : > { %v11853_v63 = vadd.f32 %v3109_v0, %v3057_v26  ;;  %v3336_v41 = vpack.c.bf16 %v11855_v14, %v11859_v62  ;;  %v8418_v32 = vpack.i.bf16 %v11855_v14, %v11859_v62  ;;  %v8744_v14 = vld [vmem:[%s13524_s11 + $0x2c4] ss:$16 sps:$4 sm:$0xff]  }
 0x5c4   : > { %v3113_v29 = vpop.f32.mrf.mxu1 }
 0x5c5   : > { %v3337_v7 = vpack.c.bf16 %v11853_v63, %v11857_v55  ;;  %v11865_v1 = vadd.f32 %v3113_v29, %v3061_v3  ;;  %v8428_v17 = vpack.i.bf16 %v11853_v63, %v11857_v55  ;;  %v8733_v63 = vld [vmem:[%s13524_s11 + $0xe0] ss:$16 sps:$4 sm:$0xff]  }
 0x5c6   : > { %v3115_v54 = vpop.f32.mrf.mxu1  ;;  %v8736_v55 = vld [vmem:[%s13524_s11 + $0x2e0] ss:$16 sps:$4 sm:$0xff]  }
 0x5c7   : > { %v11869_v36 = vadd.f32 %v3115_v54, %v3063_v58 }
 0x5c8   : > { %v3117_v20 = vpop.f32.mrf.mxu1 }
 0x5c9   : > { %v11867_v49 = vadd.f32 %v3117_v20, %v3065_v39 }
 0x5ca   : > { %v3119_v18 = vpop.f32.mrf.mxu1 }
 0x5cb   : > { %v11871_v35 = vadd.f32 %v3119_v18, %v3067_v24  ;;  %v8413_v13 = vpack.i.bf16 %v11867_v49, %v11865_v1  ;;  %v3338_v19 = vpack.c.bf16 %v11867_v49, %v11865_v1  ;;  %v8742_v1 = vld [vmem:[%s13524_s11 + $0x2c0] ss:$16 sps:$4 sm:$0xff]   ;;  %v8751_v49 = vld [vmem:[%s13524_s11 + $0xa4] ss:$16 sps:$4 sm:$0xff]  }
 0x5cd   : > { %8414 = vrot.lane.b32.xlu1 %v8413_v13, %s9425_s22  ;;  %v8423_v57 = vpack.i.bf16 %v11871_v35, %v11869_v36  ;;  %v3339_v23 = vpack.c.bf16 %v11871_v35, %v11869_v36  ;;  %v8735_v35 = vld [vmem:[%s13524_s11 + $0xe4] ss:$16 sps:$4 sm:$0xff]  }
 0x5cf   : > { %8424 = vrot.lane.b32.xlu0 %v8423_v57, %s9425_s22 }
 0x5d1   : > { %8419 = vrot.lane.b32.xlu1 %v8418_v32, %s9425_s22 }
 0x5d3   : > { %8429 = vrot.lane.b32.xlu0 %v8428_v17, %s9425_s22  ;;  %s9435_s22 = smov 119  }
 0x5d5   : > { %8434 = vrot.lane.b32.xlu1 %v8413_v13, %s9431_s27 }
 0x5d7   : > { %8444 = vrot.lane.b32.xlu0 %v8423_v57, %s9431_s27 }
 0x5d9   : > { %8439 = vrot.lane.b32.xlu1 %v8418_v32, %s9431_s27 }
 0x5db   : > { %8449 = vrot.lane.b32.xlu0 %v8428_v17, %s9431_s27  ;;  %s11901_s27 = scalar_lea.vmem %s13520_s7, %s7666_s15 }
 0x5dc   : > { %v8731_v31 = vld [vmem:[%s11901_s27 + $0x4] ss:$12 sps:$4 sm:$0xff]   ;;  %v8745_v62 = vld [vmem:[%s11901_s27 + $0x1c] ss:$12 sps:$4 sm:$0xff]  }
 0x5dd   : > { %8454 = vrot.lane.b32.xlu1 %v8413_v13, %s9432_s28  ;;  %3457 = vmatprep.mubr.bf16.mxu0 %v8731_v31 }
 0x5df   : > { %8464 = vrot.lane.b32.xlu0 %v8423_v57, %s9432_s28 }
 0x5e1   : > { %8459 = vrot.lane.b32.xlu1 %v8418_v32, %s9432_s28 }
 0x5e3   : > { %8469 = vrot.lane.b32.xlu0 %v8428_v17, %s9432_s28 }
 0x5e5   : > { %8474 = vrot.lane.b32.xlu1 %v8413_v13, %s9433_s18 }
 0x5e7   : > { %8484 = vrot.lane.b32.xlu0 %v8423_v57, %s9433_s18 }
 0x5e9   : > { %8479 = vrot.lane.b32.xlu1 %v8418_v32, %s9433_s18 }
 0x5eb   : > { %8489 = vrot.lane.b32.xlu0 %v8428_v17, %s9433_s18 }
 0x5ed   : > { %8494 = vrot.lane.b32.xlu1 %v8413_v13, %s9434_s19 }
 0x5ef   : > { %8504 = vrot.lane.b32.xlu0 %v8423_v57, %s9434_s19 }
 0x5f1   : > { %8499 = vrot.lane.b32.xlu1 %v8418_v32, %s9434_s19 }
 0x5f3   : > { %8509 = vrot.lane.b32.xlu0 %v8428_v17, %s9434_s19 }
 0x5f5   : > { %8514 = vrot.lane.b32.xlu1 %v8413_v13, %s9435_s22 }
 0x5f7   : > { %8524 = vrot.lane.b32.xlu0 %v8423_v57, %s9435_s22 }
 0x5f9   : > { %8519 = vrot.lane.b32.xlu1 %v8418_v32, %s9435_s22 }
 0x5fb   : > { %8529 = vrot.lane.b32.xlu0 %v8428_v17, %s9435_s22 }
 0x5fd   : > { %8534 = vrot.lane.b32.xlu1 %v8413_v13, %s9424_s21 }
 0x5ff   : > { %8544 = vrot.lane.b32.xlu0 %v8423_v57, %s9424_s21 }
 0x601   : > { %8539 = vrot.lane.b32.xlu1 %v8418_v32, %s9424_s21 }
 0x603   : > { %8549 = vrot.lane.b32.xlu0 %v8428_v17, %s9424_s21 }
 0x605   : > { %8554 = vrot.lane.b32.xlu1 %v8413_v13, %s9436_s20 }
 0x607   : > { %8564 = vrot.lane.b32.xlu0 %v8423_v57, %s9436_s20 }
 0x609   : > { %8559 = vrot.lane.b32.xlu1 %v8418_v32, %s9436_s20 }
 0x60b   : > { %8569 = vrot.lane.b32.xlu0 %v8428_v17, %s9436_s20 }
 0x60d   : > { %3370 = vperm.xlu1 %7932, %v3364_v42  }
 0x60f   : > { %3375 = vperm.xlu0 %7931, %v3365_v22  }
 0x611   : > { %3380 = vperm.xlu1 %7932, %v3366_v61  }
 0x613   : > { %3385 = vperm.xlu0 %7931, %v3367_v50  }
 0x63f   : > { %v8415_v4 = vpop.permute.xlu1 %8414 }
 0x640   : > { %v8417_v47 = vunpack.i.h.bf16 %v8415_v4  ;;  %v8416_v56 = vunpack.i.l.bf16 %v8415_v4 }
 0x641   : > { %v8425_v25 = vpop.permute.xlu0 %8424 }
 0x642   : > { %v8427_v10 = vunpack.i.h.bf16 %v8425_v25  ;;  %v8426_v44 = vunpack.i.l.bf16 %v8425_v25 }
 0x643   : > { %v8420_v12 = vpop.permute.xlu1 %8419 }
 0x644   : > { %v3220_v45 = vsel %vm779_vm4, %v8427_v10, %v8417_v47  ;;  %v3219_v21 = vsel %vm779_vm4, %v8426_v44, %v8416_v56  ;;  %v8422_v46 = vunpack.i.h.bf16 %v8420_v12  ;;  %v3215_v9 = vsel %vm779_vm4, %v8416_v56, %v8426_v44 }
 0x645   : > { %v3334_v16 = vpack.c.bf16 %v3220_v45, %v3219_v21  ;;  %v8430_v53 = vpop.permute.xlu0 %8429  ;;  %v3216_v59 = vsel %vm779_vm4, %v8417_v47, %v8427_v10  ;;  %v8421_v26 = vunpack.i.l.bf16 %v8420_v12 }
 0x646   : > { %v8432_v15 = vunpack.i.h.bf16 %v8430_v53  ;;  %v8431_v5 = vunpack.i.l.bf16 %v8430_v53  ;;  %v3335_v0 = vpack.c.bf16 %v3216_v59, %v3215_v9 }
 0x647   : > { %v8435_v34 = vpop.permute.xlu1 %8434 }
 0x648   : > { %v3218_v51 = vsel %vm779_vm4, %v8432_v15, %v8422_v46  ;;  %v3217_v29 = vsel %vm779_vm4, %v8431_v5, %v8421_v26  ;;  %3425 = vmatprep.subr.bf16.mxu0 %v3335_v0  ;;  %v8437_v54 = vunpack.i.h.bf16 %v8435_v34  ;;  %v3213_v39 = vsel %vm779_vm4, %v8421_v26, %v8431_v5 }
 0x649   : > { %v3332_v43 = vpack.c.bf16 %v3218_v51, %v3217_v29  ;;  %3426 = vmatpush1.bf16.msra.mxu0 %v3334_v16  ;;  %v8445_v3 = vpop.permute.xlu0 %8444  ;;  %v3214_v20 = vsel %vm779_vm4, %v8422_v46, %v8432_v15  ;;  %v8436_v58 = vunpack.i.l.bf16 %v8435_v34  ;;  %vm3163_vm4 = vcmp.lt.s32.totalorder %v9649_v27, 10  ;;  %v8738_v27 = vld [vmem:[%s13524_s11 + $0x2e4] ss:$16 sps:$4 sm:$0xff]  }
 0x64a   : > { %v8447_v24 = vunpack.i.h.bf16 %v8445_v3  ;;  %v8446_v18 = vunpack.i.l.bf16 %v8445_v3  ;;  %v3333_v13 = vpack.c.bf16 %v3214_v20, %v3213_v39 }
 0x64b   : > { %v8440_v57 = vpop.permute.xlu1 %8439 }
 0x64c   : > { %v3196_v32 = vsel %vm3188_vm10, %v8447_v24, %v8437_v54  ;;  %v3195_v17 = vsel %vm3188_vm10, %v8446_v18, %v8436_v58  ;;  %3427 = vmatprep.subr.bf16.mxu0 %v3333_v13  ;;  %v8442_v42 = vunpack.i.h.bf16 %v8440_v57  ;;  %v3191_v61 = vsel %vm3188_vm10, %v8436_v58, %v8446_v18 }
 0x64d   : > { %v3330_v31 = vpack.c.bf16 %v3196_v32, %v3195_v17  ;;  %3428 = vmatpush1.bf16.msra.mxu0 %v3332_v43  ;;  %v8450_v22 = vpop.permute.xlu0 %8449  ;;  %v3192_v50 = vsel %vm3188_vm10, %v8437_v54, %v8447_v24  ;;  %v8441_v4 = vunpack.i.l.bf16 %v8440_v57 }
 0x64e   : > { %v8452_v25 = vunpack.i.h.bf16 %v8450_v22  ;;  %v8451_v47 = vunpack.i.l.bf16 %v8450_v22  ;;  %v3331_v56 = vpack.c.bf16 %v3192_v50, %v3191_v61 }
 0x64f   : > { %v8455_v10 = vpop.permute.xlu1 %8454 }
 0x650   : > { %v3194_v44 = vsel %vm3188_vm10, %v8452_v25, %v8442_v42  ;;  %v3193_v12 = vsel %vm3188_vm10, %v8451_v47, %v8441_v4  ;;  %3429 = vmatprep.subr.bf16.mxu0 %v3331_v56  ;;  %v8457_v21 = vunpack.i.h.bf16 %v8455_v10  ;;  %v3189_v46 = vsel %vm3188_vm10, %v8441_v4, %v8451_v47 }
 0x651   : > { %v3328_v45 = vpack.c.bf16 %v3194_v44, %v3193_v12  ;;  %3430 = vmatpush1.bf16.msra.mxu0 %v3330_v31  ;;  %v8465_v16 = vpop.permute.xlu0 %8464  ;;  %v3190_v53 = vsel %vm3188_vm10, %v8442_v42, %v8452_v25  ;;  %v8456_v9 = vunpack.i.l.bf16 %v8455_v10 }
 0x652   : > { %v8467_v59 = vunpack.i.h.bf16 %v8465_v16  ;;  %v8466_v26 = vunpack.i.l.bf16 %v8465_v16  ;;  %v3329_v15 = vpack.c.bf16 %v3190_v53, %v3189_v46 }
 0x653   : > { %v8460_v5 = vpop.permute.xlu1 %8459 }
 0x654   : > { %v3171_v0 = vsel %vm3163_vm4, %v8467_v59, %v8457_v21  ;;  %v3170_v34 = vsel %vm3163_vm4, %v8466_v26, %v8456_v9  ;;  %3431 = vmatprep.subr.bf16.mxu0 %v3329_v15  ;;  %v8462_v29 = vunpack.i.h.bf16 %v8460_v5  ;;  %v3166_v54 = vsel %vm3163_vm4, %v8456_v9, %v8466_v26 }
 0x655   : > { %v3326_v51 = vpack.c.bf16 %v3171_v0, %v3170_v34  ;;  %3432 = vmatpush1.bf16.msra.mxu0 %v3328_v45  ;;  %v8470_v43 = vpop.permute.xlu0 %8469  ;;  %v3167_v3 = vsel %vm3163_vm4, %v8457_v21, %v8467_v59  ;;  %v8461_v39 = vunpack.i.l.bf16 %v8460_v5 }
 0x656   : > { %v8472_v20 = vunpack.i.h.bf16 %v8470_v43  ;;  %v8471_v58 = vunpack.i.l.bf16 %v8470_v43  ;;  %v3327_v24 = vpack.c.bf16 %v3167_v3, %v3166_v54 }
 0x657   : > { %v8475_v18 = vpop.permute.xlu1 %8474 }
 0x658   : > { %v3169_v13 = vsel %vm3163_vm4, %v8472_v20, %v8462_v29  ;;  %v3168_v57 = vsel %vm3163_vm4, %v8471_v58, %v8461_v39  ;;  %3433 = vmatprep.subr.bf16.mxu0 %v3327_v24  ;;  %v8477_v17 = vunpack.i.h.bf16 %v8475_v18  ;;  %v3164_v42 = vsel %vm3163_vm4, %v8461_v39, %v8471_v58 }
 0x659   : > { %v3324_v32 = vpack.c.bf16 %v3169_v13, %v3168_v57  ;;  %3434 = vmatpush1.bf16.msra.mxu0 %v3326_v51  ;;  %v8485_v31 = vpop.permute.xlu0 %8484  ;;  %v3165_v22 = vsel %vm3163_vm4, %v8462_v29, %v8472_v20  ;;  %v8476_v61 = vunpack.i.l.bf16 %v8475_v18 }
 0x65a   : > { %v8487_v50 = vunpack.i.h.bf16 %v8485_v31  ;;  %v8486_v4 = vunpack.i.l.bf16 %v8485_v31  ;;  %v3325_v25 = vpack.c.bf16 %v3165_v22, %v3164_v42 }
 0x65b   : > { %v8480_v47 = vpop.permute.xlu1 %8479 }
 0x65c   : > { %v3146_v56 = vsel %vm3138_vm11, %v8487_v50, %v8477_v17  ;;  %v3145_v10 = vsel %vm3138_vm11, %v8486_v4, %v8476_v61  ;;  %3435 = vmatprep.subr.bf16.mxu0 %v3325_v25  ;;  %v8482_v12 = vunpack.i.h.bf16 %v8480_v47  ;;  %v3141_v21 = vsel %vm3138_vm11, %v8476_v61, %v8486_v4 }
 0x65d   : > { %v3322_v44 = vpack.c.bf16 %v3146_v56, %v3145_v10  ;;  %3436 = vmatpush1.bf16.msra.mxu0 %v3324_v32  ;;  %v8490_v45 = vpop.permute.xlu0 %8489  ;;  %v3142_v16 = vsel %vm3138_vm11, %v8477_v17, %v8487_v50  ;;  %v8481_v46 = vunpack.i.l.bf16 %v8480_v47 }
 0x65e   : > { %v8492_v53 = vunpack.i.h.bf16 %v8490_v45  ;;  %v8491_v9 = vunpack.i.l.bf16 %v8490_v45  ;;  %v3323_v59 = vpack.c.bf16 %v3142_v16, %v3141_v21 }
 0x65f   : > { %v8495_v26 = vpop.permute.xlu1 %8494 }
 0x660   : > { %v3144_v15 = vsel %vm3138_vm11, %v8492_v53, %v8482_v12  ;;  %v3143_v5 = vsel %vm3138_vm11, %v8491_v9, %v8481_v46  ;;  %3437 = vmatprep.subr.bf16.mxu0 %v3323_v59  ;;  %v8497_v34 = vunpack.i.h.bf16 %v8495_v26  ;;  %v3139_v29 = vsel %vm3138_vm11, %v8481_v46, %v8491_v9 }
 0x661   : > { %v3320_v0 = vpack.c.bf16 %v3144_v15, %v3143_v5  ;;  %3438 = vmatpush1.bf16.msra.mxu0 %v3322_v44  ;;  %v8505_v51 = vpop.permute.xlu0 %8504  ;;  %v3140_v43 = vsel %vm3138_vm11, %v8482_v12, %v8492_v53  ;;  %v8496_v54 = vunpack.i.l.bf16 %v8495_v26 }
 0x662   : > { %v8507_v3 = vunpack.i.h.bf16 %v8505_v51  ;;  %v8506_v39 = vunpack.i.l.bf16 %v8505_v51  ;;  %v3321_v20 = vpack.c.bf16 %v3140_v43, %v3139_v29 }
 0x663   : > { %v8500_v58 = vpop.permute.xlu1 %8499 }
 0x664   : > { %v3290_v24 = vsel %vm3286_vm12, %v8497_v34, %v8507_v3  ;;  %v3289_v18 = vsel %vm3286_vm12, %v8496_v54, %v8506_v39  ;;  %3439 = vmatprep.subr.bf16.mxu0 %v3321_v20  ;;  %v8502_v57 = vunpack.i.h.bf16 %v8500_v58  ;;  %v3293_v17 = vsel %vm3286_vm12, %v8506_v39, %v8496_v54 }
 0x665   : > { %v3350_v13 = vpack.c.bf16 %v3290_v24, %v3289_v18  ;;  %3440 = vmatpush1.bf16.msra.mxu0 %v3320_v0  ;;  %v8510_v32 = vpop.permute.xlu0 %8509  ;;  %v3294_v31 = vsel %vm3286_vm12, %v8507_v3, %v8497_v34  ;;  %v8501_v42 = vunpack.i.l.bf16 %v8500_v58 }
 0x666   : > { %v8512_v22 = vunpack.i.h.bf16 %v8510_v32  ;;  %v8511_v61 = vunpack.i.l.bf16 %v8510_v32  ;;  %v3351_v50 = vpack.c.bf16 %v3294_v31, %v3293_v17 }
 0x667   : > { %v8515_v4 = vpop.permute.xlu1 %8514 }
 0x668   : > { %v3288_v25 = vsel %vm3286_vm12, %v8502_v57, %v8512_v22  ;;  %v3287_v47 = vsel %vm3286_vm12, %v8501_v42, %v8511_v61  ;;  %3441 = vmatprep.subr.bf16.mxu0 %v3351_v50  ;;  %v8517_v10 = vunpack.i.h.bf16 %v8515_v4  ;;  %v3291_v12 = vsel %vm3286_vm12, %v8511_v61, %v8501_v42 }
 0x669   : > { %v3348_v56 = vpack.c.bf16 %v3288_v25, %v3287_v47  ;;  %3442 = vmatpush2.bf16.msra.mxu0 %v3350_v13  ;;  %v8525_v44 = vpop.permute.xlu0 %8524  ;;  %v3292_v45 = vsel %vm3286_vm12, %v8512_v22, %v8502_v57  ;;  %v8516_v21 = vunpack.i.l.bf16 %v8515_v4 }
 0x66a   : > { %v8527_v16 = vunpack.i.h.bf16 %v8525_v44  ;;  %v8526_v46 = vunpack.i.l.bf16 %v8525_v44  ;;  %v3349_v53 = vpack.c.bf16 %v3292_v45, %v3291_v12 }
 0x66b   : > { %v8520_v9 = vpop.permute.xlu1 %8519 }
 0x66c   : > { %v3265_v59 = vsel %vm3261_vm13, %v8517_v10, %v8527_v16  ;;  %v3264_v26 = vsel %vm3261_vm13, %v8516_v21, %v8526_v46  ;;  %3443 = vmatprep.subr.bf16.mxu0 %v3349_v53  ;;  %v8522_v5 = vunpack.i.h.bf16 %v8520_v9  ;;  %v3268_v34 = vsel %vm3261_vm13, %v8526_v46, %v8516_v21 }
 0x66d   : > { %v3346_v15 = vpack.c.bf16 %v3265_v59, %v3264_v26  ;;  %3444 = vmatpush2.bf16.msra.mxu0 %v3348_v56  ;;  %v8530_v0 = vpop.permute.xlu0 %8529  ;;  %v3269_v51 = vsel %vm3261_vm13, %v8527_v16, %v8517_v10  ;;  %v8521_v29 = vunpack.i.l.bf16 %v8520_v9 }
 0x66e   : > { %v8532_v43 = vunpack.i.h.bf16 %v8530_v0  ;;  %v8531_v54 = vunpack.i.l.bf16 %v8530_v0  ;;  %v3347_v3 = vpack.c.bf16 %v3269_v51, %v3268_v34 }
 0x66f   : > { %v8535_v39 = vpop.permute.xlu1 %8534 }
 0x670   : > { %v3263_v20 = vsel %vm3261_vm13, %v8522_v5, %v8532_v43  ;;  %v3262_v58 = vsel %vm3261_vm13, %v8521_v29, %v8531_v54  ;;  %3445 = vmatprep.subr.bf16.mxu0 %v3347_v3  ;;  %v8537_v18 = vunpack.i.h.bf16 %v8535_v39  ;;  %v3266_v57 = vsel %vm3261_vm13, %v8531_v54, %v8521_v29 }
 0x671   : > { %v3344_v24 = vpack.c.bf16 %v3263_v20, %v3262_v58  ;;  %3446 = vmatpush2.bf16.msra.mxu0 %v3346_v15  ;;  %v8545_v13 = vpop.permute.xlu0 %8544  ;;  %v3267_v32 = vsel %vm3261_vm13, %v8532_v43, %v8522_v5  ;;  %v8536_v17 = vunpack.i.l.bf16 %v8535_v39 }
 0x672   : > { %v8547_v31 = vunpack.i.h.bf16 %v8545_v13  ;;  %v8546_v42 = vunpack.i.l.bf16 %v8545_v13  ;;  %v3345_v22 = vpack.c.bf16 %v3267_v32, %v3266_v57 }
 0x673   : > { %v8540_v61 = vpop.permute.xlu1 %8539 }
 0x674   : > { %v3240_v50 = vsel %vm816_vm3, %v8537_v18, %v8547_v31  ;;  %v3239_v4 = vsel %vm816_vm3, %v8536_v17, %v8546_v42  ;;  %3447 = vmatprep.subr.bf16.mxu0 %v3345_v22  ;;  %v8542_v47 = vunpack.i.h.bf16 %v8540_v61  ;;  %v3243_v10 = vsel %vm816_vm3, %v8546_v42, %v8536_v17 }
 0x675   : > { %v3342_v25 = vpack.c.bf16 %v3240_v50, %v3239_v4  ;;  %3448 = vmatpush2.bf16.msra.mxu0 %v3344_v24  ;;  %v8550_v56 = vpop.permute.xlu0 %8549  ;;  %v3244_v44 = vsel %vm816_vm3, %v8547_v31, %v8537_v18  ;;  %v8541_v12 = vunpack.i.l.bf16 %v8540_v61 }
 0x676   : > { %v8552_v45 = vunpack.i.h.bf16 %v8550_v56  ;;  %v8551_v21 = vunpack.i.l.bf16 %v8550_v56  ;;  %v3343_v16 = vpack.c.bf16 %v3244_v44, %v3243_v10  ;;  %v8747_v56 = vld [vmem:[%s11901_s27 + $0x18] ss:$12 sps:$4 sm:$0xff]   ;;  %v8748_v10 = vld [vmem:[%s11901_s27 + $0x20] ss:$12 sps:$4 sm:$0xff]   ;;  %v3564_v44 = vmul.f32 0.5, %v10933_v28 }
 0x677   : > { %v8555_v46 = vpop.permute.xlu1 %8554  ;;  %v8760_v28 = vld [vmem:[%s13524_s11 + $0x284] ss:$16 sps:$4 sm:$0xff]  }
 0x678   : > { %v3238_v53 = vsel %vm816_vm3, %v8542_v47, %v8552_v45  ;;  %v3237_v9 = vsel %vm816_vm3, %v8541_v12, %v8551_v21  ;;  %3449 = vmatprep.subr.bf16.mxu0 %v3343_v16  ;;  %v8557_v26 = vunpack.i.h.bf16 %v8555_v46  ;;  %v3241_v5 = vsel %vm816_vm3, %v8551_v21, %v8541_v12  ;;  %v8749_v12 = vld [vmem:[%s13524_s11 + $0xa0] ss:$16 sps:$4 sm:$0xff]  }
 0x679   : > { %v3340_v59 = vpack.c.bf16 %v3238_v53, %v3237_v9  ;;  %3450 = vmatpush2.bf16.msra.mxu0 %v3342_v25  ;;  %v8565_v15 = vpop.permute.xlu0 %8564  ;;  %v3242_v0 = vsel %vm816_vm3, %v8552_v45, %v8542_v47  ;;  %v8556_v34 = vunpack.i.l.bf16 %v8555_v46  ;;  %v8732_v25 = vld [vmem:[%s11901_s27 + $0x8] ss:$12 sps:$4 sm:$0xff]   ;;  %vm3418_vm3 = vcmask 261120   ;;  %v8752_v45 = vld [vmem:[%s13524_s11 + $0x2a0] ss:$16 sps:$4 sm:$0xff]  }
 0x67a   : > { %v8567_v51 = vunpack.i.h.bf16 %v8565_v15  ;;  %v8566_v29 = vunpack.i.l.bf16 %v8565_v15  ;;  %v3341_v43 = vpack.c.bf16 %v3242_v0, %v3241_v5  ;;  %v3562_v47 = vmul.f32 0.5, %v10889_v37  ;;  %v8757_v37 = vld [vmem:[%s13524_s11 + $0x84] ss:$16 sps:$4 sm:$0xff]   ;;  %v8755_v16 = vld [vmem:[%s13524_s11 + $0x80] ss:$16 sps:$4 sm:$0xff]  }
 0x67b   : > { %v8560_v54 = vpop.permute.xlu1 %8559  ;;  %v8758_v46 = vld [vmem:[%s13524_s11 + $0x280] ss:$16 sps:$4 sm:$0xff]   ;;  %v8763_v53 = vld [vmem:[%s13524_s11 + $0x64] ss:$16 sps:$4 sm:$0xff]  }
 0x67c   : > { %v3315_v3 = vsel %vm3311_vm0, %v8557_v26, %v8567_v51  ;;  %v3314_v39 = vsel %vm3311_vm0, %v8556_v34, %v8566_v29  ;;  %3451 = vmatprep.subr.bf16.mxu0 %v3341_v43  ;;  %v8562_v58 = vunpack.i.h.bf16 %v8560_v54  ;;  %v3318_v18 = vsel %vm3311_vm0, %v8566_v29, %v8556_v34  ;;  %v8766_v9 = vld [vmem:[%s13524_s11 + $0x264] ss:$16 sps:$4 sm:$0xff]   ;;  %v8767_v0 = vld [vmem:[%s13524_s11 + $0x40] ss:$16 sps:$4 sm:$0xff]  }
 0x67d   : > { %v3354_v20 = vpack.c.bf16 %v3315_v3, %v3314_v39  ;;  %3452 = vmatpush2.bf16.msra.mxu0 %v3340_v59  ;;  %v8570_v24 = vpop.permute.xlu0 %8569  ;;  %v3319_v13 = vsel %vm3311_vm0, %v8567_v51, %v8557_v26  ;;  %v8561_v57 = vunpack.i.l.bf16 %v8560_v54  ;;  %v12095_v21 = vpack.c.bf16 %v3562_v47, %v3562_v47  ;;  %v8761_v59 = vld [vmem:[%s13524_s11 + $0x60] ss:$16 sps:$4 sm:$0xff]   ;;  %v8769_v15 = vld [vmem:[%s13524_s11 + $0x44] ss:$16 sps:$4 sm:$0xff]  }
 0x67e   : > { %v8572_v32 = vunpack.i.h.bf16 %v8570_v24  ;;  %v8571_v17 = vunpack.i.l.bf16 %v8570_v24  ;;  %3453 = vmatprep.subr.bf16.mxu0 %v3339_v23  ;;  %v3355_v31 = vpack.c.bf16 %v3319_v13, %v3318_v18  ;;  %v8729_v23 = vld [vmem:[%s11901_s27] ss:$12 sps:$4 sm:$0xff]   ;;  %v8772_v5 = vld [vmem:[%s13524_s11 + $0x244] ss:$16 sps:$4 sm:$0xff]  }
 0x67f   : > { %v8764_v26 = vld [vmem:[%s13524_s11 + $0x260] ss:$16 sps:$4 sm:$0xff]   ;;  %v8775_v51 = vld [vmem:[%s13524_s11 + $0x24] ss:$16 sps:$4 sm:$0xff]  }
 0x680   : > { %v3313_v42 = vsel %vm3311_vm0, %v8562_v58, %v8572_v32  ;;  %v3312_v22 = vsel %vm3311_vm0, %v8561_v57, %v8571_v17  ;;  %3490 = vmatprep.subr.bf16.mxu1 %v3355_v31  ;;  %v3316_v61 = vsel %vm3311_vm0, %v8571_v17, %v8561_v57  ;;  %v3317_v50 = vsel %vm3311_vm0, %v8572_v32, %v8562_v58  ;;  %v8770_v34 = vld [vmem:[%s13524_s11 + $0x240] ss:$16 sps:$4 sm:$0xff]   ;;  %v8778_v29 = vld [vmem:[%s13524_s11 + $0x224] ss:$16 sps:$4 sm:$0xff]  }
 0x681   : > { %v3352_v4 = vpack.c.bf16 %v3313_v42, %v3312_v22  ;;  %3454 = vmatpush2.bf16.msra.mxu0 %v3338_v19  ;;  %3491 = vmatpush1.bf16.msra.mxu1 %v3354_v20  ;;  %v3353_v36 = vpack.c.bf16 %v3317_v50, %v3316_v61  ;;  %v8754_v19 = vld [vmem:[%s13524_s11 + $0x2a4] ss:$16 sps:$4 sm:$0xff]   ;;  %v8773_v43 = vld [vmem:[%s13524_s11 + $0x20] ss:$16 sps:$4 sm:$0xff]  }
 0x682   : > { %3455 = vmatprep.subr.bf16.mxu0 %v3337_v7  ;;  %v8741_v7 = vld [vmem:[%s13524_s11 + $0xc4] ss:$16 sps:$4 sm:$0xff]   ;;  %v8776_v54 = vld [vmem:[%s13524_s11 + $0x220] ss:$16 sps:$4 sm:$0xff]  }
 0x683   : > { %3492 = vmatprep.subr.bf16.mxu1 %v3353_v36  ;;  %v8781_v3 = vld [vmem:[%s13524_s11 + $0x4] ss:$16 sps:$4 sm:$0xff]   ;;  %v8779_v20 = vld [vmem:[%s13524_s11] ss:$16 sps:$4 sm:$0xff]  }
 0x684   : > { %v8784_v39 = vld [vmem:[%s13524_s11 + $0x204] ss:$16 sps:$4 sm:$0xff]   ;;  %v8782_v58 = vld [vmem:[%s13524_s11 + $0x200] ss:$16 sps:$4 sm:$0xff]  }
 0x685   : > { %3456 = vmatpush2.bf16.msra.mxu0 %v3336_v41  ;;  %3493 = vmatpush1.bf16.msra.mxu1 %v3352_v4  ;;  %v8739_v41 = vld [vmem:[%s13524_s11 + $0xc0] ss:$16 sps:$4 sm:$0xff]   ;;  %v8787_v24 = vld [vmem:[%s13524_s11 + $0x1e4] ss:$16 sps:$4 sm:$0xff]  }
 0x686   : > { %4757 = vmatprep.subr.bf16.mxu1 %v8735_v35  ;;  %4798 = vmatprep.subr.bf16.mxu0 %v8738_v27  ;;  %v8790_v18 = vld [vmem:[%s13524_s11 + $0x3e4] ss:$16 sps:$4 sm:$0xff]   ;;  %v8785_v13 = vld [vmem:[%s13524_s11 + $0x1e0] ss:$16 sps:$4 sm:$0xff]  }
 0x687   : > { %v8788_v57 = vld [vmem:[%s13524_s11 + $0x3e0] ss:$16 sps:$4 sm:$0xff]   ;;  %v8793_v32 = vld [vmem:[%s13524_s11 + $0x1c4] ss:$16 sps:$4 sm:$0xff]  }
 0x688   : > { %3458 = vmatmul.mubr.bf16.vlgmr.msra.gmra.mxu0 %v8729_v23  ;;  %7206 = vmatmul.mubr.msk.bf16.vlgmr.msra.gmra.mxu1 %vm3418_vm3, %v8732_v25  ;;  %v8796_v17 = vld [vmem:[%s13524_s11 + $0x3c4] ss:$16 sps:$4 sm:$0xff]   ;;  %v8791_v31 = vld [vmem:[%s13524_s11 + $0x1c0] ss:$16 sps:$4 sm:$0xff]  }
 0x689   : > { %4758 = vmatpush1.bf16.msra.mxu1 %v8733_v63  ;;  %4799 = vmatpush1.bf16.msra.mxu0 %v8736_v55  ;;  %v8794_v42 = vld [vmem:[%s13524_s11 + $0x3c0] ss:$16 sps:$4 sm:$0xff]   ;;  %v8799_v22 = vld [vmem:[%s13524_s11 + $0x1a4] ss:$16 sps:$4 sm:$0xff]  }
 0x68a   : > { %4759 = vmatprep.subr.bf16.mxu1 %v8741_v7  ;;  %4800 = vmatprep.subr.bf16.mxu0 %v8744_v14  ;;  %v8802_v61 = vld [vmem:[%s13524_s11 + $0x3a4] ss:$16 sps:$4 sm:$0xff]   ;;  %v8797_v50 = vld [vmem:[%s13524_s11 + $0x1a0] ss:$16 sps:$4 sm:$0xff]  }
 0x68b   : > { %3467 = vmatprep.mubr.bf16.mxu0 %v8745_v62  ;;  %3520 = vmatprep.mubr.bf16.mxu1 %v13635_v48  ;;  %v12104_v48 = vpack.c.bf16 %v3564_v44, %v3564_v44  ;;  %v8800_v4 = vld [vmem:[%s13524_s11 + $0x3a0] ss:$16 sps:$4 sm:$0xff]   ;;  %v8805_v36 = vld [vmem:[%s13524_s11 + $0x184] ss:$16 sps:$4 sm:$0xff]  }
 0x68c   : > { %v8808_v35 = vld [vmem:[%s13524_s11 + $0x384] ss:$16 sps:$4 sm:$0xff]   ;;  %v8803_v27 = vld [vmem:[%s13524_s11 + $0x180] ss:$16 sps:$4 sm:$0xff]  }
 0x68d   : > { %4760 = vmatpush1.bf16.msra.mxu1 %v8739_v41  ;;  %4801 = vmatpush1.bf16.msra.mxu0 %v8742_v1  ;;  %v8806_v23 = vld [vmem:[%s13524_s11 + $0x380] ss:$16 sps:$4 sm:$0xff]   ;;  %v8811_v25 = vld [vmem:[%s13524_s11 + $0x164] ss:$16 sps:$4 sm:$0xff]  }
 0x68e   : > { %4761 = vmatprep.subr.bf16.mxu1 %v8751_v49  ;;  %4802 = vmatprep.subr.bf16.mxu0 %v8754_v19  ;;  %v8814_v63 = vld [vmem:[%s13524_s11 + $0x364] ss:$16 sps:$4 sm:$0xff]   ;;  %v8809_v55 = vld [vmem:[%s13524_s11 + $0x160] ss:$16 sps:$4 sm:$0xff]  }
 0x68f   : > { %v8812_v7 = vld [vmem:[%s13524_s11 + $0x360] ss:$16 sps:$4 sm:$0xff]   ;;  %v8817_v14 = vld [vmem:[%s13524_s11 + $0x144] ss:$16 sps:$4 sm:$0xff]  }
 0x690   : > { %3468 = vmatmul.mubr.bf16.gmra.mxu0 %v8747_v56  ;;  %7207 = vmatmul.mubr.msk.bf16.gmra.mxu1 %vm3418_vm3, %v8748_v10  ;;  %v8820_v62 = vld [vmem:[%s13524_s11 + $0x344] ss:$16 sps:$4 sm:$0xff]   ;;  %v8815_v41 = vld [vmem:[%s13524_s11 + $0x140] ss:$16 sps:$4 sm:$0xff]  }
 0x691   : > { %4762 = vmatpush1.bf16.msra.mxu1 %v8749_v12  ;;  %4789 = vmatprep.mubr.bf16.mxu1 %v12095_v21  ;;  %v8818_v1 = vld [vmem:[%s13524_s11 + $0x340] ss:$16 sps:$4 sm:$0xff]   ;;  %v8823_v49 = vld [vmem:[%s13524_s11 + $0x124] ss:$16 sps:$4 sm:$0xff]  }
 0x692   : > { %4803 = vmatpush1.bf16.msra.mxu0 %v8752_v45  ;;  %4830 = vmatprep.mubr.bf16.mxu0 %v12104_v48  ;;  %v8826_v19 = vld [vmem:[%s13524_s11 + $0x324] ss:$16 sps:$4 sm:$0xff]   ;;  %v8821_v47 = vld [vmem:[%s13524_s11 + $0x120] ss:$16 sps:$4 sm:$0xff]  }
 0x693   : > { %4763 = vmatprep.subr.bf16.mxu1 %v8757_v37  ;;  %4804 = vmatprep.subr.bf16.mxu0 %v8760_v28  ;;  %v8824_v56 = vld [vmem:[%s13524_s11 + $0x320] ss:$16 sps:$4 sm:$0xff]   ;;  %v8829_v10 = vld [vmem:[%s13524_s11 + $0x104] ss:$16 sps:$4 sm:$0xff]   ;;  %v3561_v37 = vmul.f32 0.5, %v10893_v8 }
 0x694   : > { %v8832_v44 = vld [vmem:[%s13524_s11 + $0x304] ss:$16 sps:$4 sm:$0xff]   ;;  %v8827_v12 = vld [vmem:[%s13524_s11 + $0x100] ss:$16 sps:$4 sm:$0xff]  }
 0x695   : > { %4764 = vmatpush1.bf16.msra.mxu1 %v8755_v16  ;;  %v8830_v45 = vld [vmem:[%s13524_s11 + $0x300] ss:$16 sps:$4 sm:$0xff]   ;;  %v8835_v28 = vld [vmem:[%s13524_s11 + $0x4e4] ss:$16 sps:$4 sm:$0xff]   ;;  %v3563_v16 = vmul.f32 0.5, %v10937_v40  ;;  %v12270_v8 = vpack.c.bf16 %v3561_v37, %v3561_v37 }
 0x696   : > { %4805 = vmatpush1.bf16.msra.mxu0 %v8758_v46  ;;  %4765 = vmatprep.subr.bf16.mxu1 %v8763_v53  ;;  %v8838_v46 = vld [vmem:[%s13524_s11 + $0xec] ss:$16 sps:$4 sm:$0xff]   ;;  %v3566_v53 = vmul.f32 0.5, %v10978_v60  ;;  %v8841_v60 = vld [vmem:[%s13524_s11 + $0x4c4] ss:$16 sps:$4 sm:$0xff]  }
 0x697   : > { %4806 = vmatprep.subr.bf16.mxu0 %v8766_v9  ;;  %v8833_v9 = vld [vmem:[%s13524_s11 + $0x4e0] ss:$16 sps:$4 sm:$0xff]   ;;  %v12275_v40 = vpack.c.bf16 %v3563_v16, %v3563_v16  ;;  %v8913_v16 = vld [vmem:[%s13524_s11 + $0x544] ss:$16 sps:$4 sm:$0xff]  }
 0x698   : > { %v8905_v37 = vld [vmem:[%s13524_s11 + $0x560] ss:$16 sps:$4 sm:$0xff]  }
 0x699   : > { %4766 = vmatpush1.bf16.msra.mxu1 %v8761_v59  ;;  %v8836_v59 = vld [vmem:[%s13524_s11 + $0xe8] ss:$16 sps:$4 sm:$0xff]  }
 0x69a   : > { %4807 = vmatpush1.bf16.msra.mxu0 %v8764_v26  ;;  %4767 = vmatprep.subr.bf16.mxu1 %v8769_v15  ;;  %v12281_v26 = vpack.c.bf16 %v3566_v53, %v3566_v53  ;;  %v8844_v15 = vld [vmem:[%s13524_s11 + $0xcc] ss:$16 sps:$4 sm:$0xff]   ;;  %v8911_v53 = vld [vmem:[%s13524_s11 + $0x540] ss:$16 sps:$4 sm:$0xff]  }
 0x69b   : > { %4808 = vmatprep.subr.bf16.mxu0 %v8772_v5  ;;  %v8839_v5 = vld [vmem:[%s13524_s11 + $0x4c0] ss:$16 sps:$4 sm:$0xff]  }
 0x69d   : > { %4768 = vmatpush1.bf16.msra.mxu1 %v8767_v0  ;;  %v8842_v0 = vld [vmem:[%s13524_s11 + $0xc8] ss:$16 sps:$4 sm:$0xff]  }
 0x69e   : > { %4809 = vmatpush1.bf16.msra.mxu0 %v8770_v34  ;;  %4769 = vmatprep.subr.bf16.mxu1 %v8775_v51  ;;  %v8847_v34 = vld [vmem:[%s13524_s11 + $0x4a4] ss:$16 sps:$4 sm:$0xff]   ;;  %v8850_v51 = vld [vmem:[%s13524_s11 + $0xac] ss:$16 sps:$4 sm:$0xff]  }
 0x69f   : > { %4810 = vmatprep.subr.bf16.mxu0 %v8778_v29  ;;  %v8845_v29 = vld [vmem:[%s13524_s11 + $0x4a0] ss:$16 sps:$4 sm:$0xff]  }
 0x6a1   : > { %4770 = vmatpush1.bf16.msra.mxu1 %v8773_v43  ;;  %v8848_v43 = vld [vmem:[%s13524_s11 + $0xa8] ss:$16 sps:$4 sm:$0xff]  }
 0x6a2   : > { %4811 = vmatpush1.bf16.msra.mxu0 %v8776_v54  ;;  %4771 = vmatprep.subr.bf16.mxu1 %v8781_v3  ;;  %v8856_v54 = vld [vmem:[%s13524_s11 + $0x8c] ss:$16 sps:$4 sm:$0xff]   ;;  %v8851_v3 = vld [vmem:[%s13524_s11 + $0x480] ss:$16 sps:$4 sm:$0xff]  }
 0x6a3   : > { %4812 = vmatprep.subr.bf16.mxu0 %v8784_v39  ;;  %v8854_v39 = vld [vmem:[%s13524_s11 + $0x88] ss:$16 sps:$4 sm:$0xff]  }
 0x6a5   : > { %4772 = vmatpush1.bf16.msra.mxu1 %v8779_v20  ;;  %v8859_v20 = vld [vmem:[%s13524_s11 + $0x464] ss:$16 sps:$4 sm:$0xff]  }
 0x6a6   : > { %4813 = vmatpush1.bf16.msra.mxu0 %v8782_v58  ;;  %4773 = vmatprep.subr.bf16.mxu1 %v8787_v24  ;;  %v8862_v58 = vld [vmem:[%s13524_s11 + $0x6c] ss:$16 sps:$4 sm:$0xff]   ;;  %v8857_v24 = vld [vmem:[%s13524_s11 + $0x460] ss:$16 sps:$4 sm:$0xff]  }
 0x6a7   : > { %4814 = vmatprep.subr.bf16.mxu0 %v8790_v18  ;;  %v8860_v18 = vld [vmem:[%s13524_s11 + $0x68] ss:$16 sps:$4 sm:$0xff]  }
 0x6a9   : > { %4774 = vmatpush2.bf16.msra.mxu1 %v8785_v13  ;;  %v8865_v13 = vld [vmem:[%s13524_s11 + $0x444] ss:$16 sps:$4 sm:$0xff]  }
 0x6aa   : > { %4815 = vmatpush2.bf16.msra.mxu0 %v8788_v57  ;;  %4775 = vmatprep.subr.bf16.mxu1 %v8793_v32  ;;  %v8868_v57 = vld [vmem:[%s13524_s11 + $0x4c] ss:$16 sps:$4 sm:$0xff]   ;;  %v8863_v32 = vld [vmem:[%s13524_s11 + $0x440] ss:$16 sps:$4 sm:$0xff]  }
 0x6ab   : > { %4816 = vmatprep.subr.bf16.mxu0 %v8796_v17  ;;  %v8866_v17 = vld [vmem:[%s13524_s11 + $0x48] ss:$16 sps:$4 sm:$0xff]  }
 0x6ad   : > { %4776 = vmatpush2.bf16.msra.mxu1 %v8791_v31  ;;  %v8871_v31 = vld [vmem:[%s13524_s11 + $0x424] ss:$16 sps:$4 sm:$0xff]  }
 0x6ae   : > { %4817 = vmatpush2.bf16.msra.mxu0 %v8794_v42  ;;  %4777 = vmatprep.subr.bf16.mxu1 %v8799_v22  ;;  %v8874_v42 = vld [vmem:[%s13524_s11 + $0x2c] ss:$16 sps:$4 sm:$0xff]   ;;  %v8869_v22 = vld [vmem:[%s13524_s11 + $0x420] ss:$16 sps:$4 sm:$0xff]  }
 0x6af   : > { %4818 = vmatprep.subr.bf16.mxu0 %v8802_v61  ;;  %v8872_v61 = vld [vmem:[%s13524_s11 + $0x28] ss:$16 sps:$4 sm:$0xff]  }
 0x6b1   : > { %4778 = vmatpush2.bf16.msra.mxu1 %v8797_v50  ;;  %v8877_v50 = vld [vmem:[%s13524_s11 + $0x404] ss:$16 sps:$4 sm:$0xff]  }
 0x6b2   : > { %4819 = vmatpush2.bf16.msra.mxu0 %v8800_v4  ;;  %4779 = vmatprep.subr.bf16.mxu1 %v8805_v36  ;;  %v8880_v4 = vld [vmem:[%s13524_s11 + $0xc] ss:$16 sps:$4 sm:$0xff]   ;;  %v8875_v36 = vld [vmem:[%s13524_s11 + $0x400] ss:$16 sps:$4 sm:$0xff]  }
 0x6b3   : > { %4820 = vmatprep.subr.bf16.mxu0 %v8808_v35  ;;  %v8878_v35 = vld [vmem:[%s13524_s11 + $0x8] ss:$16 sps:$4 sm:$0xff]  }
 0x6b5   : > { %4780 = vmatpush2.bf16.msra.mxu1 %v8803_v27  ;;  %v8883_v27 = vld [vmem:[%s13524_s11 + $0x5e4] ss:$16 sps:$4 sm:$0xff]  }
 0x6b6   : > { %4821 = vmatpush2.bf16.msra.mxu0 %v8806_v23  ;;  %4781 = vmatprep.subr.bf16.mxu1 %v8811_v25  ;;  %v8886_v23 = vld [vmem:[%s13524_s11 + $0x1ec] ss:$16 sps:$4 sm:$0xff]   ;;  %v8881_v25 = vld [vmem:[%s13524_s11 + $0x5e0] ss:$16 sps:$4 sm:$0xff]  }
 0x6b7   : > { %4822 = vmatprep.subr.bf16.mxu0 %v8814_v63  ;;  %v8884_v63 = vld [vmem:[%s13524_s11 + $0x1e8] ss:$16 sps:$4 sm:$0xff]  }
 0x6b9   : > { %4782 = vmatpush2.bf16.msra.mxu1 %v8809_v55  ;;  %v8889_v55 = vld [vmem:[%s13524_s11 + $0x5c4] ss:$16 sps:$4 sm:$0xff]  }
 0x6ba   : > { %4823 = vmatpush2.bf16.msra.mxu0 %v8812_v7  ;;  %4783 = vmatprep.subr.bf16.mxu1 %v8817_v14  ;;  %v8892_v7 = vld [vmem:[%s13524_s11 + $0x1cc] ss:$16 sps:$4 sm:$0xff]   ;;  %v8887_v14 = vld [vmem:[%s13524_s11 + $0x5c0] ss:$16 sps:$4 sm:$0xff]  }
 0x6bb   : > { %4824 = vmatprep.subr.bf16.mxu0 %v8820_v62  ;;  %v8890_v62 = vld [vmem:[%s13524_s11 + $0x1c8] ss:$16 sps:$4 sm:$0xff]  }
 0x6bd   : > { %4784 = vmatpush2.bf16.msra.mxu1 %v8815_v41  ;;  %v8895_v41 = vld [vmem:[%s13524_s11 + $0x5a4] ss:$16 sps:$4 sm:$0xff]  }
 0x6be   : > { %4825 = vmatpush2.bf16.msra.mxu0 %v8818_v1  ;;  %4785 = vmatprep.subr.bf16.mxu1 %v8823_v49  ;;  %v8898_v1 = vld [vmem:[%s13524_s11 + $0x1ac] ss:$16 sps:$4 sm:$0xff]   ;;  %v8893_v49 = vld [vmem:[%s13524_s11 + $0x5a0] ss:$16 sps:$4 sm:$0xff]  }
 0x6bf   : > { %4826 = vmatprep.subr.bf16.mxu0 %v8826_v19  ;;  %v8896_v19 = vld [vmem:[%s13524_s11 + $0x1a8] ss:$16 sps:$4 sm:$0xff]  }
 0x6c1   : > { %4786 = vmatpush2.bf16.msra.mxu1 %v8821_v47  ;;  %v8901_v47 = vld [vmem:[%s13524_s11 + $0x584] ss:$16 sps:$4 sm:$0xff]  }
 0x6c2   : > { %4827 = vmatpush2.bf16.msra.mxu0 %v8824_v56  ;;  %4787 = vmatprep.subr.bf16.mxu1 %v8829_v10  ;;  %v8904_v56 = vld [vmem:[%s13524_s11 + $0x18c] ss:$16 sps:$4 sm:$0xff]   ;;  %v8899_v10 = vld [vmem:[%s13524_s11 + $0x580] ss:$16 sps:$4 sm:$0xff]  }
 0x6c3   : > { %4828 = vmatprep.subr.bf16.mxu0 %v8832_v44  ;;  %v8902_v44 = vld [vmem:[%s13524_s11 + $0x188] ss:$16 sps:$4 sm:$0xff]  }
 0x6c5   : > { %4788 = vmatpush2.bf16.msra.mxu1 %v8827_v12  ;;  %v8907_v12 = vld [vmem:[%s13524_s11 + $0x564] ss:$16 sps:$4 sm:$0xff]  }
 0x6c6   : > { %4829 = vmatpush2.bf16.msra.mxu0 %v8830_v45  ;;  %4839 = vmatprep.subr.bf16.mxu1 %v8835_v28  ;;  %v8910_v45 = vld [vmem:[%s13524_s11 + $0x16c] ss:$16 sps:$4 sm:$0xff]   ;;  %v8908_v28 = vld [vmem:[%s13524_s11 + $0x168] ss:$16 sps:$4 sm:$0xff]  }
 0x6c7   : > { %4880 = vmatprep.subr.bf16.mxu0 %v8838_v46  ;;  %v8916_v46 = vld [vmem:[%s13524_s11 + $0x14c] ss:$16 sps:$4 sm:$0xff]  }
 0x6c8   : > { %4790 = vmatmul.mubr.bf16.vlgmr.msra.gmra.mxu1 %v12270_v8 }
 0x6c9   : > { %4831 = vmatmul.mubr.bf16.vlgmr.msra.gmra.mxu0 %v12275_v40  ;;  %4840 = vmatpush1.bf16.msra.mxu1 %v8833_v9  ;;  %v8914_v9 = vld [vmem:[%s13524_s11 + $0x148] ss:$16 sps:$4 sm:$0xff]  }
 0x6ca   : > { %4871 = vmatprep.mubr.bf16.mxu1 %v12281_v26  ;;  %4881 = vmatpush1.bf16.msra.mxu0 %v8836_v59  ;;  %v8919_v59 = vld [vmem:[%s13524_s11 + $0x524] ss:$16 sps:$4 sm:$0xff]  }
 0x6cb   : > { %4912 = vmatprep.mubr.bf16.mxu0 %v12095_v21  ;;  %4841 = vmatprep.subr.bf16.mxu1 %v8841_v60  ;;  %v8853_v21 = vld [vmem:[%s13524_s11 + $0x484] ss:$16 sps:$4 sm:$0xff]   ;;  %v8922_v60 = vld [vmem:[%s13524_s11 + $0x12c] ss:$16 sps:$4 sm:$0xff]  }
 0x6cc   : > { %4882 = vmatprep.subr.bf16.mxu0 %v8844_v15  ;;  %v8917_v15 = vld [vmem:[%s13524_s11 + $0x520] ss:$16 sps:$4 sm:$0xff]  }
 0x6cd   : > { %4842 = vmatpush1.bf16.msra.mxu1 %v8839_v5  ;;  %v8920_v5 = vld [vmem:[%s13524_s11 + $0x128] ss:$16 sps:$4 sm:$0xff]  }
 0x6ce   : > { %4883 = vmatpush1.bf16.msra.mxu0 %v8842_v0  ;;  %4843 = vmatprep.subr.bf16.mxu1 %v8847_v34  ;;  %v8925_v0 = vld [vmem:[%s13524_s11 + $0x504] ss:$16 sps:$4 sm:$0xff]   ;;  %v8928_v34 = vld [vmem:[%s13524_s11 + $0x10c] ss:$16 sps:$4 sm:$0xff]  }
 0x6cf   : > { %4884 = vmatprep.subr.bf16.mxu0 %v8850_v51  ;;  %v8923_v51 = vld [vmem:[%s13524_s11 + $0x500] ss:$16 sps:$4 sm:$0xff]  }
 0x6d1   : > { %4844 = vmatpush1.bf16.msra.mxu1 %v8845_v29  ;;  %v8926_v29 = vld [vmem:[%s13524_s11 + $0x108] ss:$16 sps:$4 sm:$0xff]  }
 0x6d2   : > { %4885 = vmatpush1.bf16.msra.mxu0 %v8848_v43  ;;  %4845 = vmatprep.subr.bf16.mxu1 %v8853_v21  ;;  %v3565_v43 = vmul.f32 0.5, %v10982_v52  ;;  %v8931_v21 = vld [vmem:[%s13524_s11 + $0x2ec] ss:$16 sps:$4 sm:$0xff]   ;;  %v8932_v52 = vld [vmem:[%s13524_s11 + $0x4e8] ss:$16 sps:$4 sm:$0xff]  }
 0x6d3   : > { %4886 = vmatprep.subr.bf16.mxu0 %v8856_v54  ;;  %v8934_v54 = vld [vmem:[%s13524_s11 + $0x4ec] ss:$16 sps:$4 sm:$0xff]  }
 0x6d5   : > { %4846 = vmatpush1.bf16.msra.mxu1 %v8851_v3  ;;  %v8929_v3 = vld [vmem:[%s13524_s11 + $0x2e8] ss:$16 sps:$4 sm:$0xff]  }
 0x6d6   : > { %4887 = vmatpush1.bf16.msra.mxu0 %v8854_v39  ;;  %4847 = vmatprep.subr.bf16.mxu1 %v8859_v20  ;;  %v12473_v39 = vpack.c.bf16 %v3565_v43, %v3565_v43  ;;  %v8937_v20 = vld [vmem:[%s13524_s11 + $0x2cc] ss:$16 sps:$4 sm:$0xff]   ;;  %v9010_v43 = vld [vmem:[%s13524_s11 + $0x548] ss:$16 sps:$4 sm:$0xff]  }
 0x6d7   : > { %4888 = vmatprep.subr.bf16.mxu0 %v8862_v58  ;;  %v8940_v58 = vld [vmem:[%s13524_s11 + $0x4cc] ss:$16 sps:$4 sm:$0xff]  }
 0x6d9   : > { %4848 = vmatpush1.bf16.msra.mxu1 %v8857_v24  ;;  %v8935_v24 = vld [vmem:[%s13524_s11 + $0x2c8] ss:$16 sps:$4 sm:$0xff]  }
 0x6da   : > { %4889 = vmatpush1.bf16.msra.mxu0 %v8860_v18  ;;  %4849 = vmatprep.subr.bf16.mxu1 %v8865_v13  ;;  %v8938_v18 = vld [vmem:[%s13524_s11 + $0x4c8] ss:$16 sps:$4 sm:$0xff]   ;;  %v8943_v13 = vld [vmem:[%s13524_s11 + $0x2ac] ss:$16 sps:$4 sm:$0xff]  }
 0x6db   : > { %4890 = vmatprep.subr.bf16.mxu0 %v8868_v57  ;;  %v8944_v57 = vld [vmem:[%s13524_s11 + $0x4a8] ss:$16 sps:$4 sm:$0xff]  }
 0x6dd   : > { %4850 = vmatpush1.bf16.msra.mxu1 %v8863_v32  ;;  %v8952_v32 = vld [vmem:[%s13524_s11 + $0x48c] ss:$16 sps:$4 sm:$0xff]  }
 0x6de   : > { %4891 = vmatpush1.bf16.msra.mxu0 %v8866_v17  ;;  %4851 = vmatprep.subr.bf16.mxu1 %v8871_v31  ;;  %v8947_v17 = vld [vmem:[%s13524_s11 + $0x288] ss:$16 sps:$4 sm:$0xff]  }
 0x6df   : > { %4892 = vmatprep.subr.bf16.mxu0 %v8874_v42  ;;  %v8950_v31 = vld [vmem:[%s13524_s11 + $0x488] ss:$16 sps:$4 sm:$0xff]   ;;  %v8955_v42 = vld [vmem:[%s13524_s11 + $0x26c] ss:$16 sps:$4 sm:$0xff]  }
 0x6e1   : > { %4852 = vmatpush1.bf16.msra.mxu1 %v8869_v22  ;;  %v8958_v22 = vld [vmem:[%s13524_s11 + $0x46c] ss:$16 sps:$4 sm:$0xff]  }
 0x6e2   : > { %4893 = vmatpush1.bf16.msra.mxu0 %v8872_v61  ;;  %4853 = vmatprep.subr.bf16.mxu1 %v8877_v50  ;;  %v8953_v61 = vld [vmem:[%s13524_s11 + $0x268] ss:$16 sps:$4 sm:$0xff]  }
 0x6e3   : > { %4894 = vmatprep.subr.bf16.mxu0 %v8880_v4  ;;  %v8956_v50 = vld [vmem:[%s13524_s11 + $0x468] ss:$16 sps:$4 sm:$0xff]   ;;  %v8961_v4 = vld [vmem:[%s13524_s11 + $0x24c] ss:$16 sps:$4 sm:$0xff]  }
 0x6e5   : > { %4854 = vmatpush1.bf16.msra.mxu1 %v8875_v36  ;;  %v8964_v36 = vld [vmem:[%s13524_s11 + $0x44c] ss:$16 sps:$4 sm:$0xff]  }
 0x6e6   : > { %4895 = vmatpush1.bf16.msra.mxu0 %v8878_v35  ;;  %4855 = vmatprep.subr.bf16.mxu1 %v8883_v27  ;;  %v8959_v35 = vld [vmem:[%s13524_s11 + $0x248] ss:$16 sps:$4 sm:$0xff]  }
 0x6e7   : > { %4896 = vmatprep.subr.bf16.mxu0 %v8886_v23  ;;  %v8962_v27 = vld [vmem:[%s13524_s11 + $0x448] ss:$16 sps:$4 sm:$0xff]   ;;  %v8967_v23 = vld [vmem:[%s13524_s11 + $0x22c] ss:$16 sps:$4 sm:$0xff]  }
 0x6e9   : > { %4856 = vmatpush2.bf16.msra.mxu1 %v8881_v25  ;;  %v8970_v25 = vld [vmem:[%s13524_s11 + $0x42c] ss:$16 sps:$4 sm:$0xff]  }
 0x6ea   : > { %4897 = vmatpush2.bf16.msra.mxu0 %v8884_v63  ;;  %4857 = vmatprep.subr.bf16.mxu1 %v8889_v55  ;;  %v8965_v63 = vld [vmem:[%s13524_s11 + $0x228] ss:$16 sps:$4 sm:$0xff]  }
 0x6eb   : > { %4898 = vmatprep.subr.bf16.mxu0 %v8892_v7  ;;  %v8968_v55 = vld [vmem:[%s13524_s11 + $0x428] ss:$16 sps:$4 sm:$0xff]   ;;  %v8973_v7 = vld [vmem:[%s13524_s11 + $0x20c] ss:$16 sps:$4 sm:$0xff]  }
 0x6ed   : > { %4858 = vmatpush2.bf16.msra.mxu1 %v8887_v14  ;;  %v8976_v14 = vld [vmem:[%s13524_s11 + $0x40c] ss:$16 sps:$4 sm:$0xff]  }
 0x6ee   : > { %4899 = vmatpush2.bf16.msra.mxu0 %v8890_v62  ;;  %4859 = vmatprep.subr.bf16.mxu1 %v8895_v41  ;;  %v8971_v62 = vld [vmem:[%s13524_s11 + $0x208] ss:$16 sps:$4 sm:$0xff]  }
 0x6ef   : > { %4900 = vmatprep.subr.bf16.mxu0 %v8898_v1  ;;  %v8974_v41 = vld [vmem:[%s13524_s11 + $0x408] ss:$16 sps:$4 sm:$0xff]   ;;  %v8979_v1 = vld [vmem:[%s13524_s11 + $0x3ec] ss:$16 sps:$4 sm:$0xff]  }
 0x6f1   : > { %4860 = vmatpush2.bf16.msra.mxu1 %v8893_v49  ;;  %v8982_v49 = vld [vmem:[%s13524_s11 + $0x5ec] ss:$16 sps:$4 sm:$0xff]  }
 0x6f2   : > { %4901 = vmatpush2.bf16.msra.mxu0 %v8896_v19  ;;  %4861 = vmatprep.subr.bf16.mxu1 %v8901_v47  ;;  %v8977_v19 = vld [vmem:[%s13524_s11 + $0x3e8] ss:$16 sps:$4 sm:$0xff]  }
 0x6f3   : > { %4902 = vmatprep.subr.bf16.mxu0 %v8904_v56  ;;  %v8980_v47 = vld [vmem:[%s13524_s11 + $0x5e8] ss:$16 sps:$4 sm:$0xff]   ;;  %v8985_v56 = vld [vmem:[%s13524_s11 + $0x3cc] ss:$16 sps:$4 sm:$0xff]  }
 0x6f5   : > { %4862 = vmatpush2.bf16.msra.mxu1 %v8899_v10  ;;  %v8988_v10 = vld [vmem:[%s13524_s11 + $0x5cc] ss:$16 sps:$4 sm:$0xff]  }
 0x6f6   : > { %4903 = vmatpush2.bf16.msra.mxu0 %v8902_v44  ;;  %4863 = vmatprep.subr.bf16.mxu1 %v8907_v12  ;;  %v8983_v44 = vld [vmem:[%s13524_s11 + $0x3c8] ss:$16 sps:$4 sm:$0xff]  }
 0x6f7   : > { %4904 = vmatprep.subr.bf16.mxu0 %v8910_v45  ;;  %v8986_v12 = vld [vmem:[%s13524_s11 + $0x5c8] ss:$16 sps:$4 sm:$0xff]   ;;  %v8991_v45 = vld [vmem:[%s13524_s11 + $0x3ac] ss:$16 sps:$4 sm:$0xff]  }
 0x6f9   : > { %4864 = vmatpush2.bf16.msra.mxu1 %v8905_v37  ;;  %v8994_v37 = vld [vmem:[%s13524_s11 + $0x5ac] ss:$16 sps:$4 sm:$0xff]  }
 0x6fa   : > { %4905 = vmatpush2.bf16.msra.mxu0 %v8908_v28  ;;  %4865 = vmatprep.subr.bf16.mxu1 %v8913_v16  ;;  %v8989_v28 = vld [vmem:[%s13524_s11 + $0x3a8] ss:$16 sps:$4 sm:$0xff]  }
 0x6fb   : > { %4906 = vmatprep.subr.bf16.mxu0 %v8916_v46  ;;  %v8992_v16 = vld [vmem:[%s13524_s11 + $0x5a8] ss:$16 sps:$4 sm:$0xff]   ;;  %v8997_v46 = vld [vmem:[%s13524_s11 + $0x38c] ss:$16 sps:$4 sm:$0xff]  }
 0x6fd   : > { %4866 = vmatpush2.bf16.msra.mxu1 %v8911_v53  ;;  %v9000_v53 = vld [vmem:[%s13524_s11 + $0x58c] ss:$16 sps:$4 sm:$0xff]  }
 0x6fe   : > { %4907 = vmatpush2.bf16.msra.mxu0 %v8914_v9  ;;  %4867 = vmatprep.subr.bf16.mxu1 %v8919_v59  ;;  %v8995_v9 = vld [vmem:[%s13524_s11 + $0x388] ss:$16 sps:$4 sm:$0xff]  }
 0x6ff   : > { %4908 = vmatprep.subr.bf16.mxu0 %v8922_v60  ;;  %v8998_v59 = vld [vmem:[%s13524_s11 + $0x588] ss:$16 sps:$4 sm:$0xff]   ;;  %v9003_v60 = vld [vmem:[%s13524_s11 + $0x36c] ss:$16 sps:$4 sm:$0xff]  }
 0x701   : > { %4868 = vmatpush2.bf16.msra.mxu1 %v8917_v15  ;;  %v9006_v15 = vld [vmem:[%s13524_s11 + $0x56c] ss:$16 sps:$4 sm:$0xff]  }
 0x702   : > { %4909 = vmatpush2.bf16.msra.mxu0 %v8920_v5  ;;  %4869 = vmatprep.subr.bf16.mxu1 %v8925_v0  ;;  %v9001_v5 = vld [vmem:[%s13524_s11 + $0x368] ss:$16 sps:$4 sm:$0xff]  }
 0x703   : > { %4910 = vmatprep.subr.bf16.mxu0 %v8928_v34  ;;  %v9004_v0 = vld [vmem:[%s13524_s11 + $0x568] ss:$16 sps:$4 sm:$0xff]   ;;  %v9009_v34 = vld [vmem:[%s13524_s11 + $0x34c] ss:$16 sps:$4 sm:$0xff]  }
 0x705   : > { %4870 = vmatpush2.bf16.msra.mxu1 %v8923_v51  ;;  %v9012_v51 = vld [vmem:[%s13524_s11 + $0x54c] ss:$16 sps:$4 sm:$0xff]  }
 0x706   : > { %4911 = vmatpush2.bf16.msra.mxu0 %v8926_v29  ;;  %4921 = vmatprep.subr.bf16.mxu1 %v8931_v21  ;;  %v9007_v29 = vld [vmem:[%s13524_s11 + $0x348] ss:$16 sps:$4 sm:$0xff]   ;;  %v9015_v21 = vld [vmem:[%s13524_s11 + $0x32c] ss:$16 sps:$4 sm:$0xff]  }
 0x707   : > { %4962 = vmatprep.subr.bf16.mxu0 %v8934_v54  ;;  %v9018_v54 = vld [vmem:[%s13524_s11 + $0x52c] ss:$16 sps:$4 sm:$0xff]  }
 0x708   : > { %4872 = vmatmul.mubr.bf16.vlgmr.msra.gmra.mxu1 %v12473_v39 }
 0x709   : > { %4913 = vmatmul.mubr.bf16.vlgmr.msra.gmra.mxu0 %v12270_v8  ;;  %4922 = vmatpush1.bf16.msra.mxu1 %v8929_v3  ;;  %v8946_v8 = vld [vmem:[%s13524_s11 + $0x4ac] ss:$16 sps:$4 sm:$0xff]   ;;  %v9013_v3 = vld [vmem:[%s13524_s11 + $0x328] ss:$16 sps:$4 sm:$0xff]  }
 0x70a   : > { %4953 = vmatprep.mubr.bf16.mxu1 %v12104_v48  ;;  %4963 = vmatpush1.bf16.msra.mxu0 %v8932_v52  ;;  %v8941_v48 = vld [vmem:[%s13524_s11 + $0x2a8] ss:$16 sps:$4 sm:$0xff]  }
 0x70b   : > { %4994 = vmatprep.mubr.bf16.mxu0 %v12281_v26  ;;  %4923 = vmatprep.subr.bf16.mxu1 %v8937_v20  ;;  %v8949_v26 = vld [vmem:[%s13524_s11 + $0x28c] ss:$16 sps:$4 sm:$0xff]   ;;  %v9016_v52 = vld [vmem:[%s13524_s11 + $0x528] ss:$16 sps:$4 sm:$0xff]  }
 0x70c   : > { %4964 = vmatprep.subr.bf16.mxu0 %v8940_v58  ;;  %v9021_v20 = vld [vmem:[%s13524_s11 + $0x30c] ss:$16 sps:$4 sm:$0xff]  }
 0x70d   : > { %4924 = vmatpush1.bf16.msra.mxu1 %v8935_v24  ;;  %v9024_v58 = vld [vmem:[%s13524_s11 + $0x50c] ss:$16 sps:$4 sm:$0xff]   ;;  %v9019_v24 = vld [vmem:[%s13524_s11 + $0x308] ss:$16 sps:$4 sm:$0xff]  }
 0x70e   : > { %4965 = vmatpush1.bf16.msra.mxu0 %v8938_v18  ;;  %4925 = vmatprep.subr.bf16.mxu1 %v8943_v13  ;;  %v9022_v18 = vld [vmem:[%s13524_s11 + $0x508] ss:$16 sps:$4 sm:$0xff]   ;;  %v9027_v13 = vld [vmem:[%s13525_s12 + $0xe4] ss:$16 sps:$4 sm:$0xff]  }
 0x70f   : > { %4966 = vmatprep.subr.bf16.mxu0 %v8946_v8  ;;  %v9030_v8 = vld [vmem:[%s13525_s12 + $0x2e4] ss:$16 sps:$4 sm:$0xff]  }
 0x711   : > { %4926 = vmatpush1.bf16.msra.mxu1 %v8941_v48  ;;  %v9025_v48 = vld [vmem:[%s13525_s12 + $0xe0] ss:$16 sps:$4 sm:$0xff]  }
 0x712   : > { %4967 = vmatpush1.bf16.msra.mxu0 %v8944_v57  ;;  %4927 = vmatprep.subr.bf16.mxu1 %v8949_v26  ;;  %v9028_v57 = vld [vmem:[%s13525_s12 + $0x2e0] ss:$16 sps:$4 sm:$0xff]   ;;  %v3371_v26 = vpop.permute.xlu1 %3370 }
 0x713   : > { %4968 = vmatprep.subr.bf16.mxu0 %v8952_v32  ;;  %v9033_v32 = vld [vmem:[%s13525_s12 + $0xc4] ss:$16 sps:$4 sm:$0xff]  }
 0x715   : > { %4928 = vmatpush1.bf16.msra.mxu1 %v8947_v17 }
 0x716   : > { %4969 = vmatpush1.bf16.msra.mxu0 %v8950_v31  ;;  %4929 = vmatprep.subr.bf16.mxu1 %v8955_v42  ;;  %v9036_v42 = vld [vmem:[%s13525_s12 + $0x2c4] ss:$16 sps:$4 sm:$0xff]  }
 0x717   : > { %4970 = vmatprep.subr.bf16.mxu0 %v8958_v22 }
 0x719   : > { %4930 = vmatpush1.bf16.msra.mxu1 %v8953_v61  ;;  %v9031_v61 = vld [vmem:[%s13525_s12 + $0xc0] ss:$16 sps:$4 sm:$0xff]  }
 0x71a   : > { %4971 = vmatpush1.bf16.msra.mxu0 %v8956_v50  ;;  %4931 = vmatprep.subr.bf16.mxu1 %v8961_v4 }
 0x71b   : > { %4972 = vmatprep.subr.bf16.mxu0 %v8964_v36  ;;  %v9039_v36 = vld [vmem:[%s13525_s12 + $0xa4] ss:$16 sps:$4 sm:$0xff]  }
 0x71d   : > { %4932 = vmatpush1.bf16.msra.mxu1 %v8959_v35  ;;  %v3376_v35 = vpop.permute.xlu0 %3375 }
 0x71e   : > { %4973 = vmatpush1.bf16.msra.mxu0 %v8962_v27  ;;  %4933 = vmatprep.subr.bf16.mxu1 %v8967_v23  ;;  %v9042_v23 = vld [vmem:[%s13525_s12 + $0x2a4] ss:$16 sps:$4 sm:$0xff]  }
 0x71f   : > { %4974 = vmatprep.subr.bf16.mxu0 %v8970_v25 }
 0x721   : > { %4934 = vmatpush1.bf16.msra.mxu1 %v8965_v63 }
 0x722   : > { %4975 = vmatpush1.bf16.msra.mxu0 %v8968_v55  ;;  %4935 = vmatprep.subr.bf16.mxu1 %v8973_v7 }
 0x723   : > { %4976 = vmatprep.subr.bf16.mxu0 %v8976_v14  ;;  %v9037_v14 = vld [vmem:[%s13525_s12 + $0xa0] ss:$16 sps:$4 sm:$0xff]  }
 0x725   : > { %4936 = vmatpush1.bf16.msra.mxu1 %v8971_v62 }
 0x726   : > { %4977 = vmatpush1.bf16.msra.mxu0 %v8974_v41  ;;  %4937 = vmatprep.subr.bf16.mxu1 %v8979_v1  ;;  %v9040_v1 = vld [vmem:[%s13525_s12 + $0x2a0] ss:$16 sps:$4 sm:$0xff]  }
 0x727   : > { %4978 = vmatprep.subr.bf16.mxu0 %v8982_v49  ;;  %v9045_v49 = vld [vmem:[%s13525_s12 + $0x84] ss:$16 sps:$4 sm:$0xff]  }
 0x729   : > { %4938 = vmatpush2.bf16.msra.mxu1 %v8977_v19  ;;  %v3381_v19 = vpop.permute.xlu1 %3380 }
 0x72a   : > { %4979 = vmatpush2.bf16.msra.mxu0 %v8980_v47  ;;  %4939 = vmatprep.subr.bf16.mxu1 %v8985_v56  ;;  %v9048_v56 = vld [vmem:[%s13525_s12 + $0x284] ss:$16 sps:$4 sm:$0xff]  }
 0x72b   : > { %4980 = vmatprep.subr.bf16.mxu0 %v8988_v10 }
 0x72d   : > { %4940 = vmatpush2.bf16.msra.mxu1 %v8983_v44 }
 0x72e   : > { %4981 = vmatpush2.bf16.msra.mxu0 %v8986_v12  ;;  %4941 = vmatprep.subr.bf16.mxu1 %v8991_v45 }
 0x72f   : > { %4982 = vmatprep.subr.bf16.mxu0 %v8994_v37 }
 0x731   : > { %4942 = vmatpush2.bf16.msra.mxu1 %v8989_v28 }
 0x732   : > { %4983 = vmatpush2.bf16.msra.mxu0 %v8992_v16  ;;  %4943 = vmatprep.subr.bf16.mxu1 %v8997_v46  ;;  %v9043_v16 = vld [vmem:[%s13525_s12 + $0x80] ss:$16 sps:$4 sm:$0xff]  }
 0x733   : > { %4984 = vmatprep.subr.bf16.mxu0 %v9000_v53 }
 0x735   : > { %4944 = vmatpush2.bf16.msra.mxu1 %v8995_v9  ;;  %v9046_v9 = vld [vmem:[%s13525_s12 + $0x280] ss:$16 sps:$4 sm:$0xff]  }
 0x736   : > { %4985 = vmatpush2.bf16.msra.mxu0 %v8998_v59  ;;  %4945 = vmatprep.subr.bf16.mxu1 %v9003_v60  ;;  %v9051_v59 = vld [vmem:[%s13525_s12 + $0x64] ss:$16 sps:$4 sm:$0xff]   ;;  %v3386_v60 = vpop.permute.xlu0 %3385 }
 0x737   : > { %4986 = vmatprep.subr.bf16.mxu0 %v9006_v15 }
 0x739   : > { %4946 = vmatpush2.bf16.msra.mxu1 %v9001_v5 }
 0x73a   : > { %4987 = vmatpush2.bf16.msra.mxu0 %v9004_v0  ;;  %4947 = vmatprep.subr.bf16.mxu1 %v9009_v34  ;;  %v9054_v0 = vld [vmem:[%s13525_s12 + $0x264] ss:$16 sps:$4 sm:$0xff]  }
 0x73b   : > { %4988 = vmatprep.subr.bf16.mxu0 %v9012_v51 }
 0x73d   : > { %4948 = vmatpush2.bf16.msra.mxu1 %v9007_v29 }
 0x73e   : > { %4989 = vmatpush2.bf16.msra.mxu0 %v9010_v43  ;;  %4949 = vmatprep.subr.bf16.mxu1 %v9015_v21 }
 0x73f   : > { %4990 = vmatprep.subr.bf16.mxu0 %v9018_v54  ;;  %v9049_v54 = vld [vmem:[%s13525_s12 + $0x60] ss:$16 sps:$4 sm:$0xff]  }
 0x741   : > { %4950 = vmatpush2.bf16.msra.mxu1 %v9013_v3  ;;  %v9052_v3 = vld [vmem:[%s13525_s12 + $0x260] ss:$16 sps:$4 sm:$0xff]  }
 0x742   : > { %4991 = vmatpush2.bf16.msra.mxu0 %v9016_v52  ;;  %4951 = vmatprep.subr.bf16.mxu1 %v9021_v20 }
 0x743   : > { %4992 = vmatprep.subr.bf16.mxu0 %v9024_v58 }
 0x745   : > { %4952 = vmatpush2.bf16.msra.mxu1 %v9019_v24 }
 0x746   : > { %4993 = vmatpush2.bf16.msra.mxu0 %v9022_v18  ;;  %6161 = vmatprep.subr.bf16.mxu1 %v9027_v13  ;;  %v9057_v13 = vld [vmem:[%s13525_s12 + $0x44] ss:$16 sps:$4 sm:$0xff]  }
 0x747   : > { %6204 = vmatprep.subr.bf16.mxu0 %v9030_v8 }
 0x748   : > { %v3459_v17 = vpop.f32.mrf.mxu0  ;;  %4954 = vmatmul.mubr.bf16.vlgmr.msra.gmra.mxu1 %v12275_v40  ;;  %v3512_v31 = vpop.f32.mrf.mxu1  ;;  %v9034_v40 = vld [vmem:[%s13525_s12 + $0x2c0] ss:$16 sps:$4 sm:$0xff]  }
 0x749   : > { %v3460_v22 = vadd.f32 %v3459_v17, %v3371_v26  ;;  %4995 = vmatmul.mubr.bf16.vlgmr.msra.gmra.mxu0 %v12473_v39  ;;  %6162 = vmatpush1.bf16.msra.mxu1 %v9025_v48 }
 0x74a   : > { %6193 = vmatprep.mubr.bf16.mxu1 %v11715_v2  ;;  %6205 = vmatpush1.bf16.msra.mxu0 %v9028_v57  ;;  %v3461_v50 = vpop.f32.mrf.mxu0  ;;  %v3514_v4 = vpop.f32.mrf.mxu1 }
 0x74b   : > { %6236 = vmatprep.mubr.bf16.mxu0 %v11845_v38  ;;  %v3462_v39 = vadd.f32 %v3461_v50, %v3371_v26  ;;  %v3513_v27 = vadd.f32 %v3512_v31, %v3460_v22  ;;  %6163 = vmatprep.subr.bf16.mxu1 %v9033_v32  ;;  %v9060_v26 = vld [vmem:[%s13525_s12 + $0x244] ss:$16 sps:$4 sm:$0xff]  }
 0x74c   : > { %v3463_v25 = vpop.f32.mrf.mxu0  ;;  %6206 = vmatprep.subr.bf16.mxu0 %v9036_v42  ;;  %v3516_v63 = vpop.f32.mrf.mxu1 }
 0x74d   : > { %v3464_v55 = vadd.f32 %v3463_v25, %v3376_v35  ;;  %v12696_v7 = vadd.f32 %v3514_v4, %v3462_v39  ;;  %6164 = vmatpush1.bf16.msra.mxu1 %v9031_v61  ;;  %v3539_v45 = vmul.f32 0.25, %v3513_v27  ;;  %vm3531_vm1 = vcmp.gt.f32.partialorder %v3513_v27, 0.0  ;;  %v9055_v61 = vld [vmem:[%s13525_s12 + $0x40] ss:$16 sps:$4 sm:$0xff]   ;;  %v9066_v25 = vld [vmem:[%s13525_s12 + $0x224] ss:$16 sps:$4 sm:$0xff]  }
 0x74e   : > { %6207 = vmatpush1.bf16.msra.mxu0 %v9034_v40  ;;  %v3465_v62 = vpop.f32.mrf.mxu0  ;;  %v3518_v41 = vpop.f32.mrf.mxu1  ;;  %6165 = vmatprep.subr.bf16.mxu1 %v9039_v36  ;;  %v9058_v36 = vld [vmem:[%s13525_s12 + $0x240] ss:$16 sps:$4 sm:$0xff]  }
 0x74f   : > { %v3466_v47 = vadd.f32 %v3465_v62, %v3376_v35  ;;  %6208 = vmatprep.subr.bf16.mxu0 %v9042_v23  ;;  %v3517_v10 = vadd.f32 %v3516_v63, %v3464_v55  ;;  %v3547_v29 = vsel %vm3531_vm1, %v3513_v27, %v3539_v45  ;;  %vm3532_vm5 = vcmp.gt.f32.partialorder %v12696_v7, 0.0  ;;  %v9063_v35 = vld [vmem:[%s13525_s12 + $0x24] ss:$16 sps:$4 sm:$0xff]   ;;  %v9070_v45 = vld [vmem:[%s13525_s12 + $0x200] ss:$16 sps:$4 sm:$0xff]  }
 0x750   : > { %v3469_v44 = vpop.f32.mrf.mxu0  ;;  %v3522_v12 = vpop.f32.mrf.mxu1  ;;  %v3540_v52 = vmul.f32 0.25, %v12696_v7 }
 0x751   : > { %v3470_v37 = vadd.f32 %v3469_v44, %v3381_v19  ;;  %v12710_v28 = vadd.f32 %v3518_v41, %v3466_v47  ;;  %6166 = vmatpush1.bf16.msra.mxu1 %v9037_v14  ;;  %v3541_v20 = vmul.f32 0.25, %v3517_v10  ;;  %vm3533_vm6 = vcmp.gt.f32.partialorder %v3517_v10, 0.0  ;;  %v9061_v14 = vld [vmem:[%s13525_s12 + $0x20] ss:$16 sps:$4 sm:$0xff]   ;;  %v9072_v47 = vld [vmem:[%s13525_s12 + $0x204] ss:$16 sps:$4 sm:$0xff]  }
 0x752   : > { %6209 = vmatpush1.bf16.msra.mxu0 %v9040_v1  ;;  %v3471_v46 = vpop.f32.mrf.mxu0  ;;  %v3524_v53 = vpop.f32.mrf.mxu1  ;;  %6167 = vmatprep.subr.bf16.mxu1 %v9045_v49  ;;  %v3548_v50 = vsel %vm3532_vm5, %v12696_v7, %v3540_v52  ;;  %v9064_v49 = vld [vmem:[%s13525_s12 + $0x220] ss:$16 sps:$4 sm:$0xff]   ;;  %v9102_v52 = vld [vmem:[%s13525_s12 + $0x364] ss:$16 sps:$4 sm:$0xff]  }
 0x753   : > { %v3472_v15 = vadd.f32 %v3471_v46, %v3381_v19  ;;  %v3523_v5 = vadd.f32 %v3522_v12, %v3470_v37  ;;  %6210 = vmatprep.subr.bf16.mxu0 %v9048_v56  ;;  %v3542_v31 = vmul.f32 0.25, %v12710_v28  ;;  %v3549_v4 = vsel %vm3533_vm6, %v3517_v10, %v3541_v20  ;;  %v9069_v19 = vld [vmem:[%s13525_s12 + $0x4] ss:$16 sps:$4 sm:$0xff]   ;;  %v9067_v12 = vld [vmem:[%s13525_s12] ss:$16 sps:$4 sm:$0xff]  }
 0x754   : > { %v3473_v34 = vpop.f32.mrf.mxu0  ;;  %v3526_v51 = vpop.f32.mrf.mxu1  ;;  %vm3534_vm14 = vcmp.gt.f32.partialorder %v12710_v28, 0.0  ;;  %v9075_v37 = vld [vmem:[%s13525_s12 + $0x1e4] ss:$16 sps:$4 sm:$0xff]   ;;  %v9073_v46 = vld [vmem:[%s13525_s12 + $0x1e0] ss:$16 sps:$4 sm:$0xff]  }
 0x755   : > { %vm3535_vm2 = vcmp.gt.f32.partialorder %v3523_v5, 0.0  ;;  %v3543_v43 = vmul.f32 0.25, %v3523_v5  ;;  %v3474_v21 = vadd.f32 %v3473_v34, %v3386_v60  ;;  %6168 = vmatpush1.bf16.msra.mxu1 %v9043_v16  ;;  %v3525_v58 = vadd.f32 %v3524_v53, %v3472_v15  ;;  %v9078_v16 = vld [vmem:[%s13525_s12 + $0x3e4] ss:$16 sps:$4 sm:$0xff]   ;;  %v9076_v53 = vld [vmem:[%s13525_s12 + $0x3e0] ss:$16 sps:$4 sm:$0xff]  }
 0x756   : > { %6211 = vmatpush1.bf16.msra.mxu0 %v9046_v9  ;;  %v3475_v24 = vpop.f32.mrf.mxu0  ;;  %v3528_v18 = vpop.f32.mrf.mxu1  ;;  %6169 = vmatprep.subr.bf16.mxu1 %v9051_v59  ;;  %v3550_v55 = vsel %vm3534_vm14, %v12710_v28, %v3542_v31  ;;  %v9081_v9 = vld [vmem:[%s13525_s12 + $0x1c4] ss:$16 sps:$4 sm:$0xff]   ;;  %v9082_v15 = vld [vmem:[%s13525_s12 + $0x3c0] ss:$16 sps:$4 sm:$0xff]  }
 0x757   : > { %v3551_v8 = vsel %vm3535_vm2, %v3523_v5, %v3543_v43  ;;  %v3476_v48 = vadd.f32 %v3475_v24, %v3386_v60  ;;  %v3527_v57 = vadd.f32 %v3526_v51, %v3474_v21  ;;  %6212 = vmatprep.subr.bf16.mxu0 %v9054_v0  ;;  %vm3536_vm7 = vcmp.gt.f32.partialorder %v3525_v58, 0.0  ;;  %v9084_v59 = vld [vmem:[%s13525_s12 + $0x3c4] ss:$16 sps:$4 sm:$0xff]   ;;  %v9079_v60 = vld [vmem:[%s13525_s12 + $0x1c0] ss:$16 sps:$4 sm:$0xff]  }
 0x758   : > { %v3591_v32 = vadd.f32 %v3551_v8, %v3547_v29  ;;  %v3544_v17 = vmul.f32 0.25, %v3525_v58  ;;  %v9087_v5 = vld [vmem:[%s13525_s12 + $0x1a4] ss:$16 sps:$4 sm:$0xff]   ;;  %v9085_v34 = vld [vmem:[%s13525_s12 + $0x1a0] ss:$16 sps:$4 sm:$0xff]  }
 0x759   : > { %vm3537_vm8 = vcmp.gt.f32.partialorder %v3527_v57, 0.0  ;;  %v3545_v42 = vmul.f32 0.25, %v3527_v57  ;;  %v3529_v22 = vadd.f32 %v3528_v18, %v3476_v48  ;;  %6170 = vmatpush1.bf16.msra.mxu1 %v9049_v54  ;;  %v9090_v0 = vld [vmem:[%s13525_s12 + $0x3a4] ss:$16 sps:$4 sm:$0xff]   ;;  %v9088_v51 = vld [vmem:[%s13525_s12 + $0x3a0] ss:$16 sps:$4 sm:$0xff]  }
 0x75a   : > { %v3552_v40 = vsel %vm3536_vm7, %v3525_v58, %v3544_v17  ;;  %6213 = vmatpush1.bf16.msra.mxu0 %v9052_v3  ;;  %6171 = vmatprep.subr.bf16.mxu1 %v9057_v13  ;;  %v3595_v62 = vmul.f32 0.5, %v3591_v32  ;;  %v9093_v29 = vld [vmem:[%s13525_s12 + $0x184] ss:$16 sps:$4 sm:$0xff]   ;;  %v9091_v21 = vld [vmem:[%s13525_s12 + $0x180] ss:$16 sps:$4 sm:$0xff]  }
 0x75b   : > { %v3592_v39 = vadd.f32 %v3552_v40, %v3548_v50  ;;  %v3553_v27 = vsel %vm3537_vm8, %v3527_v57, %v3545_v42  ;;  %vm3538_vm15 = vcmp.gt.f32.partialorder %v3529_v22, 0.0  ;;  %v3546_v23 = vmul.f32 0.25, %v3529_v22  ;;  %6214 = vmatprep.subr.bf16.mxu0 %v9060_v26  ;;  %v9096_v43 = vld [vmem:[%s13525_s12 + $0x384] ss:$16 sps:$4 sm:$0xff]   ;;  %v9094_v54 = vld [vmem:[%s13525_s12 + $0x380] ss:$16 sps:$4 sm:$0xff]  }
 0x75c   : > { %v3593_v63 = vadd.f32 %v3553_v27, %v3549_v4  ;;  %v9099_v3 = vld [vmem:[%s13525_s12 + $0x164] ss:$16 sps:$4 sm:$0xff]   ;;  %v9097_v20 = vld [vmem:[%s13525_s12 + $0x160] ss:$16 sps:$4 sm:$0xff]   ;;  %v9126_v50 = vld [vmem:[%s13525_s12 + $0xec] ss:$16 sps:$4 sm:$0xff]  }
 0x75d   : > { %v3554_v7 = vsel %vm3538_vm15, %v3529_v22, %v3546_v23  ;;  %6172 = vmatpush1.bf16.msra.mxu1 %v9055_v61  ;;  %v3596_v56 = vmul.f32 0.5, %v3592_v39  ;;  %v9100_v58 = vld [vmem:[%s13525_s12 + $0x360] ss:$16 sps:$4 sm:$0xff]   ;;  %v9105_v24 = vld [vmem:[%s13525_s12 + $0x144] ss:$16 sps:$4 sm:$0xff]  }
 0x75e   : > { %v3597_v41 = vmul.f32 0.5, %v3593_v63  ;;  %v3594_v1 = vadd.f32 %v3554_v7, %v3550_v55  ;;  %6215 = vmatpush1.bf16.msra.mxu0 %v9058_v36  ;;  %6173 = vmatprep.subr.bf16.mxu1 %v9063_v35  ;;  %v9108_v18 = vld [vmem:[%s13525_s12 + $0x344] ss:$16 sps:$4 sm:$0xff]   ;;  %v9103_v13 = vld [vmem:[%s13525_s12 + $0x140] ss:$16 sps:$4 sm:$0xff]  }
 0x75f   : > { %6216 = vmatprep.subr.bf16.mxu0 %v9066_v25  ;;  %v9106_v8 = vld [vmem:[%s13525_s12 + $0x340] ss:$16 sps:$4 sm:$0xff]   ;;  %v9111_v48 = vld [vmem:[%s13525_s12 + $0x124] ss:$16 sps:$4 sm:$0xff]   ;;  %v9124_v40 = vld [vmem:[%s13525_s12 + $0xe8] ss:$16 sps:$4 sm:$0xff]  }
 0x760   : > { %v3598_v10 = vmul.f32 0.5, %v3594_v1  ;;  %v12770_v44 = vpack.c.bf16 %v3597_v41, %v3595_v62  ;;  %v9114_v57 = vld [vmem:[%s13525_s12 + $0x324] ss:$16 sps:$4 sm:$0xff]   ;;  %v9109_v26 = vld [vmem:[%s13525_s12 + $0x120] ss:$16 sps:$4 sm:$0xff]  }
 0x761   : > { %6174 = vmatpush1.bf16.msra.mxu1 %v9061_v14  ;;  %v9112_v32 = vld [vmem:[%s13525_s12 + $0x320] ss:$16 sps:$4 sm:$0xff]   ;;  %v9117_v17 = vld [vmem:[%s13525_s12 + $0x104] ss:$16 sps:$4 sm:$0xff]   ;;  %v9132_v39 = vld [vmem:[%s13525_s12 + $0xcc] ss:$16 sps:$4 sm:$0xff]  }
 0x762   : > { %6217 = vmatpush1.bf16.msra.mxu0 %v9064_v49  ;;  %6175 = vmatprep.subr.bf16.mxu1 %v9069_v19  ;;  %v12781_v28 = vpack.c.bf16 %v3598_v10, %v3596_v56  ;;  %v9120_v31 = vld [vmem:[%s13525_s12 + $0x304] ss:$16 sps:$4 sm:$0xff]   ;;  %v9115_v42 = vld [vmem:[%s13525_s12 + $0x100] ss:$16 sps:$4 sm:$0xff]   ;;  %v9130_v63 = vld [vmem:[%s13525_s12 + $0xc8] ss:$16 sps:$4 sm:$0xff]  }
 0x763   : > { %6218 = vmatprep.subr.bf16.mxu0 %v9072_v47  ;;  %v9118_v22 = vld [vmem:[%s13525_s12 + $0x300] ss:$16 sps:$4 sm:$0xff]   ;;  %v9123_v61 = vld [vmem:[%s13525_s12 + $0x4e4] ss:$16 sps:$4 sm:$0xff]   ;;  %v9138_v14 = vld [vmem:[%s13525_s12 + $0xac] ss:$16 sps:$4 sm:$0xff]  }
 0x764   : > { %v9121_v4 = vld [vmem:[%s13525_s12 + $0x4e0] ss:$16 sps:$4 sm:$0xff]   ;;  %v9129_v36 = vld [vmem:[%s13525_s12 + $0x4c4] ss:$16 sps:$4 sm:$0xff]   ;;  %v9144_v56 = vld [vmem:[%s13525_s12 + $0x8c] ss:$16 sps:$4 sm:$0xff]  }
 0x765   : > { %6176 = vmatpush1.bf16.msra.mxu1 %v9067_v12  ;;  %v9127_v23 = vld [vmem:[%s13525_s12 + $0x4c0] ss:$16 sps:$4 sm:$0xff]   ;;  %v9135_v55 = vld [vmem:[%s13525_s12 + $0x4a4] ss:$16 sps:$4 sm:$0xff]   ;;  %v9142_v12 = vld [vmem:[%s13525_s12 + $0x88] ss:$16 sps:$4 sm:$0xff]  }
 0x766   : > { %6219 = vmatpush1.bf16.msra.mxu0 %v9070_v45  ;;  %6177 = vmatprep.subr.bf16.mxu1 %v9075_v37  ;;  %v9133_v1 = vld [vmem:[%s13525_s12 + $0x4a0] ss:$16 sps:$4 sm:$0xff]   ;;  %v9141_v19 = vld [vmem:[%s13525_s12 + $0x484] ss:$16 sps:$4 sm:$0xff]   ;;  %v9150_v37 = vld [vmem:[%s13525_s12 + $0x6c] ss:$16 sps:$4 sm:$0xff]  }
 0x767   : > { %6220 = vmatprep.subr.bf16.mxu0 %v9078_v16  ;;  %v9139_v10 = vld [vmem:[%s13525_s12 + $0x480] ss:$16 sps:$4 sm:$0xff]   ;;  %v9147_v45 = vld [vmem:[%s13525_s12 + $0x464] ss:$16 sps:$4 sm:$0xff]  }
 0x768   : > { %v9145_v16 = vld [vmem:[%s13525_s12 + $0x460] ss:$16 sps:$4 sm:$0xff]  }
 0x769   : > { %6178 = vmatpush2.bf16.msra.mxu1 %v9073_v46  ;;  %v9148_v46 = vld [vmem:[%s13525_s12 + $0x68] ss:$16 sps:$4 sm:$0xff]  }
 0x76a   : > { %6221 = vmatpush2.bf16.msra.mxu0 %v9076_v53  ;;  %6179 = vmatprep.subr.bf16.mxu1 %v9081_v9  ;;  %v9153_v53 = vld [vmem:[%s13525_s12 + $0x444] ss:$16 sps:$4 sm:$0xff]   ;;  %v9156_v9 = vld [vmem:[%s13525_s12 + $0x4c] ss:$16 sps:$4 sm:$0xff]  }
 0x76b   : > { %6222 = vmatprep.subr.bf16.mxu0 %v9084_v59  ;;  %v9151_v59 = vld [vmem:[%s13525_s12 + $0x440] ss:$16 sps:$4 sm:$0xff]  }
 0x76d   : > { %6180 = vmatpush2.bf16.msra.mxu1 %v9079_v60  ;;  %v9154_v60 = vld [vmem:[%s13525_s12 + $0x48] ss:$16 sps:$4 sm:$0xff]  }
 0x76e   : > { %6223 = vmatpush2.bf16.msra.mxu0 %v9082_v15  ;;  %6181 = vmatprep.subr.bf16.mxu1 %v9087_v5  ;;  %v9159_v15 = vld [vmem:[%s13525_s12 + $0x424] ss:$16 sps:$4 sm:$0xff]   ;;  %v9162_v5 = vld [vmem:[%s13525_s12 + $0x2c] ss:$16 sps:$4 sm:$0xff]  }
 0x76f   : > { %6224 = vmatprep.subr.bf16.mxu0 %v9090_v0  ;;  %v9157_v0 = vld [vmem:[%s13525_s12 + $0x420] ss:$16 sps:$4 sm:$0xff]  }
 0x771   : > { %6182 = vmatpush2.bf16.msra.mxu1 %v9085_v34  ;;  %v9160_v34 = vld [vmem:[%s13525_s12 + $0x28] ss:$16 sps:$4 sm:$0xff]  }
 0x772   : > { %6225 = vmatpush2.bf16.msra.mxu0 %v9088_v51  ;;  %6183 = vmatprep.subr.bf16.mxu1 %v9093_v29  ;;  %v9165_v51 = vld [vmem:[%s13525_s12 + $0x404] ss:$16 sps:$4 sm:$0xff]   ;;  %v9168_v29 = vld [vmem:[%s13525_s12 + $0xc] ss:$16 sps:$4 sm:$0xff]  }
 0x773   : > { %6226 = vmatprep.subr.bf16.mxu0 %v9096_v43  ;;  %v9163_v43 = vld [vmem:[%s13525_s12 + $0x400] ss:$16 sps:$4 sm:$0xff]  }
 0x775   : > { %6184 = vmatpush2.bf16.msra.mxu1 %v9091_v21  ;;  %v9166_v21 = vld [vmem:[%s13525_s12 + $0x8] ss:$16 sps:$4 sm:$0xff]  }
 0x776   : > { %6227 = vmatpush2.bf16.msra.mxu0 %v9094_v54  ;;  %6185 = vmatprep.subr.bf16.mxu1 %v9099_v3  ;;  %v9171_v54 = vld [vmem:[%s13525_s12 + $0x5e4] ss:$16 sps:$4 sm:$0xff]   ;;  %v9174_v3 = vld [vmem:[%s13525_s12 + $0x1ec] ss:$16 sps:$4 sm:$0xff]  }
 0x777   : > { %6228 = vmatprep.subr.bf16.mxu0 %v9102_v52  ;;  %v9169_v52 = vld [vmem:[%s13525_s12 + $0x5e0] ss:$16 sps:$4 sm:$0xff]  }
 0x779   : > { %6186 = vmatpush2.bf16.msra.mxu1 %v9097_v20  ;;  %v9172_v20 = vld [vmem:[%s13525_s12 + $0x1e8] ss:$16 sps:$4 sm:$0xff]  }
 0x77a   : > { %6229 = vmatpush2.bf16.msra.mxu0 %v9100_v58  ;;  %6187 = vmatprep.subr.bf16.mxu1 %v9105_v24  ;;  %v9177_v58 = vld [vmem:[%s13525_s12 + $0x5c4] ss:$16 sps:$4 sm:$0xff]   ;;  %v9180_v24 = vld [vmem:[%s13525_s12 + $0x1cc] ss:$16 sps:$4 sm:$0xff]  }
 0x77b   : > { %6230 = vmatprep.subr.bf16.mxu0 %v9108_v18  ;;  %v9175_v18 = vld [vmem:[%s13525_s12 + $0x5c0] ss:$16 sps:$4 sm:$0xff]  }
 0x77d   : > { %6188 = vmatpush2.bf16.msra.mxu1 %v9103_v13  ;;  %v9178_v13 = vld [vmem:[%s13525_s12 + $0x1c8] ss:$16 sps:$4 sm:$0xff]  }
 0x77e   : > { %6231 = vmatpush2.bf16.msra.mxu0 %v9106_v8  ;;  %6189 = vmatprep.subr.bf16.mxu1 %v9111_v48  ;;  %v9183_v8 = vld [vmem:[%s13525_s12 + $0x5a4] ss:$16 sps:$4 sm:$0xff]   ;;  %v9186_v48 = vld [vmem:[%s13525_s12 + $0x1ac] ss:$16 sps:$4 sm:$0xff]  }
 0x77f   : > { %6232 = vmatprep.subr.bf16.mxu0 %v9114_v57  ;;  %v9181_v57 = vld [vmem:[%s13525_s12 + $0x5a0] ss:$16 sps:$4 sm:$0xff]  }
 0x781   : > { %6190 = vmatpush2.bf16.msra.mxu1 %v9109_v26  ;;  %v9184_v26 = vld [vmem:[%s13525_s12 + $0x1a8] ss:$16 sps:$4 sm:$0xff]  }
 0x782   : > { %6233 = vmatpush2.bf16.msra.mxu0 %v9112_v32  ;;  %6191 = vmatprep.subr.bf16.mxu1 %v9117_v17  ;;  %v9189_v32 = vld [vmem:[%s13525_s12 + $0x584] ss:$16 sps:$4 sm:$0xff]   ;;  %v9192_v17 = vld [vmem:[%s13525_s12 + $0x18c] ss:$16 sps:$4 sm:$0xff]  }
 0x783   : > { %6234 = vmatprep.subr.bf16.mxu0 %v9120_v31  ;;  %v9187_v31 = vld [vmem:[%s13525_s12 + $0x580] ss:$16 sps:$4 sm:$0xff]  }
 0x785   : > { %6192 = vmatpush2.bf16.msra.mxu1 %v9115_v42  ;;  %v9190_v42 = vld [vmem:[%s13525_s12 + $0x188] ss:$16 sps:$4 sm:$0xff]  }
 0x786   : > { %6235 = vmatpush2.bf16.msra.mxu0 %v9118_v22  ;;  %6247 = vmatprep.subr.bf16.mxu1 %v9123_v61  ;;  %v9195_v22 = vld [vmem:[%s13525_s12 + $0x564] ss:$16 sps:$4 sm:$0xff]   ;;  %v9198_v61 = vld [vmem:[%s13525_s12 + $0x16c] ss:$16 sps:$4 sm:$0xff]  }
 0x787   : > { %6290 = vmatprep.subr.bf16.mxu0 %v9126_v50  ;;  %v9193_v50 = vld [vmem:[%s13525_s12 + $0x560] ss:$16 sps:$4 sm:$0xff]  }
 0x788   : > { %v12891_v35 = vpop.f32.mrf.mxu1  ;;  %6194 = vmatmul.mubr.bf16.vlgmr.msra.gmra.mxu1 %v11710_v11 }
 0x789   : > { %v12897_v27 = vpop.f32.mrf.mxu0  ;;  %6237 = vmatmul.mubr.bf16.vlgmr.msra.gmra.mxu0 %v11843_v6  ;;  %6248 = vmatpush1.bf16.msra.mxu1 %v9121_v4  ;;  %v9196_v4 = vld [vmem:[%s13525_s12 + $0x168] ss:$16 sps:$4 sm:$0xff]  }
 0x78a   : > { %6279 = vmatprep.mubr.bf16.mxu1 %v11847_v30  ;;  %6291 = vmatpush1.bf16.msra.mxu0 %v9124_v40  ;;  %v12904_v25 = vpop.f32.mrf.mxu1  ;;  %v9201_v40 = vld [vmem:[%s13525_s12 + $0x544] ss:$16 sps:$4 sm:$0xff]  }
 0x78b   : > { %6322 = vmatprep.mubr.bf16.mxu0 %v11715_v2  ;;  %v12913_v7 = vpop.f32.mrf.mxu0  ;;  %6249 = vmatprep.subr.bf16.mxu1 %v9129_v36  ;;  %v9136_v2 = vld [vmem:[%s13525_s12 + $0xa8] ss:$16 sps:$4 sm:$0xff]   ;;  %v9204_v36 = vld [vmem:[%s13525_s12 + $0x14c] ss:$16 sps:$4 sm:$0xff]  }
 0x78c   : > { %v4795_v62 = vpop.f32.mrf.mxu1  ;;  %6292 = vmatprep.subr.bf16.mxu0 %v9132_v39  ;;  %v9199_v39 = vld [vmem:[%s13525_s12 + $0x540] ss:$16 sps:$4 sm:$0xff]  }
 0x78d   : > { %v4836_v41 = vpop.f32.mrf.mxu0  ;;  %6250 = vmatpush1.bf16.msra.mxu1 %v9127_v23  ;;  %v9202_v23 = vld [vmem:[%s13525_s12 + $0x148] ss:$16 sps:$4 sm:$0xff]  }
 0x78e   : > { %6293 = vmatpush1.bf16.msra.mxu0 %v9130_v63  ;;  %v4796_v49 = vpop.f32.mrf.mxu1  ;;  %6251 = vmatprep.subr.bf16.mxu1 %v9135_v55  ;;  %v9207_v63 = vld [vmem:[%s13525_s12 + $0x524] ss:$16 sps:$4 sm:$0xff]   ;;  %v9210_v55 = vld [vmem:[%s13525_s12 + $0x12c] ss:$16 sps:$4 sm:$0xff]   ;;  %v9208_v62 = vld [vmem:[%s13525_s12 + $0x128] ss:$16 sps:$4 sm:$0xff]  }
 0x78f   : > { %v4837_v47 = vpop.f32.mrf.mxu0  ;;  %6294 = vmatprep.subr.bf16.mxu0 %v9138_v14  ;;  %v9205_v14 = vld [vmem:[%s13525_s12 + $0x520] ss:$16 sps:$4 sm:$0xff]   ;;  %v9213_v41 = vld [vmem:[%s13525_s12 + $0x504] ss:$16 sps:$4 sm:$0xff]  }
 0x790   : > { %v9211_v49 = vld [vmem:[%s13525_s12 + $0x500] ss:$16 sps:$4 sm:$0xff]   ;;  %v9222_v47 = vld [vmem:[%s13525_s12 + $0x4ec] ss:$16 sps:$4 sm:$0xff]  }
 0x791   : > { %6252 = vmatpush1.bf16.msra.mxu1 %v9133_v1  ;;  %v9216_v1 = vld [vmem:[%s13525_s12 + $0x10c] ss:$16 sps:$4 sm:$0xff]  }
 0x792   : > { %6295 = vmatpush1.bf16.msra.mxu0 %v9136_v2  ;;  %6253 = vmatprep.subr.bf16.mxu1 %v9141_v19  ;;  %v9214_v2 = vld [vmem:[%s13525_s12 + $0x108] ss:$16 sps:$4 sm:$0xff]   ;;  %v9219_v19 = vld [vmem:[%s13525_s12 + $0x2ec] ss:$16 sps:$4 sm:$0xff]  }
 0x793   : > { %6296 = vmatprep.subr.bf16.mxu0 %v9144_v56  ;;  %v9217_v56 = vld [vmem:[%s13525_s12 + $0x2e8] ss:$16 sps:$4 sm:$0xff]  }
 0x795   : > { %6254 = vmatpush1.bf16.msra.mxu1 %v9139_v10  ;;  %v9220_v10 = vld [vmem:[%s13525_s12 + $0x4e8] ss:$16 sps:$4 sm:$0xff]  }
 0x796   : > { %6297 = vmatpush1.bf16.msra.mxu0 %v9142_v12  ;;  %6255 = vmatprep.subr.bf16.mxu1 %v9147_v45  ;;  %v4833_v12 = vadd.f32 %v12897_v27, %v12891_v35  ;;  %v9225_v45 = vld [vmem:[%s13525_s12 + $0x2cc] ss:$16 sps:$4 sm:$0xff]   ;;  %v4835_v35 = vadd.f32 %v12913_v7, %v12904_v25 }
 0x797   : > { %6298 = vmatprep.subr.bf16.mxu0 %v9150_v37  ;;  %v9231_v25 = vld [vmem:[%s13525_s12 + $0x2ac] ss:$16 sps:$4 sm:$0xff]  }
 0x799   : > { %6256 = vmatpush1.bf16.msra.mxu1 %v9145_v16  ;;  %v9228_v16 = vld [vmem:[%s13525_s12 + $0x4cc] ss:$16 sps:$4 sm:$0xff]  }
 0x79a   : > { %6299 = vmatpush1.bf16.msra.mxu0 %v9148_v46  ;;  %6257 = vmatprep.subr.bf16.mxu1 %v9153_v53  ;;  %v9223_v53 = vld [vmem:[%s13525_s12 + $0x2c8] ss:$16 sps:$4 sm:$0xff]  }
 0x79b   : > { %6300 = vmatprep.subr.bf16.mxu0 %v9156_v9 }
 0x79d   : > { %6258 = vmatpush1.bf16.msra.mxu1 %v9151_v59  ;;  %v9226_v59 = vld [vmem:[%s13525_s12 + $0x4c8] ss:$16 sps:$4 sm:$0xff]  }
 0x79e   : > { %6301 = vmatpush1.bf16.msra.mxu0 %v9154_v60  ;;  %6259 = vmatprep.subr.bf16.mxu1 %v9159_v15 }
 0x79f   : > { %6302 = vmatprep.subr.bf16.mxu0 %v9162_v5  ;;  %v9229_v5 = vld [vmem:[%s13525_s12 + $0x2a8] ss:$16 sps:$4 sm:$0xff]  }
 0x7a1   : > { %6260 = vmatpush1.bf16.msra.mxu1 %v9157_v0 }
 0x7a2   : > { %6303 = vmatpush1.bf16.msra.mxu0 %v9160_v34  ;;  %6261 = vmatprep.subr.bf16.mxu1 %v9165_v51  ;;  %v9237_v34 = vld [vmem:[%s13525_s12 + $0x28c] ss:$16 sps:$4 sm:$0xff]  }
 0x7a3   : > { %6304 = vmatprep.subr.bf16.mxu0 %v9168_v29  ;;  %v9240_v29 = vld [vmem:[%s13525_s12 + $0x48c] ss:$16 sps:$4 sm:$0xff]  }
 0x7a5   : > { %6262 = vmatpush1.bf16.msra.mxu1 %v9163_v43  ;;  %v9235_v43 = vld [vmem:[%s13525_s12 + $0x288] ss:$16 sps:$4 sm:$0xff]  }
 0x7a6   : > { %6305 = vmatpush1.bf16.msra.mxu0 %v9166_v21  ;;  %6263 = vmatprep.subr.bf16.mxu1 %v9171_v54  ;;  %v9238_v21 = vld [vmem:[%s13525_s12 + $0x488] ss:$16 sps:$4 sm:$0xff]   ;;  %v9243_v54 = vld [vmem:[%s13525_s12 + $0x26c] ss:$16 sps:$4 sm:$0xff]  }
 0x7a7   : > { %6306 = vmatprep.subr.bf16.mxu0 %v9174_v3  ;;  %v9246_v3 = vld [vmem:[%s13525_s12 + $0x46c] ss:$16 sps:$4 sm:$0xff]  }
 0x7a9   : > { %6264 = vmatpush2.bf16.msra.mxu1 %v9169_v52  ;;  %v9241_v52 = vld [vmem:[%s13525_s12 + $0x268] ss:$16 sps:$4 sm:$0xff]  }
 0x7aa   : > { %6307 = vmatpush2.bf16.msra.mxu0 %v9172_v20  ;;  %6265 = vmatprep.subr.bf16.mxu1 %v9177_v58  ;;  %v9244_v20 = vld [vmem:[%s13525_s12 + $0x468] ss:$16 sps:$4 sm:$0xff]   ;;  %v9249_v58 = vld [vmem:[%s13525_s12 + $0x24c] ss:$16 sps:$4 sm:$0xff]  }
 0x7ab   : > { %6308 = vmatprep.subr.bf16.mxu0 %v9180_v24  ;;  %v9252_v24 = vld [vmem:[%s13525_s12 + $0x44c] ss:$16 sps:$4 sm:$0xff]  }
 0x7ad   : > { %6266 = vmatpush2.bf16.msra.mxu1 %v9175_v18  ;;  %v9247_v18 = vld [vmem:[%s13525_s12 + $0x248] ss:$16 sps:$4 sm:$0xff]  }
 0x7ae   : > { %6309 = vmatpush2.bf16.msra.mxu0 %v9178_v13  ;;  %6267 = vmatprep.subr.bf16.mxu1 %v9183_v8  ;;  %v9250_v13 = vld [vmem:[%s13525_s12 + $0x448] ss:$16 sps:$4 sm:$0xff]   ;;  %v9255_v8 = vld [vmem:[%s13525_s12 + $0x22c] ss:$16 sps:$4 sm:$0xff]  }
 0x7af   : > { %6310 = vmatprep.subr.bf16.mxu0 %v9186_v48  ;;  %v9258_v48 = vld [vmem:[%s13525_s12 + $0x42c] ss:$16 sps:$4 sm:$0xff]  }
 0x7b1   : > { %6268 = vmatpush2.bf16.msra.mxu1 %v9181_v57  ;;  %v9253_v57 = vld [vmem:[%s13525_s12 + $0x228] ss:$16 sps:$4 sm:$0xff]  }
 0x7b2   : > { %6311 = vmatpush2.bf16.msra.mxu0 %v9184_v26  ;;  %6269 = vmatprep.subr.bf16.mxu1 %v9189_v32  ;;  %v9256_v26 = vld [vmem:[%s13525_s12 + $0x428] ss:$16 sps:$4 sm:$0xff]   ;;  %v9261_v32 = vld [vmem:[%s13525_s12 + $0x20c] ss:$16 sps:$4 sm:$0xff]  }
 0x7b3   : > { %6312 = vmatprep.subr.bf16.mxu0 %v9192_v17  ;;  %v9264_v17 = vld [vmem:[%s13525_s12 + $0x40c] ss:$16 sps:$4 sm:$0xff]  }
 0x7b5   : > { %6270 = vmatpush2.bf16.msra.mxu1 %v9187_v31  ;;  %v9259_v31 = vld [vmem:[%s13525_s12 + $0x208] ss:$16 sps:$4 sm:$0xff]  }
 0x7b6   : > { %6313 = vmatpush2.bf16.msra.mxu0 %v9190_v42  ;;  %6271 = vmatprep.subr.bf16.mxu1 %v9195_v22  ;;  %v9262_v42 = vld [vmem:[%s13525_s12 + $0x408] ss:$16 sps:$4 sm:$0xff]   ;;  %v9267_v22 = vld [vmem:[%s13525_s12 + $0x3ec] ss:$16 sps:$4 sm:$0xff]  }
 0x7b7   : > { %6314 = vmatprep.subr.bf16.mxu0 %v9198_v61  ;;  %v9270_v61 = vld [vmem:[%s13525_s12 + $0x5ec] ss:$16 sps:$4 sm:$0xff]  }
 0x7b9   : > { %6272 = vmatpush2.bf16.msra.mxu1 %v9193_v50  ;;  %v9265_v50 = vld [vmem:[%s13525_s12 + $0x3e8] ss:$16 sps:$4 sm:$0xff]  }
 0x7ba   : > { %6315 = vmatpush2.bf16.msra.mxu0 %v9196_v4  ;;  %6273 = vmatprep.subr.bf16.mxu1 %v9201_v40  ;;  %v9268_v4 = vld [vmem:[%s13525_s12 + $0x5e8] ss:$16 sps:$4 sm:$0xff]   ;;  %v9273_v40 = vld [vmem:[%s13525_s12 + $0x3cc] ss:$16 sps:$4 sm:$0xff]  }
 0x7bb   : > { %6316 = vmatprep.subr.bf16.mxu0 %v9204_v36  ;;  %v9276_v36 = vld [vmem:[%s13525_s12 + $0x5cc] ss:$16 sps:$4 sm:$0xff]  }
 0x7bd   : > { %6274 = vmatpush2.bf16.msra.mxu1 %v9199_v39  ;;  %v9271_v39 = vld [vmem:[%s13525_s12 + $0x3c8] ss:$16 sps:$4 sm:$0xff]  }
 0x7be   : > { %6317 = vmatpush2.bf16.msra.mxu0 %v9202_v23  ;;  %6275 = vmatprep.subr.bf16.mxu1 %v9207_v63  ;;  %v9274_v23 = vld [vmem:[%s13525_s12 + $0x5c8] ss:$16 sps:$4 sm:$0xff]   ;;  %v9279_v63 = vld [vmem:[%s13525_s12 + $0x3ac] ss:$16 sps:$4 sm:$0xff]  }
 0x7bf   : > { %6318 = vmatprep.subr.bf16.mxu0 %v9210_v55  ;;  %v9282_v55 = vld [vmem:[%s13525_s12 + $0x5ac] ss:$16 sps:$4 sm:$0xff]  }
 0x7c1   : > { %6276 = vmatpush2.bf16.msra.mxu1 %v9205_v14  ;;  %v9277_v14 = vld [vmem:[%s13525_s12 + $0x3a8] ss:$16 sps:$4 sm:$0xff]  }
 0x7c2   : > { %6319 = vmatpush2.bf16.msra.mxu0 %v9208_v62  ;;  %6277 = vmatprep.subr.bf16.mxu1 %v9213_v41  ;;  %v9280_v62 = vld [vmem:[%s13525_s12 + $0x5a8] ss:$16 sps:$4 sm:$0xff]   ;;  %v9285_v41 = vld [vmem:[%s13525_s12 + $0x38c] ss:$16 sps:$4 sm:$0xff]  }
 0x7c3   : > { %6320 = vmatprep.subr.bf16.mxu0 %v9216_v1  ;;  %v9288_v1 = vld [vmem:[%s13525_s12 + $0x58c] ss:$16 sps:$4 sm:$0xff]  }
 0x7c5   : > { %6278 = vmatpush2.bf16.msra.mxu1 %v9211_v49  ;;  %v9283_v49 = vld [vmem:[%s13525_s12 + $0x388] ss:$16 sps:$4 sm:$0xff]  }
 0x7c6   : > { %6321 = vmatpush2.bf16.msra.mxu0 %v9214_v2  ;;  %6333 = vmatprep.subr.bf16.mxu1 %v9219_v19  ;;  %v9286_v2 = vld [vmem:[%s13525_s12 + $0x588] ss:$16 sps:$4 sm:$0xff]   ;;  %v9291_v19 = vld [vmem:[%s13525_s12 + $0x36c] ss:$16 sps:$4 sm:$0xff]  }
 0x7c7   : > { %6376 = vmatprep.subr.bf16.mxu0 %v9222_v47  ;;  %v9294_v47 = vld [vmem:[%s13525_s12 + $0x56c] ss:$16 sps:$4 sm:$0xff]  }
 0x7c8   : > { %v4873_v37 = vpop.f32.mrf.mxu1  ;;  %6280 = vmatmul.mubr.bf16.vlgmr.msra.gmra.mxu1 %v11849_v33 }
 0x7c9   : > { %v4874_v27 = vadd.f32 %v4873_v37, %v4833_v12  ;;  %v13109_v46 = vpop.f32.mrf.mxu0  ;;  %6323 = vmatmul.mubr.bf16.vlgmr.msra.gmra.mxu0 %v11710_v11  ;;  %6334 = vmatpush1.bf16.msra.mxu1 %v9217_v56  ;;  %v9289_v56 = vld [vmem:[%s13525_s12 + $0x368] ss:$16 sps:$4 sm:$0xff]   ;;  %v9297_v12 = vld [vmem:[%s13525_s12 + $0x34c] ss:$16 sps:$4 sm:$0xff]  }
 0x7ca   : > { %6365 = vmatprep.mubr.bf16.mxu1 %v11845_v38  ;;  %6377 = vmatpush1.bf16.msra.mxu0 %v9220_v10  ;;  %v4875_v9 = vpop.f32.mrf.mxu1  ;;  %v9234_v38 = vld [vmem:[%s13525_s12 + $0x4ac] ss:$16 sps:$4 sm:$0xff]   ;;  %v9292_v10 = vld [vmem:[%s13525_s12 + $0x568] ss:$16 sps:$4 sm:$0xff]  }
 0x7cb   : > { %6891 = vst [vmem:[%s13101_s24] sm:$0xff] %v4874_v27  ;;  %6408 = vmatprep.mubr.bf16.mxu0 %v11847_v30  ;;  %v4876_v11 = vadd.f32 %v4875_v9, %v4835_v35  ;;  %v13124_v7 = vpop.f32.mrf.mxu0  ;;  %6335 = vmatprep.subr.bf16.mxu1 %v9225_v45  ;;  %v9232_v30 = vld [vmem:[%s13525_s12 + $0x4a8] ss:$16 sps:$4 sm:$0xff]   ;;  %v9300_v45 = vld [vmem:[%s13525_s12 + $0x54c] ss:$16 sps:$4 sm:$0xff]  }
 0x7cc   : > { %v4877_v60 = vpop.f32.mrf.mxu1  ;;  %6378 = vmatprep.subr.bf16.mxu0 %v9228_v16  ;;  %v9295_v37 = vld [vmem:[%s13525_s12 + $0x348] ss:$16 sps:$4 sm:$0xff]   ;;  %v9303_v35 = vld [vmem:[%s13525_s12 + $0x32c] ss:$16 sps:$4 sm:$0xff]  }
 0x7cd   : > { %6892 = vst [vmem:[%s13101_s24 + $0x8] sm:$0xff] %v4876_v11  ;;  %v4918_v15 = vpop.f32.mrf.mxu0  ;;  %6336 = vmatpush1.bf16.msra.mxu1 %v9223_v53  ;;  %v9298_v16 = vld [vmem:[%s13525_s12 + $0x548] ss:$16 sps:$4 sm:$0xff]   ;;  %v9306_v27 = vld [vmem:[%s13525_s12 + $0x52c] ss:$16 sps:$4 sm:$0xff]  }
 0x7ce   : > { %6379 = vmatpush1.bf16.msra.mxu0 %v9226_v59  ;;  %v4878_v0 = vpop.f32.mrf.mxu1  ;;  %6337 = vmatprep.subr.bf16.mxu1 %v9231_v25  ;;  %v9301_v53 = vld [vmem:[%s13525_s12 + $0x328] ss:$16 sps:$4 sm:$0xff]   ;;  %v9309_v59 = vld [vmem:[%s13525_s12 + $0x30c] ss:$16 sps:$4 sm:$0xff]   ;;  %v9315_v60 = vld [vmem:[%s13526_s13 + $0xe4] ss:$16 sps:$4 sm:$0xff]  }
 0x7cf   : > { %v4919_v51 = vpop.f32.mrf.mxu0  ;;  %6380 = vmatprep.subr.bf16.mxu0 %v9234_v38  ;;  %v9304_v9 = vld [vmem:[%s13525_s12 + $0x528] ss:$16 sps:$4 sm:$0xff]   ;;  %v9312_v25 = vld [vmem:[%s13525_s12 + $0x50c] ss:$16 sps:$4 sm:$0xff]  }
 0x7d0   : > { %v9307_v11 = vld [vmem:[%s13525_s12 + $0x308] ss:$16 sps:$4 sm:$0xff]   ;;  %v9318_v15 = vld [vmem:[%s13526_s13 + $0xec] ss:$16 sps:$4 sm:$0xff]  }
 0x7d1   : > { %6338 = vmatpush1.bf16.msra.mxu1 %v9229_v5  ;;  %v9310_v38 = vld [vmem:[%s13525_s12 + $0x508] ss:$16 sps:$4 sm:$0xff]   ;;  %v9313_v5 = vld [vmem:[%s13526_s13 + $0xe0] ss:$16 sps:$4 sm:$0xff]   ;;  %v9324_v51 = vld [vmem:[%s13526_s13 + $0xcc] ss:$16 sps:$4 sm:$0xff]  }
 0x7d2   : > { %6381 = vmatpush1.bf16.msra.mxu0 %v9232_v30  ;;  %6339 = vmatprep.subr.bf16.mxu1 %v9237_v34  ;;  %v9316_v0 = vld [vmem:[%s13526_s13 + $0xe8] ss:$16 sps:$4 sm:$0xff]   ;;  %v9321_v30 = vld [vmem:[%s13526_s13 + $0xc4] ss:$16 sps:$4 sm:$0xff]  }
 0x7d3   : > { %6382 = vmatprep.subr.bf16.mxu0 %v9240_v29 }
 0x7d5   : > { %6340 = vmatpush1.bf16.msra.mxu1 %v9235_v43 }
 0x7d6   : > { %6383 = vmatpush1.bf16.msra.mxu0 %v9238_v21  ;;  %6341 = vmatprep.subr.bf16.mxu1 %v9243_v54  ;;  %v9319_v21 = vld [vmem:[%s13526_s13 + $0xc0] ss:$16 sps:$4 sm:$0xff]  }
 0x7d7   : > { %6384 = vmatprep.subr.bf16.mxu0 %v9246_v3 }
 0x7d9   : > { %6342 = vmatpush1.bf16.msra.mxu1 %v9241_v52 }
 0x7da   : > { %6385 = vmatpush1.bf16.msra.mxu0 %v9244_v20  ;;  %6343 = vmatprep.subr.bf16.mxu1 %v9249_v58  ;;  %v9330_v20 = vld [vmem:[%s13526_s13 + $0xac] ss:$16 sps:$4 sm:$0xff]  }
 0x7db   : > { %6386 = vmatprep.subr.bf16.mxu0 %v9252_v24 }
 0x7dd   : > { %6344 = vmatpush1.bf16.msra.mxu1 %v9247_v18 }
 0x7de   : > { %6387 = vmatpush1.bf16.msra.mxu0 %v9250_v13  ;;  %6345 = vmatprep.subr.bf16.mxu1 %v9255_v8  ;;  %v9325_v13 = vld [vmem:[%s13526_s13 + $0xa0] ss:$16 sps:$4 sm:$0xff]   ;;  %v9333_v8 = vld [vmem:[%s13526_s13 + $0x84] ss:$16 sps:$4 sm:$0xff]  }
 0x7df   : > { %6388 = vmatprep.subr.bf16.mxu0 %v9258_v48 }
 0x7e1   : > { %6346 = vmatpush1.bf16.msra.mxu1 %v9253_v57  ;;  %v9336_v57 = vld [vmem:[%s13526_s13 + $0x8c] ss:$16 sps:$4 sm:$0xff]  }
 0x7e2   : > { %6389 = vmatpush1.bf16.msra.mxu0 %v9256_v26  ;;  %6347 = vmatprep.subr.bf16.mxu1 %v9261_v32  ;;  %v9331_v26 = vld [vmem:[%s13526_s13 + $0x80] ss:$16 sps:$4 sm:$0xff]   ;;  %v9334_v32 = vld [vmem:[%s13526_s13 + $0x88] ss:$16 sps:$4 sm:$0xff]  }
 0x7e3   : > { %6390 = vmatprep.subr.bf16.mxu0 %v9264_v17  ;;  %v9339_v17 = vld [vmem:[%s13526_s13 + $0x64] ss:$16 sps:$4 sm:$0xff]  }
 0x7e5   : > { %6348 = vmatpush1.bf16.msra.mxu1 %v9259_v31  ;;  %v9342_v31 = vld [vmem:[%s13526_s13 + $0x6c] ss:$16 sps:$4 sm:$0xff]  }
 0x7e6   : > { %6391 = vmatpush1.bf16.msra.mxu0 %v9262_v42  ;;  %6349 = vmatprep.subr.bf16.mxu1 %v9267_v22  ;;  %v9337_v42 = vld [vmem:[%s13526_s13 + $0x60] ss:$16 sps:$4 sm:$0xff]   ;;  %v9340_v22 = vld [vmem:[%s13526_s13 + $0x68] ss:$16 sps:$4 sm:$0xff]  }
 0x7e7   : > { %6392 = vmatprep.subr.bf16.mxu0 %v9270_v61  ;;  %v9345_v61 = vld [vmem:[%s13526_s13 + $0x44] ss:$16 sps:$4 sm:$0xff]  }
 0x7e9   : > { %6350 = vmatpush2.bf16.msra.mxu1 %v9265_v50  ;;  %v9348_v50 = vld [vmem:[%s13526_s13 + $0x4c] ss:$16 sps:$4 sm:$0xff]  }
 0x7ea   : > { %6393 = vmatpush2.bf16.msra.mxu0 %v9268_v4  ;;  %6351 = vmatprep.subr.bf16.mxu1 %v9273_v40  ;;  %v9343_v4 = vld [vmem:[%s13526_s13 + $0x40] ss:$16 sps:$4 sm:$0xff]   ;;  %v9346_v40 = vld [vmem:[%s13526_s13 + $0x48] ss:$16 sps:$4 sm:$0xff]  }
 0x7eb   : > { %6394 = vmatprep.subr.bf16.mxu0 %v9276_v36  ;;  %v9351_v36 = vld [vmem:[%s13526_s13 + $0x24] ss:$16 sps:$4 sm:$0xff]  }
 0x7ed   : > { %6352 = vmatpush2.bf16.msra.mxu1 %v9271_v39  ;;  %v9354_v39 = vld [vmem:[%s13526_s13 + $0x2c] ss:$16 sps:$4 sm:$0xff]  }
 0x7ee   : > { %6395 = vmatpush2.bf16.msra.mxu0 %v9274_v23  ;;  %6353 = vmatprep.subr.bf16.mxu1 %v9279_v63  ;;  %v9349_v23 = vld [vmem:[%s13526_s13 + $0x20] ss:$16 sps:$4 sm:$0xff]   ;;  %v9352_v63 = vld [vmem:[%s13526_s13 + $0x28] ss:$16 sps:$4 sm:$0xff]  }
 0x7ef   : > { %6396 = vmatprep.subr.bf16.mxu0 %v9282_v55  ;;  %v9357_v55 = vld [vmem:[%s13526_s13 + $0x4] ss:$16 sps:$4 sm:$0xff]  }
 0x7f1   : > { %6354 = vmatpush2.bf16.msra.mxu1 %v9277_v14  ;;  %v9360_v14 = vld [vmem:[%s13526_s13 + $0xc] ss:$16 sps:$4 sm:$0xff]  }
 0x7f2   : > { %6397 = vmatpush2.bf16.msra.mxu0 %v9280_v62  ;;  %6355 = vmatprep.subr.bf16.mxu1 %v9285_v41  ;;  %v9355_v62 = vld [vmem:[%s13526_s13] ss:$16 sps:$4 sm:$0xff]   ;;  %v9358_v41 = vld [vmem:[%s13526_s13 + $0x8] ss:$16 sps:$4 sm:$0xff]  }
 0x7f3   : > { %6398 = vmatprep.subr.bf16.mxu0 %v9288_v1  ;;  %v9363_v1 = vld [vmem:[%s13526_s13 + $0x1e4] ss:$16 sps:$4 sm:$0xff]  }
 0x7f5   : > { %6356 = vmatpush2.bf16.msra.mxu1 %v9283_v49  ;;  %v9366_v49 = vld [vmem:[%s13526_s13 + $0x1ec] ss:$16 sps:$4 sm:$0xff]  }
 0x7f6   : > { %6399 = vmatpush2.bf16.msra.mxu0 %v9286_v2  ;;  %6357 = vmatprep.subr.bf16.mxu1 %v9291_v19  ;;  %v9361_v2 = vld [vmem:[%s13526_s13 + $0x1e0] ss:$16 sps:$4 sm:$0xff]   ;;  %v9364_v19 = vld [vmem:[%s13526_s13 + $0x1e8] ss:$16 sps:$4 sm:$0xff]  }
 0x7f7   : > { %6400 = vmatprep.subr.bf16.mxu0 %v9294_v47  ;;  %v9369_v47 = vld [vmem:[%s13526_s13 + $0x1c4] ss:$16 sps:$4 sm:$0xff]  }
 0x7f9   : > { %6358 = vmatpush2.bf16.msra.mxu1 %v9289_v56  ;;  %v9372_v56 = vld [vmem:[%s13526_s13 + $0x1cc] ss:$16 sps:$4 sm:$0xff]  }
 0x7fa   : > { %6401 = vmatpush2.bf16.msra.mxu0 %v9292_v10  ;;  %6359 = vmatprep.subr.bf16.mxu1 %v9297_v12  ;;  %v9367_v10 = vld [vmem:[%s13526_s13 + $0x1c0] ss:$16 sps:$4 sm:$0xff]   ;;  %v9370_v12 = vld [vmem:[%s13526_s13 + $0x1c8] ss:$16 sps:$4 sm:$0xff]  }
 0x7fb   : > { %6402 = vmatprep.subr.bf16.mxu0 %v9300_v45  ;;  %v9375_v45 = vld [vmem:[%s13526_s13 + $0x1a4] ss:$16 sps:$4 sm:$0xff]  }
 0x7fd   : > { %6360 = vmatpush2.bf16.msra.mxu1 %v9295_v37  ;;  %v9378_v37 = vld [vmem:[%s13526_s13 + $0x1ac] ss:$16 sps:$4 sm:$0xff]  }
 0x7fe   : > { %6403 = vmatpush2.bf16.msra.mxu0 %v9298_v16  ;;  %6361 = vmatprep.subr.bf16.mxu1 %v9303_v35  ;;  %v9373_v16 = vld [vmem:[%s13526_s13 + $0x1a0] ss:$16 sps:$4 sm:$0xff]   ;;  %v9376_v35 = vld [vmem:[%s13526_s13 + $0x1a8] ss:$16 sps:$4 sm:$0xff]  }
 0x7ff   : > { %6404 = vmatprep.subr.bf16.mxu0 %v9306_v27  ;;  %v9381_v27 = vld [vmem:[%s13526_s13 + $0x184] ss:$16 sps:$4 sm:$0xff]  }
 0x801   : > { %6362 = vmatpush2.bf16.msra.mxu1 %v9301_v53  ;;  %v9384_v53 = vld [vmem:[%s13526_s13 + $0x18c] ss:$16 sps:$4 sm:$0xff]  }
 0x802   : > { %6405 = vmatpush2.bf16.msra.mxu0 %v9304_v9  ;;  %6363 = vmatprep.subr.bf16.mxu1 %v9309_v59  ;;  %v9379_v9 = vld [vmem:[%s13526_s13 + $0x180] ss:$16 sps:$4 sm:$0xff]   ;;  %v9382_v59 = vld [vmem:[%s13526_s13 + $0x188] ss:$16 sps:$4 sm:$0xff]  }
 0x803   : > { %6406 = vmatprep.subr.bf16.mxu0 %v9312_v25  ;;  %v9387_v25 = vld [vmem:[%s13526_s13 + $0x164] ss:$16 sps:$4 sm:$0xff]  }
 0x805   : > { %6364 = vmatpush2.bf16.msra.mxu1 %v9307_v11  ;;  %v9390_v11 = vld [vmem:[%s13526_s13 + $0x16c] ss:$16 sps:$4 sm:$0xff]  }
 0x806   : > { %6407 = vmatpush2.bf16.msra.mxu0 %v9310_v38  ;;  %6805 = vmatprep.subr.bf16.mxu1 %v9315_v60  ;;  %v9385_v38 = vld [vmem:[%s13526_s13 + $0x160] ss:$16 sps:$4 sm:$0xff]   ;;  %v9388_v60 = vld [vmem:[%s13526_s13 + $0x168] ss:$16 sps:$4 sm:$0xff]  }
 0x807   : > { %6848 = vmatprep.subr.bf16.mxu0 %v9318_v15  ;;  %v9393_v15 = vld [vmem:[%s13526_s13 + $0x144] ss:$16 sps:$4 sm:$0xff]  }
 0x808   : > { %v4955_v34 = vpop.f32.mrf.mxu1  ;;  %6366 = vmatmul.mubr.bf16.vlgmr.msra.gmra.mxu1 %v11843_v6  ;;  %v9322_v6 = vld [vmem:[%s13526_s13 + $0xc8] ss:$16 sps:$4 sm:$0xff]  }
 0x809   : > { %v4956_v29 = vadd.f32 %v4955_v34, %v13109_v46  ;;  %v4996_v43 = vpop.f32.mrf.mxu0  ;;  %6409 = vmatmul.mubr.bf16.vlgmr.msra.gmra.mxu0 %v11849_v33  ;;  %6806 = vmatpush1.bf16.msra.mxu1 %v9313_v5  ;;  %v9327_v46 = vld [vmem:[%s13526_s13 + $0xa4] ss:$16 sps:$4 sm:$0xff]   ;;  %v9396_v5 = vld [vmem:[%s13526_s13 + $0x14c] ss:$16 sps:$4 sm:$0xff]  }
 0x80a   : > { %6837 = vmatprep.mubr.bf16.mxu1 %v12781_v28  ;;  %6849 = vmatpush1.bf16.msra.mxu0 %v9316_v0  ;;  %v4957_v54 = vpop.f32.mrf.mxu1  ;;  %v9391_v0 = vld [vmem:[%s13526_s13 + $0x140] ss:$16 sps:$4 sm:$0xff]   ;;  %v9399_v34 = vld [vmem:[%s13526_s13 + $0x124] ss:$16 sps:$4 sm:$0xff]  }
 0x80b   : > { %v4997_v3 = vadd.f32 %v4996_v43, %v4956_v29  ;;  %6880 = vmatprep.mubr.bf16.mxu0 %v12781_v28  ;;  %v4958_v33 = vadd.f32 %v4957_v54, %v13124_v7  ;;  %v4998_v52 = vpop.f32.mrf.mxu0  ;;  %6807 = vmatprep.subr.bf16.mxu1 %v9321_v30  ;;  %v9328_v7 = vld [vmem:[%s13526_s13 + $0xa8] ss:$16 sps:$4 sm:$0xff]   ;;  %v9397_v29 = vld [vmem:[%s13526_s13 + $0x120] ss:$16 sps:$4 sm:$0xff]   ;;  %v9408_v54 = vld [vmem:[%s13526_s13 + $0x10c] ss:$16 sps:$4 sm:$0xff]  }
 0x80c   : > { %v4959_v58 = vpop.f32.mrf.mxu1  ;;  %6850 = vmatprep.subr.bf16.mxu0 %v9324_v51  ;;  %v9394_v30 = vld [vmem:[%s13526_s13 + $0x148] ss:$16 sps:$4 sm:$0xff]   ;;  %v9402_v51 = vld [vmem:[%s13526_s13 + $0x12c] ss:$16 sps:$4 sm:$0xff]  }
 0x80d   : > { %6893 = vst [vmem:[%s13101_s24 + $0x10] sm:$0xff] %v4997_v3  ;;  %v4999_v24 = vadd.f32 %v4998_v52, %v4958_v33  ;;  %v5000_v18 = vpop.f32.mrf.mxu0  ;;  %6808 = vmatpush1.bf16.msra.mxu1 %v9319_v21  ;;  %v9400_v43 = vld [vmem:[%s13526_s13 + $0x128] ss:$16 sps:$4 sm:$0xff]   ;;  %v9405_v21 = vld [vmem:[%s13526_s13 + $0x104] ss:$16 sps:$4 sm:$0xff]  }
 0x80e   : > { %6851 = vmatpush1.bf16.msra.mxu0 %v9322_v6  ;;  %v4960_v28 = vpop.f32.mrf.mxu1  ;;  %6809 = vmatprep.subr.bf16.mxu1 %v9327_v46  ;;  %v9403_v6 = vld [vmem:[%s13526_s13 + $0x100] ss:$16 sps:$4 sm:$0xff]   ;;  %v9406_v46 = vld [vmem:[%s13526_s13 + $0x108] ss:$16 sps:$4 sm:$0xff]  }
 0x80f   : > { %6894 = vst [vmem:[%s13101_s24 + $0x18] sm:$0xff] %v4999_v24  ;;  %v5001_v48 = vpop.f32.mrf.mxu0  ;;  %6852 = vmatprep.subr.bf16.mxu0 %v9330_v20 }
 0x811   : > { %6810 = vmatpush1.bf16.msra.mxu1 %v9325_v13 }
 0x812   : > { %6853 = vmatpush1.bf16.msra.mxu0 %v9328_v7  ;;  %6811 = vmatprep.subr.bf16.mxu1 %v9333_v8 }
 0x813   : > { %6854 = vmatprep.subr.bf16.mxu0 %v9336_v57 }
 0x815   : > { %6812 = vmatpush1.bf16.msra.mxu1 %v9331_v26 }
 0x816   : > { %6855 = vmatpush1.bf16.msra.mxu0 %v9334_v32  ;;  %6813 = vmatprep.subr.bf16.mxu1 %v9339_v17 }
 0x817   : > { %6856 = vmatprep.subr.bf16.mxu0 %v9342_v31 }
 0x819   : > { %6814 = vmatpush1.bf16.msra.mxu1 %v9337_v42 }
 0x81a   : > { %6857 = vmatpush1.bf16.msra.mxu0 %v9340_v22  ;;  %6815 = vmatprep.subr.bf16.mxu1 %v9345_v61 }
 0x81b   : > { %6858 = vmatprep.subr.bf16.mxu0 %v9348_v50 }
 0x81d   : > { %6816 = vmatpush1.bf16.msra.mxu1 %v9343_v4 }
 0x81e   : > { %6859 = vmatpush1.bf16.msra.mxu0 %v9346_v40  ;;  %6817 = vmatprep.subr.bf16.mxu1 %v9351_v36 }
 0x81f   : > { %6860 = vmatprep.subr.bf16.mxu0 %v9354_v39 }
 0x821   : > { %6818 = vmatpush1.bf16.msra.mxu1 %v9349_v23 }
 0x822   : > { %6861 = vmatpush1.bf16.msra.mxu0 %v9352_v63  ;;  %6819 = vmatprep.subr.bf16.mxu1 %v9357_v55 }
 0x823   : > { %6862 = vmatprep.subr.bf16.mxu0 %v9360_v14 }
 0x825   : > { %6820 = vmatpush1.bf16.msra.mxu1 %v9355_v62 }
 0x826   : > { %6863 = vmatpush1.bf16.msra.mxu0 %v9358_v41  ;;  %6821 = vmatprep.subr.bf16.mxu1 %v9363_v1 }
 0x827   : > { %6864 = vmatprep.subr.bf16.mxu0 %v9366_v49 }
 0x829   : > { %6822 = vmatpush2.bf16.msra.mxu1 %v9361_v2 }
 0x82a   : > { %6865 = vmatpush2.bf16.msra.mxu0 %v9364_v19  ;;  %6823 = vmatprep.subr.bf16.mxu1 %v9369_v47 }
 0x82b   : > { %6866 = vmatprep.subr.bf16.mxu0 %v9372_v56 }
 0x82d   : > { %6824 = vmatpush2.bf16.msra.mxu1 %v9367_v10 }
 0x82e   : > { %6867 = vmatpush2.bf16.msra.mxu0 %v9370_v12  ;;  %6825 = vmatprep.subr.bf16.mxu1 %v9375_v45 }
 0x82f   : > { %6868 = vmatprep.subr.bf16.mxu0 %v9378_v37 }
 0x831   : > { %6826 = vmatpush2.bf16.msra.mxu1 %v9373_v16 }
 0x832   : > { %6869 = vmatpush2.bf16.msra.mxu0 %v9376_v35  ;;  %6827 = vmatprep.subr.bf16.mxu1 %v9381_v27 }
 0x833   : > { %6870 = vmatprep.subr.bf16.mxu0 %v9384_v53 }
 0x835   : > { %6828 = vmatpush2.bf16.msra.mxu1 %v9379_v9 }
 0x836   : > { %6871 = vmatpush2.bf16.msra.mxu0 %v9382_v59  ;;  %6829 = vmatprep.subr.bf16.mxu1 %v9387_v25 }
 0x837   : > { %6872 = vmatprep.subr.bf16.mxu0 %v9390_v11 }
 0x839   : > { %6830 = vmatpush2.bf16.msra.mxu1 %v9385_v38 }
 0x83a   : > { %6873 = vmatpush2.bf16.msra.mxu0 %v9388_v60  ;;  %6831 = vmatprep.subr.bf16.mxu1 %v9393_v15 }
 0x83b   : > { %6874 = vmatprep.subr.bf16.mxu0 %v9396_v5 }
 0x83d   : > { %6832 = vmatpush2.bf16.msra.mxu1 %v9391_v0 }
 0x83e   : > { %6875 = vmatpush2.bf16.msra.mxu0 %v9394_v30  ;;  %6833 = vmatprep.subr.bf16.mxu1 %v9399_v34 }
 0x83f   : > { %6876 = vmatprep.subr.bf16.mxu0 %v9402_v51 }
 0x841   : > { %6834 = vmatpush2.bf16.msra.mxu1 %v9397_v29 }
 0x842   : > { %6877 = vmatpush2.bf16.msra.mxu0 %v9400_v43  ;;  %6835 = vmatprep.subr.bf16.mxu1 %v9405_v21 }
 0x843   : > { %6878 = vmatprep.subr.bf16.mxu0 %v9408_v54 }
 0x845   : > { %6836 = vmatpush2.bf16.msra.mxu1 %v9403_v6 }
 0x846   : > { %6879 = vmatpush2.bf16.msra.mxu0 %v9406_v46 }
 0x848   : > { %6838 = vmatmul.mubr.bf16.vlgmr.msra.gmra.mxu1 %v12770_v44  ;;  %v6195_v3 = vpop.f32.mrf.mxu1 }
 0x849   : > { %6881 = vmatmul.mubr.bf16.vlgmr.msra.gmra.mxu0 %v12770_v44  ;;  %v6238_v33 = vpop.f32.mrf.mxu0 }
 0x84a   : > { %v6197_v52 = vpop.f32.mrf.mxu1  ;;  %v6239_v13 = vadd.f32 %v6238_v33, %v6195_v3 }
 0x84b   : > { %v6240_v20 = vpop.f32.mrf.mxu0 }
 0x84c   : > { %v6199_v58 = vpop.f32.mrf.mxu1  ;;  %v6241_v7 = vadd.f32 %v6240_v20, %v6197_v52 }
 0x84d   : > { %v6242_v24 = vpop.f32.mrf.mxu0 }
 0x84e   : > { %v6201_v18 = vpop.f32.mrf.mxu1  ;;  %v6243_v26 = vadd.f32 %v6242_v24, %v6199_v58 }
 0x84f   : > { %v6244_v48 = vpop.f32.mrf.mxu0 }
 0x850   : > { %v6245_v17 = vadd.f32 %v6244_v48, %v6201_v18 }
 0x888   : > { %v6281_v28 = vpop.f32.mrf.mxu1 }
 0x889   : > { %v6282_v8 = vadd.f32 %v6281_v28, %v6239_v13  ;;  %v6324_v61 = vpop.f32.mrf.mxu0 }
 0x88a   : > { %v6283_v57 = vpop.f32.mrf.mxu1 }
 0x88b   : > { %6895 = vst [vmem:[%s13101_s24 + $0x20] sm:$0xff] %v6282_v8  ;;  %v6284_v32 = vadd.f32 %v6283_v57, %v6241_v7  ;;  %v6326_v50 = vpop.f32.mrf.mxu0 }
 0x88c   : > { %v6285_v44 = vpop.f32.mrf.mxu1 }
 0x88d   : > { %6896 = vst [vmem:[%s13101_s24 + $0x28] sm:$0xff] %v6284_v32  ;;  %v6286_v31 = vadd.f32 %v6285_v44, %v6243_v26  ;;  %v6328_v4 = vpop.f32.mrf.mxu0 }
 0x88e   : > { %v6287_v42 = vpop.f32.mrf.mxu1 }
 0x88f   : > { %6899 = vst [vmem:[%s13101_s24 + $0x40] sm:$0xff] %v6286_v31  ;;  %v6288_v22 = vadd.f32 %v6287_v42, %v6245_v17  ;;  %v6330_v40 = vpop.f32.mrf.mxu0 }
 0x891   : > { %6900 = vst [vmem:[%s13101_s24 + $0x48] sm:$0xff] %v6288_v22 }
 0x8c8   : > { %v6367_v36 = vpop.f32.mrf.mxu1 }
 0x8c9   : > { %v6368_v39 = vadd.f32 %v6367_v36, %v6324_v61  ;;  %v6410_v23 = vpop.f32.mrf.mxu0 }
 0x8ca   : > { %v6369_v63 = vpop.f32.mrf.mxu1 }
 0x8cb   : > { %v6411_v55 = vadd.f32 %v6410_v23, %v6368_v39  ;;  %v6370_v14 = vadd.f32 %v6369_v63, %v6326_v50  ;;  %v6412_v62 = vpop.f32.mrf.mxu0 }
 0x8cc   : > { %v6371_v41 = vpop.f32.mrf.mxu1 }
 0x8cd   : > { %6897 = vst [vmem:[%s13101_s24 + $0x30] sm:$0xff] %v6411_v55  ;;  %v6413_v1 = vadd.f32 %v6412_v62, %v6370_v14  ;;  %v6372_v49 = vadd.f32 %v6371_v41, %v6328_v4  ;;  %v6414_v2 = vpop.f32.mrf.mxu0 }
 0x8ce   : > { %v6373_v19 = vpop.f32.mrf.mxu1 }
 0x8cf   : > { %6898 = vst [vmem:[%s13101_s24 + $0x38] sm:$0xff] %v6413_v1  ;;  %v6415_v47 = vadd.f32 %v6414_v2, %v6372_v49  ;;  %v6374_v56 = vadd.f32 %v6373_v19, %v6330_v40  ;;  %v6416_v10 = vpop.f32.mrf.mxu0 }
 0x8d1   : > { %6901 = vst [vmem:[%s13101_s24 + $0x50] sm:$0xff] %v6415_v47  ;;  %v6417_v12 = vadd.f32 %v6416_v10, %v6374_v56 }
 0x8d3   : > { %6902 = vst [vmem:[%s13101_s24 + $0x58] sm:$0xff] %v6417_v12 }
 0x908   : > { %v6839_v45 = vpop.f32.mrf.mxu1 }
 0x909   : > { %6903 = vst [vmem:[%s13101_s24 + $0x60] sm:$0xff] %v6839_v45  ;;  %v6882_v37 = vpop.f32.mrf.mxu0 }
 0x90a   : > { %6905 = vst [vmem:[%s13101_s24 + $0x70] sm:$0xff] %v6882_v37  ;;  %v6841_v16 = vpop.f32.mrf.mxu1 }
 0x90b   : > { %6904 = vst [vmem:[%s13101_s24 + $0x68] sm:$0xff] %v6841_v16  ;;  %v6884_v35 = vpop.f32.mrf.mxu0 }
 0x90c   : > { %6906 = vst [vmem:[%s13101_s24 + $0x78] sm:$0xff] %v6884_v35  ;;  %v6843_v27 = vpop.f32.mrf.mxu1 }
 0x90d   : > { %6907 = vst [vmem:[%s13101_s24 + $0x80] sm:$0xff] %v6843_v27  ;;  %v6886_v53 = vpop.f32.mrf.mxu0 }
 0x90e   : > { %6909 = vst [vmem:[%s13101_s24 + $0x90] sm:$0xff] %v6886_v53  ;;  %v6845_v9 = vpop.f32.mrf.mxu1 }
 0x90f   : > { %6908 = vst [vmem:[%s13101_s24 + $0x88] sm:$0xff] %v6845_v9  ;;  %v6888_v59 = vpop.f32.mrf.mxu0 }
 0x910   : > { %6910 = vst [vmem:[%s13101_s24 + $0x98] sm:$0xff] %v6888_v59 }
 0x911 PF: > { %s24_s29 = sadd.s32 1, %s9420_s29  }
 0x912   : > { %p21_p4 = scmp.ge.s32.totalorder %s24_s29, 4  }
 0x914   :  { %23 = sbr.rel (!%p21_p4) target bundleno = 1 (0x1), region = 130 }

</bundles_post_ra>
